<compile_context>
chip_gen: v5e
topology: v5e:2x2
jax: 0.10.0
libtpu: 0.0.40
codegen_flags: <defaults>
</compile_context>

<pallas_src>
import functools

import numpy as np
import jax
import jax.numpy as jnp
from jax.experimental import pallas as pl
from jax.experimental.pallas import tpu as pltpu

LRELU_SLOPE = 0.05


def _vmem_budget():
    """Per-generation (VMEM limit, target block bytes). Conservative default."""
    try:
        kind = jax.devices()[0].device_kind.lower()
    except Exception:
        kind = ""
    if "v2" in kind or "v3" in kind:
        return 12 * 1024 * 1024, 1 * 1024 * 1024
    if "v4" in kind or "v5" in kind or "v6" in kind:
        # 128 MiB VMEM per core: bigger blocks, deeper DMA overlap.
        return 100 * 1024 * 1024, 4 * 1024 * 1024
    # v7x (64 MiB / TC) or unknown: leave headroom for scratch + double buffers.
    return 48 * 1024 * 1024, 2 * 1024 * 1024


_VMEM_LIMIT, _BLOCK_BYTES = _vmem_budget()


# ----------------------------------------------------------------------------
# Pallas kernels
# ----------------------------------------------------------------------------
def _apply_act(acc, act):
    if act == "lrelu":
        acc = jnp.where(acc >= 0, acc, LRELU_SLOPE * acc)
    elif act == "sigmoid":
        acc = 1.0 / (1.0 + jnp.exp(-acc))
    return acc


def _mm_kernel(*refs, act, has_bias, has_a2, res_op):
    """acc = act((a [+ a2]) @ b + bias) [op residual]; matmul in bf16,
    accumulation / epilogue in f32, store in out dtype."""
    idx = 0
    a_ref = refs[idx]; idx += 1
    a2_ref = None
    if has_a2:
        a2_ref = refs[idx]; idx += 1
    b_ref = refs[idx]; idx += 1
    bias_ref = None
    if has_bias:
        bias_ref = refs[idx]; idx += 1
    res_ref = None
    if res_op is not None:
        res_ref = refs[idx]; idx += 1
    o_ref = refs[idx]

    a = a_ref[...]
    if has_a2:
        a = a.astype(jnp.float32) + a2_ref[...].astype(jnp.float32)
    a = a.astype(jnp.bfloat16)
    b = b_ref[...].astype(jnp.bfloat16)
    acc = jnp.dot(a, b, preferred_element_type=jnp.float32)
    if has_bias:
        acc = acc + bias_ref[...]
    acc = _apply_act(acc, act)
    if res_op == "add":
        acc = acc + res_ref[...].astype(jnp.float32)
    elif res_op == "mul":
        acc = acc * res_ref[...].astype(jnp.float32)
    o_ref[...] = acc.astype(o_ref.dtype)


def matmul_bias_act(a, b, bias=None, act="none", a2=None, res=None, res_op=None,
                    out_dtype=jnp.bfloat16):
    """Tiled act((a [+ a2]) @ b + bias) [op res], M and N grids (K one block).

    tile_m is auto-sized from a VMEM byte budget: with tiny K/N (1x1 convs,
    ESA) a fixed small tile makes the call pipeline-overhead-bound."""
    M, K = a.shape
    _, Nn = b.shape
    tn = Nn if Nn <= 2048 else 2048
    # bf16 bytes moved per M-row per step across the tm-tall blocks.
    row_bytes = 2 * K * (2 if a2 is not None else 1) \
        + 2 * tn * (2 if res is not None else 1)
    tm_budget = max(1024, (_BLOCK_BYTES // max(row_bytes, 1)) // 8 * 8)
    tm_budget = min(tm_budget, 32768)
    tm = M if M <= tm_budget else tm_budget
    grid = (pl.cdiv(M, tm), pl.cdiv(Nn, tn))

    in_specs = [pl.BlockSpec((tm, K), lambda i, j: (i, 0))]
    args = [a]
    if a2 is not None:
        in_specs.append(pl.BlockSpec((tm, K), lambda i, j: (i, 0)))
        args.append(a2)
    in_specs.append(pl.BlockSpec((K, tn), lambda i, j: (0, j)))
    args.append(b)
    if bias is not None:
        in_specs.append(pl.BlockSpec((1, tn), lambda i, j: (0, j)))
        args.append(bias.reshape(1, Nn).astype(jnp.float32))
    if res is not None:
        in_specs.append(pl.BlockSpec((tm, tn), lambda i, j: (i, j)))
        args.append(res)

    return pl.pallas_call(
        functools.partial(_mm_kernel, act=act, has_bias=bias is not None,
                          has_a2=a2 is not None,
                          res_op=res_op if res is not None else None),
        out_shape=jax.ShapeDtypeStruct((M, Nn), out_dtype),
        grid=grid,
        in_specs=in_specs,
        out_specs=pl.BlockSpec((tm, tn), lambda i, j: (i, j)),
        compiler_params=pltpu.CompilerParams(
            dimension_semantics=("parallel", "parallel"),
            vmem_limit_bytes=_VMEM_LIMIT),
    )(*args)


def _conv3x3_kernel(xc_ref, xh_ref, w_ref, b_ref, *rest, act, has_res):
    """Fused 3x3 same-conv, wide-N formulation.

    Inputs already carry the 3 W-taps in the channel dim (3C).  The weight is
    the tap-fused (3C, 3*Cp) matrix so ONE dot produces all three H-tap
    partials side by side; they are combined with row-offset slices (rows are
    8-aligned since W%8==0) and two small f32 concats covering the 2-row
    bottom halo.  No large operand concatenate, no per-tap weight pushes."""
    if has_res:
        res_ref, o_ref = rest
    else:
        (o_ref,) = rest
    L = xc_ref.shape[1]              # rows-per-step * W
    Wrow = xh_ref.shape[1] // 2      # image width W
    Cout = b_ref.shape[1]
    Cp = w_ref.shape[1] // 3         # Cout padded to 32 (lane-aligned groups)

    w = w_ref[...]                                                  # (3C, 3Cp)
    yc = jnp.dot(xc_ref[0], w, preferred_element_type=jnp.float32)  # (L, 3Cp)
    yh = jnp.dot(xh_ref[0], w, preferred_element_type=jnp.float32)  # (2W, 3Cp)

    acc = yc[:, :Cp]
    acc = acc + jnp.concatenate(
        [yc[Wrow:, Cp:2 * Cp], yh[:Wrow, Cp:2 * Cp]], axis=0)
    acc = acc + jnp.concatenate(
        [yc[2 * Wrow:, 2 * Cp:3 * Cp], yh[:2 * Wrow, 2 * Cp:3 * Cp]], axis=0)

    acc = acc[:, :Cout] + b_ref[...]
    acc = _apply_act(acc, act)
    if has_res:
        acc = acc + res_ref[0].astype(jnp.float32)
    o_ref[0] = acc.astype(o_ref.dtype)
    # TODO(synk): lane-dense packed store (L,Cout)->(L/4,4*Cout) once the
    # Mosaic reshape path is validated for these shapes.


# ----------------------------------------------------------------------------
# Layer wrappers (glue in plain JAX, compute in the kernels above)
# ----------------------------------------------------------------------------
def _im2col(x, k, stride, padding):
    """Cold-path im2col (ESA stride-2 conv, tiny pooled conv)."""
    N, H, W, C = x.shape
    if padding:
        x = jnp.pad(x, ((0, 0), (padding, padding), (padding, padding), (0, 0)))
    Ho = (H + 2 * padding - k) // stride + 1
    Wo = (W + 2 * padding - k) // stride + 1
    cols = []
    for i in range(k):
        for j in range(k):
            cols.append(x[:, i:i + stride * (Ho - 1) + 1:stride,
                          j:j + stride * (Wo - 1) + 1:stride, :])
    patches = jnp.concatenate(cols, axis=-1)      # (N, Ho, Wo, k*k*C)
    return patches.reshape(N * Ho * Wo, k * k * C), (N, Ho, Wo)


def conv_generic(x, p, stride=1, padding=0, act="none", res=None):
    patches, (N, Ho, Wo) = _im2col(x, p["k"], stride, padding)
    res2 = None
    if res is not None:
        res2 = res.reshape(N * Ho * Wo, p["out"]).astype(jnp.bfloat16)
    y = matmul_bias_act(patches.astype(jnp.bfloat16), p["w"], p["b"], act=act,
                        res=res2, res_op="add" if res is not None else None)
    return y.reshape(N, Ho, Wo, p["out"])


def conv1x1(x, p, act="none"):
    N, H, W, C = x.shape
    y = matmul_bias_act(x.reshape(N * H * W, C), p["w"], p["b"], act=act)
    return y.reshape(N, H, W, p["out"])


def conv3x3_same(x, p, act="none", res=None):
    """3x3, stride 1, pad 1; optional fused residual add after the activation."""
    assert p["k"] == 3
    N, H, W, C = x.shape
    Cout = p["out"]
    if W % 8 != 0 or H < 4:
        # tiny / awkward shapes (ESA pooled maps) -> cold-path generic conv
        return conv_generic(x, p, stride=1, padding=1, act=act, res=res)

    Hp = H + 2
    # W-only im2col (3C channels, bf16) + explicit zero rows for H padding.
    # TODO(synk): build the 3C operand in-kernel from a raw (trh+2, W+2, C)
    # halo block to cut the HBM expansion (~2x traffic on v5e/v6e).
    xpw = jnp.pad(x, ((0, 0), (0, 0), (1, 1), (0, 0)))
    xwc = jnp.concatenate([xpw[:, :, j:j + W, :] for j in range(3)], axis=-1)
    xwc = jnp.pad(xwc, ((0, 0), (1, 1), (0, 0), (0, 0)))
    xwc = xwc.reshape(N, Hp * W, 3 * C).astype(jnp.bfloat16)

    # rows of output per grid step: sized from the per-generation byte budget,
    # even, >= 4, and capped so that N * n_i >= ~4 (both v7x TCs get work).
    bytes_per_row = W * 3 * C * 2
    trh = (_BLOCK_BYTES // max(bytes_per_row, 1)) // 2 * 2
    min_steps = -(-4 // N)                 # ceil(4 / N)
    cap = -(-H // min_steps)
    cap = cap + (cap % 2)
    trh = max(4, min(max(trh, 4), cap, H + (H % 2)))
    n_i = pl.cdiv(H, trh)
    L = trh * W
    jmax = (Hp * W - 1) // (2 * W)

    # Wide-N tap-fused weights: (3C, 3*Cp), taps side by side, Cout padded to
    # a 32-lane-aligned group so the in-kernel lane slices are 32-aligned.
    Cp = -(-Cout // 32) * 32
    w9 = p["w"].reshape(3, 3 * C, Cout)
    if Cp != Cout:
        w9 = jnp.pad(w9, ((0, 0), (0, 0), (0, Cp - Cout)))
    w_wide = jnp.transpose(w9, (1, 0, 2)).reshape(3 * C, 3 * Cp)
    b2 = p["b"].reshape(1, Cout).astype(jnp.float32)

    in_specs = [
        pl.BlockSpec((1, L, 3 * C), lambda n, i: (n, i, 0)),
        pl.BlockSpec((1, 2 * W, 3 * C),
                     lambda n, i: (n, jnp.minimum((i + 1) * (trh // 2), jmax), 0)),
        pl.BlockSpec((3 * C, 3 * Cp), lambda n, i: (0, 0)),
        pl.BlockSpec((1, Cout), lambda n, i: (0, 0)),
    ]
    args = [xwc, xwc, w_wide, b2]
    if res is not None:
        in_specs.append(pl.BlockSpec((1, L, Cout), lambda n, i: (n, i, 0)))
        args.append(res.reshape(N, H * W, Cout).astype(jnp.bfloat16))

    out = pl.pallas_call(
        functools.partial(_conv3x3_kernel, act=act, has_res=res is not None),
        out_shape=jax.ShapeDtypeStruct((N, H * W, Cout), jnp.bfloat16),
        grid=(N, n_i),
        in_specs=in_specs,
        out_specs=pl.BlockSpec((1, L, Cout), lambda n, i: (n, i, 0)),
        compiler_params=pltpu.CompilerParams(
            dimension_semantics=("parallel", "parallel"),
            vmem_limit_bytes=_VMEM_LIMIT),
    )(*args)
    return out.reshape(N, H, W, Cout)


def maxpool2d(x, k, stride):
    # Running max over shifted strided slices (no 49x stack, no giant block).
    N, H, W, C = x.shape
    Ho = (H - k) // stride + 1
    Wo = (W - k) // stride + 1
    out = None
    for i in range(k):
        for j in range(k):
            win = x[:, i:i + stride * (Ho - 1) + 1:stride,
                    j:j + stride * (Wo - 1) + 1:stride, :]
            out = win if out is None else jnp.maximum(out, win)
    return out


def _bilinear_matrix(out_size, in_size):
    # F.interpolate(mode='bilinear', align_corners=False) as a linear map.
    scale = in_size / out_size
    idx = np.arange(out_size)
    src = np.maximum((idx + 0.5) * scale - 0.5, 0.0)
    i0 = np.minimum(np.floor(src).astype(np.int64), in_size - 1)
    i1 = np.minimum(i0 + 1, in_size - 1)
    lam = (src - i0).astype(np.float32)
    M = np.zeros((out_size, in_size), np.float32)
    M[idx, i0] += (1.0 - lam)
    M[idx, i1] += lam
    return jnp.asarray(M)


def bilinear_resize(x, out_h, out_w):
    N, H, W, C = x.shape
    Mh = _bilinear_matrix(out_h, H)
    Mw = _bilinear_matrix(out_w, W)
    # interpolate along H: (out_h, H) @ (H, N*W*C)
    t = jnp.transpose(x, (1, 0, 2, 3)).reshape(H, N * W * C)
    t = matmul_bias_act(Mh, t)
    t = t.reshape(out_h, N, W, C).transpose(1, 0, 2, 3)       # (N, out_h, W, C)
    # interpolate along W
    t = jnp.transpose(t, (2, 0, 1, 3)).reshape(W, N * out_h * C)
    t = matmul_bias_act(Mw, t)
    t = t.reshape(out_w, N, out_h, C).transpose(1, 2, 0, 3)   # (N, out_h, out_w, C)
    return t


def pixel_shuffle(x, r):
    N, H, W, Crr = x.shape
    C = Crr // (r * r)
    x = x.reshape(N, H, W, C, r, r)
    x = jnp.transpose(x, (0, 1, 4, 2, 5, 3))
    return x.reshape(N, H * r, W * r, C)


# ----------------------------------------------------------------------------
# Model forward
# ----------------------------------------------------------------------------
def esa_forward(p, x):
    N, H, W, C = x.shape
    c1_ = conv1x1(x, p["conv1"])
    c1 = conv_generic(c1_, p["conv2"], stride=2, padding=0)   # 3x3 s2 p0 (small)
    v_max = maxpool2d(c1, 7, 3)
    c3 = conv_generic(v_max, p["conv3"], stride=1, padding=1) # tiny pooled map
    c3 = bilinear_resize(c3, H, W)
    cf = conv1x1(c1_, p["conv_f"])
    M = N * H * W
    f = p["conv1"]["out"]
    # fused: m = sigmoid(conv4(c3 + cf)); return x * m
    y = matmul_bias_act(c3.reshape(M, f), p["conv4"]["w"], p["conv4"]["b"],
                        act="sigmoid", a2=cf.reshape(M, f),
                        res=x.reshape(M, C), res_op="mul")
    return y.reshape(N, H, W, C)


def rlfb_forward(p, x):
    out = conv3x3_same(x, p["c1_r"], act="lrelu")
    out = conv3x3_same(out, p["c2_r"], act="lrelu")
    out = conv3x3_same(out, p["c3_r"], act="lrelu", res=x)    # fused + x
    out = conv1x1(out, p["c5"])
    return esa_forward(p["esa"], out)


def rlfn_forward(params, x_nchw, upscale=3):
    x = jnp.transpose(x_nchw, (0, 2, 3, 1)).astype(jnp.bfloat16)  # NCHW -> NHWC
    feat = conv3x3_same(x, params["conv_1"])
    b = feat
    for name in ("block_1", "block_2", "block_3"):
        b = rlfb_forward(params[name], b)
    low = conv3x3_same(b, params["conv_2"], res=feat)         # fused + feat
    up = conv3x3_same(low, params["up_conv"])
    out = pixel_shuffle(up, upscale)
    # TODO(synk): fuse pixel_shuffle + NHWC->NCHW + f32 cast into the up_conv
    # epilogue (currently one XLA layout pass on the final tensor).
    return jnp.transpose(out, (0, 3, 1, 2)).astype(jnp.float32)   # NHWC -> NCHW


# ----------------------------------------------------------------------------
# Deterministic parameter init (synthetic; shapes follow the PyTorch module)
# ----------------------------------------------------------------------------
def _init_conv(key, out_c, in_c, k):
    kw_, kb_ = jax.random.split(key)
    fan_in = in_c * k * k
    w = jax.random.normal(kw_, (out_c, in_c, k, k), jnp.float32) / np.sqrt(fan_in)
    b = 0.01 * jax.random.normal(kb_, (out_c,), jnp.float32)
    # OIHW -> (k*k*in_c, out_c) (tap-major, channel-minor), bf16 weights.
    w2 = jnp.transpose(w, (2, 3, 1, 0)).reshape(k * k * in_c, out_c)
    return {"w": w2.astype(jnp.bfloat16), "b": b, "k": k, "out": out_c}


def init_params(key, in_c=3, out_c=3, fc=30, mc=32, esa_c=16, upscale=3):
    keys = iter(jax.random.split(key, 64))

    def nc(o, i, k):
        return _init_conv(next(keys), o, i, k)

    def rlfb():
        return {
            "c1_r": nc(mc, fc, 3),
            "c2_r": nc(mc, mc, 3),
            "c3_r": nc(fc, mc, 3),
            "c5": nc(fc, fc, 1),
            "esa": {
                "conv1": nc(esa_c, fc, 1),
                "conv_f": nc(esa_c, esa_c, 1),
                "conv2": nc(esa_c, esa_c, 3),
                "conv3": nc(esa_c, esa_c, 3),
                "conv4": nc(fc, esa_c, 1),
            },
        }

    return {
        "conv_1": nc(fc, in_c, 3),
        "block_1": rlfb(),
        "block_2": rlfb(),
        "block_3": rlfb(),
        "conv_2": nc(fc, fc, 3),
        "up_conv": nc(out_c * upscale * upscale, fc, 3),
    }


if __name__ == "__main__":
    key = jax.random.PRNGKey(0)
    pkey, xkey = jax.random.split(key)
    params = init_params(pkey)
    x = jax.random.normal(xkey, (2, 3, 16, 16), jnp.float32)  # NCHW, like PyTorch
    fwd = jax.jit(lambda inp: rlfn_forward(params, inp, upscale=3))
    out = jax.block_until_ready(fwd(x))
    assert out.shape == (2, 3, 48, 48), out.shape
    assert jnp.all(jnp.isfinite(out))
    print("KERNEL_OK")
</pallas_src>

<mosaic_0001>
module attributes {stable_mosaic.version = 11 : i64} {
  func.func @_conv3x3_kernel(%arg0: i32, %arg1: i32, %arg2: memref<1x128x9xbf16, #tpu.memory_space<vmem>>, %arg3: memref<1x32x9xbf16, #tpu.memory_space<vmem>>, %arg4: memref<9x96xbf16, #tpu.memory_space<vmem>>, %arg5: memref<1x30xf32, #tpu.memory_space<vmem>>, %arg6: memref<1x128x30xbf16, #tpu.memory_space<vmem>>) attributes {dimension_semantics = [#tpu.dimension_semantics<parallel>, #tpu.dimension_semantics<parallel>], iteration_bounds = array<i64: 2, 2>, scalar_prefetch = 0 : i64, scratch_operands = 0 : i64, tpu.core_type = #tpu.core_type<tc>, window_params = [{transform_indices = @transform_0, window_bounds = array<i64: 1, 128, 9>}, {transform_indices = @transform_1, window_bounds = array<i64: 1, 32, 9>}, {pipeline_mode = #tpu.pipeline_mode<synchronous>, transform_indices = @transform_2, window_bounds = array<i64: 9, 96>}, {pipeline_mode = #tpu.pipeline_mode<synchronous>, transform_indices = @transform_3, window_bounds = array<i64: 1, 30>}, {transform_indices = @transform_4, window_bounds = array<i64: 1, 128, 30>}]} {
    %c0 = arith.constant 0 : index
    %c0_0 = arith.constant 0 : index
    %0 = vector.load %arg4[%c0, %c0_0] : memref<9x96xbf16, #tpu.memory_space<vmem>>, vector<9x96xbf16>
    %c0_1 = arith.constant 0 : index
    %c0_2 = arith.constant 0 : index
    %c0_3 = arith.constant 0 : index
    %1 = vector.load %arg2[%c0_1, %c0_2, %c0_3] : memref<1x128x9xbf16, #tpu.memory_space<vmem>>, vector<1x128x9xbf16>
    %2 = vector.shape_cast %1 : vector<1x128x9xbf16> to vector<128x9xbf16>
    %cst = arith.constant dense<0.000000e+00> : vector<128x96xf32>
    %3 = tpu.matmul %2, %0, %cst {dimension_numbers = #tpu.dot_dimension_numbers<[1], [0], [0], [1], [0, 0, 1, 1], [], []>} : vector<128x9xbf16>, vector<9x96xbf16>, vector<128x96xf32> -> vector<128x96xf32>
    %c0_4 = arith.constant 0 : index
    %c0_5 = arith.constant 0 : index
    %c0_6 = arith.constant 0 : index
    %4 = vector.load %arg3[%c0_4, %c0_5, %c0_6] : memref<1x32x9xbf16, #tpu.memory_space<vmem>>, vector<1x32x9xbf16>
    %5 = vector.shape_cast %4 : vector<1x32x9xbf16> to vector<32x9xbf16>
    %cst_7 = arith.constant dense<0.000000e+00> : vector<32x96xf32>
    %6 = tpu.matmul %5, %0, %cst_7 {dimension_numbers = #tpu.dot_dimension_numbers<[1], [0], [0], [1], [0, 0, 1, 1], [], []>} : vector<32x9xbf16>, vector<9x96xbf16>, vector<32x96xf32> -> vector<32x96xf32>
    %7 = vector.extract_strided_slice %3 {offsets = [0, 0], sizes = [128, 32], strides = [1, 1]} : vector<128x96xf32> to vector<128x32xf32>
    %8 = vector.extract_strided_slice %3 {offsets = [16, 32], sizes = [112, 32], strides = [1, 1]} : vector<128x96xf32> to vector<112x32xf32>
    %9 = vector.extract_strided_slice %6 {offsets = [0, 32], sizes = [16, 32], strides = [1, 1]} : vector<32x96xf32> to vector<16x32xf32>
    %10 = tpu.concatenate %8, %9 in 0 : vector<112x32xf32>, vector<16x32xf32> -> vector<128x32xf32>
    %11 = arith.addf %7, %10 : vector<128x32xf32>
    %12 = vector.extract_strided_slice %3 {offsets = [32, 64], sizes = [96, 32], strides = [1, 1]} : vector<128x96xf32> to vector<96x32xf32>
    %13 = vector.extract_strided_slice %6 {offsets = [0, 64], sizes = [32, 32], strides = [1, 1]} : vector<32x96xf32> to vector<32x32xf32>
    %14 = tpu.concatenate %12, %13 in 0 : vector<96x32xf32>, vector<32x32xf32> -> vector<128x32xf32>
    %15 = arith.addf %11, %14 : vector<128x32xf32>
    %16 = vector.extract_strided_slice %15 {offsets = [0, 0], sizes = [128, 30], strides = [1, 1]} : vector<128x32xf32> to vector<128x30xf32>
    %c0_8 = arith.constant 0 : index
    %c0_9 = arith.constant 0 : index
    %17 = vector.load %arg5[%c0_8, %c0_9] : memref<1x30xf32, #tpu.memory_space<vmem>>, vector<1x30xf32>
    %18 = vector.broadcast %17 : vector<1x30xf32> to vector<128x30xf32>
    %19 = arith.addf %16, %18 : vector<128x30xf32>
    %20 = arith.truncf %19 : vector<128x30xf32> to vector<128x30xbf16>
    %c0_10 = arith.constant 0 : index
    %c0_11 = arith.constant 0 : index
    %c0_12 = arith.constant 0 : index
    %21 = vector.load %arg6[%c0_10, %c0_11, %c0_12] : memref<1x128x30xbf16, #tpu.memory_space<vmem>>, vector<1x128x30xbf16>
    %22 = vector.shape_cast %21 : vector<1x128x30xbf16> to vector<128x30xbf16>
    %23 = vector.shape_cast %20 : vector<128x30xbf16> to vector<1x128x30xbf16>
    tpu.vector_store %arg6[%c0_10, %c0_11, %c0_12], %23 {strides = array<i32>} : memref<1x128x30xbf16, #tpu.memory_space<vmem>>, vector<1x128x30xbf16>,
    return
  }
  func.func @transform_0(%arg0: i32, %arg1: i32) -> (i32, i32, i32) {
    %c0_i32 = arith.constant 0 : i32
    %c0_i32_0 = arith.constant 0 : i32
    return %arg0, %arg1, %c0_i32 : i32, i32, i32
  }
  func.func @transform_1(%arg0: i32, %arg1: i32) -> (i32, i32, i32) {
    %c1_i32 = arith.constant 1 : i32
    %0 = arith.addi %arg1, %c1_i32 : i32
    %c4_i32 = arith.constant 4 : i32
    %1 = arith.muli %0, %c4_i32 : i32
    %c8_i32 = arith.constant 8 : i32
    %2 = arith.minsi %1, %c8_i32 : i32
    %c0_i32 = arith.constant 0 : i32
    %c0_i32_0 = arith.constant 0 : i32
    return %arg0, %2, %c0_i32 : i32, i32, i32
  }
  func.func @transform_2(%arg0: i32, %arg1: i32) -> (i32, i32) {
    %c0_i32 = arith.constant 0 : i32
    %c0_i32_0 = arith.constant 0 : i32
    %c0_i32_1 = arith.constant 0 : i32
    return %c0_i32, %c0_i32_0 : i32, i32
  }
  func.func @transform_3(%arg0: i32, %arg1: i32) -> (i32, i32) {
    %c0_i32 = arith.constant 0 : i32
    %c0_i32_0 = arith.constant 0 : i32
    %c0_i32_1 = arith.constant 0 : i32
    return %c0_i32, %c0_i32_0 : i32, i32
  }
  func.func @transform_4(%arg0: i32, %arg1: i32) -> (i32, i32, i32) {
    %c0_i32 = arith.constant 0 : i32
    %c0_i32_0 = arith.constant 0 : i32
    return %arg0, %arg1, %c0_i32 : i32, i32, i32
  }
}

module attributes {stable_mosaic.version = 11 : i64} {
  func.func @_conv3x3_kernel(%arg0: i32, %arg1: i32, %arg2: memref<1x128x90xbf16, #tpu.memory_space<vmem>>, %arg3: memref<1x32x90xbf16, #tpu.memory_space<vmem>>, %arg4: memref<90x96xbf16, #tpu.memory_space<vmem>>, %arg5: memref<1x32xf32, #tpu.memory_space<vmem>>, %arg6: memref<1x128x32xbf16, #tpu.memory_space<vmem>>) attributes {dimension_semantics = [#tpu.dimension_semantics<parallel>, #tpu.dimension_semantics<parallel>], iteration_bounds = array<i64: 2, 2>, scalar_prefetch = 0 : i64, scratch_operands = 0 : i64, tpu.core_type = #tpu.core_type<tc>, window_params = [{transform_indices = @transform_0, window_bounds = array<i64: 1, 128, 90>}, {transform_indices = @transform_1, window_bounds = array<i64: 1, 32, 90>}, {pipeline_mode = #tpu.pipeline_mode<synchronous>, transform_indices = @transform_2, window_bounds = array<i64: 90, 96>}, {pipeline_mode = #tpu.pipeline_mode<synchronous>, transform_indices = @transform_3, window_bounds = array<i64: 1, 32>}, {transform_indices = @transform_4, window_bounds = array<i64: 1, 128, 32>}]} {
    %c0 = arith.constant 0 : index
    %c0_0 = arith.constant 0 : index
    %0 = vector.load %arg4[%c0, %c0_0] : memref<90x96xbf16, #tpu.memory_space<vmem>>, vector<90x96xbf16>
    %c0_1 = arith.constant 0 : index
    %c0_2 = arith.constant 0 : index
    %c0_3 = arith.constant 0 : index
    %1 = vector.load %arg2[%c0_1, %c0_2, %c0_3] : memref<1x128x90xbf16, #tpu.memory_space<vmem>>, vector<1x128x90xbf16>
    %2 = vector.shape_cast %1 : vector<1x128x90xbf16> to vector<128x90xbf16>
    %cst = arith.constant dense<0.000000e+00> : vector<128x96xf32>
    %3 = tpu.matmul %2, %0, %cst {dimension_numbers = #tpu.dot_dimension_numbers<[1], [0], [0], [1], [0, 0, 1, 1], [], []>} : vector<128x90xbf16>, vector<90x96xbf16>, vector<128x96xf32> -> vector<128x96xf32>
    %c0_4 = arith.constant 0 : index
    %c0_5 = arith.constant 0 : index
    %c0_6 = arith.constant 0 : index
    %4 = vector.load %arg3[%c0_4, %c0_5, %c0_6] : memref<1x32x90xbf16, #tpu.memory_space<vmem>>, vector<1x32x90xbf16>
    %5 = vector.shape_cast %4 : vector<1x32x90xbf16> to vector<32x90xbf16>
    %cst_7 = arith.constant dense<0.000000e+00> : vector<32x96xf32>
    %6 = tpu.matmul %5, %0, %cst_7 {dimension_numbers = #tpu.dot_dimension_numbers<[1], [0], [0], [1], [0, 0, 1, 1], [], []>} : vector<32x90xbf16>, vector<90x96xbf16>, vector<32x96xf32> -> vector<32x96xf32>
    %7 = vector.extract_strided_slice %3 {offsets = [0, 0], sizes = [128, 32], strides = [1, 1]} : vector<128x96xf32> to vector<128x32xf32>
    %8 = vector.extract_strided_slice %3 {offsets = [16, 32], sizes = [112, 32], strides = [1, 1]} : vector<128x96xf32> to vector<112x32xf32>
    %9 = vector.extract_strided_slice %6 {offsets = [0, 32], sizes = [16, 32], strides = [1, 1]} : vector<32x96xf32> to vector<16x32xf32>
    %10 = tpu.concatenate %8, %9 in 0 : vector<112x32xf32>, vector<16x32xf32> -> vector<128x32xf32>
    %11 = arith.addf %7, %10 : vector<128x32xf32>
    %12 = vector.extract_strided_slice %3 {offsets = [32, 64], sizes = [96, 32], strides = [1, 1]} : vector<128x96xf32> to vector<96x32xf32>
    %13 = vector.extract_strided_slice %6 {offsets = [0, 64], sizes = [32, 32], strides = [1, 1]} : vector<32x96xf32> to vector<32x32xf32>
    %14 = tpu.concatenate %12, %13 in 0 : vector<96x32xf32>, vector<32x32xf32> -> vector<128x32xf32>
    %15 = arith.addf %11, %14 : vector<128x32xf32>
    %c0_8 = arith.constant 0 : index
    %c0_9 = arith.constant 0 : index
    %16 = vector.load %arg5[%c0_8, %c0_9] : memref<1x32xf32, #tpu.memory_space<vmem>>, vector<1x32xf32>
    %17 = vector.broadcast %16 : vector<1x32xf32> to vector<128x32xf32>
    %18 = arith.addf %15, %17 : vector<128x32xf32>
    %cst_10 = arith.constant 0.000000e+00 : f32
    %19 = vector.broadcast %cst_10 : f32 to vector<128x32xf32>
    %20 = arith.cmpf oge, %18, %19 : vector<128x32xf32>
    %cst_11 = arith.constant 5.000000e-02 : f32
    %21 = vector.broadcast %cst_11 : f32 to vector<128x32xf32>
    %22 = arith.mulf %21, %18 : vector<128x32xf32>
    %23 = arith.select %20, %18, %22 : vector<128x32xi1>, vector<128x32xf32>
    %24 = arith.truncf %23 : vector<128x32xf32> to vector<128x32xbf16>
    %c0_12 = arith.constant 0 : index
    %c0_13 = arith.constant 0 : index
    %c0_14 = arith.constant 0 : index
    %25 = vector.load %arg6[%c0_12, %c0_13, %c0_14] : memref<1x128x32xbf16, #tpu.memory_space<vmem>>, vector<1x128x32xbf16>
    %26 = vector.shape_cast %25 : vector<1x128x32xbf16> to vector<128x32xbf16>
    %27 = vector.shape_cast %24 : vector<128x32xbf16> to vector<1x128x32xbf16>
    tpu.vector_store %arg6[%c0_12, %c0_13, %c0_14], %27 {strides = array<i32>} : memref<1x128x32xbf16, #tpu.memory_space<vmem>>, vector<1x128x32xbf16>,
    return
  }
  func.func @transform_0(%arg0: i32, %arg1: i32) -> (i32, i32, i32) {
    %c0_i32 = arith.constant 0 : i32
    %c0_i32_0 = arith.constant 0 : i32
    return %arg0, %arg1, %c0_i32 : i32, i32, i32
  }
  func.func @transform_1(%arg0: i32, %arg1: i32) -> (i32, i32, i32) {
    %c1_i32 = arith.constant 1 : i32
    %0 = arith.addi %arg1, %c1_i32 : i32
    %c4_i32 = arith.constant 4 : i32
    %1 = arith.muli %0, %c4_i32 : i32
    %c8_i32 = arith.constant 8 : i32
    %2 = arith.minsi %1, %c8_i32 : i32
    %c0_i32 = arith.constant 0 : i32
    %c0_i32_0 = arith.constant 0 : i32
    return %arg0, %2, %c0_i32 : i32, i32, i32
  }
  func.func @transform_2(%arg0: i32, %arg1: i32) -> (i32, i32) {
    %c0_i32 = arith.constant 0 : i32
    %c0_i32_0 = arith.constant 0 : i32
    %c0_i32_1 = arith.constant 0 : i32
    return %c0_i32, %c0_i32_0 : i32, i32
  }
  func.func @transform_3(%arg0: i32, %arg1: i32) -> (i32, i32) {
    %c0_i32 = arith.constant 0 : i32
    %c0_i32_0 = arith.constant 0 : i32
    %c0_i32_1 = arith.constant 0 : i32
    return %c0_i32, %c0_i32_0 : i32, i32
  }
  func.func @transform_4(%arg0: i32, %arg1: i32) -> (i32, i32, i32) {
    %c0_i32 = arith.constant 0 : i32
    %c0_i32_0 = arith.constant 0 : i32
    return %arg0, %arg1, %c0_i32 : i32, i32, i32
  }
}

module attributes {stable_mosaic.version = 11 : i64} {
  func.func @_conv3x3_kernel(%arg0: i32, %arg1: i32, %arg2: memref<1x128x96xbf16, #tpu.memory_space<vmem>>, %arg3: memref<1x32x96xbf16, #tpu.memory_space<vmem>>, %arg4: memref<96x96xbf16, #tpu.memory_space<vmem>>, %arg5: memref<1x32xf32, #tpu.memory_space<vmem>>, %arg6: memref<1x128x32xbf16, #tpu.memory_space<vmem>>) attributes {dimension_semantics = [#tpu.dimension_semantics<parallel>, #tpu.dimension_semantics<parallel>], iteration_bounds = array<i64: 2, 2>, scalar_prefetch = 0 : i64, scratch_operands = 0 : i64, tpu.core_type = #tpu.core_type<tc>, window_params = [{transform_indices = @transform_0, window_bounds = array<i64: 1, 128, 96>}, {transform_indices = @transform_1, window_bounds = array<i64: 1, 32, 96>}, {pipeline_mode = #tpu.pipeline_mode<synchronous>, transform_indices = @transform_2, window_bounds = array<i64: 96, 96>}, {pipeline_mode = #tpu.pipeline_mode<synchronous>, transform_indices = @transform_3, window_bounds = array<i64: 1, 32>}, {transform_indices = @transform_4, window_bounds = array<i64: 1, 128, 32>}]} {
    %c0 = arith.constant 0 : index
    %c0_0 = arith.constant 0 : index
    %0 = vector.load %arg4[%c0, %c0_0] : memref<96x96xbf16, #tpu.memory_space<vmem>>, vector<96x96xbf16>
    %c0_1 = arith.constant 0 : index
    %c0_2 = arith.constant 0 : index
    %c0_3 = arith.constant 0 : index
    %1 = vector.load %arg2[%c0_1, %c0_2, %c0_3] : memref<1x128x96xbf16, #tpu.memory_space<vmem>>, vector<1x128x96xbf16>
    %2 = vector.shape_cast %1 : vector<1x128x96xbf16> to vector<128x96xbf16>
    %cst = arith.constant dense<0.000000e+00> : vector<128x96xf32>
    %3 = tpu.matmul %2, %0, %cst {dimension_numbers = #tpu.dot_dimension_numbers<[1], [0], [0], [1], [0, 0, 1, 1], [], []>} : vector<128x96xbf16>, vector<96x96xbf16>, vector<128x96xf32> -> vector<128x96xf32>
    %c0_4 = arith.constant 0 : index
    %c0_5 = arith.constant 0 : index
    %c0_6 = arith.constant 0 : index
    %4 = vector.load %arg3[%c0_4, %c0_5, %c0_6] : memref<1x32x96xbf16, #tpu.memory_space<vmem>>, vector<1x32x96xbf16>
    %5 = vector.shape_cast %4 : vector<1x32x96xbf16> to vector<32x96xbf16>
    %cst_7 = arith.constant dense<0.000000e+00> : vector<32x96xf32>
    %6 = tpu.matmul %5, %0, %cst_7 {dimension_numbers = #tpu.dot_dimension_numbers<[1], [0], [0], [1], [0, 0, 1, 1], [], []>} : vector<32x96xbf16>, vector<96x96xbf16>, vector<32x96xf32> -> vector<32x96xf32>
    %7 = vector.extract_strided_slice %3 {offsets = [0, 0], sizes = [128, 32], strides = [1, 1]} : vector<128x96xf32> to vector<128x32xf32>
    %8 = vector.extract_strided_slice %3 {offsets = [16, 32], sizes = [112, 32], strides = [1, 1]} : vector<128x96xf32> to vector<112x32xf32>
    %9 = vector.extract_strided_slice %6 {offsets = [0, 32], sizes = [16, 32], strides = [1, 1]} : vector<32x96xf32> to vector<16x32xf32>
    %10 = tpu.concatenate %8, %9 in 0 : vector<112x32xf32>, vector<16x32xf32> -> vector<128x32xf32>
    %11 = arith.addf %7, %10 : vector<128x32xf32>
    %12 = vector.extract_strided_slice %3 {offsets = [32, 64], sizes = [96, 32], strides = [1, 1]} : vector<128x96xf32> to vector<96x32xf32>
    %13 = vector.extract_strided_slice %6 {offsets = [0, 64], sizes = [32, 32], strides = [1, 1]} : vector<32x96xf32> to vector<32x32xf32>
    %14 = tpu.concatenate %12, %13 in 0 : vector<96x32xf32>, vector<32x32xf32> -> vector<128x32xf32>
    %15 = arith.addf %11, %14 : vector<128x32xf32>
    %c0_8 = arith.constant 0 : index
    %c0_9 = arith.constant 0 : index
    %16 = vector.load %arg5[%c0_8, %c0_9] : memref<1x32xf32, #tpu.memory_space<vmem>>, vector<1x32xf32>
    %17 = vector.broadcast %16 : vector<1x32xf32> to vector<128x32xf32>
    %18 = arith.addf %15, %17 : vector<128x32xf32>
    %cst_10 = arith.constant 0.000000e+00 : f32
    %19 = vector.broadcast %cst_10 : f32 to vector<128x32xf32>
    %20 = arith.cmpf oge, %18, %19 : vector<128x32xf32>
    %cst_11 = arith.constant 5.000000e-02 : f32
    %21 = vector.broadcast %cst_11 : f32 to vector<128x32xf32>
    %22 = arith.mulf %21, %18 : vector<128x32xf32>
    %23 = arith.select %20, %18, %22 : vector<128x32xi1>, vector<128x32xf32>
    %24 = arith.truncf %23 : vector<128x32xf32> to vector<128x32xbf16>
    %c0_12 = arith.constant 0 : index
    %c0_13 = arith.constant 0 : index
    %c0_14 = arith.constant 0 : index
    %25 = vector.load %arg6[%c0_12, %c0_13, %c0_14] : memref<1x128x32xbf16, #tpu.memory_space<vmem>>, vector<1x128x32xbf16>
    %26 = vector.shape_cast %25 : vector<1x128x32xbf16> to vector<128x32xbf16>
    %27 = vector.shape_cast %24 : vector<128x32xbf16> to vector<1x128x32xbf16>
    tpu.vector_store %arg6[%c0_12, %c0_13, %c0_14], %27 {strides = array<i32>} : memref<1x128x32xbf16, #tpu.memory_space<vmem>>, vector<1x128x32xbf16>,
    return
  }
  func.func @transform_0(%arg0: i32, %arg1: i32) -> (i32, i32, i32) {
    %c0_i32 = arith.constant 0 : i32
    %c0_i32_0 = arith.constant 0 : i32
    return %arg0, %arg1, %c0_i32 : i32, i32, i32
  }
  func.func @transform_1(%arg0: i32, %arg1: i32) -> (i32, i32, i32) {
    %c1_i32 = arith.constant 1 : i32
    %0 = arith.addi %arg1, %c1_i32 : i32
    %c4_i32 = arith.constant 4 : i32
    %1 = arith.muli %0, %c4_i32 : i32
    %c8_i32 = arith.constant 8 : i32
    %2 = arith.minsi %1, %c8_i32 : i32
    %c0_i32 = arith.constant 0 : i32
    %c0_i32_0 = arith.constant 0 : i32
    return %arg0, %2, %c0_i32 : i32, i32, i32
  }
  func.func @transform_2(%arg0: i32, %arg1: i32) -> (i32, i32) {
    %c0_i32 = arith.constant 0 : i32
    %c0_i32_0 = arith.constant 0 : i32
    %c0_i32_1 = arith.constant 0 : i32
    return %c0_i32, %c0_i32_0 : i32, i32
  }
  func.func @transform_3(%arg0: i32, %arg1: i32) -> (i32, i32) {
    %c0_i32 = arith.constant 0 : i32
    %c0_i32_0 = arith.constant 0 : i32
    %c0_i32_1 = arith.constant 0 : i32
    return %c0_i32, %c0_i32_0 : i32, i32
  }
  func.func @transform_4(%arg0: i32, %arg1: i32) -> (i32, i32, i32) {
    %c0_i32 = arith.constant 0 : i32
    %c0_i32_0 = arith.constant 0 : i32
    return %arg0, %arg1, %c0_i32 : i32, i32, i32
  }
}

module attributes {stable_mosaic.version = 11 : i64} {
  func.func @_conv3x3_kernel(%arg0: i32, %arg1: i32, %arg2: memref<1x128x96xbf16, #tpu.memory_space<vmem>>, %arg3: memref<1x32x96xbf16, #tpu.memory_space<vmem>>, %arg4: memref<96x96xbf16, #tpu.memory_space<vmem>>, %arg5: memref<1x30xf32, #tpu.memory_space<vmem>>, %arg6: memref<1x128x30xbf16, #tpu.memory_space<vmem>>, %arg7: memref<1x128x30xbf16, #tpu.memory_space<vmem>>) attributes {dimension_semantics = [#tpu.dimension_semantics<parallel>, #tpu.dimension_semantics<parallel>], iteration_bounds = array<i64: 2, 2>, scalar_prefetch = 0 : i64, scratch_operands = 0 : i64, tpu.core_type = #tpu.core_type<tc>, window_params = [{transform_indices = @transform_0, window_bounds = array<i64: 1, 128, 96>}, {transform_indices = @transform_1, window_bounds = array<i64: 1, 32, 96>}, {pipeline_mode = #tpu.pipeline_mode<synchronous>, transform_indices = @transform_2, window_bounds = array<i64: 96, 96>}, {pipeline_mode = #tpu.pipeline_mode<synchronous>, transform_indices = @transform_3, window_bounds = array<i64: 1, 30>}, {transform_indices = @transform_4, window_bounds = array<i64: 1, 128, 30>}, {transform_indices = @transform_5, window_bounds = array<i64: 1, 128, 30>}]} {
    %c0 = arith.constant 0 : index
    %c0_0 = arith.constant 0 : index
    %0 = vector.load %arg4[%c0, %c0_0] : memref<96x96xbf16, #tpu.memory_space<vmem>>, vector<96x96xbf16>
    %c0_1 = arith.constant 0 : index
    %c0_2 = arith.constant 0 : index
    %c0_3 = arith.constant 0 : index
    %1 = vector.load %arg2[%c0_1, %c0_2, %c0_3] : memref<1x128x96xbf16, #tpu.memory_space<vmem>>, vector<1x128x96xbf16>
    %2 = vector.shape_cast %1 : vector<1x128x96xbf16> to vector<128x96xbf16>
    %cst = arith.constant dense<0.000000e+00> : vector<128x96xf32>
    %3 = tpu.matmul %2, %0, %cst {dimension_numbers = #tpu.dot_dimension_numbers<[1], [0], [0], [1], [0, 0, 1, 1], [], []>} : vector<128x96xbf16>, vector<96x96xbf16>, vector<128x96xf32> -> vector<128x96xf32>
    %c0_4 = arith.constant 0 : index
    %c0_5 = arith.constant 0 : index
    %c0_6 = arith.constant 0 : index
    %4 = vector.load %arg3[%c0_4, %c0_5, %c0_6] : memref<1x32x96xbf16, #tpu.memory_space<vmem>>, vector<1x32x96xbf16>
    %5 = vector.shape_cast %4 : vector<1x32x96xbf16> to vector<32x96xbf16>
    %cst_7 = arith.constant dense<0.000000e+00> : vector<32x96xf32>
    %6 = tpu.matmul %5, %0, %cst_7 {dimension_numbers = #tpu.dot_dimension_numbers<[1], [0], [0], [1], [0, 0, 1, 1], [], []>} : vector<32x96xbf16>, vector<96x96xbf16>, vector<32x96xf32> -> vector<32x96xf32>
    %7 = vector.extract_strided_slice %3 {offsets = [0, 0], sizes = [128, 32], strides = [1, 1]} : vector<128x96xf32> to vector<128x32xf32>
    %8 = vector.extract_strided_slice %3 {offsets = [16, 32], sizes = [112, 32], strides = [1, 1]} : vector<128x96xf32> to vector<112x32xf32>
    %9 = vector.extract_strided_slice %6 {offsets = [0, 32], sizes = [16, 32], strides = [1, 1]} : vector<32x96xf32> to vector<16x32xf32>
    %10 = tpu.concatenate %8, %9 in 0 : vector<112x32xf32>, vector<16x32xf32> -> vector<128x32xf32>
    %11 = arith.addf %7, %10 : vector<128x32xf32>
    %12 = vector.extract_strided_slice %3 {offsets = [32, 64], sizes = [96, 32], strides = [1, 1]} : vector<128x96xf32> to vector<96x32xf32>
    %13 = vector.extract_strided_slice %6 {offsets = [0, 64], sizes = [32, 32], strides = [1, 1]} : vector<32x96xf32> to vector<32x32xf32>
    %14 = tpu.concatenate %12, %13 in 0 : vector<96x32xf32>, vector<32x32xf32> -> vector<128x32xf32>
    %15 = arith.addf %11, %14 : vector<128x32xf32>
    %16 = vector.extract_strided_slice %15 {offsets = [0, 0], sizes = [128, 30], strides = [1, 1]} : vector<128x32xf32> to vector<128x30xf32>
    %c0_8 = arith.constant 0 : index
    %c0_9 = arith.constant 0 : index
    %17 = vector.load %arg5[%c0_8, %c0_9] : memref<1x30xf32, #tpu.memory_space<vmem>>, vector<1x30xf32>
    %18 = vector.broadcast %17 : vector<1x30xf32> to vector<128x30xf32>
    %19 = arith.addf %16, %18 : vector<128x30xf32>
    %cst_10 = arith.constant 0.000000e+00 : f32
    %20 = vector.broadcast %cst_10 : f32 to vector<128x30xf32>
    %21 = arith.cmpf oge, %19, %20 : vector<128x30xf32>
    %cst_11 = arith.constant 5.000000e-02 : f32
    %22 = vector.broadcast %cst_11 : f32 to vector<128x30xf32>
    %23 = arith.mulf %22, %19 : vector<128x30xf32>
    %24 = arith.select %21, %19, %23 : vector<128x30xi1>, vector<128x30xf32>
    %c0_12 = arith.constant 0 : index
    %c0_13 = arith.constant 0 : index
    %c0_14 = arith.constant 0 : index
    %25 = vector.load %arg6[%c0_12, %c0_13, %c0_14] : memref<1x128x30xbf16, #tpu.memory_space<vmem>>, vector<1x128x30xbf16>
    %26 = vector.shape_cast %25 : vector<1x128x30xbf16> to vector<128x30xbf16>
    %27 = arith.extf %26 : vector<128x30xbf16> to vector<128x30xf32>
    %28 = arith.addf %24, %27 : vector<128x30xf32>
    %29 = arith.truncf %28 : vector<128x30xf32> to vector<128x30xbf16>
    %c0_15 = arith.constant 0 : index
    %c0_16 = arith.constant 0 : index
    %c0_17 = arith.constant 0 : index
    %30 = vector.load %arg7[%c0_15, %c0_16, %c0_17] : memref<1x128x30xbf16, #tpu.memory_space<vmem>>, vector<1x128x30xbf16>
    %31 = vector.shape_cast %30 : vector<1x128x30xbf16> to vector<128x30xbf16>
    %32 = vector.shape_cast %29 : vector<128x30xbf16> to vector<1x128x30xbf16>
    tpu.vector_store %arg7[%c0_15, %c0_16, %c0_17], %32 {strides = array<i32>} : memref<1x128x30xbf16, #tpu.memory_space<vmem>>, vector<1x128x30xbf16>,
    return
  }
  func.func @transform_0(%arg0: i32, %arg1: i32) -> (i32, i32, i32) {
    %c0_i32 = arith.constant 0 : i32
    %c0_i32_0 = arith.constant 0 : i32
    return %arg0, %arg1, %c0_i32 : i32, i32, i32
  }
  func.func @transform_1(%arg0: i32, %arg1: i32) -> (i32, i32, i32) {
    %c1_i32 = arith.constant 1 : i32
    %0 = arith.addi %arg1, %c1_i32 : i32
    %c4_i32 = arith.constant 4 : i32
    %1 = arith.muli %0, %c4_i32 : i32
    %c8_i32 = arith.constant 8 : i32
    %2 = arith.minsi %1, %c8_i32 : i32
    %c0_i32 = arith.constant 0 : i32
    %c0_i32_0 = arith.constant 0 : i32
    return %arg0, %2, %c0_i32 : i32, i32, i32
  }
  func.func @transform_2(%arg0: i32, %arg1: i32) -> (i32, i32) {
    %c0_i32 = arith.constant 0 : i32
    %c0_i32_0 = arith.constant 0 : i32
    %c0_i32_1 = arith.constant 0 : i32
    return %c0_i32, %c0_i32_0 : i32, i32
  }
  func.func @transform_3(%arg0: i32, %arg1: i32) -> (i32, i32) {
    %c0_i32 = arith.constant 0 : i32
    %c0_i32_0 = arith.constant 0 : i32
    %c0_i32_1 = arith.constant 0 : i32
    return %c0_i32, %c0_i32_0 : i32, i32
  }
  func.func @transform_4(%arg0: i32, %arg1: i32) -> (i32, i32, i32) {
    %c0_i32 = arith.constant 0 : i32
    %c0_i32_0 = arith.constant 0 : i32
    return %arg0, %arg1, %c0_i32 : i32, i32, i32
  }
  func.func @transform_5(%arg0: i32, %arg1: i32) -> (i32, i32, i32) {
    %c0_i32 = arith.constant 0 : i32
    %c0_i32_0 = arith.constant 0 : i32
    return %arg0, %arg1, %c0_i32 : i32, i32, i32
  }
}

module attributes {stable_mosaic.version = 11 : i64} {
  func.func @_mm_kernel(%arg0: i32, %arg1: i32, %arg2: memref<512x30xbf16, #tpu.memory_space<vmem>>, %arg3: memref<30x30xbf16, #tpu.memory_space<vmem>>, %arg4: memref<1x30xf32, #tpu.memory_space<vmem>>, %arg5: memref<512x30xbf16, #tpu.memory_space<vmem>>) attributes {dimension_semantics = [#tpu.dimension_semantics<parallel>, #tpu.dimension_semantics<parallel>], iteration_bounds = array<i64: 1, 1>, scalar_prefetch = 0 : i64, scratch_operands = 0 : i64, tpu.core_type = #tpu.core_type<tc>, window_params = [{transform_indices = @transform_0, window_bounds = array<i64: 512, 30>}, {transform_indices = @transform_1, window_bounds = array<i64: 30, 30>}, {transform_indices = @transform_2, window_bounds = array<i64: 1, 30>}, {transform_indices = @transform_3, window_bounds = array<i64: 512, 30>}]} {
    %c0 = arith.constant 0 : index
    %c0_0 = arith.constant 0 : index
    %0 = vector.load %arg2[%c0, %c0_0] : memref<512x30xbf16, #tpu.memory_space<vmem>>, vector<512x30xbf16>
    %c0_1 = arith.constant 0 : index
    %c0_2 = arith.constant 0 : index
    %1 = vector.load %arg3[%c0_1, %c0_2] : memref<30x30xbf16, #tpu.memory_space<vmem>>, vector<30x30xbf16>
    %cst = arith.constant dense<0.000000e+00> : vector<512x30xf32>
    %2 = tpu.matmul %0, %1, %cst {dimension_numbers = #tpu.dot_dimension_numbers<[1], [0], [0], [1], [0, 0, 1, 1], [], []>} : vector<512x30xbf16>, vector<30x30xbf16>, vector<512x30xf32> -> vector<512x30xf32>
    %c0_3 = arith.constant 0 : index
    %c0_4 = arith.constant 0 : index
    %3 = vector.load %arg4[%c0_3, %c0_4] : memref<1x30xf32, #tpu.memory_space<vmem>>, vector<1x30xf32>
    %4 = vector.broadcast %3 : vector<1x30xf32> to vector<512x30xf32>
    %5 = arith.addf %2, %4 : vector<512x30xf32>
    %6 = arith.truncf %5 : vector<512x30xf32> to vector<512x30xbf16>
    %c0_5 = arith.constant 0 : index
    %c0_6 = arith.constant 0 : index
    %7 = vector.load %arg5[%c0_5, %c0_6] : memref<512x30xbf16, #tpu.memory_space<vmem>>, vector<512x30xbf16>
    tpu.vector_store %arg5[%c0_5, %c0_6], %6 {strides = array<i32>} : memref<512x30xbf16, #tpu.memory_space<vmem>>, vector<512x30xbf16>,
    return
  }
  func.func @transform_0(%arg0: i32, %arg1: i32) -> (i32, i32) {
    %c0_i32 = arith.constant 0 : i32
    %c0_i32_0 = arith.constant 0 : i32
    return %arg0, %c0_i32 : i32, i32
  }
  func.func @transform_1(%arg0: i32, %arg1: i32) -> (i32, i32) {
    %c0_i32 = arith.constant 0 : i32
    %c0_i32_0 = arith.constant 0 : i32
    return %c0_i32, %arg1 : i32, i32
  }
  func.func @transform_2(%arg0: i32, %arg1: i32) -> (i32, i32) {
    %c0_i32 = arith.constant 0 : i32
    %c0_i32_0 = arith.constant 0 : i32
    return %c0_i32, %arg1 : i32, i32
  }
  func.func @transform_3(%arg0: i32, %arg1: i32) -> (i32, i32) {
    %c0_i32 = arith.constant 0 : i32
    return %arg0, %arg1 : i32, i32
  }
}

module attributes {stable_mosaic.version = 11 : i64} {
  func.func @_mm_kernel(%arg0: i32, %arg1: i32, %arg2: memref<512x30xbf16, #tpu.memory_space<vmem>>, %arg3: memref<30x16xbf16, #tpu.memory_space<vmem>>, %arg4: memref<1x16xf32, #tpu.memory_space<vmem>>, %arg5: memref<512x16xbf16, #tpu.memory_space<vmem>>) attributes {dimension_semantics = [#tpu.dimension_semantics<parallel>, #tpu.dimension_semantics<parallel>], iteration_bounds = array<i64: 1, 1>, scalar_prefetch = 0 : i64, scratch_operands = 0 : i64, tpu.core_type = #tpu.core_type<tc>, window_params = [{transform_indices = @transform_0, window_bounds = array<i64: 512, 30>}, {transform_indices = @transform_1, window_bounds = array<i64: 30, 16>}, {transform_indices = @transform_2, window_bounds = array<i64: 1, 16>}, {transform_indices = @transform_3, window_bounds = array<i64: 512, 16>}]} {
    %c0 = arith.constant 0 : index
    %c0_0 = arith.constant 0 : index
    %0 = vector.load %arg2[%c0, %c0_0] : memref<512x30xbf16, #tpu.memory_space<vmem>>, vector<512x30xbf16>
    %c0_1 = arith.constant 0 : index
    %c0_2 = arith.constant 0 : index
    %1 = vector.load %arg3[%c0_1, %c0_2] : memref<30x16xbf16, #tpu.memory_space<vmem>>, vector<30x16xbf16>
    %cst = arith.constant dense<0.000000e+00> : vector<512x16xf32>
    %2 = tpu.matmul %0, %1, %cst {dimension_numbers = #tpu.dot_dimension_numbers<[1], [0], [0], [1], [0, 0, 1, 1], [], []>} : vector<512x30xbf16>, vector<30x16xbf16>, vector<512x16xf32> -> vector<512x16xf32>
    %c0_3 = arith.constant 0 : index
    %c0_4 = arith.constant 0 : index
    %3 = vector.load %arg4[%c0_3, %c0_4] : memref<1x16xf32, #tpu.memory_space<vmem>>, vector<1x16xf32>
    %4 = vector.broadcast %3 : vector<1x16xf32> to vector<512x16xf32>
    %5 = arith.addf %2, %4 : vector<512x16xf32>
    %6 = arith.truncf %5 : vector<512x16xf32> to vector<512x16xbf16>
    %c0_5 = arith.constant 0 : index
    %c0_6 = arith.constant 0 : index
    %7 = vector.load %arg5[%c0_5, %c0_6] : memref<512x16xbf16, #tpu.memory_space<vmem>>, vector<512x16xbf16>
    tpu.vector_store %arg5[%c0_5, %c0_6], %6 {strides = array<i32>} : memref<512x16xbf16, #tpu.memory_space<vmem>>, vector<512x16xbf16>,
    return
  }
  func.func @transform_0(%arg0: i32, %arg1: i32) -> (i32, i32) {
    %c0_i32 = arith.constant 0 : i32
    %c0_i32_0 = arith.constant 0 : i32
    return %arg0, %c0_i32 : i32, i32
  }
  func.func @transform_1(%arg0: i32, %arg1: i32) -> (i32, i32) {
    %c0_i32 = arith.constant 0 : i32
    %c0_i32_0 = arith.constant 0 : i32
    return %c0_i32, %arg1 : i32, i32
  }
  func.func @transform_2(%arg0: i32, %arg1: i32) -> (i32, i32) {
    %c0_i32 = arith.constant 0 : i32
    %c0_i32_0 = arith.constant 0 : i32
    return %c0_i32, %arg1 : i32, i32
  }
  func.func @transform_3(%arg0: i32, %arg1: i32) -> (i32, i32) {
    %c0_i32 = arith.constant 0 : i32
    return %arg0, %arg1 : i32, i32
  }
}

module attributes {stable_mosaic.version = 11 : i64} {
  func.func @_mm_kernel(%arg0: i32, %arg1: i32, %arg2: memref<98x144xbf16, #tpu.memory_space<vmem>>, %arg3: memref<144x16xbf16, #tpu.memory_space<vmem>>, %arg4: memref<1x16xf32, #tpu.memory_space<vmem>>, %arg5: memref<98x16xbf16, #tpu.memory_space<vmem>>) attributes {dimension_semantics = [#tpu.dimension_semantics<parallel>, #tpu.dimension_semantics<parallel>], iteration_bounds = array<i64: 1, 1>, scalar_prefetch = 0 : i64, scratch_operands = 0 : i64, tpu.core_type = #tpu.core_type<tc>, window_params = [{transform_indices = @transform_0, window_bounds = array<i64: 98, 144>}, {transform_indices = @transform_1, window_bounds = array<i64: 144, 16>}, {transform_indices = @transform_2, window_bounds = array<i64: 1, 16>}, {transform_indices = @transform_3, window_bounds = array<i64: 98, 16>}]} {
    %c0 = arith.constant 0 : index
    %c0_0 = arith.constant 0 : index
    %0 = vector.load %arg2[%c0, %c0_0] : memref<98x144xbf16, #tpu.memory_space<vmem>>, vector<98x144xbf16>
    %c0_1 = arith.constant 0 : index
    %c0_2 = arith.constant 0 : index
    %1 = vector.load %arg3[%c0_1, %c0_2] : memref<144x16xbf16, #tpu.memory_space<vmem>>, vector<144x16xbf16>
    %cst = arith.constant dense<0.000000e+00> : vector<98x16xf32>
    %2 = tpu.matmul %0, %1, %cst {dimension_numbers = #tpu.dot_dimension_numbers<[1], [0], [0], [1], [0, 0, 1, 1], [], []>} : vector<98x144xbf16>, vector<144x16xbf16>, vector<98x16xf32> -> vector<98x16xf32>
    %c0_3 = arith.constant 0 : index
    %c0_4 = arith.constant 0 : index
    %3 = vector.load %arg4[%c0_3, %c0_4] : memref<1x16xf32, #tpu.memory_space<vmem>>, vector<1x16xf32>
    %4 = vector.broadcast %3 : vector<1x16xf32> to vector<98x16xf32>
    %5 = arith.addf %2, %4 : vector<98x16xf32>
    %6 = arith.truncf %5 : vector<98x16xf32> to vector<98x16xbf16>
    %c0_5 = arith.constant 0 : index
    %c0_6 = arith.constant 0 : index
    %7 = vector.load %arg5[%c0_5, %c0_6] : memref<98x16xbf16, #tpu.memory_space<vmem>>, vector<98x16xbf16>
    tpu.vector_store %arg5[%c0_5, %c0_6], %6 {strides = array<i32>} : memref<98x16xbf16, #tpu.memory_space<vmem>>, vector<98x16xbf16>,
    return
  }
  func.func @transform_0(%arg0: i32, %arg1: i32) -> (i32, i32) {
    %c0_i32 = arith.constant 0 : i32
    %c0_i32_0 = arith.constant 0 : i32
    return %arg0, %c0_i32 : i32, i32
  }
  func.func @transform_1(%arg0: i32, %arg1: i32) -> (i32, i32) {
    %c0_i32 = arith.constant 0 : i32
    %c0_i32_0 = arith.constant 0 : i32
    return %c0_i32, %arg1 : i32, i32
  }
  func.func @transform_2(%arg0: i32, %arg1: i32) -> (i32, i32) {
    %c0_i32 = arith.constant 0 : i32
    %c0_i32_0 = arith.constant 0 : i32
    return %c0_i32, %arg1 : i32, i32
  }
  func.func @transform_3(%arg0: i32, %arg1: i32) -> (i32, i32) {
    %c0_i32 = arith.constant 0 : i32
    return %arg0, %arg1 : i32, i32
  }
}

module attributes {stable_mosaic.version = 11 : i64} {
  func.func @_mm_kernel(%arg0: i32, %arg1: i32, %arg2: memref<16x1xf32, #tpu.memory_space<vmem>>, %arg3: memref<1x32xbf16, #tpu.memory_space<vmem>>, %arg4: memref<16x32xbf16, #tpu.memory_space<vmem>>) attributes {dimension_semantics = [#tpu.dimension_semantics<parallel>, #tpu.dimension_semantics<parallel>], iteration_bounds = array<i64: 1, 1>, scalar_prefetch = 0 : i64, scratch_operands = 0 : i64, tpu.core_type = #tpu.core_type<tc>, window_params = [{transform_indices = @transform_0, window_bounds = array<i64: 16, 1>}, {transform_indices = @transform_1, window_bounds = array<i64: 1, 32>}, {transform_indices = @transform_2, window_bounds = array<i64: 16, 32>}]} {
    %c0 = arith.constant 0 : index
    %c0_0 = arith.constant 0 : index
    %0 = vector.load %arg2[%c0, %c0_0] : memref<16x1xf32, #tpu.memory_space<vmem>>, vector<16x1xf32>
    %1 = arith.truncf %0 : vector<16x1xf32> to vector<16x1xbf16>
    %c0_1 = arith.constant 0 : index
    %c0_2 = arith.constant 0 : index
    %2 = vector.load %arg3[%c0_1, %c0_2] : memref<1x32xbf16, #tpu.memory_space<vmem>>, vector<1x32xbf16>
    %cst = arith.constant dense<0.000000e+00> : vector<16x32xf32>
    %3 = tpu.matmul %1, %2, %cst {dimension_numbers = #tpu.dot_dimension_numbers<[1], [0], [0], [1], [0, 0, 1, 1], [], []>} : vector<16x1xbf16>, vector<1x32xbf16>, vector<16x32xf32> -> vector<16x32xf32>
    %4 = arith.truncf %3 : vector<16x32xf32> to vector<16x32xbf16>
    %c0_3 = arith.constant 0 : index
    %c0_4 = arith.constant 0 : index
    %5 = vector.load %arg4[%c0_3, %c0_4] : memref<16x32xbf16, #tpu.memory_space<vmem>>, vector<16x32xbf16>
    tpu.vector_store %arg4[%c0_3, %c0_4], %4 {strides = array<i32>} : memref<16x32xbf16, #tpu.memory_space<vmem>>, vector<16x32xbf16>,
    return
  }
  func.func @transform_0(%arg0: i32, %arg1: i32) -> (i32, i32) {
    %c0_i32 = arith.constant 0 : i32
    %c0_i32_0 = arith.constant 0 : i32
    return %arg0, %c0_i32 : i32, i32
  }
  func.func @transform_1(%arg0: i32, %arg1: i32) -> (i32, i32) {
    %c0_i32 = arith.constant 0 : i32
    %c0_i32_0 = arith.constant 0 : i32
    return %c0_i32, %arg1 : i32, i32
  }
  func.func @transform_2(%arg0: i32, %arg1: i32) -> (i32, i32) {
    %c0_i32 = arith.constant 0 : i32
    return %arg0, %arg1 : i32, i32
  }
}

module attributes {stable_mosaic.version = 11 : i64} {
  func.func @_mm_kernel(%arg0: i32, %arg1: i32, %arg2: memref<16x1xf32, #tpu.memory_space<vmem>>, %arg3: memref<1x512xbf16, #tpu.memory_space<vmem>>, %arg4: memref<16x512xbf16, #tpu.memory_space<vmem>>) attributes {dimension_semantics = [#tpu.dimension_semantics<parallel>, #tpu.dimension_semantics<parallel>], iteration_bounds = array<i64: 1, 1>, scalar_prefetch = 0 : i64, scratch_operands = 0 : i64, tpu.core_type = #tpu.core_type<tc>, window_params = [{transform_indices = @transform_0, window_bounds = array<i64: 16, 1>}, {transform_indices = @transform_1, window_bounds = array<i64: 1, 512>}, {transform_indices = @transform_2, window_bounds = array<i64: 16, 512>}]} {
    %c0 = arith.constant 0 : index
    %c0_0 = arith.constant 0 : index
    %0 = vector.load %arg2[%c0, %c0_0] : memref<16x1xf32, #tpu.memory_space<vmem>>, vector<16x1xf32>
    %1 = arith.truncf %0 : vector<16x1xf32> to vector<16x1xbf16>
    %c0_1 = arith.constant 0 : index
    %c0_2 = arith.constant 0 : index
    %2 = vector.load %arg3[%c0_1, %c0_2] : memref<1x512xbf16, #tpu.memory_space<vmem>>, vector<1x512xbf16>
    %cst = arith.constant dense<0.000000e+00> : vector<16x512xf32>
    %3 = tpu.matmul %1, %2, %cst {dimension_numbers = #tpu.dot_dimension_numbers<[1], [0], [0], [1], [0, 0, 1, 1], [], []>} : vector<16x1xbf16>, vector<1x512xbf16>, vector<16x512xf32> -> vector<16x512xf32>
    %4 = arith.truncf %3 : vector<16x512xf32> to vector<16x512xbf16>
    %c0_3 = arith.constant 0 : index
    %c0_4 = arith.constant 0 : index
    %5 = vector.load %arg4[%c0_3, %c0_4] : memref<16x512xbf16, #tpu.memory_space<vmem>>, vector<16x512xbf16>
    tpu.vector_store %arg4[%c0_3, %c0_4], %4 {strides = array<i32>} : memref<16x512xbf16, #tpu.memory_space<vmem>>, vector<16x512xbf16>,
    return
  }
  func.func @transform_0(%arg0: i32, %arg1: i32) -> (i32, i32) {
    %c0_i32 = arith.constant 0 : i32
    %c0_i32_0 = arith.constant 0 : i32
    return %arg0, %c0_i32 : i32, i32
  }
  func.func @transform_1(%arg0: i32, %arg1: i32) -> (i32, i32) {
    %c0_i32 = arith.constant 0 : i32
    %c0_i32_0 = arith.constant 0 : i32
    return %c0_i32, %arg1 : i32, i32
  }
  func.func @transform_2(%arg0: i32, %arg1: i32) -> (i32, i32) {
    %c0_i32 = arith.constant 0 : i32
    return %arg0, %arg1 : i32, i32
  }
}

module attributes {stable_mosaic.version = 11 : i64} {
  func.func @_mm_kernel(%arg0: i32, %arg1: i32, %arg2: memref<2x144xbf16, #tpu.memory_space<vmem>>, %arg3: memref<144x16xbf16, #tpu.memory_space<vmem>>, %arg4: memref<1x16xf32, #tpu.memory_space<vmem>>, %arg5: memref<2x16xbf16, #tpu.memory_space<vmem>>) attributes {dimension_semantics = [#tpu.dimension_semantics<parallel>, #tpu.dimension_semantics<parallel>], iteration_bounds = array<i64: 1, 1>, scalar_prefetch = 0 : i64, scratch_operands = 0 : i64, tpu.core_type = #tpu.core_type<tc>, window_params = [{transform_indices = @transform_0, window_bounds = array<i64: 2, 144>}, {transform_indices = @transform_1, window_bounds = array<i64: 144, 16>}, {transform_indices = @transform_2, window_bounds = array<i64: 1, 16>}, {transform_indices = @transform_3, window_bounds = array<i64: 2, 16>}]} {
    %c0 = arith.constant 0 : index
    %c0_0 = arith.constant 0 : index
    %0 = vector.load %arg2[%c0, %c0_0] : memref<2x144xbf16, #tpu.memory_space<vmem>>, vector<2x144xbf16>
    %c0_1 = arith.constant 0 : index
    %c0_2 = arith.constant 0 : index
    %1 = vector.load %arg3[%c0_1, %c0_2] : memref<144x16xbf16, #tpu.memory_space<vmem>>, vector<144x16xbf16>
    %cst = arith.constant dense<0.000000e+00> : vector<2x16xf32>
    %2 = tpu.matmul %0, %1, %cst {dimension_numbers = #tpu.dot_dimension_numbers<[1], [0], [0], [1], [0, 0, 1, 1], [], []>} : vector<2x144xbf16>, vector<144x16xbf16>, vector<2x16xf32> -> vector<2x16xf32>
    %c0_3 = arith.constant 0 : index
    %c0_4 = arith.constant 0 : index
    %3 = vector.load %arg4[%c0_3, %c0_4] : memref<1x16xf32, #tpu.memory_space<vmem>>, vector<1x16xf32>
    %4 = vector.broadcast %3 : vector<1x16xf32> to vector<2x16xf32>
    %5 = arith.addf %2, %4 : vector<2x16xf32>
    %6 = arith.truncf %5 : vector<2x16xf32> to vector<2x16xbf16>
    %c0_5 = arith.constant 0 : index
    %c0_6 = arith.constant 0 : index
    %7 = vector.load %arg5[%c0_5, %c0_6] : memref<2x16xbf16, #tpu.memory_space<vmem>>, vector<2x16xbf16>
    tpu.vector_store %arg5[%c0_5, %c0_6], %6 {strides = array<i32>} : memref<2x16xbf16, #tpu.memory_space<vmem>>, vector<2x16xbf16>,
    return
  }
  func.func @transform_0(%arg0: i32, %arg1: i32) -> (i32, i32) {
    %c0_i32 = arith.constant 0 : i32
    %c0_i32_0 = arith.constant 0 : i32
    return %arg0, %c0_i32 : i32, i32
  }
  func.func @transform_1(%arg0: i32, %arg1: i32) -> (i32, i32) {
    %c0_i32 = arith.constant 0 : i32
    %c0_i32_0 = arith.constant 0 : i32
    return %c0_i32, %arg1 : i32, i32
  }
  func.func @transform_2(%arg0: i32, %arg1: i32) -> (i32, i32) {
    %c0_i32 = arith.constant 0 : i32
    %c0_i32_0 = arith.constant 0 : i32
    return %c0_i32, %arg1 : i32, i32
  }
  func.func @transform_3(%arg0: i32, %arg1: i32) -> (i32, i32) {
    %c0_i32 = arith.constant 0 : i32
    return %arg0, %arg1 : i32, i32
  }
}

module attributes {stable_mosaic.version = 11 : i64} {
  func.func @_mm_kernel(%arg0: i32, %arg1: i32, %arg2: memref<512x16xbf16, #tpu.memory_space<vmem>>, %arg3: memref<16x16xbf16, #tpu.memory_space<vmem>>, %arg4: memref<1x16xf32, #tpu.memory_space<vmem>>, %arg5: memref<512x16xbf16, #tpu.memory_space<vmem>>) attributes {dimension_semantics = [#tpu.dimension_semantics<parallel>, #tpu.dimension_semantics<parallel>], iteration_bounds = array<i64: 1, 1>, scalar_prefetch = 0 : i64, scratch_operands = 0 : i64, tpu.core_type = #tpu.core_type<tc>, window_params = [{transform_indices = @transform_0, window_bounds = array<i64: 512, 16>}, {transform_indices = @transform_1, window_bounds = array<i64: 16, 16>}, {transform_indices = @transform_2, window_bounds = array<i64: 1, 16>}, {transform_indices = @transform_3, window_bounds = array<i64: 512, 16>}]} {
    %c0 = arith.constant 0 : index
    %c0_0 = arith.constant 0 : index
    %0 = vector.load %arg2[%c0, %c0_0] : memref<512x16xbf16, #tpu.memory_space<vmem>>, vector<512x16xbf16>
    %c0_1 = arith.constant 0 : index
    %c0_2 = arith.constant 0 : index
    %1 = vector.load %arg3[%c0_1, %c0_2] : memref<16x16xbf16, #tpu.memory_space<vmem>>, vector<16x16xbf16>
    %cst = arith.constant dense<0.000000e+00> : vector<512x16xf32>
    %2 = tpu.matmul %0, %1, %cst {dimension_numbers = #tpu.dot_dimension_numbers<[1], [0], [0], [1], [0, 0, 1, 1], [], []>} : vector<512x16xbf16>, vector<16x16xbf16>, vector<512x16xf32> -> vector<512x16xf32>
    %c0_3 = arith.constant 0 : index
    %c0_4 = arith.constant 0 : index
    %3 = vector.load %arg4[%c0_3, %c0_4] : memref<1x16xf32, #tpu.memory_space<vmem>>, vector<1x16xf32>
    %4 = vector.broadcast %3 : vector<1x16xf32> to vector<512x16xf32>
    %5 = arith.addf %2, %4 : vector<512x16xf32>
    %6 = arith.truncf %5 : vector<512x16xf32> to vector<512x16xbf16>
    %c0_5 = arith.constant 0 : index
    %c0_6 = arith.constant 0 : index
    %7 = vector.load %arg5[%c0_5, %c0_6] : memref<512x16xbf16, #tpu.memory_space<vmem>>, vector<512x16xbf16>
    tpu.vector_store %arg5[%c0_5, %c0_6], %6 {strides = array<i32>} : memref<512x16xbf16, #tpu.memory_space<vmem>>, vector<512x16xbf16>,
    return
  }
  func.func @transform_0(%arg0: i32, %arg1: i32) -> (i32, i32) {
    %c0_i32 = arith.constant 0 : i32
    %c0_i32_0 = arith.constant 0 : i32
    return %arg0, %c0_i32 : i32, i32
  }
  func.func @transform_1(%arg0: i32, %arg1: i32) -> (i32, i32) {
    %c0_i32 = arith.constant 0 : i32
    %c0_i32_0 = arith.constant 0 : i32
    return %c0_i32, %arg1 : i32, i32
  }
  func.func @transform_2(%arg0: i32, %arg1: i32) -> (i32, i32) {
    %c0_i32 = arith.constant 0 : i32
    %c0_i32_0 = arith.constant 0 : i32
    return %c0_i32, %arg1 : i32, i32
  }
  func.func @transform_3(%arg0: i32, %arg1: i32) -> (i32, i32) {
    %c0_i32 = arith.constant 0 : i32
    return %arg0, %arg1 : i32, i32
  }
}

module attributes {stable_mosaic.version = 11 : i64} {
  func.func @_mm_kernel(%arg0: i32, %arg1: i32, %arg2: memref<512x16xbf16, #tpu.memory_space<vmem>>, %arg3: memref<512x16xbf16, #tpu.memory_space<vmem>>, %arg4: memref<16x30xbf16, #tpu.memory_space<vmem>>, %arg5: memref<1x30xf32, #tpu.memory_space<vmem>>, %arg6: memref<512x30xbf16, #tpu.memory_space<vmem>>, %arg7: memref<512x30xbf16, #tpu.memory_space<vmem>>) attributes {dimension_semantics = [#tpu.dimension_semantics<parallel>, #tpu.dimension_semantics<parallel>], iteration_bounds = array<i64: 1, 1>, scalar_prefetch = 0 : i64, scratch_operands = 0 : i64, tpu.core_type = #tpu.core_type<tc>, window_params = [{transform_indices = @transform_0, window_bounds = array<i64: 512, 16>}, {transform_indices = @transform_1, window_bounds = array<i64: 512, 16>}, {transform_indices = @transform_2, window_bounds = array<i64: 16, 30>}, {transform_indices = @transform_3, window_bounds = array<i64: 1, 30>}, {transform_indices = @transform_4, window_bounds = array<i64: 512, 30>}, {transform_indices = @transform_5, window_bounds = array<i64: 512, 30>}]} {
    %c0 = arith.constant 0 : index
    %c0_0 = arith.constant 0 : index
    %0 = vector.load %arg2[%c0, %c0_0] : memref<512x16xbf16, #tpu.memory_space<vmem>>, vector<512x16xbf16>
    %1 = arith.extf %0 : vector<512x16xbf16> to vector<512x16xf32>
    %c0_1 = arith.constant 0 : index
    %c0_2 = arith.constant 0 : index
    %2 = vector.load %arg3[%c0_1, %c0_2] : memref<512x16xbf16, #tpu.memory_space<vmem>>, vector<512x16xbf16>
    %3 = arith.extf %2 : vector<512x16xbf16> to vector<512x16xf32>
    %4 = arith.addf %1, %3 : vector<512x16xf32>
    %5 = arith.truncf %4 : vector<512x16xf32> to vector<512x16xbf16>
    %c0_3 = arith.constant 0 : index
    %c0_4 = arith.constant 0 : index
    %6 = vector.load %arg4[%c0_3, %c0_4] : memref<16x30xbf16, #tpu.memory_space<vmem>>, vector<16x30xbf16>
    %cst = arith.constant dense<0.000000e+00> : vector<512x30xf32>
    %7 = tpu.matmul %5, %6, %cst {dimension_numbers = #tpu.dot_dimension_numbers<[1], [0], [0], [1], [0, 0, 1, 1], [], []>} : vector<512x16xbf16>, vector<16x30xbf16>, vector<512x30xf32> -> vector<512x30xf32>
    %c0_5 = arith.constant 0 : index
    %c0_6 = arith.constant 0 : index
    %8 = vector.load %arg5[%c0_5, %c0_6] : memref<1x30xf32, #tpu.memory_space<vmem>>, vector<1x30xf32>
    %9 = vector.broadcast %8 : vector<1x30xf32> to vector<512x30xf32>
    %10 = arith.addf %7, %9 : vector<512x30xf32>
    %cst_7 = arith.constant 0.000000e+00 : f32
    %11 = vector.broadcast %cst_7 : f32 to vector<512x30xf32>
    %12 = arith.subf %11, %10 : vector<512x30xf32>
    %13 = math.exp %12 : vector<512x30xf32>
    %cst_8 = arith.constant 1.000000e+00 : f32
    %14 = vector.broadcast %cst_8 : f32 to vector<512x30xf32>
    %15 = arith.addf %14, %13 : vector<512x30xf32>
    %cst_9 = arith.constant 1.000000e+00 : f32
    %16 = vector.broadcast %cst_9 : f32 to vector<512x30xf32>
    %17 = arith.divf %16, %15 : vector<512x30xf32>
    %c0_10 = arith.constant 0 : index
    %c0_11 = arith.constant 0 : index
    %18 = vector.load %arg6[%c0_10, %c0_11] : memref<512x30xbf16, #tpu.memory_space<vmem>>, vector<512x30xbf16>
    %19 = arith.extf %18 : vector<512x30xbf16> to vector<512x30xf32>
    %20 = arith.mulf %17, %19 : vector<512x30xf32>
    %21 = arith.truncf %20 : vector<512x30xf32> to vector<512x30xbf16>
    %c0_12 = arith.constant 0 : index
    %c0_13 = arith.constant 0 : index
    %22 = vector.load %arg7[%c0_12, %c0_13] : memref<512x30xbf16, #tpu.memory_space<vmem>>, vector<512x30xbf16>
    tpu.vector_store %arg7[%c0_12, %c0_13], %21 {strides = array<i32>} : memref<512x30xbf16, #tpu.memory_space<vmem>>, vector<512x30xbf16>,
    return
  }
  func.func @transform_0(%arg0: i32, %arg1: i32) -> (i32, i32) {
    %c0_i32 = arith.constant 0 : i32
    %c0_i32_0 = arith.constant 0 : i32
    return %arg0, %c0_i32 : i32, i32
  }
  func.func @transform_1(%arg0: i32, %arg1: i32) -> (i32, i32) {
    %c0_i32 = arith.constant 0 : i32
    %c0_i32_0 = arith.constant 0 : i32
    return %arg0, %c0_i32 : i32, i32
  }
  func.func @transform_2(%arg0: i32, %arg1: i32) -> (i32, i32) {
    %c0_i32 = arith.constant 0 : i32
    %c0_i32_0 = arith.constant 0 : i32
    return %c0_i32, %arg1 : i32, i32
  }
  func.func @transform_3(%arg0: i32, %arg1: i32) -> (i32, i32) {
    %c0_i32 = arith.constant 0 : i32
    %c0_i32_0 = arith.constant 0 : i32
    return %c0_i32, %arg1 : i32, i32
  }
  func.func @transform_4(%arg0: i32, %arg1: i32) -> (i32, i32) {
    %c0_i32 = arith.constant 0 : i32
    return %arg0, %arg1 : i32, i32
  }
  func.func @transform_5(%arg0: i32, %arg1: i32) -> (i32, i32) {
    %c0_i32 = arith.constant 0 : i32
    return %arg0, %arg1 : i32, i32
  }
}

module attributes {stable_mosaic.version = 11 : i64} {
  func.func @_conv3x3_kernel(%arg0: i32, %arg1: i32, %arg2: memref<1x128x90xbf16, #tpu.memory_space<vmem>>, %arg3: memref<1x32x90xbf16, #tpu.memory_space<vmem>>, %arg4: memref<90x96xbf16, #tpu.memory_space<vmem>>, %arg5: memref<1x32xf32, #tpu.memory_space<vmem>>, %arg6: memref<1x128x32xbf16, #tpu.memory_space<vmem>>) attributes {dimension_semantics = [#tpu.dimension_semantics<parallel>, #tpu.dimension_semantics<parallel>], iteration_bounds = array<i64: 2, 2>, scalar_prefetch = 0 : i64, scratch_operands = 0 : i64, tpu.core_type = #tpu.core_type<tc>, window_params = [{transform_indices = @transform_0, window_bounds = array<i64: 1, 128, 90>}, {transform_indices = @transform_1, window_bounds = array<i64: 1, 32, 90>}, {pipeline_mode = #tpu.pipeline_mode<synchronous>, transform_indices = @transform_2, window_bounds = array<i64: 90, 96>}, {pipeline_mode = #tpu.pipeline_mode<synchronous>, transform_indices = @transform_3, window_bounds = array<i64: 1, 32>}, {transform_indices = @transform_4, window_bounds = array<i64: 1, 128, 32>}]} {
    %c0 = arith.constant 0 : index
    %c0_0 = arith.constant 0 : index
    %0 = vector.load %arg4[%c0, %c0_0] : memref<90x96xbf16, #tpu.memory_space<vmem>>, vector<90x96xbf16>
    %c0_1 = arith.constant 0 : index
    %c0_2 = arith.constant 0 : index
    %c0_3 = arith.constant 0 : index
    %1 = vector.load %arg2[%c0_1, %c0_2, %c0_3] : memref<1x128x90xbf16, #tpu.memory_space<vmem>>, vector<1x128x90xbf16>
    %2 = vector.shape_cast %1 : vector<1x128x90xbf16> to vector<128x90xbf16>
    %cst = arith.constant dense<0.000000e+00> : vector<128x96xf32>
    %3 = tpu.matmul %2, %0, %cst {dimension_numbers = #tpu.dot_dimension_numbers<[1], [0], [0], [1], [0, 0, 1, 1], [], []>} : vector<128x90xbf16>, vector<90x96xbf16>, vector<128x96xf32> -> vector<128x96xf32>
    %c0_4 = arith.constant 0 : index
    %c0_5 = arith.constant 0 : index
    %c0_6 = arith.constant 0 : index
    %4 = vector.load %arg3[%c0_4, %c0_5, %c0_6] : memref<1x32x90xbf16, #tpu.memory_space<vmem>>, vector<1x32x90xbf16>
    %5 = vector.shape_cast %4 : vector<1x32x90xbf16> to vector<32x90xbf16>
    %cst_7 = arith.constant dense<0.000000e+00> : vector<32x96xf32>
    %6 = tpu.matmul %5, %0, %cst_7 {dimension_numbers = #tpu.dot_dimension_numbers<[1], [0], [0], [1], [0, 0, 1, 1], [], []>} : vector<32x90xbf16>, vector<90x96xbf16>, vector<32x96xf32> -> vector<32x96xf32>
    %7 = vector.extract_strided_slice %3 {offsets = [0, 0], sizes = [128, 32], strides = [1, 1]} : vector<128x96xf32> to vector<128x32xf32>
    %8 = vector.extract_strided_slice %3 {offsets = [16, 32], sizes = [112, 32], strides = [1, 1]} : vector<128x96xf32> to vector<112x32xf32>
    %9 = vector.extract_strided_slice %6 {offsets = [0, 32], sizes = [16, 32], strides = [1, 1]} : vector<32x96xf32> to vector<16x32xf32>
    %10 = tpu.concatenate %8, %9 in 0 : vector<112x32xf32>, vector<16x32xf32> -> vector<128x32xf32>
    %11 = arith.addf %7, %10 : vector<128x32xf32>
    %12 = vector.extract_strided_slice %3 {offsets = [32, 64], sizes = [96, 32], strides = [1, 1]} : vector<128x96xf32> to vector<96x32xf32>
    %13 = vector.extract_strided_slice %6 {offsets = [0, 64], sizes = [32, 32], strides = [1, 1]} : vector<32x96xf32> to vector<32x32xf32>
    %14 = tpu.concatenate %12, %13 in 0 : vector<96x32xf32>, vector<32x32xf32> -> vector<128x32xf32>
    %15 = arith.addf %11, %14 : vector<128x32xf32>
    %c0_8 = arith.constant 0 : index
    %c0_9 = arith.constant 0 : index
    %16 = vector.load %arg5[%c0_8, %c0_9] : memref<1x32xf32, #tpu.memory_space<vmem>>, vector<1x32xf32>
    %17 = vector.broadcast %16 : vector<1x32xf32> to vector<128x32xf32>
    %18 = arith.addf %15, %17 : vector<128x32xf32>
    %cst_10 = arith.constant 0.000000e+00 : f32
    %19 = vector.broadcast %cst_10 : f32 to vector<128x32xf32>
    %20 = arith.cmpf oge, %18, %19 : vector<128x32xf32>
    %cst_11 = arith.constant 5.000000e-02 : f32
    %21 = vector.broadcast %cst_11 : f32 to vector<128x32xf32>
    %22 = arith.mulf %21, %18 : vector<128x32xf32>
    %23 = arith.select %20, %18, %22 : vector<128x32xi1>, vector<128x32xf32>
    %24 = arith.truncf %23 : vector<128x32xf32> to vector<128x32xbf16>
    %c0_12 = arith.constant 0 : index
    %c0_13 = arith.constant 0 : index
    %c0_14 = arith.constant 0 : index
    %25 = vector.load %arg6[%c0_12, %c0_13, %c0_14] : memref<1x128x32xbf16, #tpu.memory_space<vmem>>, vector<1x128x32xbf16>
    %26 = vector.shape_cast %25 : vector<1x128x32xbf16> to vector<128x32xbf16>
    %27 = vector.shape_cast %24 : vector<128x32xbf16> to vector<1x128x32xbf16>
    tpu.vector_store %arg6[%c0_12, %c0_13, %c0_14], %27 {strides = array<i32>} : memref<1x128x32xbf16, #tpu.memory_space<vmem>>, vector<1x128x32xbf16>,
    return
  }
  func.func @transform_0(%arg0: i32, %arg1: i32) -> (i32, i32, i32) {
    %c0_i32 = arith.constant 0 : i32
    %c0_i32_0 = arith.constant 0 : i32
    return %arg0, %arg1, %c0_i32 : i32, i32, i32
  }
  func.func @transform_1(%arg0: i32, %arg1: i32) -> (i32, i32, i32) {
    %c1_i32 = arith.constant 1 : i32
    %0 = arith.addi %arg1, %c1_i32 : i32
    %c4_i32 = arith.constant 4 : i32
    %1 = arith.muli %0, %c4_i32 : i32
    %c8_i32 = arith.constant 8 : i32
    %2 = arith.minsi %1, %c8_i32 : i32
    %c0_i32 = arith.constant 0 : i32
    %c0_i32_0 = arith.constant 0 : i32
    return %arg0, %2, %c0_i32 : i32, i32, i32
  }
  func.func @transform_2(%arg0: i32, %arg1: i32) -> (i32, i32) {
    %c0_i32 = arith.constant 0 : i32
    %c0_i32_0 = arith.constant 0 : i32
    %c0_i32_1 = arith.constant 0 : i32
    return %c0_i32, %c0_i32_0 : i32, i32
  }
  func.func @transform_3(%arg0: i32, %arg1: i32) -> (i32, i32) {
    %c0_i32 = arith.constant 0 : i32
    %c0_i32_0 = arith.constant 0 : i32
    %c0_i32_1 = arith.constant 0 : i32
    return %c0_i32, %c0_i32_0 : i32, i32
  }
  func.func @transform_4(%arg0: i32, %arg1: i32) -> (i32, i32, i32) {
    %c0_i32 = arith.constant 0 : i32
    %c0_i32_0 = arith.constant 0 : i32
    return %arg0, %arg1, %c0_i32 : i32, i32, i32
  }
}

module attributes {stable_mosaic.version = 11 : i64} {
  func.func @_conv3x3_kernel(%arg0: i32, %arg1: i32, %arg2: memref<1x128x90xbf16, #tpu.memory_space<vmem>>, %arg3: memref<1x32x90xbf16, #tpu.memory_space<vmem>>, %arg4: memref<90x96xbf16, #tpu.memory_space<vmem>>, %arg5: memref<1x30xf32, #tpu.memory_space<vmem>>, %arg6: memref<1x128x30xbf16, #tpu.memory_space<vmem>>, %arg7: memref<1x128x30xbf16, #tpu.memory_space<vmem>>) attributes {dimension_semantics = [#tpu.dimension_semantics<parallel>, #tpu.dimension_semantics<parallel>], iteration_bounds = array<i64: 2, 2>, scalar_prefetch = 0 : i64, scratch_operands = 0 : i64, tpu.core_type = #tpu.core_type<tc>, window_params = [{transform_indices = @transform_0, window_bounds = array<i64: 1, 128, 90>}, {transform_indices = @transform_1, window_bounds = array<i64: 1, 32, 90>}, {pipeline_mode = #tpu.pipeline_mode<synchronous>, transform_indices = @transform_2, window_bounds = array<i64: 90, 96>}, {pipeline_mode = #tpu.pipeline_mode<synchronous>, transform_indices = @transform_3, window_bounds = array<i64: 1, 30>}, {transform_indices = @transform_4, window_bounds = array<i64: 1, 128, 30>}, {transform_indices = @transform_5, window_bounds = array<i64: 1, 128, 30>}]} {
    %c0 = arith.constant 0 : index
    %c0_0 = arith.constant 0 : index
    %0 = vector.load %arg4[%c0, %c0_0] : memref<90x96xbf16, #tpu.memory_space<vmem>>, vector<90x96xbf16>
    %c0_1 = arith.constant 0 : index
    %c0_2 = arith.constant 0 : index
    %c0_3 = arith.constant 0 : index
    %1 = vector.load %arg2[%c0_1, %c0_2, %c0_3] : memref<1x128x90xbf16, #tpu.memory_space<vmem>>, vector<1x128x90xbf16>
    %2 = vector.shape_cast %1 : vector<1x128x90xbf16> to vector<128x90xbf16>
    %cst = arith.constant dense<0.000000e+00> : vector<128x96xf32>
    %3 = tpu.matmul %2, %0, %cst {dimension_numbers = #tpu.dot_dimension_numbers<[1], [0], [0], [1], [0, 0, 1, 1], [], []>} : vector<128x90xbf16>, vector<90x96xbf16>, vector<128x96xf32> -> vector<128x96xf32>
    %c0_4 = arith.constant 0 : index
    %c0_5 = arith.constant 0 : index
    %c0_6 = arith.constant 0 : index
    %4 = vector.load %arg3[%c0_4, %c0_5, %c0_6] : memref<1x32x90xbf16, #tpu.memory_space<vmem>>, vector<1x32x90xbf16>
    %5 = vector.shape_cast %4 : vector<1x32x90xbf16> to vector<32x90xbf16>
    %cst_7 = arith.constant dense<0.000000e+00> : vector<32x96xf32>
    %6 = tpu.matmul %5, %0, %cst_7 {dimension_numbers = #tpu.dot_dimension_numbers<[1], [0], [0], [1], [0, 0, 1, 1], [], []>} : vector<32x90xbf16>, vector<90x96xbf16>, vector<32x96xf32> -> vector<32x96xf32>
    %7 = vector.extract_strided_slice %3 {offsets = [0, 0], sizes = [128, 32], strides = [1, 1]} : vector<128x96xf32> to vector<128x32xf32>
    %8 = vector.extract_strided_slice %3 {offsets = [16, 32], sizes = [112, 32], strides = [1, 1]} : vector<128x96xf32> to vector<112x32xf32>
    %9 = vector.extract_strided_slice %6 {offsets = [0, 32], sizes = [16, 32], strides = [1, 1]} : vector<32x96xf32> to vector<16x32xf32>
    %10 = tpu.concatenate %8, %9 in 0 : vector<112x32xf32>, vector<16x32xf32> -> vector<128x32xf32>
    %11 = arith.addf %7, %10 : vector<128x32xf32>
    %12 = vector.extract_strided_slice %3 {offsets = [32, 64], sizes = [96, 32], strides = [1, 1]} : vector<128x96xf32> to vector<96x32xf32>
    %13 = vector.extract_strided_slice %6 {offsets = [0, 64], sizes = [32, 32], strides = [1, 1]} : vector<32x96xf32> to vector<32x32xf32>
    %14 = tpu.concatenate %12, %13 in 0 : vector<96x32xf32>, vector<32x32xf32> -> vector<128x32xf32>
    %15 = arith.addf %11, %14 : vector<128x32xf32>
    %16 = vector.extract_strided_slice %15 {offsets = [0, 0], sizes = [128, 30], strides = [1, 1]} : vector<128x32xf32> to vector<128x30xf32>
    %c0_8 = arith.constant 0 : index
    %c0_9 = arith.constant 0 : index
    %17 = vector.load %arg5[%c0_8, %c0_9] : memref<1x30xf32, #tpu.memory_space<vmem>>, vector<1x30xf32>
    %18 = vector.broadcast %17 : vector<1x30xf32> to vector<128x30xf32>
    %19 = arith.addf %16, %18 : vector<128x30xf32>
    %c0_10 = arith.constant 0 : index
    %c0_11 = arith.constant 0 : index
    %c0_12 = arith.constant 0 : index
    %20 = vector.load %arg6[%c0_10, %c0_11, %c0_12] : memref<1x128x30xbf16, #tpu.memory_space<vmem>>, vector<1x128x30xbf16>
    %21 = vector.shape_cast %20 : vector<1x128x30xbf16> to vector<128x30xbf16>
    %22 = arith.extf %21 : vector<128x30xbf16> to vector<128x30xf32>
    %23 = arith.addf %19, %22 : vector<128x30xf32>
    %24 = arith.truncf %23 : vector<128x30xf32> to vector<128x30xbf16>
    %c0_13 = arith.constant 0 : index
    %c0_14 = arith.constant 0 : index
    %c0_15 = arith.constant 0 : index
    %25 = vector.load %arg7[%c0_13, %c0_14, %c0_15] : memref<1x128x30xbf16, #tpu.memory_space<vmem>>, vector<1x128x30xbf16>
    %26 = vector.shape_cast %25 : vector<1x128x30xbf16> to vector<128x30xbf16>
    %27 = vector.shape_cast %24 : vector<128x30xbf16> to vector<1x128x30xbf16>
    tpu.vector_store %arg7[%c0_13, %c0_14, %c0_15], %27 {strides = array<i32>} : memref<1x128x30xbf16, #tpu.memory_space<vmem>>, vector<1x128x30xbf16>,
    return
  }
  func.func @transform_0(%arg0: i32, %arg1: i32) -> (i32, i32, i32) {
    %c0_i32 = arith.constant 0 : i32
    %c0_i32_0 = arith.constant 0 : i32
    return %arg0, %arg1, %c0_i32 : i32, i32, i32
  }
  func.func @transform_1(%arg0: i32, %arg1: i32) -> (i32, i32, i32) {
    %c1_i32 = arith.constant 1 : i32
    %0 = arith.addi %arg1, %c1_i32 : i32
    %c4_i32 = arith.constant 4 : i32
    %1 = arith.muli %0, %c4_i32 : i32
    %c8_i32 = arith.constant 8 : i32
    %2 = arith.minsi %1, %c8_i32 : i32
    %c0_i32 = arith.constant 0 : i32
    %c0_i32_0 = arith.constant 0 : i32
    return %arg0, %2, %c0_i32 : i32, i32, i32
  }
  func.func @transform_2(%arg0: i32, %arg1: i32) -> (i32, i32) {
    %c0_i32 = arith.constant 0 : i32
    %c0_i32_0 = arith.constant 0 : i32
    %c0_i32_1 = arith.constant 0 : i32
    return %c0_i32, %c0_i32_0 : i32, i32
  }
  func.func @transform_3(%arg0: i32, %arg1: i32) -> (i32, i32) {
    %c0_i32 = arith.constant 0 : i32
    %c0_i32_0 = arith.constant 0 : i32
    %c0_i32_1 = arith.constant 0 : i32
    return %c0_i32, %c0_i32_0 : i32, i32
  }
  func.func @transform_4(%arg0: i32, %arg1: i32) -> (i32, i32, i32) {
    %c0_i32 = arith.constant 0 : i32
    %c0_i32_0 = arith.constant 0 : i32
    return %arg0, %arg1, %c0_i32 : i32, i32, i32
  }
  func.func @transform_5(%arg0: i32, %arg1: i32) -> (i32, i32, i32) {
    %c0_i32 = arith.constant 0 : i32
    %c0_i32_0 = arith.constant 0 : i32
    return %arg0, %arg1, %c0_i32 : i32, i32, i32
  }
}

module attributes {stable_mosaic.version = 11 : i64} {
  func.func @_conv3x3_kernel(%arg0: i32, %arg1: i32, %arg2: memref<1x128x90xbf16, #tpu.memory_space<vmem>>, %arg3: memref<1x32x90xbf16, #tpu.memory_space<vmem>>, %arg4: memref<90x96xbf16, #tpu.memory_space<vmem>>, %arg5: memref<1x27xf32, #tpu.memory_space<vmem>>, %arg6: memref<1x128x27xbf16, #tpu.memory_space<vmem>>) attributes {dimension_semantics = [#tpu.dimension_semantics<parallel>, #tpu.dimension_semantics<parallel>], iteration_bounds = array<i64: 2, 2>, scalar_prefetch = 0 : i64, scratch_operands = 0 : i64, tpu.core_type = #tpu.core_type<tc>, window_params = [{transform_indices = @transform_0, window_bounds = array<i64: 1, 128, 90>}, {transform_indices = @transform_1, window_bounds = array<i64: 1, 32, 90>}, {pipeline_mode = #tpu.pipeline_mode<synchronous>, transform_indices = @transform_2, window_bounds = array<i64: 90, 96>}, {pipeline_mode = #tpu.pipeline_mode<synchronous>, transform_indices = @transform_3, window_bounds = array<i64: 1, 27>}, {transform_indices = @transform_4, window_bounds = array<i64: 1, 128, 27>}]} {
    %c0 = arith.constant 0 : index
    %c0_0 = arith.constant 0 : index
    %0 = vector.load %arg4[%c0, %c0_0] : memref<90x96xbf16, #tpu.memory_space<vmem>>, vector<90x96xbf16>
    %c0_1 = arith.constant 0 : index
    %c0_2 = arith.constant 0 : index
    %c0_3 = arith.constant 0 : index
    %1 = vector.load %arg2[%c0_1, %c0_2, %c0_3] : memref<1x128x90xbf16, #tpu.memory_space<vmem>>, vector<1x128x90xbf16>
    %2 = vector.shape_cast %1 : vector<1x128x90xbf16> to vector<128x90xbf16>
    %cst = arith.constant dense<0.000000e+00> : vector<128x96xf32>
    %3 = tpu.matmul %2, %0, %cst {dimension_numbers = #tpu.dot_dimension_numbers<[1], [0], [0], [1], [0, 0, 1, 1], [], []>} : vector<128x90xbf16>, vector<90x96xbf16>, vector<128x96xf32> -> vector<128x96xf32>
    %c0_4 = arith.constant 0 : index
    %c0_5 = arith.constant 0 : index
    %c0_6 = arith.constant 0 : index
    %4 = vector.load %arg3[%c0_4, %c0_5, %c0_6] : memref<1x32x90xbf16, #tpu.memory_space<vmem>>, vector<1x32x90xbf16>
    %5 = vector.shape_cast %4 : vector<1x32x90xbf16> to vector<32x90xbf16>
    %cst_7 = arith.constant dense<0.000000e+00> : vector<32x96xf32>
    %6 = tpu.matmul %5, %0, %cst_7 {dimension_numbers = #tpu.dot_dimension_numbers<[1], [0], [0], [1], [0, 0, 1, 1], [], []>} : vector<32x90xbf16>, vector<90x96xbf16>, vector<32x96xf32> -> vector<32x96xf32>
    %7 = vector.extract_strided_slice %3 {offsets = [0, 0], sizes = [128, 32], strides = [1, 1]} : vector<128x96xf32> to vector<128x32xf32>
    %8 = vector.extract_strided_slice %3 {offsets = [16, 32], sizes = [112, 32], strides = [1, 1]} : vector<128x96xf32> to vector<112x32xf32>
    %9 = vector.extract_strided_slice %6 {offsets = [0, 32], sizes = [16, 32], strides = [1, 1]} : vector<32x96xf32> to vector<16x32xf32>
    %10 = tpu.concatenate %8, %9 in 0 : vector<112x32xf32>, vector<16x32xf32> -> vector<128x32xf32>
    %11 = arith.addf %7, %10 : vector<128x32xf32>
    %12 = vector.extract_strided_slice %3 {offsets = [32, 64], sizes = [96, 32], strides = [1, 1]} : vector<128x96xf32> to vector<96x32xf32>
    %13 = vector.extract_strided_slice %6 {offsets = [0, 64], sizes = [32, 32], strides = [1, 1]} : vector<32x96xf32> to vector<32x32xf32>
    %14 = tpu.concatenate %12, %13 in 0 : vector<96x32xf32>, vector<32x32xf32> -> vector<128x32xf32>
    %15 = arith.addf %11, %14 : vector<128x32xf32>
    %16 = vector.extract_strided_slice %15 {offsets = [0, 0], sizes = [128, 27], strides = [1, 1]} : vector<128x32xf32> to vector<128x27xf32>
    %c0_8 = arith.constant 0 : index
    %c0_9 = arith.constant 0 : index
    %17 = vector.load %arg5[%c0_8, %c0_9] : memref<1x27xf32, #tpu.memory_space<vmem>>, vector<1x27xf32>
    %18 = vector.broadcast %17 : vector<1x27xf32> to vector<128x27xf32>
    %19 = arith.addf %16, %18 : vector<128x27xf32>
    %20 = arith.truncf %19 : vector<128x27xf32> to vector<128x27xbf16>
    %c0_10 = arith.constant 0 : index
    %c0_11 = arith.constant 0 : index
    %c0_12 = arith.constant 0 : index
    %21 = vector.load %arg6[%c0_10, %c0_11, %c0_12] : memref<1x128x27xbf16, #tpu.memory_space<vmem>>, vector<1x128x27xbf16>
    %22 = vector.shape_cast %21 : vector<1x128x27xbf16> to vector<128x27xbf16>
    %23 = vector.shape_cast %20 : vector<128x27xbf16> to vector<1x128x27xbf16>
    tpu.vector_store %arg6[%c0_10, %c0_11, %c0_12], %23 {strides = array<i32>} : memref<1x128x27xbf16, #tpu.memory_space<vmem>>, vector<1x128x27xbf16>,
    return
  }
  func.func @transform_0(%arg0: i32, %arg1: i32) -> (i32, i32, i32) {
    %c0_i32 = arith.constant 0 : i32
    %c0_i32_0 = arith.constant 0 : i32
    return %arg0, %arg1, %c0_i32 : i32, i32, i32
  }
  func.func @transform_1(%arg0: i32, %arg1: i32) -> (i32, i32, i32) {
    %c1_i32 = arith.constant 1 : i32
    %0 = arith.addi %arg1, %c1_i32 : i32
    %c4_i32 = arith.constant 4 : i32
    %1 = arith.muli %0, %c4_i32 : i32
    %c8_i32 = arith.constant 8 : i32
    %2 = arith.minsi %1, %c8_i32 : i32
    %c0_i32 = arith.constant 0 : i32
    %c0_i32_0 = arith.constant 0 : i32
    return %arg0, %2, %c0_i32 : i32, i32, i32
  }
  func.func @transform_2(%arg0: i32, %arg1: i32) -> (i32, i32) {
    %c0_i32 = arith.constant 0 : i32
    %c0_i32_0 = arith.constant 0 : i32
    %c0_i32_1 = arith.constant 0 : i32
    return %c0_i32, %c0_i32_0 : i32, i32
  }
  func.func @transform_3(%arg0: i32, %arg1: i32) -> (i32, i32) {
    %c0_i32 = arith.constant 0 : i32
    %c0_i32_0 = arith.constant 0 : i32
    %c0_i32_1 = arith.constant 0 : i32
    return %c0_i32, %c0_i32_0 : i32, i32
  }
  func.func @transform_4(%arg0: i32, %arg1: i32) -> (i32, i32, i32) {
    %c0_i32 = arith.constant 0 : i32
    %c0_i32_0 = arith.constant 0 : i32
    return %arg0, %arg1, %c0_i32 : i32, i32, i32
  }
}

</mosaic_0001>

<bundles_post_ra>
// kernel: _lambda_.36
= control target key start
LH: loop header
LB: loop body
LE: loop exit
PB: predicated region body
PF: predicated region fallthrough
CT: control target
= control target key end

     0   :  { %9 = vsyncpa [#allocation3], 0  ;;  %s1455_s0 = inlined_call_operand.vmem [shape: bf16[2,288,9], index: 0, kind: input, shape index: {}, may-alias: {0,1}]   ;;  %s1456_s1 = inlined_call_operand.vmem [shape: bf16[2,288,9], index: 1, kind: input, shape index: {}, may-alias: {0,1}]   ;;  %s1457_s2 = inlined_call_operand.hbm [shape: bf16[9,96], index: 2, kind: input, shape index: {}]   ;;  %s1458_s3 = inlined_call_operand.hbm [shape: f32[1,30], index: 3, kind: input, shape index: {}]   ;;  %s1459_s4 = inlined_call_operand.vmem [shape: bf16[2,256,30], index: 4, kind: output, shape index: {}]  }
   0x1   :  { %10 = vsyncpa [#allocation5], 0  ;;  %s1168_s15 = smov 0   ;;  %s1170_s16 = smov 0  }
   0x2   :  { %s1172_s17 = smov 0   ;;  %s1174_s18 = smov 0  }
   0x3   :  { %s1176_s19 = smov 0  }
   0x4 LB: > { %s866_s20 = sadd.s32 4294967295, %s1134_s19   ;;  %s25_s21 = sadd.s32 1, %s1126_s17  ;;  %s1134_s19 = sphi %s1176_s19, %s16_s19   ;;  %s1130_s18 = sphi %s1174_s18, %s1465_s18   ;;  %s1126_s17 = sphi %s1172_s17, %s1464_s17   ;;  %s1122_s16 = sphi %s1170_s16, %s1463_s16   ;;  %s1118_s15 = sphi %s1168_s15, %s1462_s15  }
   0x5   : > { %p26_p0 = scmp.ge.s32.totalorder %s25_s21, 2  ;;  %s28_s22 = sadd.s32 1, %s1130_s18 }
   0x6   : > { %p870_p1 = scmp.ge.s32.totalorder %s1134_s19, 1  ;;  %p167_p2 = scmp.lt.s32.totalorder %s1134_s19, 5 }
   0x7   : > { %s1467_s21 = smov (%p26_p0, %s25_s21), 0  ;;  %s1469_s22 = smov (!%p26_p0, %s28_s22), %s1130_s18 }
   0x8   : > { %p1201_p3 = pnand %p870_p1, %p167_p2  ;;  %p30_p4 = scmp.ge.s32.totalorder %s1469_s22, 2 }
   0x9   : > { %p1205_p5 = scmp.eq.s32.totalorder %s866_s20, 0  ;;  %s178_s27 = sshll.u32 %s1457_s2, 4  ;;  %s179_s27 = int_to_ptr.hbm [resolvable:$true] %s178_s27 }
   0xa   : > { %p969_p6 = pneg %p1201_p3  ;;  %s1471_s22 = smov (%p30_p4, %s1469_s22), 0 }
   0xb   : > { %s1136_s28 = smov [#allocation2]   ;;  %s1137_s30 = smov 64  }
   0xc   : > { %s180_s29 = sshll.u32 %s1136_s28, 4  ;;  %p970_p7 = pnand %p1205_p5, %p969_p6  ;;  %s181_s29 = int_to_ptr.vmem [resolvable:$true] %s180_s29 }
   0xd   : > { %s1138_s5 = smov 4   ;;  %s193_s8 = sshll.u32 %s1458_s3, 4  ;;  %s194_s8 = int_to_ptr.hbm [resolvable:$true] %s193_s8 }
   0xe   : > { %972 = dma.hbm_to_vmem [thread:$0]  (!%p970_p7), %s179_s27, 128, %s181_s29, [#allocation3], %s1137_s30, %s1137_s30, %s1138_s5  }
   0xf   : > { %s1139_s9 = smov [#allocation4]   ;;  %250 = sbr.rel (%p1201_p3) target bundleno = 367 (0x16f), region = 36 }
  0x10   : > { %s195_s10 = sshll.u32 %s1139_s9, 4  ;;  %s196_s10 = int_to_ptr.vmem [resolvable:$true] %s195_s10 }
  0x11   : > { %975 = dma.hbm_to_vmem [thread:$0]  (!%p970_p7), %s194_s8, 16, %s196_s10, [#allocation5]  }
  0x14   : > { %1109 = dma.done.wait (%p1205_p5), [#allocation3], 128  }
  0x15   : > { %1111 = vsyncadd (%p1205_p5), [#allocation3], 4294967168 }
  0x16   : > { %1113 = dma.done.wait (%p1205_p5), [#allocation5], 16  }
  0x17   : > { %1115 = vsyncadd (%p1205_p5), [#allocation5], 4294967280  ;;  %s1232_s11 = sshll.u32 %s1118_s15, 4  ;;  %vm442_vm0 = vcmask 1043456   ;;  %p312_p8 = scmp.lt.s32.totalorder %s1122_s16, 1  ;;  %vm443_vm1 = vcmask 1044480  }
  0x18   : > { %p314_p9 = scmp.lt.s32.totalorder %s1232_s11, 35  ;;  %s945_s12 = sshll.u32 %s1118_s15, 2  ;;  %v1140_v0 = vmov 65535   ;;  %v919_v2 = vld [vmem:[#allocation2] sm:$0xf]  ;;  %vm417_vm2 = vcmask 72704  }
  0x19   : > { %s1473_s16 = smov (!%p312_p8, %s1122_s16), 1  ;;  %v444_v1 = vsel %vm442_vm0, 4294967295, %v1140_v0  ;;  %s946_s20 = sadd.s32 4, %s945_s12  ;;  %v947_v3 = vld [vmem:[#allocation2] sm:$0x10]  ;;  %vm719_vm3 = vcmask 240640  }
  0x1a   : > { %s315_s13 = scalar_select %p314_p9, %s1232_s11, 35  ;;  %v445_v4 = vsel %vm443_vm1, %v444_v1, 0  ;;  %v920_v5 = vor.u32 %v947_v3, %v919_v2  ;;  %v1359_v44 = vld [vmem:[#allocation4] ss:$0 sm:$0xff] }
  0x1b   : > { %s960_s14 = smul.u32 36, %s1473_s16  ;;  %p327_p10 = scmp.lt.s32.totalorder %s946_s20, 8 }
  0x1c   : > { %v447_v6 = vand.u32 %v920_v5, %v445_v4  ;;  %s1141_s7 = smov 64   ;;  %s1142_s8 = smov 96  }
  0x1d   : > { %s317_s23 = sadd.s32 %s960_s14, %s315_s13  ;;  %s1475_s20 = smov (!%p327_p10, %s946_s20), 8 }
  0x1e   : > { %s878_s24 = sshll.u32 %s317_s23, 2  ;;  %958 = vmatpush.bf16.msra.mxu2 %v447_v6  ;;  %959 = vmatpush.bf16.msra.mxu3 %v447_v6  ;;  %s880_s27 = sshll.u32 %s1475_s20, 2 }
  0x1f   : > { %s1245_s15 = scalar_lea.vmem %s1455_s0, %s878_s24  ;;  %525 = vmatpush.bf16.msra.mxu1 %v447_v6  ;;  %p332_p11 = scmp.lt.s32.totalorder %s880_s27, 35  ;;  %456 = vmatpush.bf16.msra.mxu0 %v447_v6 }
  0x20   : > { %v951_v7 = vld [vmem:[%s1245_s15 + $0x18] sm:$0xff]  ;;  %v954_v8 = vld [vmem:[%s1245_s15 + $0x30] sm:$0xff]  ;;  %v948_v9 = vld [vmem:[%s1245_s15] sm:$0xff]  ;;  %p346_p12 = scmp.lt.s32.totalorder %s1232_s11, 31  ;;  %s883_s9 = sshll.u32 %s1473_s16, 5 }
  0x21   : > { %924 = vmatmul.msk.bf16.vlgmr.msra.gmra.mxu2 %vm417_vm2, %v951_v7  ;;  %927 = vmatmul.msk.bf16.vlgmr.msra.gmra.mxu3 %vm417_vm2, %v954_v8  ;;  %s1477_s27 = smov (!%p332_p11, %s880_s27), 35  ;;  %v952_v11 = vld [vmem:[%s1245_s15 + $0x20] sm:$0xff]  ;;  %v955_v12 = vld [vmem:[%s1245_s15 + $0x38] sm:$0xff]  ;;  %v949_v13 = vld [vmem:[%s1245_s15 + $0x8] sm:$0xff] }
  0x22   : > { %921 = vmatmul.msk.bf16.vlgmr.msra.gmra.mxu0 %vm417_vm2, %v948_v9  ;;  %s335_s28 = sadd.s32 %s960_s14, %s1477_s27  ;;  %v953_v15 = vld [vmem:[%s1245_s15 + $0x28] sm:$0xff]  ;;  %v950_v16 = vld [vmem:[%s1245_s15 + $0x10] sm:$0xff]  ;;  %s1479_s11 = smov (!%p346_p12, %s1232_s11), 31 }
  0x23   : > { %s881_s29 = sshll.u32 %s335_s28, 2  ;;  %s349_s10 = sadd.s32 %s883_s9, %s1479_s11 }
  0x24   : > { %s337_s6 = scalar_lea.vmem %s1456_s1, %s881_s29  ;;  %s884_s12 = sshll.u32 %s349_s10, 2 }
  0x25   : > { %v956_v10 = vld [vmem:[%s337_s6] sm:$0xff]  ;;  %v957_v14 = vld [vmem:[%s337_s6 + $0x8] sm:$0xff]  ;;  %s1365_s20 = scalar_lea.vmem %s1459_s4, %s884_s12 }
  0x26   : > { %937 = vmatmul.msk.bf16.vlgmr.msra.gmra.mxu1 %vm417_vm2, %v956_v10 }
  0x31   : > { %925 = vmatmul.msk.bf16.gmra.mxu2 %vm417_vm2, %v952_v11  ;;  %928 = vmatmul.msk.bf16.gmra.mxu3 %vm417_vm2, %v955_v12 }
  0x32   : > { %922 = vmatmul.msk.bf16.gmra.mxu0 %vm417_vm2, %v949_v13 }
  0x36   : > { %938 = vmatmul.msk.bf16.gmra.mxu1 %vm417_vm2, %v957_v14 }
  0x41   : > { %926 = vmatmul.msk.bf16.gmra.mxu2 %vm417_vm2, %v953_v15 }
  0x42   : > { %923 = vmatmul.msk.bf16.gmra.mxu0 %vm417_vm2, %v950_v16 }
  0x9f   : > { %v1274_v19 = vpop.f32.mrf.mxu0 }
  0xa3   : > { %v527_v18 = vpop.f32.mrf.mxu1 }
  0xa4   : > { %v1268_v17 = vpop.f32.mrf.mxu2  ;;  %643 = vrot.lane.b32.xlu1 %v527_v18, %s1141_s7  ;;  %581 = vrot.lane.b32.xlu2 %v527_v18, %s1142_s8  ;;  %v1276_v20 = vpop.f32.mrf.mxu3 }
  0xa5   : > { %623 = vrot.lane.b32.xlu0 %v1268_v17, %s1141_s7 }
  0xa7   : > { %v1286_v22 = vpop.f32.mrf.mxu0 }
  0xab   : > { %v529_v23 = vpop.f32.mrf.mxu1 }
  0xac   : > { %573 = vrot.lane.b32.xlu1 %v1276_v20, %s1142_s8  ;;  %561 = vrot.lane.b32.xlu2 %v1268_v17, %s1142_s8  ;;  %v1284_v21 = vpop.f32.mrf.mxu2  ;;  %v1293_v24 = vpop.f32.mrf.mxu3 }
  0xad   : > { %635 = vrot.lane.b32.xlu0 %v1276_v20, %s1141_s7 }
  0xaf   : > { %v1297_v26 = vpop.f32.mrf.mxu0 }
  0xb3   : > { %v532_v35 = vpop.f32.mrf.mxu1 }
  0xb4   : > { %625 = vrot.lane.b32.xlu1 %v1284_v21, %s1141_s7  ;;  %563 = vrot.lane.b32.xlu2 %v1284_v21, %s1142_s8  ;;  %v1295_v25 = vpop.f32.mrf.mxu2  ;;  %v1305_v27 = vpop.f32.mrf.mxu3 }
  0xb5   : > { %583 = vrot.lane.b32.xlu0 %v529_v23, %s1142_s8 }
  0xb7   : > { %v1315_v29 = vpop.f32.mrf.mxu0 }
  0xbb   : > { %v534_v36 = vpop.f32.mrf.mxu1 }
  0xbc   : > { %637 = vrot.lane.b32.xlu1 %v1293_v24, %s1141_s7  ;;  %575 = vrot.lane.b32.xlu2 %v1293_v24, %s1142_s8  ;;  %v1307_v28 = vpop.f32.mrf.mxu2  ;;  %v1317_v30 = vpop.f32.mrf.mxu3 }
  0xbd   : > { %553 = vrot.lane.b32.xlu0 %v1297_v26, %s1142_s8 }
  0xbf   : > { %v468_v31 = vpop.f32.mrf.mxu0 }
  0xc4   : > { %627 = vrot.lane.b32.xlu2 %v1295_v25, %s1141_s7  ;;  %567 = vrot.lane.b32.xlu1 %v1307_v28, %s1142_s8  ;;  %v483_v32 = vpop.f32.mrf.mxu2 }
  0xc5   : > { %565 = vrot.lane.b32.xlu0 %v1295_v25, %s1142_s8 }
  0xc7   : > { %v1329_v33 = vpop.f32.mrf.mxu0 }
  0xcc   : > { %639 = vrot.lane.b32.xlu2 %v1305_v27, %s1141_s7  ;;  %579 = vrot.lane.b32.xlu1 %v1317_v30, %s1142_s8  ;;  %v1336_v34 = vpop.f32.mrf.mxu2 }
  0xcd   : > { %577 = vrot.lane.b32.xlu0 %v1305_v27, %s1142_s8 }
  0xd4   : > { %569 = vrot.lane.b32.xlu2 %v483_v32, %s1142_s8  ;;  %557 = vrot.lane.b32.xlu1 %v468_v31, %s1142_s8 }
  0xd5   : > { %555 = vrot.lane.b32.xlu0 %v1315_v29, %s1142_s8 }
  0xdc   : > { %619 = vrot.lane.b32.xlu1 %v468_v31, %s1141_s7  ;;  %621 = vrot.lane.b32.xlu2 %v1329_v33, %s1141_s7 }
  0xdd   : > { %629 = vrot.lane.b32.xlu0 %v1307_v28, %s1141_s7 }
  0xe4   : > { %631 = vrot.lane.b32.xlu1 %v483_v32, %s1141_s7  ;;  %633 = vrot.lane.b32.xlu2 %v1336_v34, %s1141_s7 }
  0xe5   : > { %641 = vrot.lane.b32.xlu0 %v1317_v30, %s1141_s7 }
  0xec   : > { %645 = vrot.lane.b32.xlu2 %v529_v23, %s1141_s7  ;;  %559 = vrot.lane.b32.xlu1 %v1329_v33, %s1142_s8 }
  0xed   : > { %571 = vrot.lane.b32.xlu0 %v1336_v34, %s1142_s8 }
  0xf4   : > { %649 = vrot.lane.b32.xlu1 %v534_v36, %s1141_s7 }
  0xf5   : > { %647 = vrot.lane.b32.xlu0 %v532_v35, %s1141_s7 }
  0xfe   : > { %v1350_v37 = vpop.permute.xlu2 %581 }
 0x106   : > { %v562_v38 = vpop.permute.xlu2 %561 }
 0x107   : > { %v605_v43 = vadd.f32 %v562_v38, %v468_v31 }
 0x10e   : > { %v1352_v39 = vpop.permute.xlu2 %563 }
 0x116   : > { %v644_v41 = vpop.permute.xlu1 %643  ;;  %v1355_v42 = vpop.permute.xlu2 %575 }
 0x117   : > { %v624_v40 = vpop.permute.xlu0 %623 }
 0x11e   : > { %v574_v46 = vpop.permute.xlu1 %573  ;;  %v628_v47 = vpop.permute.xlu2 %627 }
 0x11f   : > { %v636_v45 = vpop.permute.xlu0 %635  ;;  %v671_v48 = vadd.f32 %v628_v47, %v605_v43  ;;  %v611_v51 = vadd.f32 %v574_v46, %v483_v32 }
 0x121   : > { %v691_v49 = vadd.f32 %v1359_v44, %v671_v48 }
 0x123   : > { %v707_v50 = vpack.c.bf16 %v691_v49, %v691_v49  ;;  %v612_v49 = vadd.f32 %v1355_v42, %v1336_v34 }
 0x125   : > { %724 = vst.msk [vmem:[%s1365_s20 + $0x10] sm:$0xf] %vm719_vm3, %v707_v50 }
 0x126   : > { %v1371_v53 = vpop.permute.xlu1 %625  ;;  %v640_v54 = vpop.permute.xlu2 %639 }
 0x127   : > { %v1369_v52 = vpop.permute.xlu0 %583  ;;  %v677_v55 = vadd.f32 %v640_v54, %v611_v51 }
 0x129   : > { %v697_v56 = vadd.f32 %v1359_v44, %v677_v55 }
 0x12b   : > { %v713_v57 = vpack.c.bf16 %v697_v56, %v697_v56 }
 0x12d   : > { %730 = vst.msk [vmem:[%s1365_s20 + $0x28] sm:$0xf] %vm719_vm3, %v713_v57 }
 0x12e   : > { %v1376_v59 = vpop.permute.xlu1 %637  ;;  %v570_v60 = vpop.permute.xlu2 %569 }
 0x12f   : > { %v554_v58 = vpop.permute.xlu0 %553  ;;  %v609_v61 = vadd.f32 %v570_v60, %v1295_v25 }
 0x131   : > { %v675_v62 = vadd.f32 %v636_v45, %v609_v61 }
 0x133   : > { %v695_v63 = vadd.f32 %v1359_v44, %v675_v62 }
 0x135   : > { %v711_v0 = vpack.c.bf16 %v695_v63, %v695_v63 }
 0x136   : > { %v568_v2 = vpop.permute.xlu1 %567  ;;  %v622_v3 = vpop.permute.xlu2 %621 }
 0x137   : > { %v566_v1 = vpop.permute.xlu0 %565  ;;  %728 = vst.msk [vmem:[%s1365_s20 + $0x20] sm:$0xf] %vm719_vm3, %v711_v0  ;;  %v608_v4 = vadd.f32 %v568_v2, %v1284_v21 }
 0x138   : > { %v607_v50 = vadd.f32 %v566_v1, %v1268_v17 }
 0x13e   : > { %v580_v6 = vpop.permute.xlu1 %579  ;;  %v634_v7 = vpop.permute.xlu2 %633 }
 0x13f   : > { %v578_v5 = vpop.permute.xlu0 %577  ;;  %v674_v9 = vadd.f32 %v634_v7, %v608_v4  ;;  %v614_v15 = vadd.f32 %v580_v6, %v1293_v24 }
 0x140   : > { %v613_v8 = vadd.f32 %v578_v5, %v1276_v20  ;;  %v616_v5 = vadd.f32 %v1369_v52, %v1317_v30 }
 0x141   : > { %v694_v11 = vadd.f32 %v1359_v44, %v674_v9 }
 0x142   : > { %v679_v10 = vadd.f32 %v644_v41, %v613_v8  ;;  %v606_v41 = vadd.f32 %v1352_v39, %v1329_v33 }
 0x143   : > { %v710_v13 = vpack.c.bf16 %v694_v11, %v694_v11 }
 0x144   : > { %v699_v12 = vadd.f32 %v1359_v44, %v679_v10 }
 0x145   : > { %727 = vst.msk [vmem:[%s1365_s20 + $0x1c] sm:$0xf] %vm719_vm3, %v710_v13 }
 0x146   : > { %v715_v14 = vpack.c.bf16 %v699_v12, %v699_v12  ;;  %v558_v18 = vpop.permute.xlu1 %557  ;;  %v646_v21 = vpop.permute.xlu2 %645 }
 0x147   : > { %v556_v16 = vpop.permute.xlu0 %555  ;;  %v603_v23 = vadd.f32 %v558_v18, %v1297_v26  ;;  %v680_v25 = vadd.f32 %v646_v21, %v614_v15 }
 0x148   : > { %732 = vst.msk [vmem:[%s1365_s20 + $0x30] sm:$0xf] %vm719_vm3, %v715_v14  ;;  %v602_v20 = vadd.f32 %v556_v16, %v1286_v22  ;;  %v601_v22 = vadd.f32 %v554_v58, %v1274_v19 }
 0x149   : > { %v669_v32 = vadd.f32 %v624_v40, %v603_v23  ;;  %v700_v35 = vadd.f32 %v1359_v44, %v680_v25 }
 0x14a   : > { %v668_v31 = vadd.f32 %v622_v3, %v602_v20  ;;  %v615_v3 = vadd.f32 %v1350_v37, %v1305_v27 }
 0x14b   : > { %v689_v36 = vadd.f32 %v1359_v44, %v669_v32  ;;  %v716_v38 = vpack.c.bf16 %v700_v35, %v700_v35 }
 0x14c   : > { %v688_v24 = vadd.f32 %v1359_v44, %v668_v31 }
 0x14d   : > { %v705_v26 = vpack.c.bf16 %v689_v36, %v689_v36  ;;  %733 = vst.msk [vmem:[%s1365_s20 + $0x34] sm:$0xf] %vm719_vm3, %v716_v38 }
 0x14e   : > { %v704_v43 = vpack.c.bf16 %v688_v24, %v688_v24  ;;  %v620_v40 = vpop.permute.xlu1 %619 }
 0x14f   : > { %v630_v45 = vpop.permute.xlu0 %629  ;;  %722 = vst.msk [vmem:[%s1365_s20 + $0x8] sm:$0xf] %vm719_vm3, %v705_v26  ;;  %v667_v47 = vadd.f32 %v620_v40, %v601_v22 }
 0x150   : > { %721 = vst.msk [vmem:[%s1365_s20 + $0x4] sm:$0xf] %vm719_vm3, %v704_v43  ;;  %v672_v46 = vadd.f32 %v630_v45, %v606_v41 }
 0x151   : > { %v687_v33 = vadd.f32 %v1359_v44, %v667_v47 }
 0x152   : > { %v692_v48 = vadd.f32 %v1359_v44, %v672_v46 }
 0x153   : > { %v703_v19 = vpack.c.bf16 %v687_v33, %v687_v33 }
 0x154   : > { %v708_v39 = vpack.c.bf16 %v692_v48, %v692_v48 }
 0x155   : > { %720 = vst.msk [vmem:[%s1365_s20] sm:$0xf] %vm719_vm3, %v703_v19 }
 0x156   : > { %725 = vst.msk [vmem:[%s1365_s20 + $0x14] sm:$0xf] %vm719_vm3, %v708_v39  ;;  %v632_v54 = vpop.permute.xlu1 %631 }
 0x157   : > { %v642_v51 = vpop.permute.xlu0 %641  ;;  %v673_v56 = vadd.f32 %v632_v54, %v607_v50 }
 0x158   : > { %v678_v55 = vadd.f32 %v642_v51, %v612_v49 }
 0x159   : > { %v693_v58 = vadd.f32 %v1359_v44, %v673_v56 }
 0x15a   : > { %v698_v57 = vadd.f32 %v1359_v44, %v678_v55 }
 0x15b   : > { %v709_v61 = vpack.c.bf16 %v693_v58, %v693_v58 }
 0x15c   : > { %v714_v60 = vpack.c.bf16 %v698_v57, %v698_v57 }
 0x15d   : > { %726 = vst.msk [vmem:[%s1365_s20 + $0x18] sm:$0xf] %vm719_vm3, %v709_v61 }
 0x15e   : > { %731 = vst.msk [vmem:[%s1365_s20 + $0x2c] sm:$0xf] %vm719_vm3, %v714_v60  ;;  %v560_v17 = vpop.permute.xlu1 %559 }
 0x15f   : > { %v572_v34 = vpop.permute.xlu0 %571  ;;  %v604_v62 = vadd.f32 %v560_v17, %v1315_v29 }
 0x160   : > { %v610_v42 = vadd.f32 %v572_v34, %v1307_v28 }
 0x161   : > { %v670_v0 = vadd.f32 %v1371_v53, %v604_v62 }
 0x162   : > { %v676_v63 = vadd.f32 %v1376_v59, %v610_v42 }
 0x163   : > { %v690_v2 = vadd.f32 %v1359_v44, %v670_v0 }
 0x164   : > { %v696_v1 = vadd.f32 %v1359_v44, %v676_v63 }
 0x165   : > { %v706_v28 = vpack.c.bf16 %v690_v2, %v690_v2 }
 0x166   : > { %v712_v4 = vpack.c.bf16 %v696_v1, %v696_v1  ;;  %v650_v29 = vpop.permute.xlu1 %649 }
 0x167   : > { %v648_v6 = vpop.permute.xlu0 %647  ;;  %723 = vst.msk [vmem:[%s1365_s20 + $0xc] sm:$0xf] %vm719_vm3, %v706_v28  ;;  %v682_v53 = vadd.f32 %v650_v29, %v616_v5 }
 0x168   : > { %729 = vst.msk [vmem:[%s1365_s20 + $0x24] sm:$0xf] %vm719_vm3, %v712_v4  ;;  %v681_v59 = vadd.f32 %v648_v6, %v615_v3 }
 0x169   : > { %v702_v8 = vadd.f32 %v1359_v44, %v682_v53 }
 0x16a   : > { %v701_v7 = vadd.f32 %v1359_v44, %v681_v59 }
 0x16b   : > { %v718_v10 = vpack.c.bf16 %v702_v8, %v702_v8 }
 0x16c   : > { %v717_v9 = vpack.c.bf16 %v701_v7, %v701_v7 }
 0x16d   : > { %735 = vst.msk [vmem:[%s1365_s20 + $0x3c] sm:$0xf] %vm719_vm3, %v718_v10 }
 0x16e   : > { %734 = vst.msk [vmem:[%s1365_s20 + $0x38] sm:$0xf] %vm719_vm3, %v717_v9 }
 0x16f PF: > { %s16_s19 = sadd.s32 1, %s1134_s19   ;;  %s1462_s15 = smov %s1126_s17 }
 0x170   : > { %p13_p13 = scmp.ge.s32.totalorder %s16_s19, 6   ;;  %s1463_s16 = smov %s1130_s18 }
 0x171   : > { %s1464_s17 = smov %s1467_s21  ;;  %s1465_s18 = smov %s1471_s22 }
 0x172   :  { %15 = sbr.rel (!%p13_p13) target bundleno = 4 (0x4), region = 78 }
 0x177   :  { %766 = vsyncpa [#allocation3], 1 }
 0x178   :  { %768 = vsyncpa [#allocation3 + $0x1], 1 }
 0x179   :  { %769 = vsyncpa [#allocation5], 1 }

// kernel: _lambda_.37
= control target key start
LH: loop header
LB: loop body
LE: loop exit
PB: predicated region body
PF: predicated region fallthrough
CT: control target
= control target key end

     0   :  { %9 = vsyncpa [#allocation3], 0  ;;  %s1545_s0 = inlined_call_operand.vmem [shape: bf16[2,288,90], index: 0, kind: input, shape index: {}, may-alias: {0,1}]   ;;  %s1546_s1 = inlined_call_operand.vmem [shape: bf16[2,288,90], index: 1, kind: input, shape index: {}, may-alias: {0,1}]   ;;  %s1547_s2 = inlined_call_operand.hbm [shape: bf16[90,96], index: 2, kind: input, shape index: {}]   ;;  %s1548_s3 = inlined_call_operand.hbm [shape: f32[1,32], index: 3, kind: input, shape index: {}]   ;;  %s1549_s4 = inlined_call_operand.vmem [shape: bf16[2,256,32], index: 4, kind: output, shape index: {}]  }
   0x1   :  { %10 = vsyncpa [#allocation5], 0  ;;  %s1286_s15 = smov 0   ;;  %s1288_s16 = smov 0  }
   0x2   :  { %s1290_s17 = smov 0   ;;  %s1292_s18 = smov 0  }
   0x3   :  { %s1294_s19 = smov 0  }
   0x4 LB: > { %s951_s20 = sadd.s32 4294967295, %s1253_s19   ;;  %s25_s21 = sadd.s32 1, %s1245_s17  ;;  %s1253_s19 = sphi %s1294_s19, %s16_s19   ;;  %s1249_s18 = sphi %s1292_s18, %s1555_s18   ;;  %s1245_s17 = sphi %s1290_s17, %s1554_s17   ;;  %s1241_s16 = sphi %s1288_s16, %s1553_s16   ;;  %s1237_s15 = sphi %s1286_s15, %s1552_s15  }
   0x5   : > { %p26_p0 = scmp.ge.s32.totalorder %s25_s21, 2  ;;  %s28_s22 = sadd.s32 1, %s1249_s18 }
   0x6   : > { %p955_p1 = scmp.ge.s32.totalorder %s1253_s19, 1  ;;  %p167_p2 = scmp.lt.s32.totalorder %s1253_s19, 5 }
   0x7   : > { %s1557_s21 = smov (%p26_p0, %s25_s21), 0  ;;  %s1559_s22 = smov (!%p26_p0, %s28_s22), %s1249_s18 }
   0x8   : > { %p1319_p3 = pnand %p955_p1, %p167_p2  ;;  %p30_p4 = scmp.ge.s32.totalorder %s1559_s22, 2 }
   0x9   : > { %p1323_p5 = scmp.eq.s32.totalorder %s951_s20, 0  ;;  %s178_s27 = sshll.u32 %s1547_s2, 4  ;;  %s179_s27 = int_to_ptr.hbm [resolvable:$true] %s178_s27 }
   0xa   : > { %p1089_p6 = pneg %p1319_p3  ;;  %s1561_s22 = smov (%p30_p4, %s1559_s22), 0 }
   0xb   : > { %s1255_s28 = smov [#allocation2]   ;;  %s1256_s30 = smov 64  }
   0xc   : > { %s180_s29 = sshll.u32 %s1255_s28, 4  ;;  %p1090_p7 = pnand %p1323_p5, %p1089_p6  ;;  %s181_s29 = int_to_ptr.vmem [resolvable:$true] %s180_s29 }
   0xd   : > { %s1257_s5 = smov 4   ;;  %s193_s8 = sshll.u32 %s1548_s3, 4  ;;  %s194_s8 = int_to_ptr.hbm [resolvable:$true] %s193_s8 }
   0xe   : > { %1092 = dma.hbm_to_vmem [thread:$0]  (!%p1090_p7), %s179_s27, 768, %s181_s29, [#allocation3], %s1256_s30, %s1256_s30, %s1257_s5  }
   0xf   : > { %s1258_s9 = smov [#allocation4]   ;;  %250 = sbr.rel (%p1319_p3) target bundleno = 388 (0x184), region = 36 }
  0x10   : > { %s195_s10 = sshll.u32 %s1258_s9, 4  ;;  %s196_s10 = int_to_ptr.vmem [resolvable:$true] %s195_s10 }
  0x11   : > { %1095 = dma.hbm_to_vmem [thread:$0]  (!%p1090_p7), %s194_s8, 16, %s196_s10, [#allocation5]  }
  0x14   : > { %1228 = dma.done.wait (%p1323_p5), [#allocation3], 768  }
  0x15   : > { %1230 = vsyncadd (%p1323_p5), [#allocation3], 4294966528 }
  0x16   : > { %1232 = dma.done.wait (%p1323_p5), [#allocation5], 16  }
  0x17   : > { %1234 = vsyncadd (%p1323_p5), [#allocation5], 4294967280  ;;  %s962_s11 = sshll.u32 %s1237_s15, 4  ;;  %p312_p8 = scmp.lt.s32.totalorder %s1241_s16, 1  ;;  %v1024_v0 = vld [vmem:[#allocation2 + $0x28] sm:$0xf] }
  0x18   : > { %p346_p9 = scmp.lt.s32.totalorder %s962_s11, 31  ;;  %s1050_s14 = sshll.u32 %s1237_s15, 2  ;;  %v1057_v1 = vld [vmem:[#allocation2 + $0x28] sm:$0x10]  ;;  %vm482_vm0 = vcmask 1044480   ;;  %v1056_v4 = vld [vmem:[#allocation2 + $0x20] sm:$0xff] }
  0x19   : > { %s1563_s16 = smov (!%p312_p8, %s1241_s16), 1  ;;  %v1025_v2 = vor.u32 %v1057_v1, %v1024_v0  ;;  %s1051_s23 = sadd.s32 4, %s1050_s14  ;;  %v1055_v5 = vld [vmem:[#allocation2 + $0x18] sm:$0xff]  ;;  %v1054_v6 = vld [vmem:[#allocation2 + $0x10] sm:$0xff]  ;;  %v1053_v7 = vld [vmem:[#allocation2 + $0x8] sm:$0xff]  ;;  %vm457_vm1 = vcmask 736256  }
  0x1a   : > { %s968_s12 = sshll.u32 %s1563_s16, 5  ;;  %p327_p10 = scmp.lt.s32.totalorder %s1051_s23, 8  ;;  %v1052_v8 = vld [vmem:[#allocation2] sm:$0xff]  ;;  %v1451_v49 = vld [vmem:[#allocation4] ss:$0 sm:$0xff]  ;;  %vm804_vm3 = vcmask 257024  }
  0x1b   : > { %s347_s13 = scalar_select %p346_p9, %s962_s11, 31  ;;  %v484_v3 = vsel %vm482_vm0, %v1025_v2, 0 }
  0x1c   : > { %1068 = vmatpush.bf16.msra.mxu2 %v484_v3  ;;  %1069 = vmatpush.bf16.msra.mxu3 %v484_v3  ;;  %p314_p11 = scmp.lt.s32.totalorder %s962_s11, 35  ;;  %s1565_s23 = smov (!%p327_p10, %s1051_s23), 8 }
  0x1d   : > { %s1356_s20 = sadd.s32 %s968_s12, %s347_s13  ;;  %557 = vmatpush.bf16.msra.mxu1 %v484_v3  ;;  %488 = vmatpush.bf16.msra.mxu0 %v484_v3  ;;  %s965_s24 = sshll.u32 %s1565_s23, 2 }
  0x1e   : > { %p332_p12 = scmp.lt.s32.totalorder %s965_s24, 35  ;;  %s1567_s11 = smov (!%p314_p11, %s962_s11), 35 }
  0x1f   : > { %s1080_s15 = smul.u32 36, %s1563_s16  ;;  %s1259_s8 = smov 64  }
  0x20   : > { %1070 = vmatpush.bf16.msra.mxu2 %v1056_v4  ;;  %1071 = vmatpush.bf16.msra.mxu3 %v1056_v4  ;;  %s1569_s24 = smov (!%p332_p12, %s965_s24), 35  ;;  %s1260_s9 = smov 96  }
  0x21   : > { %558 = vmatpush.bf16.msra.mxu1 %v1056_v4  ;;  %489 = vmatpush.bf16.msra.mxu0 %v1056_v4  ;;  %s317_s25 = sadd.s32 %s1080_s15, %s1567_s11  ;;  %s335_s26 = sadd.s32 %s1080_s15, %s1569_s24 }
  0x22   : > { %s963_s27 = sshll.u32 %s317_s25, 2  ;;  %s966_s28 = sshll.u32 %s335_s26, 2 }
  0x23   : > { %s319_s30 = scalar_lea.vmem %s1545_s0, %s963_s27  ;;  %s337_s7 = scalar_lea.vmem %s1546_s1, %s966_s28 }
  0x24   : > { %1072 = vmatpush.bf16.msra.mxu2 %v1055_v5  ;;  %1073 = vmatpush.bf16.msra.mxu3 %v1055_v5  ;;  %v1061_v9 = vld [vmem:[%s319_s30 + $0x18] sm:$0xff]  ;;  %v1064_v10 = vld [vmem:[%s319_s30 + $0x30] sm:$0xff]  ;;  %v1066_v11 = vld [vmem:[%s337_s7] sm:$0xff]  ;;  %s969_s10 = sshll.u32 %s1356_s20, 2 }
  0x25   : > { %559 = vmatpush.bf16.msra.mxu1 %v1055_v5  ;;  %490 = vmatpush.bf16.msra.mxu0 %v1055_v5  ;;  %v1058_v12 = vld [vmem:[%s319_s30] sm:$0xff]  ;;  %v1065_v14 = vld [vmem:[%s319_s30 + $0x38] sm:$0xff]  ;;  %v1059_v15 = vld [vmem:[%s319_s30 + $0x8] sm:$0xff]  ;;  %s1458_s13 = scalar_lea.vmem %s1549_s4, %s969_s10 }
  0x26   : > { %v1062_v13 = vld [vmem:[%s319_s30 + $0x20] sm:$0xff]  ;;  %v1067_v16 = vld [vmem:[%s337_s7 + $0x8] sm:$0xff]  ;;  %v1060_v18 = vld [vmem:[%s319_s30 + $0x10] sm:$0xff] }
  0x27   : > { %v1063_v17 = vld [vmem:[%s319_s30 + $0x28] sm:$0xff] }
  0x28   : > { %1074 = vmatpush.bf16.msra.mxu2 %v1054_v6  ;;  %1075 = vmatpush.bf16.msra.mxu3 %v1054_v6 }
  0x29   : > { %560 = vmatpush.bf16.msra.mxu1 %v1054_v6  ;;  %491 = vmatpush.bf16.msra.mxu0 %v1054_v6 }
  0x2c   : > { %1076 = vmatpush.bf16.msra.mxu2 %v1053_v7  ;;  %1077 = vmatpush.bf16.msra.mxu3 %v1053_v7 }
  0x2d   : > { %561 = vmatpush.bf16.msra.mxu1 %v1053_v7  ;;  %492 = vmatpush.bf16.msra.mxu0 %v1053_v7 }
  0x30   : > { %1078 = vmatpush.bf16.msra.mxu2 %v1052_v8  ;;  %1079 = vmatpush.bf16.msra.mxu3 %v1052_v8 }
  0x31   : > { %562 = vmatpush.bf16.msra.mxu1 %v1052_v8  ;;  %493 = vmatpush.bf16.msra.mxu0 %v1052_v8 }
  0x33   : > { %1029 = vmatmul.msk.bf16.vlgmr.msra.gmra.mxu2 %vm457_vm1, %v1061_v9  ;;  %1032 = vmatmul.msk.bf16.vlgmr.msra.gmra.mxu3 %vm457_vm1, %v1064_v10 }
  0x34   : > { %1042 = vmatmul.msk.bf16.vlgmr.msra.gmra.mxu1 %vm457_vm1, %v1066_v11  ;;  %1026 = vmatmul.msk.bf16.vlgmr.msra.gmra.mxu0 %vm457_vm1, %v1058_v12 }
  0x43   : > { %1030 = vmatmul.msk.bf16.gmra.mxu2 %vm457_vm1, %v1062_v13  ;;  %1033 = vmatmul.msk.bf16.gmra.mxu3 %vm457_vm1, %v1065_v14 }
  0x44   : > { %1027 = vmatmul.msk.bf16.gmra.mxu0 %vm457_vm1, %v1059_v15  ;;  %1043 = vmatmul.msk.bf16.gmra.mxu1 %vm457_vm1, %v1067_v16 }
  0x53   : > { %1031 = vmatmul.msk.bf16.gmra.mxu2 %vm457_vm1, %v1063_v17 }
  0x54   : > { %1028 = vmatmul.msk.bf16.gmra.mxu0 %vm457_vm1, %v1060_v18 }
  0xb1   : > { %v564_v19 = vpop.f32.mrf.mxu1  ;;  %v1381_v21 = vpop.f32.mrf.mxu0 }
  0xb2   : > { %680 = vrot.lane.b32.xlu1 %v564_v19, %s1259_s8  ;;  %618 = vrot.lane.b32.xlu2 %v564_v19, %s1260_s9 }
  0xb6   : > { %v1377_v20 = vpop.f32.mrf.mxu2  ;;  %v1383_v22 = vpop.f32.mrf.mxu3 }
  0xb7   : > { %660 = vrot.lane.b32.xlu0 %v1377_v20, %s1259_s8 }
  0xb9   : > { %v1397_v24 = vpop.f32.mrf.mxu0  ;;  %v566_v25 = vpop.f32.mrf.mxu1 }
  0xba   : > { %610 = vrot.lane.b32.xlu1 %v1383_v22, %s1260_s9  ;;  %598 = vrot.lane.b32.xlu2 %v1377_v20, %s1260_s9 }
  0xbe   : > { %v1389_v23 = vpop.f32.mrf.mxu2  ;;  %v1399_v26 = vpop.f32.mrf.mxu3 }
  0xbf   : > { %672 = vrot.lane.b32.xlu0 %v1383_v22, %s1259_s8 }
  0xc1   : > { %v1408_v28 = vpop.f32.mrf.mxu0  ;;  %v569_v37 = vpop.f32.mrf.mxu1 }
  0xc2   : > { %662 = vrot.lane.b32.xlu1 %v1389_v23, %s1259_s8  ;;  %600 = vrot.lane.b32.xlu2 %v1389_v23, %s1260_s9 }
  0xc6   : > { %v1401_v27 = vpop.f32.mrf.mxu2  ;;  %v530_v29 = vpop.f32.mrf.mxu3 }
  0xc7   : > { %620 = vrot.lane.b32.xlu0 %v566_v25, %s1260_s9 }
  0xc9   : > { %v1418_v31 = vpop.f32.mrf.mxu0  ;;  %v571_v38 = vpop.f32.mrf.mxu1 }
  0xca   : > { %674 = vrot.lane.b32.xlu1 %v1399_v26, %s1259_s8  ;;  %612 = vrot.lane.b32.xlu2 %v1399_v26, %s1260_s9 }
  0xce   : > { %v1412_v30 = vpop.f32.mrf.mxu2  ;;  %v1422_v32 = vpop.f32.mrf.mxu3 }
  0xcf   : > { %590 = vrot.lane.b32.xlu0 %v1408_v28, %s1260_s9 }
  0xd1   : > { %v505_v33 = vpop.f32.mrf.mxu0 }
  0xd2   : > { %664 = vrot.lane.b32.xlu2 %v1401_v27, %s1259_s8  ;;  %604 = vrot.lane.b32.xlu1 %v1412_v30, %s1260_s9 }
  0xd6   : > { %v520_v34 = vpop.f32.mrf.mxu2 }
  0xd7   : > { %602 = vrot.lane.b32.xlu0 %v1401_v27, %s1260_s9 }
  0xd9   : > { %v507_v35 = vpop.f32.mrf.mxu0 }
  0xda   : > { %676 = vrot.lane.b32.xlu2 %v530_v29, %s1259_s8  ;;  %616 = vrot.lane.b32.xlu1 %v1422_v32, %s1260_s9 }
  0xde   : > { %v522_v36 = vpop.f32.mrf.mxu2 }
  0xdf   : > { %614 = vrot.lane.b32.xlu0 %v530_v29, %s1260_s9 }
  0xe2   : > { %606 = vrot.lane.b32.xlu2 %v520_v34, %s1260_s9  ;;  %594 = vrot.lane.b32.xlu1 %v505_v33, %s1260_s9 }
  0xe7   : > { %592 = vrot.lane.b32.xlu0 %v1418_v31, %s1260_s9 }
  0xea   : > { %656 = vrot.lane.b32.xlu1 %v505_v33, %s1259_s8  ;;  %658 = vrot.lane.b32.xlu2 %v507_v35, %s1259_s8 }
  0xef   : > { %666 = vrot.lane.b32.xlu0 %v1412_v30, %s1259_s8 }
  0xf2   : > { %668 = vrot.lane.b32.xlu1 %v520_v34, %s1259_s8  ;;  %670 = vrot.lane.b32.xlu2 %v522_v36, %s1259_s8 }
  0xf7   : > { %678 = vrot.lane.b32.xlu0 %v1422_v32, %s1259_s8 }
  0xfa   : > { %682 = vrot.lane.b32.xlu2 %v566_v25, %s1259_s8  ;;  %596 = vrot.lane.b32.xlu1 %v507_v35, %s1260_s9 }
  0xff   : > { %608 = vrot.lane.b32.xlu0 %v522_v36, %s1260_s9 }
 0x102   : > { %686 = vrot.lane.b32.xlu1 %v571_v38, %s1259_s8 }
 0x107   : > { %684 = vrot.lane.b32.xlu0 %v569_v37, %s1259_s8 }
 0x10c   : > { %v619_v39 = vpop.permute.xlu2 %618 }
 0x10d   : > { %v1445_v40 = vadd.f32 %v619_v39, %v530_v29 }
 0x114   : > { %v599_v41 = vpop.permute.xlu2 %598 }
 0x115   : > { %v642_v48 = vadd.f32 %v599_v41, %v505_v33 }
 0x11c   : > { %v601_v42 = vpop.permute.xlu2 %600 }
 0x11d   : > { %v1447_v43 = vadd.f32 %v601_v42, %v507_v35 }
 0x124   : > { %v681_v44 = vpop.permute.xlu1 %680  ;;  %v613_v45 = vpop.permute.xlu2 %612 }
 0x125   : > { %v1449_v46 = vadd.f32 %v613_v45, %v522_v36 }
 0x129   : > { %v661_v47 = vpop.permute.xlu0 %660 }
 0x12c   : > { %v611_v50 = vpop.permute.xlu1 %610  ;;  %v665_v51 = vpop.permute.xlu2 %664 }
 0x12d   : > { %v708_v52 = vadd.f32 %v665_v51, %v642_v48  ;;  %v648_v56 = vadd.f32 %v611_v50, %v520_v34 }
 0x12f   : > { %v728_v53 = vadd.f32 %v1451_v49, %v708_v52 }
 0x131   : > { %vm744_vm2 = vcmp.ge.f32.partialorder %v728_v53, 0.0  ;;  %v760_v54 = vmul.f32 0.05, %v728_v53  ;;  %v673_v55 = vpop.permute.xlu0 %672 }
 0x133   : > { %v776_v57 = vsel %vm744_vm2, %v728_v53, %v760_v54 }
 0x134   : > { %v792_v58 = vpack.c.bf16 %v776_v57, %v776_v57  ;;  %v1460_v59 = vpop.permute.xlu1 %662  ;;  %v677_v60 = vpop.permute.xlu2 %676 }
 0x135   : > { %v714_v61 = vadd.f32 %v677_v60, %v648_v56 }
 0x136   : > { %809 = vst.msk [vmem:[%s1458_s13 + $0x10] sm:$0xf] %vm804_vm3, %v792_v58 }
 0x137   : > { %v734_v62 = vadd.f32 %v1451_v49, %v714_v61 }
 0x139   : > { %vm750_vm4 = vcmp.ge.f32.partialorder %v734_v62, 0.0  ;;  %v766_v63 = vmul.f32 0.05, %v734_v62  ;;  %v1465_v0 = vpop.permute.xlu0 %620 }
 0x13b   : > { %v782_v1 = vsel %vm750_vm4, %v734_v62, %v766_v63 }
 0x13c   : > { %v798_v2 = vpack.c.bf16 %v782_v1, %v782_v1  ;;  %v1467_v3 = vpop.permute.xlu1 %674  ;;  %v607_v4 = vpop.permute.xlu2 %606 }
 0x13d   : > { %v646_v5 = vadd.f32 %v607_v4, %v1401_v27 }
 0x13e   : > { %815 = vst.msk [vmem:[%s1458_s13 + $0x28] sm:$0xf] %vm804_vm3, %v798_v2 }
 0x13f   : > { %v712_v6 = vadd.f32 %v673_v55, %v646_v5 }
 0x141   : > { %v732_v7 = vadd.f32 %v1451_v49, %v712_v6  ;;  %v591_v8 = vpop.permute.xlu0 %590 }
 0x142   : > { %v638_v50 = vadd.f32 %v591_v8, %v1381_v21 }
 0x143   : > { %vm748_vm5 = vcmp.ge.f32.partialorder %v732_v7, 0.0  ;;  %v764_v9 = vmul.f32 0.05, %v732_v7 }
 0x144   : > { %v605_v10 = vpop.permute.xlu1 %604  ;;  %v659_v11 = vpop.permute.xlu2 %658 }
 0x145   : > { %v780_v12 = vsel %vm748_vm5, %v732_v7, %v764_v9  ;;  %v645_v15 = vadd.f32 %v605_v10, %v1389_v23 }
 0x146   : > { %v796_v13 = vpack.c.bf16 %v780_v12, %v780_v12 }
 0x148   : > { %813 = vst.msk [vmem:[%s1458_s13 + $0x20] sm:$0xf] %vm804_vm3, %v796_v13 }
 0x149   : > { %v603_v14 = vpop.permute.xlu0 %602 }
 0x14a   : > { %v644_v4 = vadd.f32 %v603_v14, %v1377_v20 }
 0x14c   : > { %v617_v16 = vpop.permute.xlu1 %616  ;;  %v671_v17 = vpop.permute.xlu2 %670 }
 0x14d   : > { %v711_v18 = vadd.f32 %v671_v17, %v645_v15  ;;  %v651_v33 = vadd.f32 %v617_v16, %v1399_v26 }
 0x14f   : > { %v731_v19 = vadd.f32 %v1451_v49, %v711_v18 }
 0x151   : > { %vm747_vm6 = vcmp.ge.f32.partialorder %v731_v19, 0.0  ;;  %v763_v25 = vmul.f32 0.05, %v731_v19  ;;  %v615_v27 = vpop.permute.xlu0 %614 }
 0x152   : > { %v650_v29 = vadd.f32 %v615_v27, %v1383_v22 }
 0x153   : > { %v779_v34 = vsel %vm747_vm6, %v731_v19, %v763_v25 }
 0x154   : > { %v795_v35 = vpack.c.bf16 %v779_v34, %v779_v34  ;;  %v716_v36 = vadd.f32 %v681_v44, %v650_v29  ;;  %v595_v37 = vpop.permute.xlu1 %594  ;;  %v683_v38 = vpop.permute.xlu2 %682 }
 0x155   : > { %v640_v23 = vadd.f32 %v595_v37, %v1408_v28  ;;  %v717_v39 = vadd.f32 %v683_v38, %v651_v33  ;;  %v653_v37 = vadd.f32 %v1465_v0, %v1422_v32 }
 0x156   : > { %812 = vst.msk [vmem:[%s1458_s13 + $0x1c] sm:$0xf] %vm804_vm3, %v795_v35  ;;  %v736_v41 = vadd.f32 %v1451_v49, %v716_v36 }
 0x157   : > { %v706_v42 = vadd.f32 %v661_v47, %v640_v23  ;;  %v737_v45 = vadd.f32 %v1451_v49, %v717_v39 }
 0x158   : > { %vm752_vm7 = vcmp.ge.f32.partialorder %v736_v41, 0.0  ;;  %v768_v22 = vmul.f32 0.05, %v736_v41 }
 0x159   : > { %v726_v26 = vadd.f32 %v1451_v49, %v706_v42  ;;  %vm753_vm8 = vcmp.ge.f32.partialorder %v737_v45, 0.0  ;;  %v769_v48 = vmul.f32 0.05, %v737_v45  ;;  %v593_v44 = vpop.permute.xlu0 %592 }
 0x15a   : > { %v784_v28 = vsel %vm752_vm7, %v736_v41, %v768_v22  ;;  %v639_v51 = vadd.f32 %v593_v44, %v1397_v24 }
 0x15b   : > { %v800_v52 = vpack.c.bf16 %v784_v28, %v784_v28  ;;  %vm742_vm9 = vcmp.ge.f32.partialorder %v726_v26, 0.0  ;;  %v758_v47 = vmul.f32 0.05, %v726_v26  ;;  %v785_v53 = vsel %vm753_vm8, %v737_v45, %v769_v48 }
 0x15c   : > { %v801_v54 = vpack.c.bf16 %v785_v53, %v785_v53  ;;  %v705_v55 = vadd.f32 %v659_v11, %v639_v51  ;;  %v657_v56 = vpop.permute.xlu1 %656 }
 0x15d   : > { %817 = vst.msk [vmem:[%s1458_s13 + $0x30] sm:$0xf] %vm804_vm3, %v800_v52  ;;  %v774_v57 = vsel %vm742_vm9, %v726_v26, %v758_v47  ;;  %v704_v58 = vadd.f32 %v657_v56, %v638_v50 }
 0x15e   : > { %v790_v60 = vpack.c.bf16 %v774_v57, %v774_v57  ;;  %818 = vst.msk [vmem:[%s1458_s13 + $0x34] sm:$0xf] %vm804_vm3, %v801_v54  ;;  %v725_v21 = vadd.f32 %v1451_v49, %v705_v55 }
 0x15f   : > { %v724_v61 = vadd.f32 %v1451_v49, %v704_v58 }
 0x160   : > { %807 = vst.msk [vmem:[%s1458_s13 + $0x8] sm:$0xf] %vm804_vm3, %v790_v60  ;;  %vm741_vm10 = vcmp.ge.f32.partialorder %v725_v21, 0.0  ;;  %v757_v24 = vmul.f32 0.05, %v725_v21 }
 0x161   : > { %vm740_vm11 = vcmp.ge.f32.partialorder %v724_v61, 0.0  ;;  %v756_v62 = vmul.f32 0.05, %v724_v61  ;;  %v667_v63 = vpop.permute.xlu0 %666 }
 0x162   : > { %v773_v1 = vsel %vm741_vm10, %v725_v21, %v757_v24  ;;  %v709_v2 = vadd.f32 %v667_v63, %v1447_v43 }
 0x163   : > { %v789_v5 = vpack.c.bf16 %v773_v1, %v773_v1  ;;  %v772_v6 = vsel %vm740_vm11, %v724_v61, %v756_v62 }
 0x164   : > { %v788_v7 = vpack.c.bf16 %v772_v6, %v772_v6  ;;  %v729_v8 = vadd.f32 %v1451_v49, %v709_v2  ;;  %v669_v9 = vpop.permute.xlu1 %668 }
 0x165   : > { %806 = vst.msk [vmem:[%s1458_s13 + $0x4] sm:$0xf] %vm804_vm3, %v789_v5  ;;  %v710_v10 = vadd.f32 %v669_v9, %v644_v4 }
 0x166   : > { %805 = vst.msk [vmem:[%s1458_s13] sm:$0xf] %vm804_vm3, %v788_v7  ;;  %vm745_vm12 = vcmp.ge.f32.partialorder %v729_v8, 0.0  ;;  %v761_v11 = vmul.f32 0.05, %v729_v8 }
 0x167   : > { %v730_v12 = vadd.f32 %v1451_v49, %v710_v10 }
 0x168   : > { %v777_v43 = vsel %vm745_vm12, %v729_v8, %v761_v11 }
 0x169   : > { %v793_v13 = vpack.c.bf16 %v777_v43, %v777_v43  ;;  %vm746_vm13 = vcmp.ge.f32.partialorder %v730_v12, 0.0  ;;  %v762_v20 = vmul.f32 0.05, %v730_v12  ;;  %v679_v14 = vpop.permute.xlu0 %678 }
 0x16a   : > { %v715_v15 = vadd.f32 %v679_v14, %v1449_v46 }
 0x16b   : > { %810 = vst.msk [vmem:[%s1458_s13 + $0x14] sm:$0xf] %vm804_vm3, %v793_v13  ;;  %v778_v16 = vsel %vm746_vm13, %v730_v12, %v762_v20 }
 0x16c   : > { %v794_v17 = vpack.c.bf16 %v778_v16, %v778_v16  ;;  %v735_v18 = vadd.f32 %v1451_v49, %v715_v15  ;;  %v597_v19 = vpop.permute.xlu1 %596 }
 0x16d   : > { %v641_v25 = vadd.f32 %v597_v19, %v1418_v31 }
 0x16e   : > { %811 = vst.msk [vmem:[%s1458_s13 + $0x18] sm:$0xf] %vm804_vm3, %v794_v17  ;;  %vm751_vm14 = vcmp.ge.f32.partialorder %v735_v18, 0.0  ;;  %v767_v27 = vmul.f32 0.05, %v735_v18 }
 0x16f   : > { %v707_v29 = vadd.f32 %v1460_v59, %v641_v25 }
 0x170   : > { %v783_v33 = vsel %vm751_vm14, %v735_v18, %v767_v27 }
 0x171   : > { %v799_v34 = vpack.c.bf16 %v783_v33, %v783_v33  ;;  %v727_v46 = vadd.f32 %v1451_v49, %v707_v29  ;;  %v609_v35 = vpop.permute.xlu0 %608 }
 0x172   : > { %v647_v36 = vadd.f32 %v609_v35, %v1412_v30 }
 0x173   : > { %816 = vst.msk [vmem:[%s1458_s13 + $0x2c] sm:$0xf] %vm804_vm3, %v799_v34  ;;  %vm743_vm15 = vcmp.ge.f32.partialorder %v727_v46, 0.0  ;;  %v759_v31 = vmul.f32 0.05, %v727_v46 }
 0x174   : > { %v713_v38 = vadd.f32 %v1467_v3, %v647_v36  ;;  %v687_v23 = vpop.permute.xlu1 %686 }
 0x175   : > { %v775_v39 = vsel %vm743_vm15, %v727_v46, %v759_v31  ;;  %v719_v59 = vadd.f32 %v687_v23, %v653_v37 }
 0x176   : > { %v791_v41 = vpack.c.bf16 %v775_v39, %v775_v39  ;;  %v733_v42 = vadd.f32 %v1451_v49, %v713_v38 }
 0x177   : > { %v739_v45 = vadd.f32 %v1451_v49, %v719_v59 }
 0x178   : > { %808 = vst.msk [vmem:[%s1458_s13 + $0xc] sm:$0xf] %vm804_vm3, %v791_v41  ;;  %vm749_vm0 = vcmp.ge.f32.partialorder %v733_v42, 0.0  ;;  %v765_v30 = vmul.f32 0.05, %v733_v42 }
 0x179   : > { %vm755_vm1 = vcmp.ge.f32.partialorder %v739_v45, 0.0  ;;  %v771_v32 = vmul.f32 0.05, %v739_v45  ;;  %v685_v0 = vpop.permute.xlu0 %684 }
 0x17a   : > { %v781_v22 = vsel %vm749_vm0, %v733_v42, %v765_v30  ;;  %v718_v3 = vadd.f32 %v685_v0, %v1445_v40 }
 0x17b   : > { %v797_v26 = vpack.c.bf16 %v781_v22, %v781_v22  ;;  %v787_v48 = vsel %vm755_vm1, %v739_v45, %v771_v32 }
 0x17c   : > { %v803_v44 = vpack.c.bf16 %v787_v48, %v787_v48  ;;  %v738_v50 = vadd.f32 %v1451_v49, %v718_v3 }
 0x17d   : > { %814 = vst.msk [vmem:[%s1458_s13 + $0x24] sm:$0xf] %vm804_vm3, %v797_v26 }
 0x17e   : > { %820 = vst.msk [vmem:[%s1458_s13 + $0x3c] sm:$0xf] %vm804_vm3, %v803_v44  ;;  %vm754_vm2 = vcmp.ge.f32.partialorder %v738_v50, 0.0  ;;  %v770_v28 = vmul.f32 0.05, %v738_v50 }
 0x180   : > { %v786_v51 = vsel %vm754_vm2, %v738_v50, %v770_v28 }
 0x181   : > { %v802_v52 = vpack.c.bf16 %v786_v51, %v786_v51 }
 0x183   : > { %819 = vst.msk [vmem:[%s1458_s13 + $0x38] sm:$0xf] %vm804_vm3, %v802_v52 }
 0x184 PF: > { %s16_s19 = sadd.s32 1, %s1253_s19   ;;  %s1552_s15 = smov %s1245_s17 }
 0x185   : > { %p13_p13 = scmp.ge.s32.totalorder %s16_s19, 6   ;;  %s1553_s16 = smov %s1249_s18 }
 0x186   : > { %s1554_s17 = smov %s1557_s21  ;;  %s1555_s18 = smov %s1561_s22 }
 0x187   :  { %15 = sbr.rel (!%p13_p13) target bundleno = 4 (0x4), region = 78 }
 0x18c   :  { %851 = vsyncpa [#allocation3], 1 }
 0x18d   :  { %853 = vsyncpa [#allocation3 + $0x1], 1 }
 0x18e   :  { %854 = vsyncpa [#allocation5], 1 }

// kernel: _lambda_.38
= control target key start
LH: loop header
LB: loop body
LE: loop exit
PB: predicated region body
PF: predicated region fallthrough
CT: control target
= control target key end

     0   :  { %s1130_s15 = smov 0   ;;  %s1132_s16 = smov 0   ;;  %s1383_s0 = inlined_call_operand.vmem [shape: bf16[2,288,96], index: 0, kind: input, shape index: {}, may-alias: {0,1}]   ;;  %s1384_s1 = inlined_call_operand.vmem [shape: bf16[2,288,96], index: 1, kind: input, shape index: {}, may-alias: {0,1}]   ;;  %s1385_s2 = inlined_call_operand.vmem [shape: bf16[96,96], index: 2, kind: input, shape index: {}]   ;;  %s1386_s3 = inlined_call_operand.vmem [shape: f32[1,32], index: 3, kind: input, shape index: {}]   ;;  %s1387_s4 = inlined_call_operand.vmem [shape: bf16[2,256,32], index: 4, kind: output, shape index: {}]  }
   0x1   :  { %s1134_s17 = smov 0   ;;  %s1136_s18 = smov 0  }
   0x2   :  { %s1138_s19 = smov 0  }
   0x3 LB: > { %s23_s20 = sadd.s32 1, %s1093_s17  ;;  %s26_s21 = sadd.s32 1, %s1097_s18  ;;  %s1101_s19 = sphi %s1138_s19, %s14_s19   ;;  %s1097_s18 = sphi %s1136_s18, %s1391_s18   ;;  %s1093_s17 = sphi %s1134_s17, %s1390_s17   ;;  %s1089_s16 = sphi %s1132_s16, %s1389_s16   ;;  %s1085_s15 = sphi %s1130_s15, %s1388_s15  }
   0x4   : > { %p24_p0 = scmp.ge.s32.totalorder %s23_s20, 2  ;;  %p900_p1 = scmp.ge.s32.totalorder %s1101_s19, 1 }
   0x5   : > { %p224_p2 = scmp.lt.s32.totalorder %s1101_s19, 5 }
   0x6   : > { %s1393_s20 = smov (%p24_p0, %s23_s20), 0  ;;  %s1395_s21 = smov (!%p24_p0, %s26_s21), %s1097_s18 }
   0x7   : > { %p225_p3 = pnand %p900_p1, %p224_p2  ;;  %p28_p4 = scmp.ge.s32.totalorder %s1395_s21, 2 }
   0x8   : > { %s1166_s24 = sshll.u32 (!%p225_p3), %s1085_s15, 4  ;;  %p280_p5 = scmp.lt.s32.totalorder (!%p225_p3), %s1089_s16, 1 }
   0x9   : > { %s1397_s21 = smov (%p28_p4, %s1395_s21), 0  ;;  %228 = sbr.rel (%p225_p3) target bundleno = 375 (0x177), region = 36 }
   0xa   : > { %p282_p6 = scmp.lt.s32.totalorder (!%p225_p3), %s1166_s24, 35  ;;  %s989_s28 = sshll.u32 (!%p225_p3), %s1085_s15, 2 }
   0xb   : > { %s990_s5 = sadd.s32 (!%p225_p3), 4, %s989_s28  ;;  %p314_p9 = scmp.lt.s32.totalorder (!%p225_p3), %s1166_s24, 31 }
   0xc   : > { %p295_p7 = scmp.lt.s32.totalorder (!%p225_p3), %s990_s5, 8 }
   0xe   : > { %v996_v0 = vld [vmem:[%s1385_s2 + $0x28] sm:$0xff]  ;;  %v995_v1 = vld [vmem:[%s1385_s2 + $0x20] sm:$0xff]  ;;  %s1399_s16 = smov (!%p280_p5, %s1089_s16), 1  ;;  %v994_v2 = vld [vmem:[%s1385_s2 + $0x18] sm:$0xff]  ;;  %s1401_s5 = smov (!%p295_p7, %s990_s5), 8  ;;  %vm426_vm0 = vcmask 785408  }
   0xf   : > { %1007 = vmatpush.bf16.msra.mxu2 %v996_v0  ;;  %1008 = vmatpush.bf16.msra.mxu3 %v996_v0  ;;  %s283_s27 = scalar_select %p282_p6, %s1166_s24, 35  ;;  %v993_v3 = vld [vmem:[%s1385_s2 + $0x10] sm:$0xff]  ;;  %v992_v4 = vld [vmem:[%s1385_s2 + $0x8] sm:$0xff]  ;;  %v991_v5 = vld [vmem:[%s1385_s2] sm:$0xff]  ;;  %vm769_vm2 = vcmask 257024  }
  0x10   : > { %522 = vmatpush.bf16.msra.mxu1 %v996_v0  ;;  %453 = vmatpush.bf16.msra.mxu0 %v996_v0  ;;  %s1019_s6 = smul.u32 36, %s1399_s16  ;;  %s904_s9 = sshll.u32 %s1401_s5, 2  ;;  %v1289_v46 = vld [vmem:[%s1386_s3] ss:$0 sm:$0xff] }
  0x11   : > { %p300_p8 = scmp.lt.s32.totalorder %s904_s9, 35  ;;  %s1103_s5 = smov 64  }
  0x12   : > { %s285_s10 = sadd.s32 %s1019_s6, %s283_s27  ;;  %s1405_s24 = smov (!%p314_p9, %s1166_s24), 31 }
  0x13   : > { %1009 = vmatpush.bf16.msra.mxu2 %v995_v1  ;;  %1010 = vmatpush.bf16.msra.mxu3 %v995_v1  ;;  %s1403_s9 = smov (!%p300_p8, %s904_s9), 35  ;;  %s902_s13 = sshll.u32 %s285_s10, 2 }
  0x14   : > { %523 = vmatpush.bf16.msra.mxu1 %v995_v1  ;;  %454 = vmatpush.bf16.msra.mxu0 %v995_v1  ;;  %s303_s14 = sadd.s32 %s1019_s6, %s1403_s9  ;;  %s287_s27 = scalar_lea.vmem %s1383_s0, %s902_s13 }
  0x15   : > { %s905_s15 = sshll.u32 %s303_s14, 2  ;;  %v1000_v6 = vld [vmem:[%s287_s27 + $0x18] sm:$0xff]  ;;  %v1003_v7 = vld [vmem:[%s287_s27 + $0x30] sm:$0xff]  ;;  %v997_v9 = vld [vmem:[%s287_s27] sm:$0xff]  ;;  %s1104_s6 = smov 96  }
  0x16   : > { %s305_s30 = scalar_lea.vmem %s1384_s1, %s905_s15  ;;  %v1001_v10 = vld [vmem:[%s287_s27 + $0x20] sm:$0xff]  ;;  %v1004_v11 = vld [vmem:[%s287_s27 + $0x38] sm:$0xff]  ;;  %v998_v12 = vld [vmem:[%s287_s27 + $0x8] sm:$0xff]  ;;  %s907_s7 = sshll.u32 %s1399_s16, 5 }
  0x17   : > { %1011 = vmatpush.bf16.msra.mxu2 %v994_v2  ;;  %1012 = vmatpush.bf16.msra.mxu3 %v994_v2  ;;  %v1005_v8 = vld [vmem:[%s305_s30] sm:$0xff]  ;;  %v1006_v13 = vld [vmem:[%s305_s30 + $0x8] sm:$0xff]  ;;  %v999_v15 = vld [vmem:[%s287_s27 + $0x10] sm:$0xff]  ;;  %s317_s10 = sadd.s32 %s907_s7, %s1405_s24 }
  0x18   : > { %524 = vmatpush.bf16.msra.mxu1 %v994_v2  ;;  %455 = vmatpush.bf16.msra.mxu0 %v994_v2  ;;  %v1002_v14 = vld [vmem:[%s287_s27 + $0x28] sm:$0xff]  ;;  %s908_s11 = sshll.u32 %s317_s10, 2 }
  0x19   : > { %s1295_s16 = scalar_lea.vmem %s1387_s4, %s908_s11 }
  0x1b   : > { %1013 = vmatpush.bf16.msra.mxu2 %v993_v3  ;;  %1014 = vmatpush.bf16.msra.mxu3 %v993_v3 }
  0x1c   : > { %525 = vmatpush.bf16.msra.mxu1 %v993_v3  ;;  %456 = vmatpush.bf16.msra.mxu0 %v993_v3 }
  0x1f   : > { %1015 = vmatpush.bf16.msra.mxu2 %v992_v4  ;;  %1016 = vmatpush.bf16.msra.mxu3 %v992_v4 }
  0x20   : > { %526 = vmatpush.bf16.msra.mxu1 %v992_v4  ;;  %457 = vmatpush.bf16.msra.mxu0 %v992_v4 }
  0x23   : > { %1017 = vmatpush.bf16.msra.mxu2 %v991_v5  ;;  %1018 = vmatpush.bf16.msra.mxu3 %v991_v5 }
  0x24   : > { %527 = vmatpush.bf16.msra.mxu1 %v991_v5  ;;  %458 = vmatpush.bf16.msra.mxu0 %v991_v5 }
  0x26   : > { %968 = vmatmul.msk.bf16.vlgmr.msra.gmra.mxu2 %vm426_vm0, %v1000_v6  ;;  %971 = vmatmul.msk.bf16.vlgmr.msra.gmra.mxu3 %vm426_vm0, %v1003_v7 }
  0x27   : > { %981 = vmatmul.msk.bf16.vlgmr.msra.gmra.mxu1 %vm426_vm0, %v1005_v8  ;;  %965 = vmatmul.msk.bf16.vlgmr.msra.gmra.mxu0 %vm426_vm0, %v997_v9 }
  0x36   : > { %969 = vmatmul.msk.bf16.gmra.mxu2 %vm426_vm0, %v1001_v10  ;;  %972 = vmatmul.msk.bf16.gmra.mxu3 %vm426_vm0, %v1004_v11 }
  0x37   : > { %966 = vmatmul.msk.bf16.gmra.mxu0 %vm426_vm0, %v998_v12  ;;  %982 = vmatmul.msk.bf16.gmra.mxu1 %vm426_vm0, %v1006_v13 }
  0x46   : > { %970 = vmatmul.msk.bf16.gmra.mxu2 %vm426_vm0, %v1002_v14 }
  0x47   : > { %967 = vmatmul.msk.bf16.gmra.mxu0 %vm426_vm0, %v999_v15 }
  0xa4   : > { %v529_v16 = vpop.f32.mrf.mxu1  ;;  %v1211_v18 = vpop.f32.mrf.mxu0 }
  0xa5   : > { %645 = vrot.lane.b32.xlu1 %v529_v16, %s1103_s5  ;;  %583 = vrot.lane.b32.xlu2 %v529_v16, %s1104_s6 }
  0xa9   : > { %v1207_v17 = vpop.f32.mrf.mxu2  ;;  %v1213_v19 = vpop.f32.mrf.mxu3 }
  0xaa   : > { %625 = vrot.lane.b32.xlu0 %v1207_v17, %s1103_s5 }
  0xac   : > { %v1227_v21 = vpop.f32.mrf.mxu0  ;;  %v531_v22 = vpop.f32.mrf.mxu1 }
  0xad   : > { %575 = vrot.lane.b32.xlu1 %v1213_v19, %s1104_s6  ;;  %563 = vrot.lane.b32.xlu2 %v1207_v17, %s1104_s6 }
  0xb1   : > { %v1219_v20 = vpop.f32.mrf.mxu2  ;;  %v1229_v23 = vpop.f32.mrf.mxu3 }
  0xb2   : > { %637 = vrot.lane.b32.xlu0 %v1213_v19, %s1103_s5 }
  0xb4   : > { %v1238_v25 = vpop.f32.mrf.mxu0  ;;  %v534_v34 = vpop.f32.mrf.mxu1 }
  0xb5   : > { %627 = vrot.lane.b32.xlu1 %v1219_v20, %s1103_s5  ;;  %565 = vrot.lane.b32.xlu2 %v1219_v20, %s1104_s6 }
  0xb9   : > { %v1231_v24 = vpop.f32.mrf.mxu2  ;;  %v495_v26 = vpop.f32.mrf.mxu3 }
  0xba   : > { %585 = vrot.lane.b32.xlu0 %v531_v22, %s1104_s6 }
  0xbc   : > { %v1248_v28 = vpop.f32.mrf.mxu0  ;;  %v536_v35 = vpop.f32.mrf.mxu1 }
  0xbd   : > { %639 = vrot.lane.b32.xlu1 %v1229_v23, %s1103_s5  ;;  %577 = vrot.lane.b32.xlu2 %v1229_v23, %s1104_s6 }
  0xc1   : > { %v1242_v27 = vpop.f32.mrf.mxu2  ;;  %v1252_v29 = vpop.f32.mrf.mxu3 }
  0xc2   : > { %555 = vrot.lane.b32.xlu0 %v1238_v25, %s1104_s6 }
  0xc4   : > { %v470_v30 = vpop.f32.mrf.mxu0 }
  0xc5   : > { %629 = vrot.lane.b32.xlu2 %v1231_v24, %s1103_s5  ;;  %569 = vrot.lane.b32.xlu1 %v1242_v27, %s1104_s6 }
  0xc9   : > { %v485_v31 = vpop.f32.mrf.mxu2 }
  0xca   : > { %567 = vrot.lane.b32.xlu0 %v1231_v24, %s1104_s6 }
  0xcc   : > { %v472_v32 = vpop.f32.mrf.mxu0 }
  0xcd   : > { %641 = vrot.lane.b32.xlu2 %v495_v26, %s1103_s5  ;;  %581 = vrot.lane.b32.xlu1 %v1252_v29, %s1104_s6 }
  0xd1   : > { %v487_v33 = vpop.f32.mrf.mxu2 }
  0xd2   : > { %579 = vrot.lane.b32.xlu0 %v495_v26, %s1104_s6 }
  0xd5   : > { %571 = vrot.lane.b32.xlu2 %v485_v31, %s1104_s6  ;;  %559 = vrot.lane.b32.xlu1 %v470_v30, %s1104_s6 }
  0xda   : > { %557 = vrot.lane.b32.xlu0 %v1248_v28, %s1104_s6 }
  0xdd   : > { %621 = vrot.lane.b32.xlu1 %v470_v30, %s1103_s5  ;;  %623 = vrot.lane.b32.xlu2 %v472_v32, %s1103_s5 }
  0xe2   : > { %631 = vrot.lane.b32.xlu0 %v1242_v27, %s1103_s5 }
  0xe5   : > { %633 = vrot.lane.b32.xlu1 %v485_v31, %s1103_s5  ;;  %635 = vrot.lane.b32.xlu2 %v487_v33, %s1103_s5 }
  0xea   : > { %643 = vrot.lane.b32.xlu0 %v1252_v29, %s1103_s5 }
  0xed   : > { %647 = vrot.lane.b32.xlu2 %v531_v22, %s1103_s5  ;;  %561 = vrot.lane.b32.xlu1 %v472_v32, %s1104_s6 }
  0xf2   : > { %573 = vrot.lane.b32.xlu0 %v487_v33, %s1104_s6 }
  0xf5   : > { %651 = vrot.lane.b32.xlu1 %v536_v35, %s1103_s5 }
  0xfa   : > { %649 = vrot.lane.b32.xlu0 %v534_v34, %s1103_s5 }
  0xff   : > { %v584_v36 = vpop.permute.xlu2 %583 }
 0x100   : > { %v1275_v37 = vadd.f32 %v584_v36, %v495_v26 }
 0x107   : > { %v564_v38 = vpop.permute.xlu2 %563 }
 0x108   : > { %v607_v45 = vadd.f32 %v564_v38, %v470_v30 }
 0x10f   : > { %v566_v39 = vpop.permute.xlu2 %565 }
 0x110   : > { %v1277_v40 = vadd.f32 %v566_v39, %v472_v32 }
 0x117   : > { %v646_v41 = vpop.permute.xlu1 %645  ;;  %v578_v42 = vpop.permute.xlu2 %577 }
 0x118   : > { %v1280_v43 = vadd.f32 %v578_v42, %v487_v33 }
 0x11c   : > { %v1282_v44 = vpop.permute.xlu0 %625 }
 0x11f   : > { %v576_v47 = vpop.permute.xlu1 %575  ;;  %v630_v48 = vpop.permute.xlu2 %629 }
 0x120   : > { %v673_v49 = vadd.f32 %v630_v48, %v607_v45  ;;  %v613_v53 = vadd.f32 %v576_v47, %v485_v31 }
 0x122   : > { %v693_v50 = vadd.f32 %v1289_v46, %v673_v49 }
 0x124   : > { %vm709_vm1 = vcmp.ge.f32.partialorder %v693_v50, 0.0  ;;  %v725_v51 = vmul.f32 0.05, %v693_v50  ;;  %v638_v52 = vpop.permute.xlu0 %637 }
 0x126   : > { %v741_v54 = vsel %vm709_vm1, %v693_v50, %v725_v51 }
 0x127   : > { %v757_v55 = vpack.c.bf16 %v741_v54, %v741_v54  ;;  %v1297_v56 = vpop.permute.xlu1 %627  ;;  %v642_v57 = vpop.permute.xlu2 %641 }
 0x128   : > { %v679_v58 = vadd.f32 %v642_v57, %v613_v53 }
 0x129   : > { %774 = vst.msk [vmem:[%s1295_s16 + $0x10] sm:$0xf] %vm769_vm2, %v757_v55 }
 0x12a   : > { %v699_v59 = vadd.f32 %v1289_v46, %v679_v58 }
 0x12c   : > { %vm715_vm3 = vcmp.ge.f32.partialorder %v699_v59, 0.0  ;;  %v731_v60 = vmul.f32 0.05, %v699_v59  ;;  %v1302_v61 = vpop.permute.xlu0 %585 }
 0x12e   : > { %v747_v62 = vsel %vm715_vm3, %v699_v59, %v731_v60 }
 0x12f   : > { %v763_v63 = vpack.c.bf16 %v747_v62, %v747_v62  ;;  %v1304_v0 = vpop.permute.xlu1 %639  ;;  %v572_v1 = vpop.permute.xlu2 %571 }
 0x130   : > { %v611_v2 = vadd.f32 %v572_v1, %v1231_v24 }
 0x131   : > { %780 = vst.msk [vmem:[%s1295_s16 + $0x28] sm:$0xf] %vm769_vm2, %v763_v63 }
 0x132   : > { %v677_v3 = vadd.f32 %v638_v52, %v611_v2 }
 0x134   : > { %v697_v4 = vadd.f32 %v1289_v46, %v677_v3  ;;  %v556_v5 = vpop.permute.xlu0 %555 }
 0x136   : > { %vm713_vm4 = vcmp.ge.f32.partialorder %v697_v4, 0.0  ;;  %v729_v6 = vmul.f32 0.05, %v697_v4 }
 0x137   : > { %v570_v7 = vpop.permute.xlu1 %569  ;;  %v624_v8 = vpop.permute.xlu2 %623 }
 0x138   : > { %v745_v9 = vsel %vm713_vm4, %v697_v4, %v729_v6  ;;  %v610_v12 = vadd.f32 %v570_v7, %v1219_v20 }
 0x139   : > { %v761_v10 = vpack.c.bf16 %v745_v9, %v745_v9 }
 0x13b   : > { %778 = vst.msk [vmem:[%s1295_s16 + $0x20] sm:$0xf] %vm769_vm2, %v761_v10 }
 0x13c   : > { %v568_v11 = vpop.permute.xlu0 %567 }
 0x13d   : > { %v609_v1 = vadd.f32 %v568_v11, %v1207_v17 }
 0x13f   : > { %v582_v13 = vpop.permute.xlu1 %581  ;;  %v636_v14 = vpop.permute.xlu2 %635 }
 0x140   : > { %v676_v15 = vadd.f32 %v636_v14, %v610_v12  ;;  %v616_v30 = vadd.f32 %v582_v13, %v1229_v23 }
 0x142   : > { %v696_v16 = vadd.f32 %v1289_v46, %v676_v15 }
 0x144   : > { %vm712_vm5 = vcmp.ge.f32.partialorder %v696_v16, 0.0  ;;  %v728_v22 = vmul.f32 0.05, %v696_v16  ;;  %v580_v24 = vpop.permute.xlu0 %579 }
 0x145   : > { %v615_v26 = vadd.f32 %v580_v24, %v1213_v19 }
 0x146   : > { %v744_v31 = vsel %vm712_vm5, %v696_v16, %v728_v22 }
 0x147   : > { %v760_v32 = vpack.c.bf16 %v744_v31, %v744_v31  ;;  %v681_v33 = vadd.f32 %v646_v41, %v615_v26  ;;  %v560_v34 = vpop.permute.xlu1 %559  ;;  %v648_v35 = vpop.permute.xlu2 %647 }
 0x148   : > { %v605_v20 = vadd.f32 %v560_v34, %v1238_v25  ;;  %v682_v36 = vadd.f32 %v648_v35, %v616_v30  ;;  %v603_v25 = vadd.f32 %v556_v5, %v1211_v18  ;;  %v618_v34 = vadd.f32 %v1302_v61, %v1252_v29 }
 0x149   : > { %777 = vst.msk [vmem:[%s1295_s16 + $0x1c] sm:$0xf] %vm769_vm2, %v760_v32  ;;  %v701_v38 = vadd.f32 %v1289_v46, %v681_v33 }
 0x14a   : > { %v671_v39 = vadd.f32 %v1282_v44, %v605_v20  ;;  %v702_v42 = vadd.f32 %v1289_v46, %v682_v36 }
 0x14b   : > { %vm717_vm6 = vcmp.ge.f32.partialorder %v701_v38, 0.0  ;;  %v733_v19 = vmul.f32 0.05, %v701_v38 }
 0x14c   : > { %v691_v23 = vadd.f32 %v1289_v46, %v671_v39  ;;  %vm718_vm7 = vcmp.ge.f32.partialorder %v702_v42, 0.0  ;;  %v734_v41 = vmul.f32 0.05, %v702_v42  ;;  %v558_v45 = vpop.permute.xlu0 %557 }
 0x14d   : > { %v749_v47 = vsel %vm717_vm6, %v701_v38, %v733_v19  ;;  %v604_v48 = vadd.f32 %v558_v45, %v1227_v21 }
 0x14e   : > { %v765_v49 = vpack.c.bf16 %v749_v47, %v749_v47  ;;  %vm707_vm8 = vcmp.ge.f32.partialorder %v691_v23, 0.0  ;;  %v723_v44 = vmul.f32 0.05, %v691_v23  ;;  %v750_v50 = vsel %vm718_vm7, %v702_v42, %v734_v41 }
 0x14f   : > { %v766_v51 = vpack.c.bf16 %v750_v50, %v750_v50  ;;  %v670_v52 = vadd.f32 %v624_v8, %v604_v48  ;;  %v622_v53 = vpop.permute.xlu1 %621 }
 0x150   : > { %782 = vst.msk [vmem:[%s1295_s16 + $0x30] sm:$0xf] %vm769_vm2, %v765_v49  ;;  %v739_v54 = vsel %vm707_vm8, %v691_v23, %v723_v44  ;;  %v669_v55 = vadd.f32 %v622_v53, %v603_v25 }
 0x151   : > { %v755_v57 = vpack.c.bf16 %v739_v54, %v739_v54  ;;  %783 = vst.msk [vmem:[%s1295_s16 + $0x34] sm:$0xf] %vm769_vm2, %v766_v51  ;;  %v690_v18 = vadd.f32 %v1289_v46, %v670_v52 }
 0x152   : > { %v689_v58 = vadd.f32 %v1289_v46, %v669_v55 }
 0x153   : > { %772 = vst.msk [vmem:[%s1295_s16 + $0x8] sm:$0xf] %vm769_vm2, %v755_v57  ;;  %vm706_vm9 = vcmp.ge.f32.partialorder %v690_v18, 0.0  ;;  %v722_v21 = vmul.f32 0.05, %v690_v18 }
 0x154   : > { %vm705_vm10 = vcmp.ge.f32.partialorder %v689_v58, 0.0  ;;  %v721_v59 = vmul.f32 0.05, %v689_v58  ;;  %v632_v60 = vpop.permute.xlu0 %631 }
 0x155   : > { %v738_v62 = vsel %vm706_vm9, %v690_v18, %v722_v21  ;;  %v674_v63 = vadd.f32 %v632_v60, %v1277_v40 }
 0x156   : > { %v754_v2 = vpack.c.bf16 %v738_v62, %v738_v62  ;;  %v737_v3 = vsel %vm705_vm10, %v689_v58, %v721_v59 }
 0x157   : > { %v753_v4 = vpack.c.bf16 %v737_v3, %v737_v3  ;;  %v694_v5 = vadd.f32 %v1289_v46, %v674_v63  ;;  %v634_v6 = vpop.permute.xlu1 %633 }
 0x158   : > { %771 = vst.msk [vmem:[%s1295_s16 + $0x4] sm:$0xf] %vm769_vm2, %v754_v2  ;;  %v675_v7 = vadd.f32 %v634_v6, %v609_v1 }
 0x159   : > { %770 = vst.msk [vmem:[%s1295_s16] sm:$0xf] %vm769_vm2, %v753_v4  ;;  %vm710_vm11 = vcmp.ge.f32.partialorder %v694_v5, 0.0  ;;  %v726_v8 = vmul.f32 0.05, %v694_v5 }
 0x15a   : > { %v695_v9 = vadd.f32 %v1289_v46, %v675_v7 }
 0x15b   : > { %v742_v40 = vsel %vm710_vm11, %v694_v5, %v726_v8 }
 0x15c   : > { %v758_v10 = vpack.c.bf16 %v742_v40, %v742_v40  ;;  %vm711_vm12 = vcmp.ge.f32.partialorder %v695_v9, 0.0  ;;  %v727_v17 = vmul.f32 0.05, %v695_v9  ;;  %v644_v11 = vpop.permute.xlu0 %643 }
 0x15d   : > { %v680_v12 = vadd.f32 %v644_v11, %v1280_v43 }
 0x15e   : > { %775 = vst.msk [vmem:[%s1295_s16 + $0x14] sm:$0xf] %vm769_vm2, %v758_v10  ;;  %v743_v13 = vsel %vm711_vm12, %v695_v9, %v727_v17 }
 0x15f   : > { %v759_v14 = vpack.c.bf16 %v743_v13, %v743_v13  ;;  %v700_v15 = vadd.f32 %v1289_v46, %v680_v12  ;;  %v562_v16 = vpop.permute.xlu1 %561 }
 0x160   : > { %v606_v22 = vadd.f32 %v562_v16, %v1248_v28 }
 0x161   : > { %776 = vst.msk [vmem:[%s1295_s16 + $0x18] sm:$0xf] %vm769_vm2, %v759_v14  ;;  %vm716_vm13 = vcmp.ge.f32.partialorder %v700_v15, 0.0  ;;  %v732_v24 = vmul.f32 0.05, %v700_v15 }
 0x162   : > { %v672_v26 = vadd.f32 %v1297_v56, %v606_v22 }
 0x163   : > { %v748_v30 = vsel %vm716_vm13, %v700_v15, %v732_v24 }
 0x164   : > { %v764_v31 = vpack.c.bf16 %v748_v30, %v748_v30  ;;  %v692_v43 = vadd.f32 %v1289_v46, %v672_v26  ;;  %v574_v32 = vpop.permute.xlu0 %573 }
 0x165   : > { %v612_v33 = vadd.f32 %v574_v32, %v1242_v27 }
 0x166   : > { %781 = vst.msk [vmem:[%s1295_s16 + $0x2c] sm:$0xf] %vm769_vm2, %v764_v31  ;;  %vm708_vm14 = vcmp.ge.f32.partialorder %v692_v43, 0.0  ;;  %v724_v28 = vmul.f32 0.05, %v692_v43 }
 0x167   : > { %v678_v35 = vadd.f32 %v1304_v0, %v612_v33  ;;  %v652_v20 = vpop.permute.xlu1 %651 }
 0x168   : > { %v740_v36 = vsel %vm708_vm14, %v692_v43, %v724_v28  ;;  %v684_v56 = vadd.f32 %v652_v20, %v618_v34 }
 0x169   : > { %v756_v38 = vpack.c.bf16 %v740_v36, %v740_v36  ;;  %v698_v39 = vadd.f32 %v1289_v46, %v678_v35 }
 0x16a   : > { %v704_v42 = vadd.f32 %v1289_v46, %v684_v56 }
 0x16b   : > { %773 = vst.msk [vmem:[%s1295_s16 + $0xc] sm:$0xf] %vm769_vm2, %v756_v38  ;;  %vm714_vm15 = vcmp.ge.f32.partialorder %v698_v39, 0.0  ;;  %v730_v27 = vmul.f32 0.05, %v698_v39 }
 0x16c   : > { %vm720_vm0 = vcmp.ge.f32.partialorder %v704_v42, 0.0  ;;  %v736_v29 = vmul.f32 0.05, %v704_v42  ;;  %v650_v61 = vpop.permute.xlu0 %649 }
 0x16d   : > { %v746_v19 = vsel %vm714_vm15, %v698_v39, %v730_v27  ;;  %v683_v0 = vadd.f32 %v650_v61, %v1275_v37 }
 0x16e   : > { %v762_v23 = vpack.c.bf16 %v746_v19, %v746_v19  ;;  %v752_v41 = vsel %vm720_vm0, %v704_v42, %v736_v29 }
 0x16f   : > { %v768_v45 = vpack.c.bf16 %v752_v41, %v752_v41  ;;  %v703_v25 = vadd.f32 %v1289_v46, %v683_v0 }
 0x170   : > { %779 = vst.msk [vmem:[%s1295_s16 + $0x24] sm:$0xf] %vm769_vm2, %v762_v23 }
 0x171   : > { %785 = vst.msk [vmem:[%s1295_s16 + $0x3c] sm:$0xf] %vm769_vm2, %v768_v45  ;;  %vm719_vm1 = vcmp.ge.f32.partialorder %v703_v25, 0.0  ;;  %v735_v47 = vmul.f32 0.05, %v703_v25 }
 0x173   : > { %v751_v48 = vsel %vm719_vm1, %v703_v25, %v735_v47 }
 0x174   : > { %v767_v49 = vpack.c.bf16 %v751_v48, %v751_v48 }
 0x176   : > { %784 = vst.msk [vmem:[%s1295_s16 + $0x38] sm:$0xf] %vm769_vm2, %v767_v49 }
 0x177 PF: > { %s14_s19 = sadd.s32 1, %s1101_s19   ;;  %s1388_s15 = smov %s1093_s17 }
 0x178   : > { %p11_p10 = scmp.ge.s32.totalorder %s14_s19, 6   ;;  %s1389_s16 = smov %s1097_s18 }
 0x179   : > { %s1390_s17 = smov %s1393_s20  ;;  %s1391_s18 = smov %s1397_s21 }
 0x17a   :  { %13 = sbr.rel (!%p11_p10) target bundleno = 3 (0x3), region = 69 }

// kernel: _lambda_.39
= control target key start
LH: loop header
LB: loop body
LE: loop exit
PB: predicated region body
PF: predicated region fallthrough
CT: control target
= control target key end

     0   :  { %s1306_s18 = smov 0   ;;  %s1308_s19 = smov 0   ;;  %s1594_s0 = inlined_call_operand.vmem [shape: bf16[2,288,96], index: 0, kind: input, shape index: {}, may-alias: {0,1}]   ;;  %s1595_s1 = inlined_call_operand.vmem [shape: bf16[2,288,96], index: 1, kind: input, shape index: {}, may-alias: {0,1}]   ;;  %s1596_s2 = inlined_call_operand.vmem [shape: bf16[96,96], index: 2, kind: input, shape index: {}]   ;;  %s1597_s3 = inlined_call_operand.vmem [shape: f32[1,30], index: 3, kind: input, shape index: {}]   ;;  %s1598_s4 = inlined_call_operand.vmem [shape: bf16[2,256,30], index: 4, kind: input, shape index: {}]   ;;  %s1599_s5 = inlined_call_operand.vmem [shape: bf16[2,256,30], index: 5, kind: output, shape index: {}]  }
   0x1   :  { %s1310_s20 = smov 0   ;;  %s1312_s21 = smov 0  }
   0x2   :  { %s1314_s22 = smov 0  }
   0x3 LB: > { %s24_s23 = sadd.s32 1, %s1264_s20  ;;  %s27_s24 = sadd.s32 1, %s1268_s21  ;;  %s1272_s22 = sphi %s1314_s22, %s15_s22   ;;  %s1268_s21 = sphi %s1312_s21, %s1603_s21   ;;  %s1264_s20 = sphi %s1310_s20, %s1602_s20   ;;  %s1260_s19 = sphi %s1308_s19, %s1601_s19   ;;  %s1256_s18 = sphi %s1306_s18, %s1600_s18  }
   0x4   : > { %p25_p0 = scmp.ge.s32.totalorder %s24_s23, 2  ;;  %p1029_p1 = scmp.ge.s32.totalorder %s1272_s22, 1 }
   0x5   : > { %p266_p2 = scmp.lt.s32.totalorder %s1272_s22, 5 }
   0x6   : > { %s1605_s23 = smov (%p25_p0, %s24_s23), 0  ;;  %s1607_s24 = smov (!%p25_p0, %s27_s24), %s1268_s21 }
   0x7   : > { %p267_p3 = pnand %p1029_p1, %p266_p2  ;;  %p29_p4 = scmp.ge.s32.totalorder %s1607_s24, 2 }
   0x8   : > { %s1339_s27 = sshll.u32 (!%p267_p3), %s1256_s18, 4  ;;  %p333_p5 = scmp.lt.s32.totalorder (!%p267_p3), %s1260_s19, 1 }
   0x9   : > { %s1609_s24 = smov (%p29_p4, %s1607_s24), 0  ;;  %270 = sbr.rel (%p267_p3) target bundleno = 377 (0x179), region = 40 }
   0xa   : > { %s1121_s28 = sshll.u32 (!%p267_p3), %s1256_s18, 2  ;;  %p335_p6 = scmp.lt.s32.totalorder (!%p267_p3), %s1339_s27, 35 }
   0xb   : > { %s1122_s6 = sadd.s32 (!%p267_p3), 4, %s1121_s28  ;;  %s1275_s11 = smov (!%p267_p3), 96  }
   0xc   : > { %p348_p7 = scmp.lt.s32.totalorder (!%p267_p3), %s1122_s6, 8  ;;  %p367_p9 = scmp.lt.s32.totalorder (!%p267_p3), %s1339_s27, 31 }
   0xe   : > { %v1128_v0 = vld [vmem:[%s1596_s2 + $0x28] sm:$0xff]  ;;  %v1127_v1 = vld [vmem:[%s1596_s2 + $0x20] sm:$0xff]  ;;  %s1611_s19 = smov (!%p333_p5, %s1260_s19), 1  ;;  %v1126_v2 = vld [vmem:[%s1596_s2 + $0x18] sm:$0xff]  ;;  %s1613_s6 = smov (!%p348_p7, %s1122_s6), 8  ;;  %vm489_vm0 = vcmask 785408  }
   0xf   : > { %1178 = vmatpush.bf16.msra.mxu2 %v1128_v0  ;;  %1179 = vmatpush.bf16.msra.mxu3 %v1128_v0  ;;  %s336_s9 = scalar_select %p335_p6, %s1339_s27, 35  ;;  %v1125_v3 = vld [vmem:[%s1596_s2 + $0x10] sm:$0xff]  ;;  %v1124_v4 = vld [vmem:[%s1596_s2 + $0x8] sm:$0xff]  ;;  %v1123_v5 = vld [vmem:[%s1596_s2] sm:$0xff]  ;;  %vm880_vm2 = vcmask 240640  }
  0x10   : > { %585 = vmatpush.bf16.msra.mxu1 %v1128_v0  ;;  %516 = vmatpush.bf16.msra.mxu0 %v1128_v0  ;;  %s1190_s10 = smul.u32 36, %s1611_s19  ;;  %s1033_s13 = sshll.u32 %s1613_s6, 2  ;;  %v1468_v46 = vld [vmem:[%s1597_s3] ss:$0 sm:$0xff] }
  0x11   : > { %p353_p8 = scmp.lt.s32.totalorder %s1033_s13, 35  ;;  %s1617_s27 = smov (!%p367_p9, %s1339_s27), 31 }
  0x12   : > { %s338_s14 = sadd.s32 %s1190_s10, %s336_s9  ;;  %s1036_s12 = sshll.u32 %s1611_s19, 5 }
  0x13   : > { %1180 = vmatpush.bf16.msra.mxu2 %v1127_v1  ;;  %1181 = vmatpush.bf16.msra.mxu3 %v1127_v1  ;;  %s1615_s13 = smov (!%p353_p8, %s1033_s13), 35  ;;  %s1031_s17 = sshll.u32 %s338_s14, 2 }
  0x14   : > { %586 = vmatpush.bf16.msra.mxu1 %v1127_v1  ;;  %517 = vmatpush.bf16.msra.mxu0 %v1127_v1  ;;  %s356_s18 = sadd.s32 %s1190_s10, %s1615_s13  ;;  %s340_s6 = scalar_lea.vmem %s1594_s0, %s1031_s17 }
  0x15   : > { %s1034_s25 = sshll.u32 %s356_s18, 2  ;;  %v1132_v6 = vld [vmem:[%s340_s6 + $0x18] sm:$0xff]  ;;  %v1135_v7 = vld [vmem:[%s340_s6 + $0x30] sm:$0xff]  ;;  %v1129_v9 = vld [vmem:[%s340_s6] sm:$0xff]  ;;  %s1274_s10 = smov 64  }
  0x16   : > { %s358_s9 = scalar_lea.vmem %s1595_s1, %s1034_s25  ;;  %v1133_v10 = vld [vmem:[%s340_s6 + $0x20] sm:$0xff]  ;;  %v1136_v11 = vld [vmem:[%s340_s6 + $0x38] sm:$0xff]  ;;  %v1130_v12 = vld [vmem:[%s340_s6 + $0x8] sm:$0xff]  ;;  %s370_s13 = sadd.s32 %s1036_s12, %s1617_s27 }
  0x17   : > { %1182 = vmatpush.bf16.msra.mxu2 %v1126_v2  ;;  %1183 = vmatpush.bf16.msra.mxu3 %v1126_v2  ;;  %v1137_v8 = vld [vmem:[%s358_s9] sm:$0xff]  ;;  %v1138_v13 = vld [vmem:[%s358_s9 + $0x8] sm:$0xff]  ;;  %v1131_v15 = vld [vmem:[%s340_s6 + $0x10] sm:$0xff]  ;;  %s1037_s14 = sshll.u32 %s370_s13, 2 }
  0x18   : > { %587 = vmatpush.bf16.msra.mxu1 %v1126_v2  ;;  %518 = vmatpush.bf16.msra.mxu0 %v1126_v2  ;;  %v1134_v14 = vld [vmem:[%s340_s6 + $0x28] sm:$0xff]  ;;  %s1463_s17 = scalar_lea.vmem %s1598_s4, %s1037_s14  ;;  %s1480_s26 = scalar_lea.vmem %s1599_s5, %s1037_s14 }
  0x19   : > { %v1471_v49 = vld [vmem:[%s1463_s17 + $0x10] sm:$0xff]   ;;  %v1483_v60 = vld [vmem:[%s1463_s17 + $0x28] sm:$0xff]  }
  0x1a   : > { %v1149_v52 = vunpack.c.l.bf16 %v1471_v49  ;;  %v1161_v0 = vunpack.c.l.bf16 %v1483_v60 }
  0x1b   : > { %1184 = vmatpush.bf16.msra.mxu2 %v1125_v3  ;;  %1185 = vmatpush.bf16.msra.mxu3 %v1125_v3 }
  0x1c   : > { %588 = vmatpush.bf16.msra.mxu1 %v1125_v3  ;;  %519 = vmatpush.bf16.msra.mxu0 %v1125_v3 }
  0x1f   : > { %1186 = vmatpush.bf16.msra.mxu2 %v1124_v4  ;;  %1187 = vmatpush.bf16.msra.mxu3 %v1124_v4 }
  0x20   : > { %589 = vmatpush.bf16.msra.mxu1 %v1124_v4  ;;  %520 = vmatpush.bf16.msra.mxu0 %v1124_v4 }
  0x23   : > { %1188 = vmatpush.bf16.msra.mxu2 %v1123_v5  ;;  %1189 = vmatpush.bf16.msra.mxu3 %v1123_v5 }
  0x24   : > { %590 = vmatpush.bf16.msra.mxu1 %v1123_v5  ;;  %521 = vmatpush.bf16.msra.mxu0 %v1123_v5 }
  0x26   : > { %1100 = vmatmul.msk.bf16.vlgmr.msra.gmra.mxu2 %vm489_vm0, %v1132_v6  ;;  %1103 = vmatmul.msk.bf16.vlgmr.msra.gmra.mxu3 %vm489_vm0, %v1135_v7 }
  0x27   : > { %1113 = vmatmul.msk.bf16.vlgmr.msra.gmra.mxu1 %vm489_vm0, %v1137_v8  ;;  %1097 = vmatmul.msk.bf16.vlgmr.msra.gmra.mxu0 %vm489_vm0, %v1129_v9  ;;  %v1495_v9 = vld [vmem:[%s1463_s17 + $0x20] sm:$0xff]  }
  0x36   : > { %1101 = vmatmul.msk.bf16.gmra.mxu2 %vm489_vm0, %v1133_v10  ;;  %1104 = vmatmul.msk.bf16.gmra.mxu3 %vm489_vm0, %v1136_v11 }
  0x37   : > { %1098 = vmatmul.msk.bf16.gmra.mxu0 %vm489_vm0, %v1130_v12  ;;  %1114 = vmatmul.msk.bf16.gmra.mxu1 %vm489_vm0, %v1138_v13  ;;  %v1157_v13 = vunpack.c.l.bf16 %v1495_v9 }
  0x46   : > { %1102 = vmatmul.msk.bf16.gmra.mxu2 %vm489_vm0, %v1134_v14 }
  0x47   : > { %1099 = vmatmul.msk.bf16.gmra.mxu0 %vm489_vm0, %v1131_v15 }
  0xa4   : > { %v592_v16 = vpop.f32.mrf.mxu1  ;;  %v1383_v18 = vpop.f32.mrf.mxu0 }
  0xa5   : > { %708 = vrot.lane.b32.xlu1 %v592_v16, %s1274_s10  ;;  %646 = vrot.lane.b32.xlu2 %v592_v16, %s1275_s11 }
  0xa9   : > { %v1379_v17 = vpop.f32.mrf.mxu2  ;;  %v1385_v19 = vpop.f32.mrf.mxu3 }
  0xaa   : > { %688 = vrot.lane.b32.xlu0 %v1379_v17, %s1274_s10 }
  0xac   : > { %v1399_v21 = vpop.f32.mrf.mxu0  ;;  %v594_v22 = vpop.f32.mrf.mxu1 }
  0xad   : > { %638 = vrot.lane.b32.xlu1 %v1385_v19, %s1275_s11  ;;  %626 = vrot.lane.b32.xlu2 %v1379_v17, %s1275_s11 }
  0xb1   : > { %v1391_v20 = vpop.f32.mrf.mxu2  ;;  %v1401_v23 = vpop.f32.mrf.mxu3 }
  0xb2   : > { %700 = vrot.lane.b32.xlu0 %v1385_v19, %s1274_s10 }
  0xb4   : > { %v1410_v25 = vpop.f32.mrf.mxu0  ;;  %v597_v34 = vpop.f32.mrf.mxu1 }
  0xb5   : > { %690 = vrot.lane.b32.xlu1 %v1391_v20, %s1274_s10  ;;  %628 = vrot.lane.b32.xlu2 %v1391_v20, %s1275_s11 }
  0xb9   : > { %v1403_v24 = vpop.f32.mrf.mxu2  ;;  %v558_v26 = vpop.f32.mrf.mxu3 }
  0xba   : > { %648 = vrot.lane.b32.xlu0 %v594_v22, %s1275_s11 }
  0xbc   : > { %v1420_v28 = vpop.f32.mrf.mxu0  ;;  %v599_v35 = vpop.f32.mrf.mxu1 }
  0xbd   : > { %702 = vrot.lane.b32.xlu1 %v1401_v23, %s1274_s10  ;;  %640 = vrot.lane.b32.xlu2 %v1401_v23, %s1275_s11 }
  0xc1   : > { %v1414_v27 = vpop.f32.mrf.mxu2  ;;  %v1424_v29 = vpop.f32.mrf.mxu3 }
  0xc2   : > { %618 = vrot.lane.b32.xlu0 %v1410_v25, %s1275_s11 }
  0xc4   : > { %v533_v30 = vpop.f32.mrf.mxu0 }
  0xc5   : > { %692 = vrot.lane.b32.xlu2 %v1403_v24, %s1274_s10  ;;  %632 = vrot.lane.b32.xlu1 %v1414_v27, %s1275_s11 }
  0xc9   : > { %v548_v31 = vpop.f32.mrf.mxu2 }
  0xca   : > { %630 = vrot.lane.b32.xlu0 %v1403_v24, %s1275_s11 }
  0xcc   : > { %v535_v32 = vpop.f32.mrf.mxu0 }
  0xcd   : > { %704 = vrot.lane.b32.xlu2 %v558_v26, %s1274_s10  ;;  %644 = vrot.lane.b32.xlu1 %v1424_v29, %s1275_s11 }
  0xd1   : > { %v550_v33 = vpop.f32.mrf.mxu2 }
  0xd2   : > { %642 = vrot.lane.b32.xlu0 %v558_v26, %s1275_s11 }
  0xd5   : > { %634 = vrot.lane.b32.xlu2 %v548_v31, %s1275_s11  ;;  %622 = vrot.lane.b32.xlu1 %v533_v30, %s1275_s11 }
  0xda   : > { %620 = vrot.lane.b32.xlu0 %v1420_v28, %s1275_s11 }
  0xdd   : > { %684 = vrot.lane.b32.xlu1 %v533_v30, %s1274_s10  ;;  %686 = vrot.lane.b32.xlu2 %v535_v32, %s1274_s10 }
  0xe2   : > { %694 = vrot.lane.b32.xlu0 %v1414_v27, %s1274_s10 }
  0xe5   : > { %696 = vrot.lane.b32.xlu1 %v548_v31, %s1274_s10  ;;  %698 = vrot.lane.b32.xlu2 %v550_v33, %s1274_s10 }
  0xea   : > { %706 = vrot.lane.b32.xlu0 %v1424_v29, %s1274_s10 }
  0xed   : > { %710 = vrot.lane.b32.xlu2 %v594_v22, %s1274_s10  ;;  %624 = vrot.lane.b32.xlu1 %v535_v32, %s1275_s11 }
  0xf2   : > { %636 = vrot.lane.b32.xlu0 %v550_v33, %s1275_s11 }
  0xf5   : > { %714 = vrot.lane.b32.xlu1 %v599_v35, %s1274_s10 }
  0xfa   : > { %712 = vrot.lane.b32.xlu0 %v597_v34, %s1274_s10  ;;  %v1507_v34 = vld [vmem:[%s1463_s17 + $0x18] sm:$0xff]  }
  0xff   : > { %v647_v36 = vpop.permute.xlu2 %646 }
 0x100   : > { %v1447_v37 = vadd.f32 %v647_v36, %v558_v26 }
 0x107   : > { %v627_v38 = vpop.permute.xlu2 %626 }
 0x108   : > { %v670_v45 = vadd.f32 %v627_v38, %v533_v30  ;;  %v1154_v38 = vunpack.c.h.bf16 %v1507_v34 }
 0x10f   : > { %v629_v39 = vpop.permute.xlu2 %628 }
 0x110   : > { %v1450_v40 = vadd.f32 %v629_v39, %v535_v32 }
 0x117   : > { %v1454_v41 = vpop.permute.xlu1 %708  ;;  %v641_v42 = vpop.permute.xlu2 %640 }
 0x118   : > { %v1456_v43 = vadd.f32 %v641_v42, %v550_v33 }
 0x11c   : > { %v1458_v44 = vpop.permute.xlu0 %688 }
 0x11f   : > { %v639_v47 = vpop.permute.xlu1 %638  ;;  %v693_v48 = vpop.permute.xlu2 %692 }
 0x120   : > { %v736_v50 = vadd.f32 %v693_v48, %v670_v45  ;;  %v676_v55 = vadd.f32 %v639_v47, %v548_v31 }
 0x122   : > { %v756_v51 = vadd.f32 %v1468_v46, %v736_v50  ;;  %v1176_v50 = vld [vmem:[%s1463_s17 + $0x30] sm:$0xff]  }
 0x124   : > { %vm772_vm1 = vcmp.ge.f32.partialorder %v756_v51, 0.0  ;;  %v788_v53 = vmul.f32 0.05, %v756_v51  ;;  %v701_v54 = vpop.permute.xlu0 %700 }
 0x126   : > { %v804_v56 = vsel %vm772_vm1, %v756_v51, %v788_v53 }
 0x127   : > { %v852_v57 = vadd.f32 %v1149_v52, %v804_v56  ;;  %v1475_v58 = vpop.permute.xlu1 %690  ;;  %v705_v59 = vpop.permute.xlu2 %704 }
 0x128   : > { %v742_v61 = vadd.f32 %v705_v59, %v676_v55  ;;  %v1165_v59 = vunpack.c.l.bf16 %v1176_v50 }
 0x129   : > { %v868_v62 = vpack.c.bf16 %v852_v57, %v852_v57 }
 0x12a   : > { %v762_v63 = vadd.f32 %v1468_v46, %v742_v61  ;;  %v1518_v61 = vld [vmem:[%s1463_s17 + $0x8] sm:$0xff]  }
 0x12b   : > { %885 = vst.msk [vmem:[%s1480_s26 + $0x10] sm:$0xf] %vm880_vm2, %v868_v62  ;;  %v1166_v62 = vunpack.c.h.bf16 %v1176_v50 }
 0x12c   : > { %vm778_vm3 = vcmp.ge.f32.partialorder %v762_v63, 0.0  ;;  %v794_v1 = vmul.f32 0.05, %v762_v63  ;;  %v1489_v2 = vpop.permute.xlu0 %648 }
 0x12e   : > { %v810_v3 = vsel %vm778_vm3, %v762_v63, %v794_v1 }
 0x12f   : > { %v858_v4 = vadd.f32 %v1161_v0, %v810_v3  ;;  %v1491_v5 = vpop.permute.xlu1 %702  ;;  %v635_v6 = vpop.permute.xlu2 %634 }
 0x130   : > { %v674_v7 = vadd.f32 %v635_v6, %v1403_v24 }
 0x131   : > { %v874_v8 = vpack.c.bf16 %v858_v4, %v858_v4  ;;  %v1145_v4 = vunpack.c.l.bf16 %v1518_v61 }
 0x132   : > { %v740_v10 = vadd.f32 %v701_v54, %v674_v7 }
 0x133   : > { %891 = vst.msk [vmem:[%s1480_s26 + $0x28] sm:$0xf] %vm880_vm2, %v874_v8 }
 0x134   : > { %v760_v11 = vadd.f32 %v1468_v46, %v740_v10  ;;  %v619_v12 = vpop.permute.xlu0 %618 }
 0x135   : > { %v666_v1 = vadd.f32 %v619_v12, %v1383_v18 }
 0x136   : > { %vm776_vm4 = vcmp.ge.f32.partialorder %v760_v11, 0.0  ;;  %v792_v14 = vmul.f32 0.05, %v760_v11 }
 0x137   : > { %v633_v15 = vpop.permute.xlu1 %632  ;;  %v687_v16 = vpop.permute.xlu2 %686 }
 0x138   : > { %v808_v22 = vsel %vm776_vm4, %v760_v11, %v792_v14  ;;  %v673_v31 = vadd.f32 %v633_v15, %v1391_v20  ;;  %v1140_v11 = vld [vmem:[%s1463_s17] sm:$0xff]  }
 0x139   : > { %v856_v26 = vadd.f32 %v1157_v13, %v808_v22 }
 0x13b   : > { %v872_v24 = vpack.c.bf16 %v856_v26, %v856_v26 }
 0x13c   : > { %v1501_v30 = vpop.permute.xlu0 %630 }
 0x13d   : > { %889 = vst.msk [vmem:[%s1480_s26 + $0x20] sm:$0xf] %vm880_vm2, %v872_v24 }
 0x13f   : > { %v645_v32 = vpop.permute.xlu1 %644  ;;  %v699_v33 = vpop.permute.xlu2 %698 }
 0x140   : > { %v739_v35 = vadd.f32 %v699_v33, %v673_v31  ;;  %v679_v47 = vadd.f32 %v645_v32, %v1401_v23 }
 0x142   : > { %v759_v36 = vadd.f32 %v1468_v46, %v739_v35 }
 0x144   : > { %vm775_vm5 = vcmp.ge.f32.partialorder %v759_v36, 0.0  ;;  %v791_v39 = vmul.f32 0.05, %v759_v36  ;;  %v643_v42 = vpop.permute.xlu0 %642 }
 0x145   : > { %v678_v45 = vadd.f32 %v643_v42, %v1385_v19  ;;  %v672_v42 = vadd.f32 %v1501_v30, %v1379_v17  ;;  %v1153_v30 = vunpack.c.l.bf16 %v1507_v34 }
 0x146   : > { %v807_v48 = vsel %vm775_vm5, %v759_v36, %v791_v39 }
 0x147   : > { %v855_v20 = vadd.f32 %v1154_v38, %v807_v48  ;;  %v744_v51 = vadd.f32 %v1454_v41, %v678_v45  ;;  %v623_v52 = vpop.permute.xlu1 %622  ;;  %v711_v53 = vpop.permute.xlu2 %710 }
 0x148   : > { %v668_v54 = vadd.f32 %v623_v52, %v1410_v25  ;;  %v745_v55 = vadd.f32 %v711_v53, %v679_v47  ;;  %v1150_v52 = vunpack.c.h.bf16 %v1471_v49 }
 0x149   : > { %v871_v56 = vpack.c.bf16 %v855_v20, %v855_v20  ;;  %v764_v57 = vadd.f32 %v1468_v46, %v744_v51 }
 0x14a   : > { %v734_v19 = vadd.f32 %v1458_v44, %v668_v54  ;;  %v765_v23 = vadd.f32 %v1468_v46, %v745_v55 }
 0x14b   : > { %888 = vst.msk [vmem:[%s1480_s26 + $0x1c] sm:$0xf] %vm880_vm2, %v871_v56  ;;  %vm780_vm6 = vcmp.ge.f32.partialorder %v764_v57, 0.0  ;;  %v796_v41 = vmul.f32 0.05, %v764_v57 }
 0x14c   : > { %v754_v63 = vadd.f32 %v1468_v46, %v734_v19  ;;  %vm781_vm7 = vcmp.ge.f32.partialorder %v765_v23, 0.0  ;;  %v797_v25 = vmul.f32 0.05, %v765_v23  ;;  %v621_v0 = vpop.permute.xlu0 %620 }
 0x14d   : > { %v812_v3 = vsel %vm780_vm6, %v764_v57, %v796_v41  ;;  %v667_v44 = vadd.f32 %v621_v0, %v1399_v21  ;;  %v1142_v21 = vunpack.c.h.bf16 %v1140_v11 }
 0x14e   : > { %v860_v6 = vadd.f32 %v1165_v59, %v812_v3  ;;  %vm770_vm8 = vcmp.ge.f32.partialorder %v754_v63, 0.0  ;;  %v786_v7 = vmul.f32 0.05, %v754_v63  ;;  %v813_v8 = vsel %vm781_vm7, %v765_v23, %v797_v25 }
 0x14f   : > { %v861_v10 = vadd.f32 %v1166_v62, %v813_v8  ;;  %v733_v13 = vadd.f32 %v687_v16, %v667_v44  ;;  %v685_v14 = vpop.permute.xlu1 %684  ;;  %v1141_v16 = vunpack.c.l.bf16 %v1140_v11  ;;  %v1162_v25 = vunpack.c.h.bf16 %v1483_v60 }
 0x150   : > { %v876_v15 = vpack.c.bf16 %v860_v6, %v860_v6  ;;  %v802_v22 = vsel %vm770_vm8, %v754_v63, %v786_v7  ;;  %v732_v26 = vadd.f32 %v685_v14, %v666_v1  ;;  %v1146_v7 = vunpack.c.h.bf16 %v1518_v61  ;;  %v1177_v14 = vld [vmem:[%s1463_s17 + $0x38] sm:$0xff]  }
 0x151   : > { %v850_v18 = vadd.f32 %v1145_v4, %v802_v22  ;;  %v877_v12 = vpack.c.bf16 %v861_v10, %v861_v10  ;;  %v753_v24 = vadd.f32 %v1468_v46, %v733_v13 }
 0x152   : > { %893 = vst.msk [vmem:[%s1480_s26 + $0x30] sm:$0xf] %vm880_vm2, %v876_v15  ;;  %v752_v31 = vadd.f32 %v1468_v46, %v732_v26 }
 0x153   : > { %v866_v32 = vpack.c.bf16 %v850_v18, %v850_v18  ;;  %894 = vst.msk [vmem:[%s1480_s26 + $0x34] sm:$0xf] %vm880_vm2, %v877_v12  ;;  %vm769_vm9 = vcmp.ge.f32.partialorder %v753_v24, 0.0  ;;  %v785_v33 = vmul.f32 0.05, %v753_v24  ;;  %v1170_v18 = vunpack.c.h.bf16 %v1177_v14 }
 0x154   : > { %vm768_vm10 = vcmp.ge.f32.partialorder %v752_v31, 0.0  ;;  %v784_v35 = vmul.f32 0.05, %v752_v31  ;;  %v695_v36 = vpop.permute.xlu0 %694 }
 0x155   : > { %883 = vst.msk [vmem:[%s1480_s26 + $0x8] sm:$0xf] %vm880_vm2, %v866_v32  ;;  %v801_v38 = vsel %vm769_vm9, %v753_v24, %v785_v33  ;;  %v737_v39 = vadd.f32 %v695_v36, %v1450_v40 }
 0x156   : > { %v849_v45 = vadd.f32 %v1142_v21, %v801_v38  ;;  %v800_v47 = vsel %vm768_vm10, %v752_v31, %v784_v35  ;;  %v1169_v35 = vunpack.c.l.bf16 %v1177_v14 }
 0x157   : > { %v848_v48 = vadd.f32 %v1141_v16, %v800_v47  ;;  %v757_v20 = vadd.f32 %v1468_v46, %v737_v39  ;;  %v697_v50 = vpop.permute.xlu1 %696 }
 0x158   : > { %v865_v51 = vpack.c.bf16 %v849_v45, %v849_v45  ;;  %v738_v53 = vadd.f32 %v697_v50, %v672_v42 }
 0x159   : > { %v864_v54 = vpack.c.bf16 %v848_v48, %v848_v48  ;;  %vm773_vm11 = vcmp.ge.f32.partialorder %v757_v20, 0.0  ;;  %v789_v55 = vmul.f32 0.05, %v757_v20 }
 0x15a   : > { %882 = vst.msk [vmem:[%s1480_s26 + $0x4] sm:$0xf] %vm880_vm2, %v865_v51  ;;  %v758_v40 = vadd.f32 %v1468_v46, %v738_v53 }
 0x15b   : > { %881 = vst.msk [vmem:[%s1480_s26] sm:$0xf] %vm880_vm2, %v864_v54  ;;  %v805_v17 = vsel %vm773_vm11, %v757_v20, %v789_v55 }
 0x15c   : > { %v853_v56 = vadd.f32 %v1150_v52, %v805_v17  ;;  %vm774_vm12 = vcmp.ge.f32.partialorder %v758_v40, 0.0  ;;  %v790_v57 = vmul.f32 0.05, %v758_v40  ;;  %v707_v59 = vpop.permute.xlu0 %706 }
 0x15d   : > { %v743_v49 = vadd.f32 %v707_v59, %v1456_v43 }
 0x15e   : > { %v869_v19 = vpack.c.bf16 %v853_v56, %v853_v56  ;;  %v806_v23 = vsel %vm774_vm12, %v758_v40, %v790_v57 }
 0x15f   : > { %v854_v41 = vadd.f32 %v1153_v30, %v806_v23  ;;  %v763_v62 = vadd.f32 %v1468_v46, %v743_v49  ;;  %v625_v63 = vpop.permute.xlu1 %624 }
 0x160   : > { %886 = vst.msk [vmem:[%s1480_s26 + $0x14] sm:$0xf] %vm880_vm2, %v869_v19  ;;  %v669_v0 = vadd.f32 %v625_v63, %v1420_v28  ;;  %v681_v28 = vadd.f32 %v1489_v2, %v1424_v29 }
 0x161   : > { %v870_v34 = vpack.c.bf16 %v854_v41, %v854_v41  ;;  %vm779_vm13 = vcmp.ge.f32.partialorder %v763_v62, 0.0  ;;  %v795_v1 = vmul.f32 0.05, %v763_v62 }
 0x162   : > { %v735_v3 = vadd.f32 %v1475_v58, %v669_v0 }
 0x163   : > { %887 = vst.msk [vmem:[%s1480_s26 + $0x18] sm:$0xf] %vm880_vm2, %v870_v34  ;;  %v811_v43 = vsel %vm779_vm13, %v763_v62, %v795_v1 }
 0x164   : > { %v859_v4 = vadd.f32 %v1162_v25, %v811_v43  ;;  %v755_v44 = vadd.f32 %v1468_v46, %v735_v3  ;;  %v637_v6 = vpop.permute.xlu0 %636 }
 0x165   : > { %v675_v60 = vadd.f32 %v637_v6, %v1414_v27  ;;  %v1158_v27 = vunpack.c.h.bf16 %v1495_v9 }
 0x166   : > { %v875_v8 = vpack.c.bf16 %v859_v4, %v859_v4  ;;  %vm771_vm14 = vcmp.ge.f32.partialorder %v755_v44, 0.0  ;;  %v787_v10 = vmul.f32 0.05, %v755_v44 }
 0x167   : > { %v741_v58 = vadd.f32 %v1491_v5, %v675_v60  ;;  %v715_v11 = vpop.permute.xlu1 %714 }
 0x168   : > { %892 = vst.msk [vmem:[%s1480_s26 + $0x2c] sm:$0xf] %vm880_vm2, %v875_v8  ;;  %v803_v13 = vsel %vm771_vm14, %v755_v44, %v787_v10  ;;  %v747_v15 = vadd.f32 %v715_v11, %v681_v28 }
 0x169   : > { %v851_v22 = vadd.f32 %v1146_v7, %v803_v13  ;;  %v761_v61 = vadd.f32 %v1468_v46, %v741_v58 }
 0x16a   : > { %v767_v26 = vadd.f32 %v1468_v46, %v747_v15 }
 0x16b   : > { %v867_v29 = vpack.c.bf16 %v851_v22, %v851_v22  ;;  %vm777_vm15 = vcmp.ge.f32.partialorder %v761_v61, 0.0  ;;  %v793_v2 = vmul.f32 0.05, %v761_v61 }
 0x16c   : > { %vm783_vm0 = vcmp.ge.f32.partialorder %v767_v26, 0.0  ;;  %v799_v5 = vmul.f32 0.05, %v767_v26  ;;  %v713_v12 = vpop.permute.xlu0 %712 }
 0x16d   : > { %884 = vst.msk [vmem:[%s1480_s26 + $0xc] sm:$0xf] %vm880_vm2, %v867_v29  ;;  %v809_v24 = vsel %vm777_vm15, %v761_v61, %v793_v2  ;;  %v746_v21 = vadd.f32 %v713_v12, %v1447_v37 }
 0x16e   : > { %v857_v31 = vadd.f32 %v1158_v27, %v809_v24  ;;  %v815_v32 = vsel %vm783_vm0, %v767_v26, %v799_v5 }
 0x16f   : > { %v863_v9 = vadd.f32 %v1170_v18, %v815_v32  ;;  %v766_v33 = vadd.f32 %v1468_v46, %v746_v21 }
 0x170   : > { %v873_v16 = vpack.c.bf16 %v857_v31, %v857_v31 }
 0x171   : > { %v879_v36 = vpack.c.bf16 %v863_v9, %v863_v9  ;;  %vm782_vm1 = vcmp.ge.f32.partialorder %v766_v33, 0.0  ;;  %v798_v38 = vmul.f32 0.05, %v766_v33 }
 0x172   : > { %890 = vst.msk [vmem:[%s1480_s26 + $0x24] sm:$0xf] %vm880_vm2, %v873_v16 }
 0x173   : > { %896 = vst.msk [vmem:[%s1480_s26 + $0x3c] sm:$0xf] %vm880_vm2, %v879_v36  ;;  %v814_v39 = vsel %vm782_vm1, %v766_v33, %v798_v38 }
 0x174   : > { %v862_v42 = vadd.f32 %v1169_v35, %v814_v39 }
 0x176   : > { %v878_v45 = vpack.c.bf16 %v862_v42, %v862_v42 }
 0x178   : > { %895 = vst.msk [vmem:[%s1480_s26 + $0x38] sm:$0xf] %vm880_vm2, %v878_v45 }
 0x179 PF: > { %s15_s22 = sadd.s32 1, %s1272_s22   ;;  %s1600_s18 = smov %s1264_s20 }
 0x17a   : > { %p12_p10 = scmp.ge.s32.totalorder %s15_s22, 6   ;;  %s1601_s19 = smov %s1268_s21 }
 0x17b   : > { %s1602_s20 = smov %s1605_s23  ;;  %s1603_s21 = smov %s1609_s24 }
 0x17c   :  { %14 = sbr.rel (!%p12_p10) target bundleno = 3 (0x3), region = 76 }

// kernel: _lambda_.40
= control target key start
LH: loop header
LB: loop body
LE: loop exit
PB: predicated region body
PF: predicated region fallthrough
CT: control target
= control target key end

     0   :  { %vm355_vm0 = vcmask 1046528   ;;  %vm258_vm1 = vcmask 244736   ;;  %vm592_vm2 = vcmask 240640   ;;  %s1352_s1 = inlined_call_operand.vmem [shape: bf16[30,30], index: 1, kind: input, shape index: {}]   ;;  %s1353_s2 = inlined_call_operand.vmem [shape: f32[1,30], index: 2, kind: input, shape index: {}]   ;;  %s1354_s0 = inlined_call_operand.vmem [shape: bf16[512,30], index: 0, kind: input, shape index: {}]   ;;  %s1355_s3 = inlined_call_operand.vmem [shape: bf16[512,30], index: 3, kind: output, shape index: {}]  }
   0x1   :  { %v795_v0 = vld [vmem:[%s1352_s1 + $0x8] sm:$0xf]  ;;  %v862_v1 = vld [vmem:[%s1352_s1 + $0x8] sm:$0x70]  ;;  %v861_v4 = vld [vmem:[%s1352_s1] sm:$0xff] }
   0x2   :  { %v796_v2 = vor.u32 %v862_v1, %v795_v0  ;;  %v829_v5 = vld [vmem:[%s1354_s0] sm:$0xff]  ;;  %v830_v9 = vld [vmem:[%s1354_s0 + $0x8] sm:$0xff]  ;;  %v831_v13 = vld [vmem:[%s1354_s0 + $0x10] sm:$0xff] }
   0x3   :  { %v837_v6 = vld [vmem:[%s1354_s0 + $0x40] sm:$0xff]  ;;  %v838_v10 = vld [vmem:[%s1354_s0 + $0x48] sm:$0xff]  ;;  %v839_v14 = vld [vmem:[%s1354_s0 + $0x50] sm:$0xff] }
   0x4   :  { %v357_v3 = vsel %vm355_vm0, %v796_v2, 0  ;;  %v845_v7 = vld [vmem:[%s1354_s0 + $0x80] sm:$0xff]  ;;  %v846_v11 = vld [vmem:[%s1354_s0 + $0x88] sm:$0xff]  ;;  %v847_v15 = vld [vmem:[%s1354_s0 + $0x90] sm:$0xff] }
   0x5   :  { %365 = vmatpush.bf16.msra.mxu0 %v357_v3  ;;  %863 = vmatpush.bf16.msra.mxu1 %v357_v3  ;;  %v853_v8 = vld [vmem:[%s1354_s0 + $0xc0] sm:$0xff]  ;;  %v854_v12 = vld [vmem:[%s1354_s0 + $0xc8] sm:$0xff]  ;;  %v855_v16 = vld [vmem:[%s1354_s0 + $0xd0] sm:$0xff] }
   0x6   :  { %864 = vmatpush.bf16.msra.mxu2 %v357_v3  ;;  %865 = vmatpush.bf16.msra.mxu3 %v357_v3  ;;  %v832_v17 = vld [vmem:[%s1354_s0 + $0x18] sm:$0xff]  ;;  %v833_v21 = vld [vmem:[%s1354_s0 + $0x20] sm:$0xff]  ;;  %v834_v25 = vld [vmem:[%s1354_s0 + $0x28] sm:$0xff] }
   0x7   :  { %v840_v18 = vld [vmem:[%s1354_s0 + $0x58] sm:$0xff]  ;;  %v841_v22 = vld [vmem:[%s1354_s0 + $0x60] sm:$0xff]  ;;  %v842_v26 = vld [vmem:[%s1354_s0 + $0x68] sm:$0xff] }
   0x8   :  { %v848_v19 = vld [vmem:[%s1354_s0 + $0x98] sm:$0xff]  ;;  %v849_v23 = vld [vmem:[%s1354_s0 + $0xa0] sm:$0xff]  ;;  %v850_v27 = vld [vmem:[%s1354_s0 + $0xa8] sm:$0xff] }
   0x9   :  { %366 = vmatpush.bf16.msra.mxu0 %v861_v4  ;;  %866 = vmatpush.bf16.msra.mxu1 %v861_v4  ;;  %v856_v20 = vld [vmem:[%s1354_s0 + $0xd8] sm:$0xff]  ;;  %v857_v24 = vld [vmem:[%s1354_s0 + $0xe0] sm:$0xff]  ;;  %v858_v28 = vld [vmem:[%s1354_s0 + $0xe8] sm:$0xff] }
   0xa   :  { %867 = vmatpush.bf16.msra.mxu2 %v861_v4  ;;  %868 = vmatpush.bf16.msra.mxu3 %v861_v4  ;;  %v835_v29 = vld [vmem:[%s1354_s0 + $0x30] sm:$0xff]  ;;  %v836_v33 = vld [vmem:[%s1354_s0 + $0x38] sm:$0xff]  ;;  %v1030_v37 = vld [vmem:[%s1353_s2] ss:$0 sm:$0xff] }
   0xb   :  { %v843_v30 = vld [vmem:[%s1354_s0 + $0x70] sm:$0xff]  ;;  %v844_v34 = vld [vmem:[%s1354_s0 + $0x78] sm:$0xff] }
   0xc   :  { %797 = vmatmul.msk.bf16.vlgmr.msra.gmra.mxu0 %vm258_vm1, %v829_v5  ;;  %805 = vmatmul.msk.bf16.vlgmr.msra.gmra.mxu1 %vm258_vm1, %v837_v6  ;;  %v851_v31 = vld [vmem:[%s1354_s0 + $0xb0] sm:$0xff]  ;;  %v852_v35 = vld [vmem:[%s1354_s0 + $0xb8] sm:$0xff] }
   0xd   :  { %813 = vmatmul.msk.bf16.vlgmr.msra.gmra.mxu2 %vm258_vm1, %v845_v7  ;;  %821 = vmatmul.msk.bf16.vlgmr.msra.gmra.mxu3 %vm258_vm1, %v853_v8  ;;  %v859_v32 = vld [vmem:[%s1354_s0 + $0xf0] sm:$0xff]  ;;  %v860_v36 = vld [vmem:[%s1354_s0 + $0xf8] sm:$0xff] }
  0x1c   :  { %798 = vmatmul.msk.bf16.gmra.mxu0 %vm258_vm1, %v830_v9  ;;  %806 = vmatmul.msk.bf16.gmra.mxu1 %vm258_vm1, %v838_v10 }
  0x1d   :  { %814 = vmatmul.msk.bf16.gmra.mxu2 %vm258_vm1, %v846_v11  ;;  %822 = vmatmul.msk.bf16.gmra.mxu3 %vm258_vm1, %v854_v12 }
  0x2c   :  { %799 = vmatmul.msk.bf16.gmra.mxu0 %vm258_vm1, %v831_v13  ;;  %807 = vmatmul.msk.bf16.gmra.mxu1 %vm258_vm1, %v839_v14 }
  0x2d   :  { %815 = vmatmul.msk.bf16.gmra.mxu2 %vm258_vm1, %v847_v15  ;;  %823 = vmatmul.msk.bf16.gmra.mxu3 %vm258_vm1, %v855_v16 }
  0x3c   :  { %800 = vmatmul.msk.bf16.gmra.mxu0 %vm258_vm1, %v832_v17  ;;  %808 = vmatmul.msk.bf16.gmra.mxu1 %vm258_vm1, %v840_v18 }
  0x3d   :  { %816 = vmatmul.msk.bf16.gmra.mxu2 %vm258_vm1, %v848_v19  ;;  %824 = vmatmul.msk.bf16.gmra.mxu3 %vm258_vm1, %v856_v20 }
  0x4c   :  { %801 = vmatmul.msk.bf16.gmra.mxu0 %vm258_vm1, %v833_v21  ;;  %809 = vmatmul.msk.bf16.gmra.mxu1 %vm258_vm1, %v841_v22 }
  0x4d   :  { %817 = vmatmul.msk.bf16.gmra.mxu2 %vm258_vm1, %v849_v23  ;;  %825 = vmatmul.msk.bf16.gmra.mxu3 %vm258_vm1, %v857_v24 }
  0x5c   :  { %802 = vmatmul.msk.bf16.gmra.mxu0 %vm258_vm1, %v834_v25  ;;  %810 = vmatmul.msk.bf16.gmra.mxu1 %vm258_vm1, %v842_v26 }
  0x5d   :  { %818 = vmatmul.msk.bf16.gmra.mxu2 %vm258_vm1, %v850_v27  ;;  %826 = vmatmul.msk.bf16.gmra.mxu3 %vm258_vm1, %v858_v28 }
  0x6c   :  { %803 = vmatmul.msk.bf16.gmra.mxu0 %vm258_vm1, %v835_v29  ;;  %811 = vmatmul.msk.bf16.gmra.mxu1 %vm258_vm1, %v843_v30 }
  0x6d   :  { %819 = vmatmul.msk.bf16.gmra.mxu2 %vm258_vm1, %v851_v31  ;;  %827 = vmatmul.msk.bf16.gmra.mxu3 %vm258_vm1, %v859_v32 }
  0x7c   :  { %804 = vmatmul.msk.bf16.gmra.mxu0 %vm258_vm1, %v836_v33  ;;  %812 = vmatmul.msk.bf16.gmra.mxu1 %vm258_vm1, %v844_v34 }
  0x7d   :  { %820 = vmatmul.msk.bf16.gmra.mxu2 %vm258_vm1, %v852_v35  ;;  %828 = vmatmul.msk.bf16.gmra.mxu3 %vm258_vm1, %v860_v36 }
  0x89   :  { %v368_v38 = vpop.f32.mrf.mxu0  ;;  %v408_v39 = vpop.f32.mrf.mxu1 }
  0x8a   :  { %v369_v40 = vadd.f32 %v1030_v37, %v368_v38  ;;  %v409_v41 = vadd.f32 %v1030_v37, %v408_v39 }
  0x8c   :  { %v528_v42 = vpack.c.bf16 %v369_v40, %v369_v40  ;;  %v544_v43 = vpack.c.bf16 %v409_v41, %v409_v41 }
  0x8e   :  { %593 = vst.msk [vmem:[%s1355_s3] sm:$0xf] %vm592_vm2, %v528_v42 }
  0x8f   :  { %609 = vst.msk [vmem:[%s1355_s3 + $0x40] sm:$0xf] %vm592_vm2, %v544_v43 }
  0x90   :  { %v448_v44 = vpop.f32.mrf.mxu2  ;;  %v488_v45 = vpop.f32.mrf.mxu3 }
  0x91   :  { %v449_v46 = vadd.f32 %v1030_v37, %v448_v44  ;;  %v489_v47 = vadd.f32 %v1030_v37, %v488_v45  ;;  %v370_v48 = vpop.f32.mrf.mxu0  ;;  %v410_v49 = vpop.f32.mrf.mxu1 }
  0x92   :  { %v371_v50 = vadd.f32 %v1030_v37, %v370_v48  ;;  %v411_v51 = vadd.f32 %v1030_v37, %v410_v49 }
  0x93   :  { %v560_v52 = vpack.c.bf16 %v449_v46, %v449_v46  ;;  %v576_v53 = vpack.c.bf16 %v489_v47, %v489_v47 }
  0x94   :  { %v529_v54 = vpack.c.bf16 %v371_v50, %v371_v50  ;;  %v545_v55 = vpack.c.bf16 %v411_v51, %v411_v51 }
  0x95   :  { %625 = vst.msk [vmem:[%s1355_s3 + $0x80] sm:$0xf] %vm592_vm2, %v560_v52 }
  0x96   :  { %641 = vst.msk [vmem:[%s1355_s3 + $0xc0] sm:$0xf] %vm592_vm2, %v576_v53 }
  0x97   :  { %594 = vst.msk [vmem:[%s1355_s3 + $0x4] sm:$0xf] %vm592_vm2, %v529_v54 }
  0x98   :  { %610 = vst.msk [vmem:[%s1355_s3 + $0x44] sm:$0xf] %vm592_vm2, %v545_v55  ;;  %v450_v56 = vpop.f32.mrf.mxu2  ;;  %v490_v57 = vpop.f32.mrf.mxu3 }
  0x99   :  { %v451_v58 = vadd.f32 %v1030_v37, %v450_v56  ;;  %v491_v59 = vadd.f32 %v1030_v37, %v490_v57  ;;  %v373_v60 = vpop.f32.mrf.mxu0  ;;  %v413_v61 = vpop.f32.mrf.mxu1 }
  0x9a   :  { %v374_v62 = vadd.f32 %v1030_v37, %v373_v60  ;;  %v414_v63 = vadd.f32 %v1030_v37, %v413_v61 }
  0x9b   :  { %v561_v0 = vpack.c.bf16 %v451_v58, %v451_v58  ;;  %v577_v1 = vpack.c.bf16 %v491_v59, %v491_v59 }
  0x9c   :  { %v530_v2 = vpack.c.bf16 %v374_v62, %v374_v62  ;;  %v546_v3 = vpack.c.bf16 %v414_v63, %v414_v63 }
  0x9d   :  { %626 = vst.msk [vmem:[%s1355_s3 + $0x84] sm:$0xf] %vm592_vm2, %v561_v0 }
  0x9e   :  { %642 = vst.msk [vmem:[%s1355_s3 + $0xc4] sm:$0xf] %vm592_vm2, %v577_v1 }
  0x9f   :  { %595 = vst.msk [vmem:[%s1355_s3 + $0x8] sm:$0xf] %vm592_vm2, %v530_v2 }
  0xa0   :  { %611 = vst.msk [vmem:[%s1355_s3 + $0x48] sm:$0xf] %vm592_vm2, %v546_v3  ;;  %v453_v4 = vpop.f32.mrf.mxu2  ;;  %v493_v5 = vpop.f32.mrf.mxu3 }
  0xa1   :  { %v454_v6 = vadd.f32 %v1030_v37, %v453_v4  ;;  %v494_v7 = vadd.f32 %v1030_v37, %v493_v5  ;;  %v375_v8 = vpop.f32.mrf.mxu0  ;;  %v415_v9 = vpop.f32.mrf.mxu1 }
  0xa2   :  { %v376_v10 = vadd.f32 %v1030_v37, %v375_v8  ;;  %v416_v11 = vadd.f32 %v1030_v37, %v415_v9 }
  0xa3   :  { %v562_v12 = vpack.c.bf16 %v454_v6, %v454_v6  ;;  %v578_v13 = vpack.c.bf16 %v494_v7, %v494_v7 }
  0xa4   :  { %v531_v14 = vpack.c.bf16 %v376_v10, %v376_v10  ;;  %v547_v15 = vpack.c.bf16 %v416_v11, %v416_v11 }
  0xa5   :  { %627 = vst.msk [vmem:[%s1355_s3 + $0x88] sm:$0xf] %vm592_vm2, %v562_v12 }
  0xa6   :  { %643 = vst.msk [vmem:[%s1355_s3 + $0xc8] sm:$0xf] %vm592_vm2, %v578_v13 }
  0xa7   :  { %596 = vst.msk [vmem:[%s1355_s3 + $0xc] sm:$0xf] %vm592_vm2, %v531_v14 }
  0xa8   :  { %612 = vst.msk [vmem:[%s1355_s3 + $0x4c] sm:$0xf] %vm592_vm2, %v547_v15  ;;  %v455_v16 = vpop.f32.mrf.mxu2  ;;  %v495_v17 = vpop.f32.mrf.mxu3 }
  0xa9   :  { %v456_v18 = vadd.f32 %v1030_v37, %v455_v16  ;;  %v496_v19 = vadd.f32 %v1030_v37, %v495_v17  ;;  %v378_v20 = vpop.f32.mrf.mxu0  ;;  %v418_v21 = vpop.f32.mrf.mxu1 }
  0xaa   :  { %v379_v22 = vadd.f32 %v1030_v37, %v378_v20  ;;  %v419_v23 = vadd.f32 %v1030_v37, %v418_v21 }
  0xab   :  { %v563_v24 = vpack.c.bf16 %v456_v18, %v456_v18  ;;  %v579_v25 = vpack.c.bf16 %v496_v19, %v496_v19 }
  0xac   :  { %v532_v26 = vpack.c.bf16 %v379_v22, %v379_v22  ;;  %v548_v27 = vpack.c.bf16 %v419_v23, %v419_v23 }
  0xad   :  { %628 = vst.msk [vmem:[%s1355_s3 + $0x8c] sm:$0xf] %vm592_vm2, %v563_v24 }
  0xae   :  { %644 = vst.msk [vmem:[%s1355_s3 + $0xcc] sm:$0xf] %vm592_vm2, %v579_v25 }
  0xaf   :  { %597 = vst.msk [vmem:[%s1355_s3 + $0x10] sm:$0xf] %vm592_vm2, %v532_v26 }
  0xb0   :  { %613 = vst.msk [vmem:[%s1355_s3 + $0x50] sm:$0xf] %vm592_vm2, %v548_v27  ;;  %v458_v28 = vpop.f32.mrf.mxu2  ;;  %v498_v29 = vpop.f32.mrf.mxu3 }
  0xb1   :  { %v459_v30 = vadd.f32 %v1030_v37, %v458_v28  ;;  %v499_v31 = vadd.f32 %v1030_v37, %v498_v29  ;;  %v380_v32 = vpop.f32.mrf.mxu0  ;;  %v420_v33 = vpop.f32.mrf.mxu1 }
  0xb2   :  { %v381_v34 = vadd.f32 %v1030_v37, %v380_v32  ;;  %v421_v35 = vadd.f32 %v1030_v37, %v420_v33 }
  0xb3   :  { %v564_v36 = vpack.c.bf16 %v459_v30, %v459_v30  ;;  %v580_v38 = vpack.c.bf16 %v499_v31, %v499_v31 }
  0xb4   :  { %v533_v39 = vpack.c.bf16 %v381_v34, %v381_v34  ;;  %v549_v40 = vpack.c.bf16 %v421_v35, %v421_v35 }
  0xb5   :  { %629 = vst.msk [vmem:[%s1355_s3 + $0x90] sm:$0xf] %vm592_vm2, %v564_v36 }
  0xb6   :  { %645 = vst.msk [vmem:[%s1355_s3 + $0xd0] sm:$0xf] %vm592_vm2, %v580_v38 }
  0xb7   :  { %598 = vst.msk [vmem:[%s1355_s3 + $0x14] sm:$0xf] %vm592_vm2, %v533_v39 }
  0xb8   :  { %614 = vst.msk [vmem:[%s1355_s3 + $0x54] sm:$0xf] %vm592_vm2, %v549_v40  ;;  %v460_v41 = vpop.f32.mrf.mxu2  ;;  %v500_v42 = vpop.f32.mrf.mxu3 }
  0xb9   :  { %v461_v43 = vadd.f32 %v1030_v37, %v460_v41  ;;  %v501_v44 = vadd.f32 %v1030_v37, %v500_v42  ;;  %v383_v45 = vpop.f32.mrf.mxu0  ;;  %v423_v46 = vpop.f32.mrf.mxu1 }
  0xba   :  { %v384_v47 = vadd.f32 %v1030_v37, %v383_v45  ;;  %v424_v48 = vadd.f32 %v1030_v37, %v423_v46 }
  0xbb   :  { %v565_v49 = vpack.c.bf16 %v461_v43, %v461_v43  ;;  %v581_v50 = vpack.c.bf16 %v501_v44, %v501_v44 }
  0xbc   :  { %v534_v51 = vpack.c.bf16 %v384_v47, %v384_v47  ;;  %v550_v52 = vpack.c.bf16 %v424_v48, %v424_v48 }
  0xbd   :  { %630 = vst.msk [vmem:[%s1355_s3 + $0x94] sm:$0xf] %vm592_vm2, %v565_v49 }
  0xbe   :  { %646 = vst.msk [vmem:[%s1355_s3 + $0xd4] sm:$0xf] %vm592_vm2, %v581_v50 }
  0xbf   :  { %599 = vst.msk [vmem:[%s1355_s3 + $0x18] sm:$0xf] %vm592_vm2, %v534_v51 }
  0xc0   :  { %615 = vst.msk [vmem:[%s1355_s3 + $0x58] sm:$0xf] %vm592_vm2, %v550_v52  ;;  %v463_v53 = vpop.f32.mrf.mxu2  ;;  %v503_v54 = vpop.f32.mrf.mxu3 }
  0xc1   :  { %v464_v55 = vadd.f32 %v1030_v37, %v463_v53  ;;  %v504_v56 = vadd.f32 %v1030_v37, %v503_v54  ;;  %v385_v57 = vpop.f32.mrf.mxu0  ;;  %v425_v58 = vpop.f32.mrf.mxu1 }
  0xc2   :  { %v386_v59 = vadd.f32 %v1030_v37, %v385_v57  ;;  %v426_v60 = vadd.f32 %v1030_v37, %v425_v58 }
  0xc3   :  { %v566_v61 = vpack.c.bf16 %v464_v55, %v464_v55  ;;  %v582_v62 = vpack.c.bf16 %v504_v56, %v504_v56 }
  0xc4   :  { %v535_v63 = vpack.c.bf16 %v386_v59, %v386_v59  ;;  %v551_v0 = vpack.c.bf16 %v426_v60, %v426_v60 }
  0xc5   :  { %631 = vst.msk [vmem:[%s1355_s3 + $0x98] sm:$0xf] %vm592_vm2, %v566_v61 }
  0xc6   :  { %647 = vst.msk [vmem:[%s1355_s3 + $0xd8] sm:$0xf] %vm592_vm2, %v582_v62 }
  0xc7   :  { %600 = vst.msk [vmem:[%s1355_s3 + $0x1c] sm:$0xf] %vm592_vm2, %v535_v63 }
  0xc8   :  { %616 = vst.msk [vmem:[%s1355_s3 + $0x5c] sm:$0xf] %vm592_vm2, %v551_v0  ;;  %v465_v1 = vpop.f32.mrf.mxu2  ;;  %v505_v2 = vpop.f32.mrf.mxu3 }
  0xc9   :  { %v466_v3 = vadd.f32 %v1030_v37, %v465_v1  ;;  %v506_v4 = vadd.f32 %v1030_v37, %v505_v2  ;;  %v388_v5 = vpop.f32.mrf.mxu0  ;;  %v428_v6 = vpop.f32.mrf.mxu1 }
  0xca   :  { %v389_v7 = vadd.f32 %v1030_v37, %v388_v5  ;;  %v429_v8 = vadd.f32 %v1030_v37, %v428_v6 }
  0xcb   :  { %v567_v9 = vpack.c.bf16 %v466_v3, %v466_v3  ;;  %v583_v10 = vpack.c.bf16 %v506_v4, %v506_v4 }
  0xcc   :  { %v536_v11 = vpack.c.bf16 %v389_v7, %v389_v7  ;;  %v552_v12 = vpack.c.bf16 %v429_v8, %v429_v8 }
  0xcd   :  { %632 = vst.msk [vmem:[%s1355_s3 + $0x9c] sm:$0xf] %vm592_vm2, %v567_v9 }
  0xce   :  { %648 = vst.msk [vmem:[%s1355_s3 + $0xdc] sm:$0xf] %vm592_vm2, %v583_v10 }
  0xcf   :  { %601 = vst.msk [vmem:[%s1355_s3 + $0x20] sm:$0xf] %vm592_vm2, %v536_v11 }
  0xd0   :  { %617 = vst.msk [vmem:[%s1355_s3 + $0x60] sm:$0xf] %vm592_vm2, %v552_v12  ;;  %v468_v13 = vpop.f32.mrf.mxu2  ;;  %v508_v14 = vpop.f32.mrf.mxu3 }
  0xd1   :  { %v469_v15 = vadd.f32 %v1030_v37, %v468_v13  ;;  %v509_v16 = vadd.f32 %v1030_v37, %v508_v14  ;;  %v390_v17 = vpop.f32.mrf.mxu0  ;;  %v430_v18 = vpop.f32.mrf.mxu1 }
  0xd2   :  { %v391_v19 = vadd.f32 %v1030_v37, %v390_v17  ;;  %v431_v20 = vadd.f32 %v1030_v37, %v430_v18 }
  0xd3   :  { %v568_v21 = vpack.c.bf16 %v469_v15, %v469_v15  ;;  %v584_v22 = vpack.c.bf16 %v509_v16, %v509_v16 }
  0xd4   :  { %v537_v23 = vpack.c.bf16 %v391_v19, %v391_v19  ;;  %v553_v24 = vpack.c.bf16 %v431_v20, %v431_v20 }
  0xd5   :  { %633 = vst.msk [vmem:[%s1355_s3 + $0xa0] sm:$0xf] %vm592_vm2, %v568_v21 }
  0xd6   :  { %649 = vst.msk [vmem:[%s1355_s3 + $0xe0] sm:$0xf] %vm592_vm2, %v584_v22 }
  0xd7   :  { %602 = vst.msk [vmem:[%s1355_s3 + $0x24] sm:$0xf] %vm592_vm2, %v537_v23 }
  0xd8   :  { %618 = vst.msk [vmem:[%s1355_s3 + $0x64] sm:$0xf] %vm592_vm2, %v553_v24  ;;  %v470_v25 = vpop.f32.mrf.mxu2  ;;  %v510_v26 = vpop.f32.mrf.mxu3 }
  0xd9   :  { %v471_v27 = vadd.f32 %v1030_v37, %v470_v25  ;;  %v511_v28 = vadd.f32 %v1030_v37, %v510_v26  ;;  %v393_v29 = vpop.f32.mrf.mxu0  ;;  %v433_v30 = vpop.f32.mrf.mxu1 }
  0xda   :  { %v394_v31 = vadd.f32 %v1030_v37, %v393_v29  ;;  %v434_v32 = vadd.f32 %v1030_v37, %v433_v30 }
  0xdb   :  { %v569_v33 = vpack.c.bf16 %v471_v27, %v471_v27  ;;  %v585_v34 = vpack.c.bf16 %v511_v28, %v511_v28 }
  0xdc   :  { %v538_v35 = vpack.c.bf16 %v394_v31, %v394_v31  ;;  %v554_v36 = vpack.c.bf16 %v434_v32, %v434_v32 }
  0xdd   :  { %634 = vst.msk [vmem:[%s1355_s3 + $0xa4] sm:$0xf] %vm592_vm2, %v569_v33 }
  0xde   :  { %650 = vst.msk [vmem:[%s1355_s3 + $0xe4] sm:$0xf] %vm592_vm2, %v585_v34 }
  0xdf   :  { %603 = vst.msk [vmem:[%s1355_s3 + $0x28] sm:$0xf] %vm592_vm2, %v538_v35 }
  0xe0   :  { %619 = vst.msk [vmem:[%s1355_s3 + $0x68] sm:$0xf] %vm592_vm2, %v554_v36  ;;  %v473_v38 = vpop.f32.mrf.mxu2  ;;  %v513_v39 = vpop.f32.mrf.mxu3 }
  0xe1   :  { %v474_v40 = vadd.f32 %v1030_v37, %v473_v38  ;;  %v514_v41 = vadd.f32 %v1030_v37, %v513_v39  ;;  %v395_v42 = vpop.f32.mrf.mxu0  ;;  %v435_v43 = vpop.f32.mrf.mxu1 }
  0xe2   :  { %v396_v44 = vadd.f32 %v1030_v37, %v395_v42  ;;  %v436_v45 = vadd.f32 %v1030_v37, %v435_v43 }
  0xe3   :  { %v570_v46 = vpack.c.bf16 %v474_v40, %v474_v40  ;;  %v586_v47 = vpack.c.bf16 %v514_v41, %v514_v41 }
  0xe4   :  { %v539_v48 = vpack.c.bf16 %v396_v44, %v396_v44  ;;  %v555_v49 = vpack.c.bf16 %v436_v45, %v436_v45 }
  0xe5   :  { %635 = vst.msk [vmem:[%s1355_s3 + $0xa8] sm:$0xf] %vm592_vm2, %v570_v46 }
  0xe6   :  { %651 = vst.msk [vmem:[%s1355_s3 + $0xe8] sm:$0xf] %vm592_vm2, %v586_v47 }
  0xe7   :  { %604 = vst.msk [vmem:[%s1355_s3 + $0x2c] sm:$0xf] %vm592_vm2, %v539_v48 }
  0xe8   :  { %620 = vst.msk [vmem:[%s1355_s3 + $0x6c] sm:$0xf] %vm592_vm2, %v555_v49  ;;  %v475_v50 = vpop.f32.mrf.mxu2  ;;  %v515_v51 = vpop.f32.mrf.mxu3 }
  0xe9   :  { %v476_v52 = vadd.f32 %v1030_v37, %v475_v50  ;;  %v516_v53 = vadd.f32 %v1030_v37, %v515_v51  ;;  %v398_v54 = vpop.f32.mrf.mxu0  ;;  %v438_v55 = vpop.f32.mrf.mxu1 }
  0xea   :  { %v399_v56 = vadd.f32 %v1030_v37, %v398_v54  ;;  %v439_v57 = vadd.f32 %v1030_v37, %v438_v55 }
  0xeb   :  { %v571_v58 = vpack.c.bf16 %v476_v52, %v476_v52  ;;  %v587_v59 = vpack.c.bf16 %v516_v53, %v516_v53 }
  0xec   :  { %v540_v60 = vpack.c.bf16 %v399_v56, %v399_v56  ;;  %v556_v61 = vpack.c.bf16 %v439_v57, %v439_v57 }
  0xed   :  { %636 = vst.msk [vmem:[%s1355_s3 + $0xac] sm:$0xf] %vm592_vm2, %v571_v58 }
  0xee   :  { %652 = vst.msk [vmem:[%s1355_s3 + $0xec] sm:$0xf] %vm592_vm2, %v587_v59 }
  0xef   :  { %605 = vst.msk [vmem:[%s1355_s3 + $0x30] sm:$0xf] %vm592_vm2, %v540_v60 }
  0xf0   :  { %621 = vst.msk [vmem:[%s1355_s3 + $0x70] sm:$0xf] %vm592_vm2, %v556_v61  ;;  %v478_v62 = vpop.f32.mrf.mxu2  ;;  %v518_v63 = vpop.f32.mrf.mxu3 }
  0xf1   :  { %v479_v0 = vadd.f32 %v1030_v37, %v478_v62  ;;  %v519_v1 = vadd.f32 %v1030_v37, %v518_v63  ;;  %v400_v2 = vpop.f32.mrf.mxu0  ;;  %v440_v3 = vpop.f32.mrf.mxu1 }
  0xf2   :  { %v401_v4 = vadd.f32 %v1030_v37, %v400_v2  ;;  %v441_v5 = vadd.f32 %v1030_v37, %v440_v3 }
  0xf3   :  { %v572_v6 = vpack.c.bf16 %v479_v0, %v479_v0  ;;  %v588_v7 = vpack.c.bf16 %v519_v1, %v519_v1 }
  0xf4   :  { %v541_v8 = vpack.c.bf16 %v401_v4, %v401_v4  ;;  %v557_v9 = vpack.c.bf16 %v441_v5, %v441_v5 }
  0xf5   :  { %637 = vst.msk [vmem:[%s1355_s3 + $0xb0] sm:$0xf] %vm592_vm2, %v572_v6 }
  0xf6   :  { %653 = vst.msk [vmem:[%s1355_s3 + $0xf0] sm:$0xf] %vm592_vm2, %v588_v7 }
  0xf7   :  { %606 = vst.msk [vmem:[%s1355_s3 + $0x34] sm:$0xf] %vm592_vm2, %v541_v8 }
  0xf8   :  { %622 = vst.msk [vmem:[%s1355_s3 + $0x74] sm:$0xf] %vm592_vm2, %v557_v9  ;;  %v480_v10 = vpop.f32.mrf.mxu2  ;;  %v520_v11 = vpop.f32.mrf.mxu3 }
  0xf9   :  { %v481_v12 = vadd.f32 %v1030_v37, %v480_v10  ;;  %v521_v13 = vadd.f32 %v1030_v37, %v520_v11  ;;  %v403_v14 = vpop.f32.mrf.mxu0  ;;  %v443_v15 = vpop.f32.mrf.mxu1 }
  0xfa   :  { %v404_v16 = vadd.f32 %v1030_v37, %v403_v14  ;;  %v444_v17 = vadd.f32 %v1030_v37, %v443_v15 }
  0xfb   :  { %v573_v18 = vpack.c.bf16 %v481_v12, %v481_v12  ;;  %v589_v19 = vpack.c.bf16 %v521_v13, %v521_v13 }
  0xfc   :  { %v542_v20 = vpack.c.bf16 %v404_v16, %v404_v16  ;;  %v558_v21 = vpack.c.bf16 %v444_v17, %v444_v17 }
  0xfd   :  { %638 = vst.msk [vmem:[%s1355_s3 + $0xb4] sm:$0xf] %vm592_vm2, %v573_v18 }
  0xfe   :  { %654 = vst.msk [vmem:[%s1355_s3 + $0xf4] sm:$0xf] %vm592_vm2, %v589_v19 }
  0xff   :  { %607 = vst.msk [vmem:[%s1355_s3 + $0x38] sm:$0xf] %vm592_vm2, %v542_v20 }
 0x100   :  { %623 = vst.msk [vmem:[%s1355_s3 + $0x78] sm:$0xf] %vm592_vm2, %v558_v21  ;;  %v483_v22 = vpop.f32.mrf.mxu2  ;;  %v523_v23 = vpop.f32.mrf.mxu3 }
 0x101   :  { %v484_v24 = vadd.f32 %v1030_v37, %v483_v22  ;;  %v524_v25 = vadd.f32 %v1030_v37, %v523_v23  ;;  %v405_v26 = vpop.f32.mrf.mxu0  ;;  %v445_v27 = vpop.f32.mrf.mxu1 }
 0x102   :  { %v406_v28 = vadd.f32 %v1030_v37, %v405_v26  ;;  %v446_v29 = vadd.f32 %v1030_v37, %v445_v27 }
 0x103   :  { %v574_v30 = vpack.c.bf16 %v484_v24, %v484_v24  ;;  %v590_v31 = vpack.c.bf16 %v524_v25, %v524_v25 }
 0x104   :  { %v543_v32 = vpack.c.bf16 %v406_v28, %v406_v28  ;;  %v559_v33 = vpack.c.bf16 %v446_v29, %v446_v29 }
 0x105   :  { %639 = vst.msk [vmem:[%s1355_s3 + $0xb8] sm:$0xf] %vm592_vm2, %v574_v30 }
 0x106   :  { %655 = vst.msk [vmem:[%s1355_s3 + $0xf8] sm:$0xf] %vm592_vm2, %v590_v31 }
 0x107   :  { %608 = vst.msk [vmem:[%s1355_s3 + $0x3c] sm:$0xf] %vm592_vm2, %v543_v32 }
 0x108   :  { %624 = vst.msk [vmem:[%s1355_s3 + $0x7c] sm:$0xf] %vm592_vm2, %v559_v33  ;;  %v485_v34 = vpop.f32.mrf.mxu2  ;;  %v525_v35 = vpop.f32.mrf.mxu3 }
 0x109   :  { %v486_v36 = vadd.f32 %v1030_v37, %v485_v34  ;;  %v526_v38 = vadd.f32 %v1030_v37, %v525_v35 }
 0x10b   :  { %v575_v39 = vpack.c.bf16 %v486_v36, %v486_v36  ;;  %v591_v40 = vpack.c.bf16 %v526_v38, %v526_v38 }
 0x10d   :  { %640 = vst.msk [vmem:[%s1355_s3 + $0xbc] sm:$0xf] %vm592_vm2, %v575_v39 }
 0x10e   :  { %656 = vst.msk [vmem:[%s1355_s3 + $0xfc] sm:$0xf] %vm592_vm2, %v591_v40 }

// kernel: _lambda_.41
= control target key start
LH: loop header
LB: loop body
LE: loop exit
PB: predicated region body
PF: predicated region fallthrough
CT: control target
= control target key end

     0   :  { %vm355_vm0 = vcmask 1046528   ;;  %vm258_vm1 = vcmask 244736   ;;  %vm592_vm2 = vcmask 125952   ;;  %s1352_s1 = inlined_call_operand.vmem [shape: bf16[30,16], index: 1, kind: input, shape index: {}]   ;;  %s1353_s2 = inlined_call_operand.vmem [shape: f32[1,16], index: 2, kind: input, shape index: {}]   ;;  %s1354_s0 = inlined_call_operand.vmem [shape: bf16[512,30], index: 0, kind: input, shape index: {}]   ;;  %s1355_s3 = inlined_call_operand.vmem [shape: bf16[512,16], index: 3, kind: output, shape index: {}]  }
   0x1   :  { %v795_v0 = vld [vmem:[%s1352_s1 + $0x8] sm:$0xf]  ;;  %v862_v1 = vld [vmem:[%s1352_s1 + $0x8] sm:$0x70]  ;;  %v861_v4 = vld [vmem:[%s1352_s1] sm:$0xff] }
   0x2   :  { %v796_v2 = vor.u32 %v862_v1, %v795_v0  ;;  %v829_v5 = vld [vmem:[%s1354_s0] sm:$0xff]  ;;  %v830_v9 = vld [vmem:[%s1354_s0 + $0x8] sm:$0xff]  ;;  %v831_v13 = vld [vmem:[%s1354_s0 + $0x10] sm:$0xff] }
   0x3   :  { %v837_v6 = vld [vmem:[%s1354_s0 + $0x40] sm:$0xff]  ;;  %v838_v10 = vld [vmem:[%s1354_s0 + $0x48] sm:$0xff]  ;;  %v839_v14 = vld [vmem:[%s1354_s0 + $0x50] sm:$0xff] }
   0x4   :  { %v357_v3 = vsel %vm355_vm0, %v796_v2, 0  ;;  %v845_v7 = vld [vmem:[%s1354_s0 + $0x80] sm:$0xff]  ;;  %v846_v11 = vld [vmem:[%s1354_s0 + $0x88] sm:$0xff]  ;;  %v847_v15 = vld [vmem:[%s1354_s0 + $0x90] sm:$0xff] }
   0x5   :  { %365 = vmatpush.bf16.msra.mxu0 %v357_v3  ;;  %863 = vmatpush.bf16.msra.mxu1 %v357_v3  ;;  %v853_v8 = vld [vmem:[%s1354_s0 + $0xc0] sm:$0xff]  ;;  %v854_v12 = vld [vmem:[%s1354_s0 + $0xc8] sm:$0xff]  ;;  %v855_v16 = vld [vmem:[%s1354_s0 + $0xd0] sm:$0xff] }
   0x6   :  { %864 = vmatpush.bf16.msra.mxu2 %v357_v3  ;;  %865 = vmatpush.bf16.msra.mxu3 %v357_v3  ;;  %v832_v17 = vld [vmem:[%s1354_s0 + $0x18] sm:$0xff]  ;;  %v833_v21 = vld [vmem:[%s1354_s0 + $0x20] sm:$0xff]  ;;  %v834_v25 = vld [vmem:[%s1354_s0 + $0x28] sm:$0xff] }
   0x7   :  { %v840_v18 = vld [vmem:[%s1354_s0 + $0x58] sm:$0xff]  ;;  %v841_v22 = vld [vmem:[%s1354_s0 + $0x60] sm:$0xff]  ;;  %v842_v26 = vld [vmem:[%s1354_s0 + $0x68] sm:$0xff] }
   0x8   :  { %v848_v19 = vld [vmem:[%s1354_s0 + $0x98] sm:$0xff]  ;;  %v849_v23 = vld [vmem:[%s1354_s0 + $0xa0] sm:$0xff]  ;;  %v850_v27 = vld [vmem:[%s1354_s0 + $0xa8] sm:$0xff] }
   0x9   :  { %366 = vmatpush.bf16.msra.mxu0 %v861_v4  ;;  %866 = vmatpush.bf16.msra.mxu1 %v861_v4  ;;  %v856_v20 = vld [vmem:[%s1354_s0 + $0xd8] sm:$0xff]  ;;  %v857_v24 = vld [vmem:[%s1354_s0 + $0xe0] sm:$0xff]  ;;  %v858_v28 = vld [vmem:[%s1354_s0 + $0xe8] sm:$0xff] }
   0xa   :  { %867 = vmatpush.bf16.msra.mxu2 %v861_v4  ;;  %868 = vmatpush.bf16.msra.mxu3 %v861_v4  ;;  %v835_v29 = vld [vmem:[%s1354_s0 + $0x30] sm:$0xff]  ;;  %v836_v33 = vld [vmem:[%s1354_s0 + $0x38] sm:$0xff]  ;;  %v1030_v37 = vld [vmem:[%s1353_s2] ss:$0 sm:$0xff] }
   0xb   :  { %v843_v30 = vld [vmem:[%s1354_s0 + $0x70] sm:$0xff]  ;;  %v844_v34 = vld [vmem:[%s1354_s0 + $0x78] sm:$0xff] }
   0xc   :  { %797 = vmatmul.msk.bf16.vlgmr.msra.gmra.mxu0 %vm258_vm1, %v829_v5  ;;  %805 = vmatmul.msk.bf16.vlgmr.msra.gmra.mxu1 %vm258_vm1, %v837_v6  ;;  %v851_v31 = vld [vmem:[%s1354_s0 + $0xb0] sm:$0xff]  ;;  %v852_v35 = vld [vmem:[%s1354_s0 + $0xb8] sm:$0xff] }
   0xd   :  { %813 = vmatmul.msk.bf16.vlgmr.msra.gmra.mxu2 %vm258_vm1, %v845_v7  ;;  %821 = vmatmul.msk.bf16.vlgmr.msra.gmra.mxu3 %vm258_vm1, %v853_v8  ;;  %v859_v32 = vld [vmem:[%s1354_s0 + $0xf0] sm:$0xff]  ;;  %v860_v36 = vld [vmem:[%s1354_s0 + $0xf8] sm:$0xff] }
  0x1c   :  { %798 = vmatmul.msk.bf16.gmra.mxu0 %vm258_vm1, %v830_v9  ;;  %806 = vmatmul.msk.bf16.gmra.mxu1 %vm258_vm1, %v838_v10 }
  0x1d   :  { %814 = vmatmul.msk.bf16.gmra.mxu2 %vm258_vm1, %v846_v11  ;;  %822 = vmatmul.msk.bf16.gmra.mxu3 %vm258_vm1, %v854_v12 }
  0x2c   :  { %799 = vmatmul.msk.bf16.gmra.mxu0 %vm258_vm1, %v831_v13  ;;  %807 = vmatmul.msk.bf16.gmra.mxu1 %vm258_vm1, %v839_v14 }
  0x2d   :  { %815 = vmatmul.msk.bf16.gmra.mxu2 %vm258_vm1, %v847_v15  ;;  %823 = vmatmul.msk.bf16.gmra.mxu3 %vm258_vm1, %v855_v16 }
  0x3c   :  { %800 = vmatmul.msk.bf16.gmra.mxu0 %vm258_vm1, %v832_v17  ;;  %808 = vmatmul.msk.bf16.gmra.mxu1 %vm258_vm1, %v840_v18 }
  0x3d   :  { %816 = vmatmul.msk.bf16.gmra.mxu2 %vm258_vm1, %v848_v19  ;;  %824 = vmatmul.msk.bf16.gmra.mxu3 %vm258_vm1, %v856_v20 }
  0x4c   :  { %801 = vmatmul.msk.bf16.gmra.mxu0 %vm258_vm1, %v833_v21  ;;  %809 = vmatmul.msk.bf16.gmra.mxu1 %vm258_vm1, %v841_v22 }
  0x4d   :  { %817 = vmatmul.msk.bf16.gmra.mxu2 %vm258_vm1, %v849_v23  ;;  %825 = vmatmul.msk.bf16.gmra.mxu3 %vm258_vm1, %v857_v24 }
  0x5c   :  { %802 = vmatmul.msk.bf16.gmra.mxu0 %vm258_vm1, %v834_v25  ;;  %810 = vmatmul.msk.bf16.gmra.mxu1 %vm258_vm1, %v842_v26 }
  0x5d   :  { %818 = vmatmul.msk.bf16.gmra.mxu2 %vm258_vm1, %v850_v27  ;;  %826 = vmatmul.msk.bf16.gmra.mxu3 %vm258_vm1, %v858_v28 }
  0x6c   :  { %803 = vmatmul.msk.bf16.gmra.mxu0 %vm258_vm1, %v835_v29  ;;  %811 = vmatmul.msk.bf16.gmra.mxu1 %vm258_vm1, %v843_v30 }
  0x6d   :  { %819 = vmatmul.msk.bf16.gmra.mxu2 %vm258_vm1, %v851_v31  ;;  %827 = vmatmul.msk.bf16.gmra.mxu3 %vm258_vm1, %v859_v32 }
  0x7c   :  { %804 = vmatmul.msk.bf16.gmra.mxu0 %vm258_vm1, %v836_v33  ;;  %812 = vmatmul.msk.bf16.gmra.mxu1 %vm258_vm1, %v844_v34 }
  0x7d   :  { %820 = vmatmul.msk.bf16.gmra.mxu2 %vm258_vm1, %v852_v35  ;;  %828 = vmatmul.msk.bf16.gmra.mxu3 %vm258_vm1, %v860_v36 }
  0x89   :  { %v368_v38 = vpop.f32.mrf.mxu0  ;;  %v408_v39 = vpop.f32.mrf.mxu1 }
  0x8a   :  { %v369_v40 = vadd.f32 %v1030_v37, %v368_v38  ;;  %v409_v41 = vadd.f32 %v1030_v37, %v408_v39 }
  0x8c   :  { %v528_v42 = vpack.c.bf16 %v369_v40, %v369_v40  ;;  %v544_v43 = vpack.c.bf16 %v409_v41, %v409_v41 }
  0x8e   :  { %593 = vst.msk [vmem:[%s1355_s3] sm:$0xf] %vm592_vm2, %v528_v42 }
  0x8f   :  { %609 = vst.msk [vmem:[%s1355_s3 + $0x40] sm:$0xf] %vm592_vm2, %v544_v43 }
  0x90   :  { %v448_v44 = vpop.f32.mrf.mxu2  ;;  %v488_v45 = vpop.f32.mrf.mxu3 }
  0x91   :  { %v449_v46 = vadd.f32 %v1030_v37, %v448_v44  ;;  %v489_v47 = vadd.f32 %v1030_v37, %v488_v45  ;;  %v370_v48 = vpop.f32.mrf.mxu0  ;;  %v410_v49 = vpop.f32.mrf.mxu1 }
  0x92   :  { %v371_v50 = vadd.f32 %v1030_v37, %v370_v48  ;;  %v411_v51 = vadd.f32 %v1030_v37, %v410_v49 }
  0x93   :  { %v560_v52 = vpack.c.bf16 %v449_v46, %v449_v46  ;;  %v576_v53 = vpack.c.bf16 %v489_v47, %v489_v47 }
  0x94   :  { %v529_v54 = vpack.c.bf16 %v371_v50, %v371_v50  ;;  %v545_v55 = vpack.c.bf16 %v411_v51, %v411_v51 }
  0x95   :  { %625 = vst.msk [vmem:[%s1355_s3 + $0x80] sm:$0xf] %vm592_vm2, %v560_v52 }
  0x96   :  { %641 = vst.msk [vmem:[%s1355_s3 + $0xc0] sm:$0xf] %vm592_vm2, %v576_v53 }
  0x97   :  { %594 = vst.msk [vmem:[%s1355_s3 + $0x4] sm:$0xf] %vm592_vm2, %v529_v54 }
  0x98   :  { %610 = vst.msk [vmem:[%s1355_s3 + $0x44] sm:$0xf] %vm592_vm2, %v545_v55  ;;  %v450_v56 = vpop.f32.mrf.mxu2  ;;  %v490_v57 = vpop.f32.mrf.mxu3 }
  0x99   :  { %v451_v58 = vadd.f32 %v1030_v37, %v450_v56  ;;  %v491_v59 = vadd.f32 %v1030_v37, %v490_v57  ;;  %v373_v60 = vpop.f32.mrf.mxu0  ;;  %v413_v61 = vpop.f32.mrf.mxu1 }
  0x9a   :  { %v374_v62 = vadd.f32 %v1030_v37, %v373_v60  ;;  %v414_v63 = vadd.f32 %v1030_v37, %v413_v61 }
  0x9b   :  { %v561_v0 = vpack.c.bf16 %v451_v58, %v451_v58  ;;  %v577_v1 = vpack.c.bf16 %v491_v59, %v491_v59 }
  0x9c   :  { %v530_v2 = vpack.c.bf16 %v374_v62, %v374_v62  ;;  %v546_v3 = vpack.c.bf16 %v414_v63, %v414_v63 }
  0x9d   :  { %626 = vst.msk [vmem:[%s1355_s3 + $0x84] sm:$0xf] %vm592_vm2, %v561_v0 }
  0x9e   :  { %642 = vst.msk [vmem:[%s1355_s3 + $0xc4] sm:$0xf] %vm592_vm2, %v577_v1 }
  0x9f   :  { %595 = vst.msk [vmem:[%s1355_s3 + $0x8] sm:$0xf] %vm592_vm2, %v530_v2 }
  0xa0   :  { %611 = vst.msk [vmem:[%s1355_s3 + $0x48] sm:$0xf] %vm592_vm2, %v546_v3  ;;  %v453_v4 = vpop.f32.mrf.mxu2  ;;  %v493_v5 = vpop.f32.mrf.mxu3 }
  0xa1   :  { %v454_v6 = vadd.f32 %v1030_v37, %v453_v4  ;;  %v494_v7 = vadd.f32 %v1030_v37, %v493_v5  ;;  %v375_v8 = vpop.f32.mrf.mxu0  ;;  %v415_v9 = vpop.f32.mrf.mxu1 }
  0xa2   :  { %v376_v10 = vadd.f32 %v1030_v37, %v375_v8  ;;  %v416_v11 = vadd.f32 %v1030_v37, %v415_v9 }
  0xa3   :  { %v562_v12 = vpack.c.bf16 %v454_v6, %v454_v6  ;;  %v578_v13 = vpack.c.bf16 %v494_v7, %v494_v7 }
  0xa4   :  { %v531_v14 = vpack.c.bf16 %v376_v10, %v376_v10  ;;  %v547_v15 = vpack.c.bf16 %v416_v11, %v416_v11 }
  0xa5   :  { %627 = vst.msk [vmem:[%s1355_s3 + $0x88] sm:$0xf] %vm592_vm2, %v562_v12 }
  0xa6   :  { %643 = vst.msk [vmem:[%s1355_s3 + $0xc8] sm:$0xf] %vm592_vm2, %v578_v13 }
  0xa7   :  { %596 = vst.msk [vmem:[%s1355_s3 + $0xc] sm:$0xf] %vm592_vm2, %v531_v14 }
  0xa8   :  { %612 = vst.msk [vmem:[%s1355_s3 + $0x4c] sm:$0xf] %vm592_vm2, %v547_v15  ;;  %v455_v16 = vpop.f32.mrf.mxu2  ;;  %v495_v17 = vpop.f32.mrf.mxu3 }
  0xa9   :  { %v456_v18 = vadd.f32 %v1030_v37, %v455_v16  ;;  %v496_v19 = vadd.f32 %v1030_v37, %v495_v17  ;;  %v378_v20 = vpop.f32.mrf.mxu0  ;;  %v418_v21 = vpop.f32.mrf.mxu1 }
  0xaa   :  { %v379_v22 = vadd.f32 %v1030_v37, %v378_v20  ;;  %v419_v23 = vadd.f32 %v1030_v37, %v418_v21 }
  0xab   :  { %v563_v24 = vpack.c.bf16 %v456_v18, %v456_v18  ;;  %v579_v25 = vpack.c.bf16 %v496_v19, %v496_v19 }
  0xac   :  { %v532_v26 = vpack.c.bf16 %v379_v22, %v379_v22  ;;  %v548_v27 = vpack.c.bf16 %v419_v23, %v419_v23 }
  0xad   :  { %628 = vst.msk [vmem:[%s1355_s3 + $0x8c] sm:$0xf] %vm592_vm2, %v563_v24 }
  0xae   :  { %644 = vst.msk [vmem:[%s1355_s3 + $0xcc] sm:$0xf] %vm592_vm2, %v579_v25 }
  0xaf   :  { %597 = vst.msk [vmem:[%s1355_s3 + $0x10] sm:$0xf] %vm592_vm2, %v532_v26 }
  0xb0   :  { %613 = vst.msk [vmem:[%s1355_s3 + $0x50] sm:$0xf] %vm592_vm2, %v548_v27  ;;  %v458_v28 = vpop.f32.mrf.mxu2  ;;  %v498_v29 = vpop.f32.mrf.mxu3 }
  0xb1   :  { %v459_v30 = vadd.f32 %v1030_v37, %v458_v28  ;;  %v499_v31 = vadd.f32 %v1030_v37, %v498_v29  ;;  %v380_v32 = vpop.f32.mrf.mxu0  ;;  %v420_v33 = vpop.f32.mrf.mxu1 }
  0xb2   :  { %v381_v34 = vadd.f32 %v1030_v37, %v380_v32  ;;  %v421_v35 = vadd.f32 %v1030_v37, %v420_v33 }
  0xb3   :  { %v564_v36 = vpack.c.bf16 %v459_v30, %v459_v30  ;;  %v580_v38 = vpack.c.bf16 %v499_v31, %v499_v31 }
  0xb4   :  { %v533_v39 = vpack.c.bf16 %v381_v34, %v381_v34  ;;  %v549_v40 = vpack.c.bf16 %v421_v35, %v421_v35 }
  0xb5   :  { %629 = vst.msk [vmem:[%s1355_s3 + $0x90] sm:$0xf] %vm592_vm2, %v564_v36 }
  0xb6   :  { %645 = vst.msk [vmem:[%s1355_s3 + $0xd0] sm:$0xf] %vm592_vm2, %v580_v38 }
  0xb7   :  { %598 = vst.msk [vmem:[%s1355_s3 + $0x14] sm:$0xf] %vm592_vm2, %v533_v39 }
  0xb8   :  { %614 = vst.msk [vmem:[%s1355_s3 + $0x54] sm:$0xf] %vm592_vm2, %v549_v40  ;;  %v460_v41 = vpop.f32.mrf.mxu2  ;;  %v500_v42 = vpop.f32.mrf.mxu3 }
  0xb9   :  { %v461_v43 = vadd.f32 %v1030_v37, %v460_v41  ;;  %v501_v44 = vadd.f32 %v1030_v37, %v500_v42  ;;  %v383_v45 = vpop.f32.mrf.mxu0  ;;  %v423_v46 = vpop.f32.mrf.mxu1 }
  0xba   :  { %v384_v47 = vadd.f32 %v1030_v37, %v383_v45  ;;  %v424_v48 = vadd.f32 %v1030_v37, %v423_v46 }
  0xbb   :  { %v565_v49 = vpack.c.bf16 %v461_v43, %v461_v43  ;;  %v581_v50 = vpack.c.bf16 %v501_v44, %v501_v44 }
  0xbc   :  { %v534_v51 = vpack.c.bf16 %v384_v47, %v384_v47  ;;  %v550_v52 = vpack.c.bf16 %v424_v48, %v424_v48 }
  0xbd   :  { %630 = vst.msk [vmem:[%s1355_s3 + $0x94] sm:$0xf] %vm592_vm2, %v565_v49 }
  0xbe   :  { %646 = vst.msk [vmem:[%s1355_s3 + $0xd4] sm:$0xf] %vm592_vm2, %v581_v50 }
  0xbf   :  { %599 = vst.msk [vmem:[%s1355_s3 + $0x18] sm:$0xf] %vm592_vm2, %v534_v51 }
  0xc0   :  { %615 = vst.msk [vmem:[%s1355_s3 + $0x58] sm:$0xf] %vm592_vm2, %v550_v52  ;;  %v463_v53 = vpop.f32.mrf.mxu2  ;;  %v503_v54 = vpop.f32.mrf.mxu3 }
  0xc1   :  { %v464_v55 = vadd.f32 %v1030_v37, %v463_v53  ;;  %v504_v56 = vadd.f32 %v1030_v37, %v503_v54  ;;  %v385_v57 = vpop.f32.mrf.mxu0  ;;  %v425_v58 = vpop.f32.mrf.mxu1 }
  0xc2   :  { %v386_v59 = vadd.f32 %v1030_v37, %v385_v57  ;;  %v426_v60 = vadd.f32 %v1030_v37, %v425_v58 }
  0xc3   :  { %v566_v61 = vpack.c.bf16 %v464_v55, %v464_v55  ;;  %v582_v62 = vpack.c.bf16 %v504_v56, %v504_v56 }
  0xc4   :  { %v535_v63 = vpack.c.bf16 %v386_v59, %v386_v59  ;;  %v551_v0 = vpack.c.bf16 %v426_v60, %v426_v60 }
  0xc5   :  { %631 = vst.msk [vmem:[%s1355_s3 + $0x98] sm:$0xf] %vm592_vm2, %v566_v61 }
  0xc6   :  { %647 = vst.msk [vmem:[%s1355_s3 + $0xd8] sm:$0xf] %vm592_vm2, %v582_v62 }
  0xc7   :  { %600 = vst.msk [vmem:[%s1355_s3 + $0x1c] sm:$0xf] %vm592_vm2, %v535_v63 }
  0xc8   :  { %616 = vst.msk [vmem:[%s1355_s3 + $0x5c] sm:$0xf] %vm592_vm2, %v551_v0  ;;  %v465_v1 = vpop.f32.mrf.mxu2  ;;  %v505_v2 = vpop.f32.mrf.mxu3 }
  0xc9   :  { %v466_v3 = vadd.f32 %v1030_v37, %v465_v1  ;;  %v506_v4 = vadd.f32 %v1030_v37, %v505_v2  ;;  %v388_v5 = vpop.f32.mrf.mxu0  ;;  %v428_v6 = vpop.f32.mrf.mxu1 }
  0xca   :  { %v389_v7 = vadd.f32 %v1030_v37, %v388_v5  ;;  %v429_v8 = vadd.f32 %v1030_v37, %v428_v6 }
  0xcb   :  { %v567_v9 = vpack.c.bf16 %v466_v3, %v466_v3  ;;  %v583_v10 = vpack.c.bf16 %v506_v4, %v506_v4 }
  0xcc   :  { %v536_v11 = vpack.c.bf16 %v389_v7, %v389_v7  ;;  %v552_v12 = vpack.c.bf16 %v429_v8, %v429_v8 }
  0xcd   :  { %632 = vst.msk [vmem:[%s1355_s3 + $0x9c] sm:$0xf] %vm592_vm2, %v567_v9 }
  0xce   :  { %648 = vst.msk [vmem:[%s1355_s3 + $0xdc] sm:$0xf] %vm592_vm2, %v583_v10 }
  0xcf   :  { %601 = vst.msk [vmem:[%s1355_s3 + $0x20] sm:$0xf] %vm592_vm2, %v536_v11 }
  0xd0   :  { %617 = vst.msk [vmem:[%s1355_s3 + $0x60] sm:$0xf] %vm592_vm2, %v552_v12  ;;  %v468_v13 = vpop.f32.mrf.mxu2  ;;  %v508_v14 = vpop.f32.mrf.mxu3 }
  0xd1   :  { %v469_v15 = vadd.f32 %v1030_v37, %v468_v13  ;;  %v509_v16 = vadd.f32 %v1030_v37, %v508_v14  ;;  %v390_v17 = vpop.f32.mrf.mxu0  ;;  %v430_v18 = vpop.f32.mrf.mxu1 }
  0xd2   :  { %v391_v19 = vadd.f32 %v1030_v37, %v390_v17  ;;  %v431_v20 = vadd.f32 %v1030_v37, %v430_v18 }
  0xd3   :  { %v568_v21 = vpack.c.bf16 %v469_v15, %v469_v15  ;;  %v584_v22 = vpack.c.bf16 %v509_v16, %v509_v16 }
  0xd4   :  { %v537_v23 = vpack.c.bf16 %v391_v19, %v391_v19  ;;  %v553_v24 = vpack.c.bf16 %v431_v20, %v431_v20 }
  0xd5   :  { %633 = vst.msk [vmem:[%s1355_s3 + $0xa0] sm:$0xf] %vm592_vm2, %v568_v21 }
  0xd6   :  { %649 = vst.msk [vmem:[%s1355_s3 + $0xe0] sm:$0xf] %vm592_vm2, %v584_v22 }
  0xd7   :  { %602 = vst.msk [vmem:[%s1355_s3 + $0x24] sm:$0xf] %vm592_vm2, %v537_v23 }
  0xd8   :  { %618 = vst.msk [vmem:[%s1355_s3 + $0x64] sm:$0xf] %vm592_vm2, %v553_v24  ;;  %v470_v25 = vpop.f32.mrf.mxu2  ;;  %v510_v26 = vpop.f32.mrf.mxu3 }
  0xd9   :  { %v471_v27 = vadd.f32 %v1030_v37, %v470_v25  ;;  %v511_v28 = vadd.f32 %v1030_v37, %v510_v26  ;;  %v393_v29 = vpop.f32.mrf.mxu0  ;;  %v433_v30 = vpop.f32.mrf.mxu1 }
  0xda   :  { %v394_v31 = vadd.f32 %v1030_v37, %v393_v29  ;;  %v434_v32 = vadd.f32 %v1030_v37, %v433_v30 }
  0xdb   :  { %v569_v33 = vpack.c.bf16 %v471_v27, %v471_v27  ;;  %v585_v34 = vpack.c.bf16 %v511_v28, %v511_v28 }
  0xdc   :  { %v538_v35 = vpack.c.bf16 %v394_v31, %v394_v31  ;;  %v554_v36 = vpack.c.bf16 %v434_v32, %v434_v32 }
  0xdd   :  { %634 = vst.msk [vmem:[%s1355_s3 + $0xa4] sm:$0xf] %vm592_vm2, %v569_v33 }
  0xde   :  { %650 = vst.msk [vmem:[%s1355_s3 + $0xe4] sm:$0xf] %vm592_vm2, %v585_v34 }
  0xdf   :  { %603 = vst.msk [vmem:[%s1355_s3 + $0x28] sm:$0xf] %vm592_vm2, %v538_v35 }
  0xe0   :  { %619 = vst.msk [vmem:[%s1355_s3 + $0x68] sm:$0xf] %vm592_vm2, %v554_v36  ;;  %v473_v38 = vpop.f32.mrf.mxu2  ;;  %v513_v39 = vpop.f32.mrf.mxu3 }
  0xe1   :  { %v474_v40 = vadd.f32 %v1030_v37, %v473_v38  ;;  %v514_v41 = vadd.f32 %v1030_v37, %v513_v39  ;;  %v395_v42 = vpop.f32.mrf.mxu0  ;;  %v435_v43 = vpop.f32.mrf.mxu1 }
  0xe2   :  { %v396_v44 = vadd.f32 %v1030_v37, %v395_v42  ;;  %v436_v45 = vadd.f32 %v1030_v37, %v435_v43 }
  0xe3   :  { %v570_v46 = vpack.c.bf16 %v474_v40, %v474_v40  ;;  %v586_v47 = vpack.c.bf16 %v514_v41, %v514_v41 }
  0xe4   :  { %v539_v48 = vpack.c.bf16 %v396_v44, %v396_v44  ;;  %v555_v49 = vpack.c.bf16 %v436_v45, %v436_v45 }
  0xe5   :  { %635 = vst.msk [vmem:[%s1355_s3 + $0xa8] sm:$0xf] %vm592_vm2, %v570_v46 }
  0xe6   :  { %651 = vst.msk [vmem:[%s1355_s3 + $0xe8] sm:$0xf] %vm592_vm2, %v586_v47 }
  0xe7   :  { %604 = vst.msk [vmem:[%s1355_s3 + $0x2c] sm:$0xf] %vm592_vm2, %v539_v48 }
  0xe8   :  { %620 = vst.msk [vmem:[%s1355_s3 + $0x6c] sm:$0xf] %vm592_vm2, %v555_v49  ;;  %v475_v50 = vpop.f32.mrf.mxu2  ;;  %v515_v51 = vpop.f32.mrf.mxu3 }
  0xe9   :  { %v476_v52 = vadd.f32 %v1030_v37, %v475_v50  ;;  %v516_v53 = vadd.f32 %v1030_v37, %v515_v51  ;;  %v398_v54 = vpop.f32.mrf.mxu0  ;;  %v438_v55 = vpop.f32.mrf.mxu1 }
  0xea   :  { %v399_v56 = vadd.f32 %v1030_v37, %v398_v54  ;;  %v439_v57 = vadd.f32 %v1030_v37, %v438_v55 }
  0xeb   :  { %v571_v58 = vpack.c.bf16 %v476_v52, %v476_v52  ;;  %v587_v59 = vpack.c.bf16 %v516_v53, %v516_v53 }
  0xec   :  { %v540_v60 = vpack.c.bf16 %v399_v56, %v399_v56  ;;  %v556_v61 = vpack.c.bf16 %v439_v57, %v439_v57 }
  0xed   :  { %636 = vst.msk [vmem:[%s1355_s3 + $0xac] sm:$0xf] %vm592_vm2, %v571_v58 }
  0xee   :  { %652 = vst.msk [vmem:[%s1355_s3 + $0xec] sm:$0xf] %vm592_vm2, %v587_v59 }
  0xef   :  { %605 = vst.msk [vmem:[%s1355_s3 + $0x30] sm:$0xf] %vm592_vm2, %v540_v60 }
  0xf0   :  { %621 = vst.msk [vmem:[%s1355_s3 + $0x70] sm:$0xf] %vm592_vm2, %v556_v61  ;;  %v478_v62 = vpop.f32.mrf.mxu2  ;;  %v518_v63 = vpop.f32.mrf.mxu3 }
  0xf1   :  { %v479_v0 = vadd.f32 %v1030_v37, %v478_v62  ;;  %v519_v1 = vadd.f32 %v1030_v37, %v518_v63  ;;  %v400_v2 = vpop.f32.mrf.mxu0  ;;  %v440_v3 = vpop.f32.mrf.mxu1 }
  0xf2   :  { %v401_v4 = vadd.f32 %v1030_v37, %v400_v2  ;;  %v441_v5 = vadd.f32 %v1030_v37, %v440_v3 }
  0xf3   :  { %v572_v6 = vpack.c.bf16 %v479_v0, %v479_v0  ;;  %v588_v7 = vpack.c.bf16 %v519_v1, %v519_v1 }
  0xf4   :  { %v541_v8 = vpack.c.bf16 %v401_v4, %v401_v4  ;;  %v557_v9 = vpack.c.bf16 %v441_v5, %v441_v5 }
  0xf5   :  { %637 = vst.msk [vmem:[%s1355_s3 + $0xb0] sm:$0xf] %vm592_vm2, %v572_v6 }
  0xf6   :  { %653 = vst.msk [vmem:[%s1355_s3 + $0xf0] sm:$0xf] %vm592_vm2, %v588_v7 }
  0xf7   :  { %606 = vst.msk [vmem:[%s1355_s3 + $0x34] sm:$0xf] %vm592_vm2, %v541_v8 }
  0xf8   :  { %622 = vst.msk [vmem:[%s1355_s3 + $0x74] sm:$0xf] %vm592_vm2, %v557_v9  ;;  %v480_v10 = vpop.f32.mrf.mxu2  ;;  %v520_v11 = vpop.f32.mrf.mxu3 }
  0xf9   :  { %v481_v12 = vadd.f32 %v1030_v37, %v480_v10  ;;  %v521_v13 = vadd.f32 %v1030_v37, %v520_v11  ;;  %v403_v14 = vpop.f32.mrf.mxu0  ;;  %v443_v15 = vpop.f32.mrf.mxu1 }
  0xfa   :  { %v404_v16 = vadd.f32 %v1030_v37, %v403_v14  ;;  %v444_v17 = vadd.f32 %v1030_v37, %v443_v15 }
  0xfb   :  { %v573_v18 = vpack.c.bf16 %v481_v12, %v481_v12  ;;  %v589_v19 = vpack.c.bf16 %v521_v13, %v521_v13 }
  0xfc   :  { %v542_v20 = vpack.c.bf16 %v404_v16, %v404_v16  ;;  %v558_v21 = vpack.c.bf16 %v444_v17, %v444_v17 }
  0xfd   :  { %638 = vst.msk [vmem:[%s1355_s3 + $0xb4] sm:$0xf] %vm592_vm2, %v573_v18 }
  0xfe   :  { %654 = vst.msk [vmem:[%s1355_s3 + $0xf4] sm:$0xf] %vm592_vm2, %v589_v19 }
  0xff   :  { %607 = vst.msk [vmem:[%s1355_s3 + $0x38] sm:$0xf] %vm592_vm2, %v542_v20 }
 0x100   :  { %623 = vst.msk [vmem:[%s1355_s3 + $0x78] sm:$0xf] %vm592_vm2, %v558_v21  ;;  %v483_v22 = vpop.f32.mrf.mxu2  ;;  %v523_v23 = vpop.f32.mrf.mxu3 }
 0x101   :  { %v484_v24 = vadd.f32 %v1030_v37, %v483_v22  ;;  %v524_v25 = vadd.f32 %v1030_v37, %v523_v23  ;;  %v405_v26 = vpop.f32.mrf.mxu0  ;;  %v445_v27 = vpop.f32.mrf.mxu1 }
 0x102   :  { %v406_v28 = vadd.f32 %v1030_v37, %v405_v26  ;;  %v446_v29 = vadd.f32 %v1030_v37, %v445_v27 }
 0x103   :  { %v574_v30 = vpack.c.bf16 %v484_v24, %v484_v24  ;;  %v590_v31 = vpack.c.bf16 %v524_v25, %v524_v25 }
 0x104   :  { %v543_v32 = vpack.c.bf16 %v406_v28, %v406_v28  ;;  %v559_v33 = vpack.c.bf16 %v446_v29, %v446_v29 }
 0x105   :  { %639 = vst.msk [vmem:[%s1355_s3 + $0xb8] sm:$0xf] %vm592_vm2, %v574_v30 }
 0x106   :  { %655 = vst.msk [vmem:[%s1355_s3 + $0xf8] sm:$0xf] %vm592_vm2, %v590_v31 }
 0x107   :  { %608 = vst.msk [vmem:[%s1355_s3 + $0x3c] sm:$0xf] %vm592_vm2, %v543_v32 }
 0x108   :  { %624 = vst.msk [vmem:[%s1355_s3 + $0x7c] sm:$0xf] %vm592_vm2, %v559_v33  ;;  %v485_v34 = vpop.f32.mrf.mxu2  ;;  %v525_v35 = vpop.f32.mrf.mxu3 }
 0x109   :  { %v486_v36 = vadd.f32 %v1030_v37, %v485_v34  ;;  %v526_v38 = vadd.f32 %v1030_v37, %v525_v35 }
 0x10b   :  { %v575_v39 = vpack.c.bf16 %v486_v36, %v486_v36  ;;  %v591_v40 = vpack.c.bf16 %v526_v38, %v526_v38 }
 0x10d   :  { %640 = vst.msk [vmem:[%s1355_s3 + $0xbc] sm:$0xf] %vm592_vm2, %v575_v39 }
 0x10e   :  { %656 = vst.msk [vmem:[%s1355_s3 + $0xfc] sm:$0xf] %vm592_vm2, %v591_v40 }

// kernel: _lambda_.42
= control target key start
LH: loop header
LB: loop body
LE: loop exit
PB: predicated region body
PF: predicated region fallthrough
CT: control target
= control target key end

     0   :  { %vm164_vm0 = vcmask 130048   ;;  %vm285_vm1 = vcmask 125952   ;;  %vm298_vm2 = vcmask 122880   ;;  %s624_s1 = inlined_call_operand.vmem [shape: bf16[144,16], index: 1, kind: input, shape index: {}]   ;;  %s625_s0 = inlined_call_operand.vmem [shape: bf16[98,144], index: 0, kind: input, shape index: {}]   ;;  %s626_s2 = inlined_call_operand.vmem [shape: f32[1,16], index: 2, kind: input, shape index: {}]   ;;  %s627_s3 = inlined_call_operand.vmem [shape: bf16[98,16], index: 3, kind: output, shape index: {}]  }
   0x1   :  { %v414_v0 = vld [vmem:[%s624_s1 + $0x38] sm:$0xff]  ;;  %v415_v1 = vld [vmem:[%s624_s1 + $0x40] sm:$0xff]  ;;  %v308_v3 = vld [vmem:[%s625_s0 + $0x8] sm:$0xf0] }
   0x2   :  { %v395_v2 = vld [vmem:[%s625_s0 + $0x4] sm:$0xf]  ;;  %186 = vmatpush.bf16.msra.mxu0 %v414_v0  ;;  %416 = vmatpush.bf16.msra.mxu2 %v414_v0  ;;  %v413_v5 = vld [vmem:[%s624_s1 + $0x30] sm:$0xff]  ;;  %v412_v6 = vld [vmem:[%s624_s1 + $0x28] sm:$0xff] }
   0x3   :  { %v311_v4 = vor.u32 %v395_v2, %v308_v3  ;;  %236 = vmatpush.bf16.msra.mxu1 %v415_v1  ;;  %424 = vmatpush.bf16.msra.mxu3 %v415_v1  ;;  %v411_v7 = vld [vmem:[%s624_s1 + $0x20] sm:$0xff]  ;;  %v410_v8 = vld [vmem:[%s624_s1 + $0x18] sm:$0xff]  ;;  %v397_v9 = vld [vmem:[%s625_s0 + $0x14] sm:$0xf] }
   0x4   :  { %v316_v10 = vld [vmem:[%s625_s0 + $0x18] sm:$0xf0]  ;;  %v409_v12 = vld [vmem:[%s624_s1 + $0x10] sm:$0xff]  ;;  %v408_v13 = vld [vmem:[%s624_s1 + $0x8] sm:$0xff] }
   0x5   :  { %v319_v11 = vor.u32 %v397_v9, %v316_v10  ;;  %v405_v14 = vld [vmem:[%s625_s0 + $0x54] sm:$0xf]  ;;  %v348_v15 = vld [vmem:[%s625_s0 + $0x58] sm:$0xf0]  ;;  %v407_v17 = vld [vmem:[%s624_s1] sm:$0xff] }
   0x6   :  { %388 = vmatmul.msk.bf16.vlgmr.msra.gmra.mxu1 %vm164_vm0, %v311_v4  ;;  %187 = vmatpush.bf16.msra.mxu0 %v413_v5  ;;  %v351_v16 = vor.u32 %v405_v14, %v348_v15  ;;  %v306_v18 = vld [vmem:[%s625_s0] sm:$0xf]  ;;  %v396_v19 = vld [vmem:[%s625_s0 + $0x4] sm:$0xf0]  ;;  %v330_v20 = vld [vmem:[%s625_s0 + $0x30] sm:$0xf] }
   0x7   :  { %417 = vmatpush.bf16.msra.mxu2 %v413_v5  ;;  %v402_v21 = vld [vmem:[%s625_s0 + $0x34] sm:$0xf0]  ;;  %v307_v22 = vor.u32 %v396_v19, %v306_v18  ;;  %v399_v24 = vld [vmem:[%s625_s0 + $0x24] sm:$0xf]  ;;  %v324_v25 = vld [vmem:[%s625_s0 + $0x28] sm:$0xf0] }
   0x8   :  { %393 = vmatmul.msk.bf16.vlgmr.msra.gmra.mxu3 %vm164_vm0, %v351_v16  ;;  %v331_v23 = vor.u32 %v402_v21, %v330_v20  ;;  %v327_v26 = vor.u32 %v399_v24, %v324_v25  ;;  %v27_v27 = vld [vmem:[%s625_s0 + $0x60] sm:$0x11]  ;;  %v314_v30 = vld [vmem:[%s625_s0 + $0x10] sm:$0xf]  ;;  %v398_v31 = vld [vmem:[%s625_s0 + $0x14] sm:$0xf0] }
   0x9   :  { %v88_v28 = vunpack.c.h.b16 %v27_v27  ;;  %v338_v32 = vld [vmem:[%s625_s0 + $0x40] sm:$0xf]  ;;  %v404_v33 = vld [vmem:[%s625_s0 + $0x44] sm:$0xf0]  ;;  %v315_v34 = vor.u32 %v398_v31, %v314_v30  ;;  %v401_v36 = vld [vmem:[%s625_s0 + $0x34] sm:$0xf]  ;;  %v87_v48 = vunpack.c.l.b16 %v27_v27 }
   0xa   :  { %188 = vmatpush.bf16.msra.mxu0 %v412_v6  ;;  %v339_v35 = vor.u32 %v404_v33, %v338_v32  ;;  %v332_v37 = vld [vmem:[%s625_s0 + $0x38] sm:$0xf0]  ;;  %v322_v39 = vld [vmem:[%s625_s0 + $0x20] sm:$0xf]  ;;  %v400_v40 = vld [vmem:[%s625_s0 + $0x24] sm:$0xf0] }
   0xb   :  { %418 = vmatpush.bf16.msra.mxu2 %v412_v6  ;;  %v102_v29 = vpack.c.b16 %v88_v28, %v88_v28  ;;  %v335_v38 = vor.u32 %v401_v36, %v332_v37  ;;  %v346_v41 = vld [vmem:[%s625_s0 + $0x50] sm:$0xf]  ;;  %v406_v42 = vld [vmem:[%s625_s0 + $0x54] sm:$0xf0]  ;;  %v323_v43 = vor.u32 %v400_v40, %v322_v39  ;;  %v403_v45 = vld [vmem:[%s625_s0 + $0x44] sm:$0xf]  ;;  %v101_v49 = vpack.c.b16 %v87_v48, %v87_v48 }
   0xc   :  { %v347_v44 = vor.u32 %v406_v42, %v346_v41  ;;  %v340_v46 = vld [vmem:[%s625_s0 + $0x48] sm:$0xf0]  ;;  %v558_v54 = vld [vmem:[%s626_s2] ss:$0 sm:$0xff] }
   0xd   :  { %v343_v47 = vor.u32 %v403_v45, %v340_v46 }
   0xe   :  { %189 = vmatpush.bf16.msra.mxu0 %v411_v7 }
   0xf   :  { %419 = vmatpush.bf16.msra.mxu2 %v411_v7 }
  0x12   :  { %190 = vmatpush.bf16.msra.mxu0 %v410_v8 }
  0x13   :  { %420 = vmatpush.bf16.msra.mxu2 %v410_v8 }
  0x16   :  { %389 = vmatmul.msk.bf16.gmra.mxu1 %vm164_vm0, %v319_v11  ;;  %191 = vmatpush.bf16.msra.mxu0 %v409_v12 }
  0x17   :  { %421 = vmatpush.bf16.msra.mxu2 %v409_v12 }
  0x18   :  { %394 = vmatmul.msk.bf16.gmra.mxu3 %vm164_vm0, %v102_v29 }
  0x1a   :  { %192 = vmatpush.bf16.msra.mxu0 %v408_v13 }
  0x1b   :  { %422 = vmatpush.bf16.msra.mxu2 %v408_v13 }
  0x1e   :  { %193 = vmatpush.bf16.msra.mxu0 %v407_v17 }
  0x1f   :  { %423 = vmatpush.bf16.msra.mxu2 %v407_v17 }
  0x21   :  { %194 = vmatmul.bf16.vlgmr.msra.gmra.mxu0 %v307_v22 }
  0x22   :  { %209 = vmatmul.bf16.vlgmr.msra.gmra.mxu2 %v331_v23 }
  0x26   :  { %390 = vmatmul.msk.bf16.gmra.mxu1 %vm164_vm0, %v327_v26 }
  0x31   :  { %199 = vmatmul.bf16.gmra.mxu0 %v315_v34 }
  0x32   :  { %214 = vmatmul.bf16.gmra.mxu2 %v339_v35 }
  0x36   :  { %391 = vmatmul.msk.bf16.gmra.mxu1 %vm164_vm0, %v335_v38 }
  0x41   :  { %204 = vmatmul.bf16.gmra.mxu0 %v323_v43 }
  0x42   :  { %219 = vmatmul.bf16.gmra.mxu2 %v347_v44 }
  0x46   :  { %392 = vmatmul.msk.bf16.gmra.mxu1 %vm164_vm0, %v343_v47 }
  0x52   :  { %224 = vmatmul.bf16.gmra.mxu2 %v101_v49 }
  0x83   :  { %v238_v50 = vpop.f32.mrf.mxu1 }
  0x8b   :  { %v240_v51 = vpop.f32.mrf.mxu1  ;;  %v263_v55 = vpop.f32.mrf.mxu3 }
  0x93   :  { %v243_v52 = vpop.f32.mrf.mxu1  ;;  %v265_v62 = vpop.f32.mrf.mxu3 }
  0x9b   :  { %v245_v53 = vpop.f32.mrf.mxu1  ;;  %v268_v5 = vpop.f32.mrf.mxu3 }
  0x9e   :  { %v195_v56 = vpop.f32.mrf.mxu0 }
  0x9f   :  { %v196_v57 = vadd.f32 %v558_v54, %v195_v56 }
  0xa1   :  { %v239_v58 = vadd.f32 %v238_v50, %v196_v57 }
  0xa3   :  { %v272_v59 = vpack.c.bf16 %v239_v58, %v239_v58  ;;  %v248_v60 = vpop.f32.mrf.mxu1  ;;  %v270_v14 = vpop.f32.mrf.mxu3 }
  0xa5   :  { %286 = vst.msk [vmem:[%s627_s3] sm:$0xf] %vm285_vm1, %v272_v59  ;;  %v210_v61 = vpop.f32.mrf.mxu2 }
  0xa6   :  { %v197_v63 = vpop.f32.mrf.mxu0  ;;  %v211_v9 = vadd.f32 %v558_v54, %v210_v61 }
  0xa7   :  { %v198_v0 = vadd.f32 %v558_v54, %v197_v63 }
  0xa9   :  { %v241_v1 = vadd.f32 %v240_v51, %v198_v0 }
  0xab   :  { %v273_v2 = vpack.c.bf16 %v241_v1, %v241_v1  ;;  %v250_v3 = vpop.f32.mrf.mxu1 }
  0xad   :  { %287 = vst.msk [vmem:[%s627_s3 + $0x4] sm:$0xf] %vm285_vm1, %v273_v2  ;;  %v212_v4 = vpop.f32.mrf.mxu2 }
  0xae   :  { %v200_v6 = vpop.f32.mrf.mxu0  ;;  %v213_v19 = vadd.f32 %v558_v54, %v212_v4 }
  0xaf   :  { %v201_v7 = vadd.f32 %v558_v54, %v200_v6 }
  0xb1   :  { %v244_v8 = vadd.f32 %v243_v52, %v201_v7 }
  0xb3   :  { %v274_v10 = vpack.c.bf16 %v244_v8, %v244_v8  ;;  %v253_v11 = vpop.f32.mrf.mxu1 }
  0xb4   :  { %v254_v12 = vadd.f32 %v253_v11, %v211_v9 }
  0xb5   :  { %288 = vst.msk [vmem:[%s627_s3 + $0x8] sm:$0xf] %vm285_vm1, %v274_v10  ;;  %v215_v13 = vpop.f32.mrf.mxu2 }
  0xb6   :  { %v278_v15 = vpack.c.bf16 %v254_v12, %v254_v12  ;;  %v202_v16 = vpop.f32.mrf.mxu0  ;;  %v216_v28 = vadd.f32 %v558_v54, %v215_v13 }
  0xb7   :  { %v203_v17 = vadd.f32 %v558_v54, %v202_v16 }
  0xb8   :  { %292 = vst.msk [vmem:[%s627_s3 + $0x18] sm:$0xf] %vm285_vm1, %v278_v15 }
  0xb9   :  { %v246_v18 = vadd.f32 %v245_v53, %v203_v17 }
  0xbb   :  { %v275_v20 = vpack.c.bf16 %v246_v18, %v246_v18  ;;  %v255_v21 = vpop.f32.mrf.mxu1 }
  0xbc   :  { %v256_v22 = vadd.f32 %v255_v21, %v213_v19 }
  0xbd   :  { %289 = vst.msk [vmem:[%s627_s3 + $0xc] sm:$0xf] %vm285_vm1, %v275_v20  ;;  %v217_v23 = vpop.f32.mrf.mxu2 }
  0xbe   :  { %v279_v24 = vpack.c.bf16 %v256_v22, %v256_v22  ;;  %v205_v25 = vpop.f32.mrf.mxu0  ;;  %v218_v39 = vadd.f32 %v558_v54, %v217_v23 }
  0xbf   :  { %v206_v26 = vadd.f32 %v558_v54, %v205_v25 }
  0xc0   :  { %293 = vst.msk [vmem:[%s627_s3 + $0x1c] sm:$0xf] %vm285_vm1, %v279_v24 }
  0xc1   :  { %v249_v27 = vadd.f32 %v248_v60, %v206_v26 }
  0xc3   :  { %v276_v29 = vpack.c.bf16 %v249_v27, %v249_v27  ;;  %v258_v30 = vpop.f32.mrf.mxu1 }
  0xc4   :  { %v259_v31 = vadd.f32 %v258_v30, %v216_v28 }
  0xc5   :  { %290 = vst.msk [vmem:[%s627_s3 + $0x10] sm:$0xf] %vm285_vm1, %v276_v29  ;;  %v220_v32 = vpop.f32.mrf.mxu2 }
  0xc6   :  { %v280_v33 = vpack.c.bf16 %v259_v31, %v259_v31  ;;  %v221_v34 = vadd.f32 %v558_v54, %v220_v32  ;;  %v207_v35 = vpop.f32.mrf.mxu0 }
  0xc7   :  { %v208_v36 = vadd.f32 %v558_v54, %v207_v35 }
  0xc8   :  { %294 = vst.msk [vmem:[%s627_s3 + $0x20] sm:$0xf] %vm285_vm1, %v280_v33  ;;  %v264_v37 = vadd.f32 %v263_v55, %v221_v34 }
  0xc9   :  { %v251_v38 = vadd.f32 %v250_v3, %v208_v36 }
  0xca   :  { %v282_v40 = vpack.c.bf16 %v264_v37, %v264_v37 }
  0xcb   :  { %v277_v41 = vpack.c.bf16 %v251_v38, %v251_v38  ;;  %v260_v42 = vpop.f32.mrf.mxu1 }
  0xcc   :  { %296 = vst.msk [vmem:[%s627_s3 + $0x28] sm:$0xf] %vm285_vm1, %v282_v40  ;;  %v261_v43 = vadd.f32 %v260_v42, %v218_v39 }
  0xcd   :  { %291 = vst.msk [vmem:[%s627_s3 + $0x14] sm:$0xf] %vm285_vm1, %v277_v41  ;;  %v222_v44 = vpop.f32.mrf.mxu2 }
  0xce   :  { %v281_v45 = vpack.c.bf16 %v261_v43, %v261_v43  ;;  %v223_v46 = vadd.f32 %v558_v54, %v222_v44 }
  0xd0   :  { %295 = vst.msk [vmem:[%s627_s3 + $0x24] sm:$0xf] %vm285_vm1, %v281_v45  ;;  %v266_v47 = vadd.f32 %v265_v62, %v223_v46 }
  0xd2   :  { %v283_v48 = vpack.c.bf16 %v266_v47, %v266_v47 }
  0xd4   :  { %297 = vst.msk [vmem:[%s627_s3 + $0x2c] sm:$0xf] %vm285_vm1, %v283_v48 }
  0xd5   :  { %v225_v49 = vpop.f32.mrf.mxu2 }
  0xd6   :  { %v226_v50 = vadd.f32 %v558_v54, %v225_v49 }
  0xd8   :  { %v269_v51 = vadd.f32 %v268_v5, %v226_v50 }
  0xda   :  { %v284_v52 = vpack.c.bf16 %v269_v51, %v269_v51 }
  0xdc   :  { %299 = vst.msk [vmem:[%s627_s3 + $0x30] sm:$0x1] %vm298_vm2, %v284_v52 }
  0xdd   :  { %v227_v53 = vpop.f32.mrf.mxu2 }

// kernel: _lambda_.44
= control target key start
LH: loop header
LB: loop body
LE: loop exit
PB: predicated region body
PF: predicated region fallthrough
CT: control target
= control target key end

     0   :  { %vm20_vm0 = vcmask 1040384   ;;  %v51_v1 = vmov 0   ;;  %vm16_vm1 = vcmask 7168   ;;  %vm42_vm2 = vcmask 257024   ;;  %s82_s1 = inlined_call_operand.vmem [shape: bf16[1,32], index: 1, kind: input, shape index: {}]   ;;  %s83_s0 = inlined_call_operand.vmem [shape: f32[16,1], index: 0, kind: input, shape index: {}]   ;;  %s84_s2 = inlined_call_operand.vmem [shape: bf16[16,32], index: 2, kind: output, shape index: {}]  }
   0x1   :  { %v15_v0 = vld [vmem:[%s82_s1] sm:$0x1]  ;;  %v22_v2 = vsel %vm20_vm0, 65535, %v51_v1  ;;  %v13_v4 = vld [vmem:[%s83_s0 + $0x8] sm:$0xff] }
   0x2   :  { %v12_v3 = vld [vmem:[%s83_s0] sm:$0xff]  ;;  %v24_v5 = vand.u32 %v22_v2, %v15_v0 }
   0x3   :  { %v14_v6 = vpack.c.bf16 %v13_v4, %v12_v3 }
   0x4   :  { %33 = vmatpush.bf16.msra.mxu0 %v24_v5 }
   0x7   :  { %49 = vmatmul.msk.bf16.vlgmr.msra.gmra.mxu0 %vm16_vm1, %v14_v6 }
  0x84   :  { %v35_v7 = vpop.f32.mrf.mxu0 }
  0x85   :  { %v40_v8 = vpack.c.bf16 %v35_v7, %v35_v7 }
  0x87   :  { %43 = vst.msk [vmem:[%s84_s2] sm:$0xf] %vm42_vm2, %v40_v8 }
  0x8c   :  { %v37_v9 = vpop.f32.mrf.mxu0 }
  0x8d   :  { %v41_v10 = vpack.c.bf16 %v37_v9, %v37_v9 }
  0x8f   :  { %44 = vst.msk [vmem:[%s84_s2 + $0x4] sm:$0xf] %vm42_vm2, %v41_v10 }

// kernel: _lambda_.45
= control target key start
LH: loop header
LB: loop body
LE: loop exit
PB: predicated region body
PF: predicated region fallthrough
CT: control target
= control target key end

     0   :  { %vm26_vm0 = vcmask 1040384   ;;  %v110_v1 = vmov 0   ;;  %vm22_vm1 = vcmask 7168   ;;  %s147_s1 = inlined_call_operand.vmem [shape: bf16[1,512], index: 1, kind: input, shape index: {}]   ;;  %s148_s0 = inlined_call_operand.vmem [shape: f32[16,1], index: 0, kind: input, shape index: {}]   ;;  %s149_s2 = inlined_call_operand.vmem [shape: bf16[16,512], index: 2, kind: output, shape index: {}]  }
   0x1   :  { %v15_v0 = vld [vmem:[%s147_s1] sm:$0xf]  ;;  %v28_v2 = vsel %vm26_vm0, 65535, %v110_v1  ;;  %v13_v4 = vld [vmem:[%s148_s0 + $0x8] sm:$0xff] }
   0x2   :  { %17 = vst [vmem:[#allocation1] ss:$9 sm:$0xff] %v15_v0  ;;  %v12_v3 = vld [vmem:[%s148_s0] sm:$0xff] }
   0x3   :  { %v14_v13 = vpack.c.bf16 %v13_v4, %v12_v3 }
   0x9   :  { %v18_v5 = vld [vmem:[#allocation1] sm:$0xff]  ;;  %v19_v6 = vld [vmem:[#allocation1 + $0x9] sm:$0xff]  ;;  %v20_v7 = vld [vmem:[#allocation1 + $0x12] sm:$0xff] }
   0xa   :  { %v29_v8 = vand.u32 %v28_v2, %v18_v5  ;;  %v31_v9 = vand.u32 %v28_v2, %v19_v6  ;;  %v33_v10 = vand.u32 %v28_v2, %v20_v7  ;;  %v21_v11 = vld [vmem:[#allocation1 + $0x1b] sm:$0xff] }
   0xb   :  { %v35_v12 = vand.u32 %v28_v2, %v21_v11 }
   0xc   :  { %44 = vmatpush.bf16.msra.mxu0 %v29_v8  ;;  %58 = vmatpush.bf16.msra.mxu1 %v31_v9 }
   0xd   :  { %72 = vmatpush.bf16.msra.mxu2 %v33_v10  ;;  %86 = vmatpush.bf16.msra.mxu3 %v35_v12 }
   0xf   :  { %105 = vmatmul.msk.bf16.vlgmr.msra.gmra.mxu0 %vm22_vm1, %v14_v13  ;;  %106 = vmatmul.msk.bf16.vlgmr.msra.gmra.mxu1 %vm22_vm1, %v14_v13 }
  0x10   :  { %107 = vmatmul.msk.bf16.vlgmr.msra.gmra.mxu2 %vm22_vm1, %v14_v13  ;;  %108 = vmatmul.msk.bf16.vlgmr.msra.gmra.mxu3 %vm22_vm1, %v14_v13 }
  0x8c   :  { %v46_v14 = vpop.f32.mrf.mxu0  ;;  %v60_v15 = vpop.f32.mrf.mxu1 }
  0x8d   :  { %v93_v16 = vpack.c.bf16 %v60_v15, %v46_v14 }
  0x8f   :  { %97 = vst [vmem:[%s149_s2] sm:$0xff] %v93_v16 }
  0x93   :  { %v74_v17 = vpop.f32.mrf.mxu2  ;;  %v88_v18 = vpop.f32.mrf.mxu3 }
  0x94   :  { %v94_v19 = vpack.c.bf16 %v88_v18, %v74_v17  ;;  %v48_v20 = vpop.f32.mrf.mxu0  ;;  %v62_v21 = vpop.f32.mrf.mxu1 }
  0x95   :  { %v95_v22 = vpack.c.bf16 %v62_v21, %v48_v20 }
  0x96   :  { %98 = vst [vmem:[%s149_s2 + $0x8] sm:$0xff] %v94_v19 }
  0x97   :  { %99 = vst [vmem:[%s149_s2 + $0x10] sm:$0xff] %v95_v22 }
  0x9b   :  { %v76_v23 = vpop.f32.mrf.mxu2  ;;  %v90_v24 = vpop.f32.mrf.mxu3 }
  0x9c   :  { %v96_v25 = vpack.c.bf16 %v90_v24, %v76_v23 }
  0x9e   :  { %100 = vst [vmem:[%s149_s2 + $0x18] sm:$0xff] %v96_v25 }

// kernel: _lambda_.43
= control target key start
LH: loop header
LB: loop body
LE: loop exit
PB: predicated region body
PF: predicated region fallthrough
CT: control target
= control target key end

     0   :  { %vm97_vm0 = vcmask 130048   ;;  %vm127_vm1 = vcmask 122880   ;;  %s236_s1 = inlined_call_operand.vmem [shape: bf16[144,16], index: 1, kind: input, shape index: {}]   ;;  %s237_s0 = inlined_call_operand.vmem [shape: bf16[2,144], index: 0, kind: input, shape index: {}]   ;;  %s238_s2 = inlined_call_operand.vmem [shape: f32[1,16], index: 2, kind: input, shape index: {}]   ;;  %s239_s3 = inlined_call_operand.vmem [shape: bf16[2,16], index: 3, kind: output, shape index: {}]  }
   0x1   :  { %v177_v0 = vld [vmem:[%s236_s1 + $0x38] sm:$0xff]  ;;  %v176_v1 = vld [vmem:[%s236_s1 + $0x30] sm:$0xff]  ;;  %v178_v2 = vld [vmem:[%s236_s1 + $0x40] sm:$0xff] }
   0x2   :  { %100 = vmatpush.bf16.msra.mxu0 %v177_v0  ;;  %v15_v3 = vld [vmem:[%s237_s0] sm:$0x3]  ;;  %120 = vmatpush.bf16.msra.mxu1 %v178_v2  ;;  %v175_v4 = vld [vmem:[%s236_s1 + $0x28] sm:$0xff]  ;;  %v173_v7 = vld [vmem:[%s236_s1 + $0x18] sm:$0xff] }
   0x3   :  { %39 = vst [vmem:[#allocation1] ss:$9 sm:$0xff] %v15_v3  ;;  %v174_v5 = vld [vmem:[%s236_s1 + $0x20] sm:$0xff]  ;;  %v172_v8 = vld [vmem:[%s236_s1 + $0x10] sm:$0xff]  ;;  %v171_v9 = vld [vmem:[%s236_s1 + $0x8] sm:$0xff] }
   0x4   :  { %v170_v10 = vld [vmem:[%s236_s1] sm:$0xff] }
   0x5   :  { %v179_v14 = vld [vmem:[%s238_s2] ss:$0 sm:$0xff] }
   0x6   :  { %101 = vmatpush.bf16.msra.mxu0 %v176_v1 }
   0xa   :  { %102 = vmatpush.bf16.msra.mxu0 %v175_v4  ;;  %v41_v6 = vld [vmem:[#allocation1 + $0x9] sm:$0xff]  ;;  %v40_v11 = vld [vmem:[#allocation1] sm:$0xff] }
   0xb   :  { %169 = vmatmul.msk.bf16.vlgmr.msra.gmra.mxu1 %vm97_vm0, %v41_v6 }
   0xe   :  { %103 = vmatpush.bf16.msra.mxu0 %v174_v5 }
  0x12   :  { %104 = vmatpush.bf16.msra.mxu0 %v173_v7 }
  0x16   :  { %105 = vmatpush.bf16.msra.mxu0 %v172_v8 }
  0x1a   :  { %106 = vmatpush.bf16.msra.mxu0 %v171_v9 }
  0x1e   :  { %107 = vmatpush.bf16.msra.mxu0 %v170_v10 }
  0x21   :  { %108 = vmatmul.bf16.vlgmr.msra.gmra.mxu0 %v40_v11 }
  0x88   :  { %v122_v12 = vpop.f32.mrf.mxu1 }
  0x90   :  { %v124_v13 = vpop.f32.mrf.mxu1 }
  0x9e   :  { %v109_v15 = vpop.f32.mrf.mxu0 }
  0x9f   :  { %v110_v16 = vadd.f32 %v179_v14, %v109_v15 }
  0xa1   :  { %v123_v17 = vadd.f32 %v122_v12, %v110_v16 }
  0xa3   :  { %v126_v18 = vpack.c.bf16 %v123_v17, %v123_v17 }
  0xa5   :  { %128 = vst.msk [vmem:[%s239_s3] sm:$0x1] %vm127_vm1, %v126_v18 }
  0xa6   :  { %v111_v19 = vpop.f32.mrf.mxu0 }

// kernel: _lambda_.46
= control target key start
LH: loop header
LB: loop body
LE: loop exit
PB: predicated region body
PF: predicated region fallthrough
CT: control target
= control target key end

     0   :  { %vm251_vm0 = vcmask 130048   ;;  %vm581_vm1 = vcmask 125952   ;;  %s1327_s1 = inlined_call_operand.vmem [shape: bf16[16,16], index: 1, kind: input, shape index: {}]   ;;  %s1328_s0 = inlined_call_operand.vmem [shape: bf16[512,16], index: 0, kind: input, shape index: {}]   ;;  %s1329_s2 = inlined_call_operand.vmem [shape: f32[1,16], index: 2, kind: input, shape index: {}]   ;;  %s1330_s3 = inlined_call_operand.vmem [shape: bf16[512,16], index: 3, kind: output, shape index: {}]  }
   0x1   :  { %v846_v0 = vld [vmem:[%s1327_s1] sm:$0xff]  ;;  %v815_v5 = vld [vmem:[%s1328_s0 + $0x8] sm:$0xff]  ;;  %v816_v9 = vld [vmem:[%s1328_s0 + $0x10] sm:$0xff] }
   0x2   :  { %v814_v1 = vld [vmem:[%s1328_s0] sm:$0xff]  ;;  %355 = vmatpush.bf16.msra.mxu0 %v846_v0  ;;  %847 = vmatpush.bf16.msra.mxu1 %v846_v0  ;;  %v823_v6 = vld [vmem:[%s1328_s0 + $0x48] sm:$0xff]  ;;  %v824_v10 = vld [vmem:[%s1328_s0 + $0x50] sm:$0xff] }
   0x3   :  { %v822_v2 = vld [vmem:[%s1328_s0 + $0x40] sm:$0xff]  ;;  %848 = vmatpush.bf16.msra.mxu2 %v846_v0  ;;  %849 = vmatpush.bf16.msra.mxu3 %v846_v0  ;;  %v831_v7 = vld [vmem:[%s1328_s0 + $0x88] sm:$0xff]  ;;  %v832_v11 = vld [vmem:[%s1328_s0 + $0x90] sm:$0xff] }
   0x4   :  { %v830_v3 = vld [vmem:[%s1328_s0 + $0x80] sm:$0xff]  ;;  %v839_v8 = vld [vmem:[%s1328_s0 + $0xc8] sm:$0xff]  ;;  %v840_v12 = vld [vmem:[%s1328_s0 + $0xd0] sm:$0xff] }
   0x5   :  { %v838_v4 = vld [vmem:[%s1328_s0 + $0xc0] sm:$0xff]  ;;  %782 = vmatmul.msk.bf16.vlgmr.msra.gmra.mxu0 %vm251_vm0, %v814_v1  ;;  %790 = vmatmul.msk.bf16.vlgmr.msra.gmra.mxu1 %vm251_vm0, %v822_v2  ;;  %v817_v13 = vld [vmem:[%s1328_s0 + $0x18] sm:$0xff]  ;;  %v819_v21 = vld [vmem:[%s1328_s0 + $0x28] sm:$0xff] }
   0x6   :  { %798 = vmatmul.msk.bf16.vlgmr.msra.gmra.mxu2 %vm251_vm0, %v830_v3  ;;  %806 = vmatmul.msk.bf16.vlgmr.msra.gmra.mxu3 %vm251_vm0, %v838_v4  ;;  %v825_v14 = vld [vmem:[%s1328_s0 + $0x58] sm:$0xff]  ;;  %v818_v17 = vld [vmem:[%s1328_s0 + $0x20] sm:$0xff]  ;;  %v827_v22 = vld [vmem:[%s1328_s0 + $0x68] sm:$0xff] }
   0x7   :  { %v833_v15 = vld [vmem:[%s1328_s0 + $0x98] sm:$0xff]  ;;  %v826_v18 = vld [vmem:[%s1328_s0 + $0x60] sm:$0xff]  ;;  %v835_v23 = vld [vmem:[%s1328_s0 + $0xa8] sm:$0xff] }
   0x8   :  { %v841_v16 = vld [vmem:[%s1328_s0 + $0xd8] sm:$0xff]  ;;  %v834_v19 = vld [vmem:[%s1328_s0 + $0xa0] sm:$0xff]  ;;  %v843_v24 = vld [vmem:[%s1328_s0 + $0xe8] sm:$0xff] }
   0x9   :  { %v842_v20 = vld [vmem:[%s1328_s0 + $0xe0] sm:$0xff]  ;;  %v820_v25 = vld [vmem:[%s1328_s0 + $0x30] sm:$0xff]  ;;  %v821_v29 = vld [vmem:[%s1328_s0 + $0x38] sm:$0xff] }
   0xa   :  { %v828_v26 = vld [vmem:[%s1328_s0 + $0x70] sm:$0xff]  ;;  %v829_v30 = vld [vmem:[%s1328_s0 + $0x78] sm:$0xff]  ;;  %v1005_v33 = vld [vmem:[%s1329_s2] ss:$0 sm:$0xff] }
   0xb   :  { %v836_v27 = vld [vmem:[%s1328_s0 + $0xb0] sm:$0xff]  ;;  %v837_v31 = vld [vmem:[%s1328_s0 + $0xb8] sm:$0xff] }
   0xc   :  { %v844_v28 = vld [vmem:[%s1328_s0 + $0xf0] sm:$0xff]  ;;  %v845_v32 = vld [vmem:[%s1328_s0 + $0xf8] sm:$0xff] }
  0x15   :  { %783 = vmatmul.msk.bf16.gmra.mxu0 %vm251_vm0, %v815_v5  ;;  %791 = vmatmul.msk.bf16.gmra.mxu1 %vm251_vm0, %v823_v6 }
  0x16   :  { %799 = vmatmul.msk.bf16.gmra.mxu2 %vm251_vm0, %v831_v7  ;;  %807 = vmatmul.msk.bf16.gmra.mxu3 %vm251_vm0, %v839_v8 }
  0x25   :  { %784 = vmatmul.msk.bf16.gmra.mxu0 %vm251_vm0, %v816_v9  ;;  %792 = vmatmul.msk.bf16.gmra.mxu1 %vm251_vm0, %v824_v10 }
  0x26   :  { %800 = vmatmul.msk.bf16.gmra.mxu2 %vm251_vm0, %v832_v11  ;;  %808 = vmatmul.msk.bf16.gmra.mxu3 %vm251_vm0, %v840_v12 }
  0x35   :  { %785 = vmatmul.msk.bf16.gmra.mxu0 %vm251_vm0, %v817_v13  ;;  %793 = vmatmul.msk.bf16.gmra.mxu1 %vm251_vm0, %v825_v14 }
  0x36   :  { %801 = vmatmul.msk.bf16.gmra.mxu2 %vm251_vm0, %v833_v15  ;;  %809 = vmatmul.msk.bf16.gmra.mxu3 %vm251_vm0, %v841_v16 }
  0x45   :  { %786 = vmatmul.msk.bf16.gmra.mxu0 %vm251_vm0, %v818_v17  ;;  %794 = vmatmul.msk.bf16.gmra.mxu1 %vm251_vm0, %v826_v18 }
  0x46   :  { %802 = vmatmul.msk.bf16.gmra.mxu2 %vm251_vm0, %v834_v19  ;;  %810 = vmatmul.msk.bf16.gmra.mxu3 %vm251_vm0, %v842_v20 }
  0x55   :  { %787 = vmatmul.msk.bf16.gmra.mxu0 %vm251_vm0, %v819_v21  ;;  %795 = vmatmul.msk.bf16.gmra.mxu1 %vm251_vm0, %v827_v22 }
  0x56   :  { %803 = vmatmul.msk.bf16.gmra.mxu2 %vm251_vm0, %v835_v23  ;;  %811 = vmatmul.msk.bf16.gmra.mxu3 %vm251_vm0, %v843_v24 }
  0x65   :  { %788 = vmatmul.msk.bf16.gmra.mxu0 %vm251_vm0, %v820_v25  ;;  %796 = vmatmul.msk.bf16.gmra.mxu1 %vm251_vm0, %v828_v26 }
  0x66   :  { %804 = vmatmul.msk.bf16.gmra.mxu2 %vm251_vm0, %v836_v27  ;;  %812 = vmatmul.msk.bf16.gmra.mxu3 %vm251_vm0, %v844_v28 }
  0x75   :  { %789 = vmatmul.msk.bf16.gmra.mxu0 %vm251_vm0, %v821_v29  ;;  %797 = vmatmul.msk.bf16.gmra.mxu1 %vm251_vm0, %v829_v30 }
  0x76   :  { %805 = vmatmul.msk.bf16.gmra.mxu2 %vm251_vm0, %v837_v31  ;;  %813 = vmatmul.msk.bf16.gmra.mxu3 %vm251_vm0, %v845_v32 }
  0x82   :  { %v357_v34 = vpop.f32.mrf.mxu0  ;;  %v397_v35 = vpop.f32.mrf.mxu1 }
  0x83   :  { %v358_v36 = vadd.f32 %v1005_v33, %v357_v34  ;;  %v398_v37 = vadd.f32 %v1005_v33, %v397_v35 }
  0x85   :  { %v517_v38 = vpack.c.bf16 %v358_v36, %v358_v36  ;;  %v533_v39 = vpack.c.bf16 %v398_v37, %v398_v37 }
  0x87   :  { %582 = vst.msk [vmem:[%s1330_s3] sm:$0xf] %vm581_vm1, %v517_v38 }
  0x88   :  { %598 = vst.msk [vmem:[%s1330_s3 + $0x40] sm:$0xf] %vm581_vm1, %v533_v39 }
  0x89   :  { %v437_v40 = vpop.f32.mrf.mxu2  ;;  %v477_v41 = vpop.f32.mrf.mxu3 }
  0x8a   :  { %v438_v42 = vadd.f32 %v1005_v33, %v437_v40  ;;  %v478_v43 = vadd.f32 %v1005_v33, %v477_v41  ;;  %v359_v44 = vpop.f32.mrf.mxu0  ;;  %v399_v45 = vpop.f32.mrf.mxu1 }
  0x8b   :  { %v360_v46 = vadd.f32 %v1005_v33, %v359_v44  ;;  %v400_v47 = vadd.f32 %v1005_v33, %v399_v45 }
  0x8c   :  { %v549_v48 = vpack.c.bf16 %v438_v42, %v438_v42  ;;  %v565_v49 = vpack.c.bf16 %v478_v43, %v478_v43 }
  0x8d   :  { %v518_v50 = vpack.c.bf16 %v360_v46, %v360_v46  ;;  %v534_v51 = vpack.c.bf16 %v400_v47, %v400_v47 }
  0x8e   :  { %614 = vst.msk [vmem:[%s1330_s3 + $0x80] sm:$0xf] %vm581_vm1, %v549_v48 }
  0x8f   :  { %630 = vst.msk [vmem:[%s1330_s3 + $0xc0] sm:$0xf] %vm581_vm1, %v565_v49 }
  0x90   :  { %583 = vst.msk [vmem:[%s1330_s3 + $0x4] sm:$0xf] %vm581_vm1, %v518_v50 }
  0x91   :  { %599 = vst.msk [vmem:[%s1330_s3 + $0x44] sm:$0xf] %vm581_vm1, %v534_v51  ;;  %v439_v52 = vpop.f32.mrf.mxu2  ;;  %v479_v53 = vpop.f32.mrf.mxu3 }
  0x92   :  { %v440_v54 = vadd.f32 %v1005_v33, %v439_v52  ;;  %v480_v55 = vadd.f32 %v1005_v33, %v479_v53  ;;  %v362_v56 = vpop.f32.mrf.mxu0  ;;  %v402_v57 = vpop.f32.mrf.mxu1 }
  0x93   :  { %v363_v58 = vadd.f32 %v1005_v33, %v362_v56  ;;  %v403_v59 = vadd.f32 %v1005_v33, %v402_v57 }
  0x94   :  { %v550_v60 = vpack.c.bf16 %v440_v54, %v440_v54  ;;  %v566_v61 = vpack.c.bf16 %v480_v55, %v480_v55 }
  0x95   :  { %v519_v62 = vpack.c.bf16 %v363_v58, %v363_v58  ;;  %v535_v63 = vpack.c.bf16 %v403_v59, %v403_v59 }
  0x96   :  { %615 = vst.msk [vmem:[%s1330_s3 + $0x84] sm:$0xf] %vm581_vm1, %v550_v60 }
  0x97   :  { %631 = vst.msk [vmem:[%s1330_s3 + $0xc4] sm:$0xf] %vm581_vm1, %v566_v61 }
  0x98   :  { %584 = vst.msk [vmem:[%s1330_s3 + $0x8] sm:$0xf] %vm581_vm1, %v519_v62 }
  0x99   :  { %600 = vst.msk [vmem:[%s1330_s3 + $0x48] sm:$0xf] %vm581_vm1, %v535_v63  ;;  %v442_v0 = vpop.f32.mrf.mxu2  ;;  %v482_v1 = vpop.f32.mrf.mxu3 }
  0x9a   :  { %v443_v2 = vadd.f32 %v1005_v33, %v442_v0  ;;  %v483_v3 = vadd.f32 %v1005_v33, %v482_v1  ;;  %v364_v4 = vpop.f32.mrf.mxu0  ;;  %v404_v5 = vpop.f32.mrf.mxu1 }
  0x9b   :  { %v365_v6 = vadd.f32 %v1005_v33, %v364_v4  ;;  %v405_v7 = vadd.f32 %v1005_v33, %v404_v5 }
  0x9c   :  { %v551_v8 = vpack.c.bf16 %v443_v2, %v443_v2  ;;  %v567_v9 = vpack.c.bf16 %v483_v3, %v483_v3 }
  0x9d   :  { %v520_v10 = vpack.c.bf16 %v365_v6, %v365_v6  ;;  %v536_v11 = vpack.c.bf16 %v405_v7, %v405_v7 }
  0x9e   :  { %616 = vst.msk [vmem:[%s1330_s3 + $0x88] sm:$0xf] %vm581_vm1, %v551_v8 }
  0x9f   :  { %632 = vst.msk [vmem:[%s1330_s3 + $0xc8] sm:$0xf] %vm581_vm1, %v567_v9 }
  0xa0   :  { %585 = vst.msk [vmem:[%s1330_s3 + $0xc] sm:$0xf] %vm581_vm1, %v520_v10 }
  0xa1   :  { %601 = vst.msk [vmem:[%s1330_s3 + $0x4c] sm:$0xf] %vm581_vm1, %v536_v11  ;;  %v444_v12 = vpop.f32.mrf.mxu2  ;;  %v484_v13 = vpop.f32.mrf.mxu3 }
  0xa2   :  { %v445_v14 = vadd.f32 %v1005_v33, %v444_v12  ;;  %v485_v15 = vadd.f32 %v1005_v33, %v484_v13  ;;  %v367_v16 = vpop.f32.mrf.mxu0  ;;  %v407_v17 = vpop.f32.mrf.mxu1 }
  0xa3   :  { %v368_v18 = vadd.f32 %v1005_v33, %v367_v16  ;;  %v408_v19 = vadd.f32 %v1005_v33, %v407_v17 }
  0xa4   :  { %v552_v20 = vpack.c.bf16 %v445_v14, %v445_v14  ;;  %v568_v21 = vpack.c.bf16 %v485_v15, %v485_v15 }
  0xa5   :  { %v521_v22 = vpack.c.bf16 %v368_v18, %v368_v18  ;;  %v537_v23 = vpack.c.bf16 %v408_v19, %v408_v19 }
  0xa6   :  { %617 = vst.msk [vmem:[%s1330_s3 + $0x8c] sm:$0xf] %vm581_vm1, %v552_v20 }
  0xa7   :  { %633 = vst.msk [vmem:[%s1330_s3 + $0xcc] sm:$0xf] %vm581_vm1, %v568_v21 }
  0xa8   :  { %586 = vst.msk [vmem:[%s1330_s3 + $0x10] sm:$0xf] %vm581_vm1, %v521_v22 }
  0xa9   :  { %602 = vst.msk [vmem:[%s1330_s3 + $0x50] sm:$0xf] %vm581_vm1, %v537_v23  ;;  %v447_v24 = vpop.f32.mrf.mxu2  ;;  %v487_v25 = vpop.f32.mrf.mxu3 }
  0xaa   :  { %v448_v26 = vadd.f32 %v1005_v33, %v447_v24  ;;  %v488_v27 = vadd.f32 %v1005_v33, %v487_v25  ;;  %v369_v28 = vpop.f32.mrf.mxu0  ;;  %v409_v29 = vpop.f32.mrf.mxu1 }
  0xab   :  { %v370_v30 = vadd.f32 %v1005_v33, %v369_v28  ;;  %v410_v31 = vadd.f32 %v1005_v33, %v409_v29 }
  0xac   :  { %v553_v32 = vpack.c.bf16 %v448_v26, %v448_v26  ;;  %v569_v34 = vpack.c.bf16 %v488_v27, %v488_v27 }
  0xad   :  { %v522_v35 = vpack.c.bf16 %v370_v30, %v370_v30  ;;  %v538_v36 = vpack.c.bf16 %v410_v31, %v410_v31 }
  0xae   :  { %618 = vst.msk [vmem:[%s1330_s3 + $0x90] sm:$0xf] %vm581_vm1, %v553_v32 }
  0xaf   :  { %634 = vst.msk [vmem:[%s1330_s3 + $0xd0] sm:$0xf] %vm581_vm1, %v569_v34 }
  0xb0   :  { %587 = vst.msk [vmem:[%s1330_s3 + $0x14] sm:$0xf] %vm581_vm1, %v522_v35 }
  0xb1   :  { %603 = vst.msk [vmem:[%s1330_s3 + $0x54] sm:$0xf] %vm581_vm1, %v538_v36  ;;  %v449_v37 = vpop.f32.mrf.mxu2  ;;  %v489_v38 = vpop.f32.mrf.mxu3 }
  0xb2   :  { %v450_v39 = vadd.f32 %v1005_v33, %v449_v37  ;;  %v490_v40 = vadd.f32 %v1005_v33, %v489_v38  ;;  %v372_v41 = vpop.f32.mrf.mxu0  ;;  %v412_v42 = vpop.f32.mrf.mxu1 }
  0xb3   :  { %v373_v43 = vadd.f32 %v1005_v33, %v372_v41  ;;  %v413_v44 = vadd.f32 %v1005_v33, %v412_v42 }
  0xb4   :  { %v554_v45 = vpack.c.bf16 %v450_v39, %v450_v39  ;;  %v570_v46 = vpack.c.bf16 %v490_v40, %v490_v40 }
  0xb5   :  { %v523_v47 = vpack.c.bf16 %v373_v43, %v373_v43  ;;  %v539_v48 = vpack.c.bf16 %v413_v44, %v413_v44 }
  0xb6   :  { %619 = vst.msk [vmem:[%s1330_s3 + $0x94] sm:$0xf] %vm581_vm1, %v554_v45 }
  0xb7   :  { %635 = vst.msk [vmem:[%s1330_s3 + $0xd4] sm:$0xf] %vm581_vm1, %v570_v46 }
  0xb8   :  { %588 = vst.msk [vmem:[%s1330_s3 + $0x18] sm:$0xf] %vm581_vm1, %v523_v47 }
  0xb9   :  { %604 = vst.msk [vmem:[%s1330_s3 + $0x58] sm:$0xf] %vm581_vm1, %v539_v48  ;;  %v452_v49 = vpop.f32.mrf.mxu2  ;;  %v492_v50 = vpop.f32.mrf.mxu3 }
  0xba   :  { %v453_v51 = vadd.f32 %v1005_v33, %v452_v49  ;;  %v493_v52 = vadd.f32 %v1005_v33, %v492_v50  ;;  %v374_v53 = vpop.f32.mrf.mxu0  ;;  %v414_v54 = vpop.f32.mrf.mxu1 }
  0xbb   :  { %v375_v55 = vadd.f32 %v1005_v33, %v374_v53  ;;  %v415_v56 = vadd.f32 %v1005_v33, %v414_v54 }
  0xbc   :  { %v555_v57 = vpack.c.bf16 %v453_v51, %v453_v51  ;;  %v571_v58 = vpack.c.bf16 %v493_v52, %v493_v52 }
  0xbd   :  { %v524_v59 = vpack.c.bf16 %v375_v55, %v375_v55  ;;  %v540_v60 = vpack.c.bf16 %v415_v56, %v415_v56 }
  0xbe   :  { %620 = vst.msk [vmem:[%s1330_s3 + $0x98] sm:$0xf] %vm581_vm1, %v555_v57 }
  0xbf   :  { %636 = vst.msk [vmem:[%s1330_s3 + $0xd8] sm:$0xf] %vm581_vm1, %v571_v58 }
  0xc0   :  { %589 = vst.msk [vmem:[%s1330_s3 + $0x1c] sm:$0xf] %vm581_vm1, %v524_v59 }
  0xc1   :  { %605 = vst.msk [vmem:[%s1330_s3 + $0x5c] sm:$0xf] %vm581_vm1, %v540_v60  ;;  %v454_v61 = vpop.f32.mrf.mxu2  ;;  %v494_v62 = vpop.f32.mrf.mxu3 }
  0xc2   :  { %v455_v63 = vadd.f32 %v1005_v33, %v454_v61  ;;  %v495_v0 = vadd.f32 %v1005_v33, %v494_v62  ;;  %v377_v1 = vpop.f32.mrf.mxu0  ;;  %v417_v2 = vpop.f32.mrf.mxu1 }
  0xc3   :  { %v378_v3 = vadd.f32 %v1005_v33, %v377_v1  ;;  %v418_v4 = vadd.f32 %v1005_v33, %v417_v2 }
  0xc4   :  { %v556_v5 = vpack.c.bf16 %v455_v63, %v455_v63  ;;  %v572_v6 = vpack.c.bf16 %v495_v0, %v495_v0 }
  0xc5   :  { %v525_v7 = vpack.c.bf16 %v378_v3, %v378_v3  ;;  %v541_v8 = vpack.c.bf16 %v418_v4, %v418_v4 }
  0xc6   :  { %621 = vst.msk [vmem:[%s1330_s3 + $0x9c] sm:$0xf] %vm581_vm1, %v556_v5 }
  0xc7   :  { %637 = vst.msk [vmem:[%s1330_s3 + $0xdc] sm:$0xf] %vm581_vm1, %v572_v6 }
  0xc8   :  { %590 = vst.msk [vmem:[%s1330_s3 + $0x20] sm:$0xf] %vm581_vm1, %v525_v7 }
  0xc9   :  { %606 = vst.msk [vmem:[%s1330_s3 + $0x60] sm:$0xf] %vm581_vm1, %v541_v8  ;;  %v457_v9 = vpop.f32.mrf.mxu2  ;;  %v497_v10 = vpop.f32.mrf.mxu3 }
  0xca   :  { %v458_v11 = vadd.f32 %v1005_v33, %v457_v9  ;;  %v498_v12 = vadd.f32 %v1005_v33, %v497_v10  ;;  %v379_v13 = vpop.f32.mrf.mxu0  ;;  %v419_v14 = vpop.f32.mrf.mxu1 }
  0xcb   :  { %v380_v15 = vadd.f32 %v1005_v33, %v379_v13  ;;  %v420_v16 = vadd.f32 %v1005_v33, %v419_v14 }
  0xcc   :  { %v557_v17 = vpack.c.bf16 %v458_v11, %v458_v11  ;;  %v573_v18 = vpack.c.bf16 %v498_v12, %v498_v12 }
  0xcd   :  { %v526_v19 = vpack.c.bf16 %v380_v15, %v380_v15  ;;  %v542_v20 = vpack.c.bf16 %v420_v16, %v420_v16 }
  0xce   :  { %622 = vst.msk [vmem:[%s1330_s3 + $0xa0] sm:$0xf] %vm581_vm1, %v557_v17 }
  0xcf   :  { %638 = vst.msk [vmem:[%s1330_s3 + $0xe0] sm:$0xf] %vm581_vm1, %v573_v18 }
  0xd0   :  { %591 = vst.msk [vmem:[%s1330_s3 + $0x24] sm:$0xf] %vm581_vm1, %v526_v19 }
  0xd1   :  { %607 = vst.msk [vmem:[%s1330_s3 + $0x64] sm:$0xf] %vm581_vm1, %v542_v20  ;;  %v459_v21 = vpop.f32.mrf.mxu2  ;;  %v499_v22 = vpop.f32.mrf.mxu3 }
  0xd2   :  { %v460_v23 = vadd.f32 %v1005_v33, %v459_v21  ;;  %v500_v24 = vadd.f32 %v1005_v33, %v499_v22  ;;  %v382_v25 = vpop.f32.mrf.mxu0  ;;  %v422_v26 = vpop.f32.mrf.mxu1 }
  0xd3   :  { %v383_v27 = vadd.f32 %v1005_v33, %v382_v25  ;;  %v423_v28 = vadd.f32 %v1005_v33, %v422_v26 }
  0xd4   :  { %v558_v29 = vpack.c.bf16 %v460_v23, %v460_v23  ;;  %v574_v30 = vpack.c.bf16 %v500_v24, %v500_v24 }
  0xd5   :  { %v527_v31 = vpack.c.bf16 %v383_v27, %v383_v27  ;;  %v543_v32 = vpack.c.bf16 %v423_v28, %v423_v28 }
  0xd6   :  { %623 = vst.msk [vmem:[%s1330_s3 + $0xa4] sm:$0xf] %vm581_vm1, %v558_v29 }
  0xd7   :  { %639 = vst.msk [vmem:[%s1330_s3 + $0xe4] sm:$0xf] %vm581_vm1, %v574_v30 }
  0xd8   :  { %592 = vst.msk [vmem:[%s1330_s3 + $0x28] sm:$0xf] %vm581_vm1, %v527_v31 }
  0xd9   :  { %608 = vst.msk [vmem:[%s1330_s3 + $0x68] sm:$0xf] %vm581_vm1, %v543_v32  ;;  %v462_v34 = vpop.f32.mrf.mxu2  ;;  %v502_v35 = vpop.f32.mrf.mxu3 }
  0xda   :  { %v463_v36 = vadd.f32 %v1005_v33, %v462_v34  ;;  %v503_v37 = vadd.f32 %v1005_v33, %v502_v35  ;;  %v384_v38 = vpop.f32.mrf.mxu0  ;;  %v424_v39 = vpop.f32.mrf.mxu1 }
  0xdb   :  { %v385_v40 = vadd.f32 %v1005_v33, %v384_v38  ;;  %v425_v41 = vadd.f32 %v1005_v33, %v424_v39 }
  0xdc   :  { %v559_v42 = vpack.c.bf16 %v463_v36, %v463_v36  ;;  %v575_v43 = vpack.c.bf16 %v503_v37, %v503_v37 }
  0xdd   :  { %v528_v44 = vpack.c.bf16 %v385_v40, %v385_v40  ;;  %v544_v45 = vpack.c.bf16 %v425_v41, %v425_v41 }
  0xde   :  { %624 = vst.msk [vmem:[%s1330_s3 + $0xa8] sm:$0xf] %vm581_vm1, %v559_v42 }
  0xdf   :  { %640 = vst.msk [vmem:[%s1330_s3 + $0xe8] sm:$0xf] %vm581_vm1, %v575_v43 }
  0xe0   :  { %593 = vst.msk [vmem:[%s1330_s3 + $0x2c] sm:$0xf] %vm581_vm1, %v528_v44 }
  0xe1   :  { %609 = vst.msk [vmem:[%s1330_s3 + $0x6c] sm:$0xf] %vm581_vm1, %v544_v45  ;;  %v464_v46 = vpop.f32.mrf.mxu2  ;;  %v504_v47 = vpop.f32.mrf.mxu3 }
  0xe2   :  { %v465_v48 = vadd.f32 %v1005_v33, %v464_v46  ;;  %v505_v49 = vadd.f32 %v1005_v33, %v504_v47  ;;  %v387_v50 = vpop.f32.mrf.mxu0  ;;  %v427_v51 = vpop.f32.mrf.mxu1 }
  0xe3   :  { %v388_v52 = vadd.f32 %v1005_v33, %v387_v50  ;;  %v428_v53 = vadd.f32 %v1005_v33, %v427_v51 }
  0xe4   :  { %v560_v54 = vpack.c.bf16 %v465_v48, %v465_v48  ;;  %v576_v55 = vpack.c.bf16 %v505_v49, %v505_v49 }
  0xe5   :  { %v529_v56 = vpack.c.bf16 %v388_v52, %v388_v52  ;;  %v545_v57 = vpack.c.bf16 %v428_v53, %v428_v53 }
  0xe6   :  { %625 = vst.msk [vmem:[%s1330_s3 + $0xac] sm:$0xf] %vm581_vm1, %v560_v54 }
  0xe7   :  { %641 = vst.msk [vmem:[%s1330_s3 + $0xec] sm:$0xf] %vm581_vm1, %v576_v55 }
  0xe8   :  { %594 = vst.msk [vmem:[%s1330_s3 + $0x30] sm:$0xf] %vm581_vm1, %v529_v56 }
  0xe9   :  { %610 = vst.msk [vmem:[%s1330_s3 + $0x70] sm:$0xf] %vm581_vm1, %v545_v57  ;;  %v467_v58 = vpop.f32.mrf.mxu2  ;;  %v507_v59 = vpop.f32.mrf.mxu3 }
  0xea   :  { %v468_v60 = vadd.f32 %v1005_v33, %v467_v58  ;;  %v508_v61 = vadd.f32 %v1005_v33, %v507_v59  ;;  %v389_v62 = vpop.f32.mrf.mxu0  ;;  %v429_v63 = vpop.f32.mrf.mxu1 }
  0xeb   :  { %v390_v0 = vadd.f32 %v1005_v33, %v389_v62  ;;  %v430_v1 = vadd.f32 %v1005_v33, %v429_v63 }
  0xec   :  { %v561_v2 = vpack.c.bf16 %v468_v60, %v468_v60  ;;  %v577_v3 = vpack.c.bf16 %v508_v61, %v508_v61 }
  0xed   :  { %v530_v4 = vpack.c.bf16 %v390_v0, %v390_v0  ;;  %v546_v5 = vpack.c.bf16 %v430_v1, %v430_v1 }
  0xee   :  { %626 = vst.msk [vmem:[%s1330_s3 + $0xb0] sm:$0xf] %vm581_vm1, %v561_v2 }
  0xef   :  { %642 = vst.msk [vmem:[%s1330_s3 + $0xf0] sm:$0xf] %vm581_vm1, %v577_v3 }
  0xf0   :  { %595 = vst.msk [vmem:[%s1330_s3 + $0x34] sm:$0xf] %vm581_vm1, %v530_v4 }
  0xf1   :  { %611 = vst.msk [vmem:[%s1330_s3 + $0x74] sm:$0xf] %vm581_vm1, %v546_v5  ;;  %v469_v6 = vpop.f32.mrf.mxu2  ;;  %v509_v7 = vpop.f32.mrf.mxu3 }
  0xf2   :  { %v470_v8 = vadd.f32 %v1005_v33, %v469_v6  ;;  %v510_v9 = vadd.f32 %v1005_v33, %v509_v7  ;;  %v392_v10 = vpop.f32.mrf.mxu0  ;;  %v432_v11 = vpop.f32.mrf.mxu1 }
  0xf3   :  { %v393_v12 = vadd.f32 %v1005_v33, %v392_v10  ;;  %v433_v13 = vadd.f32 %v1005_v33, %v432_v11 }
  0xf4   :  { %v562_v14 = vpack.c.bf16 %v470_v8, %v470_v8  ;;  %v578_v15 = vpack.c.bf16 %v510_v9, %v510_v9 }
  0xf5   :  { %v531_v16 = vpack.c.bf16 %v393_v12, %v393_v12  ;;  %v547_v17 = vpack.c.bf16 %v433_v13, %v433_v13 }
  0xf6   :  { %627 = vst.msk [vmem:[%s1330_s3 + $0xb4] sm:$0xf] %vm581_vm1, %v562_v14 }
  0xf7   :  { %643 = vst.msk [vmem:[%s1330_s3 + $0xf4] sm:$0xf] %vm581_vm1, %v578_v15 }
  0xf8   :  { %596 = vst.msk [vmem:[%s1330_s3 + $0x38] sm:$0xf] %vm581_vm1, %v531_v16 }
  0xf9   :  { %612 = vst.msk [vmem:[%s1330_s3 + $0x78] sm:$0xf] %vm581_vm1, %v547_v17  ;;  %v472_v18 = vpop.f32.mrf.mxu2  ;;  %v512_v19 = vpop.f32.mrf.mxu3 }
  0xfa   :  { %v473_v20 = vadd.f32 %v1005_v33, %v472_v18  ;;  %v513_v21 = vadd.f32 %v1005_v33, %v512_v19  ;;  %v394_v22 = vpop.f32.mrf.mxu0  ;;  %v434_v23 = vpop.f32.mrf.mxu1 }
  0xfb   :  { %v395_v24 = vadd.f32 %v1005_v33, %v394_v22  ;;  %v435_v25 = vadd.f32 %v1005_v33, %v434_v23 }
  0xfc   :  { %v563_v26 = vpack.c.bf16 %v473_v20, %v473_v20  ;;  %v579_v27 = vpack.c.bf16 %v513_v21, %v513_v21 }
  0xfd   :  { %v532_v28 = vpack.c.bf16 %v395_v24, %v395_v24  ;;  %v548_v29 = vpack.c.bf16 %v435_v25, %v435_v25 }
  0xfe   :  { %628 = vst.msk [vmem:[%s1330_s3 + $0xb8] sm:$0xf] %vm581_vm1, %v563_v26 }
  0xff   :  { %644 = vst.msk [vmem:[%s1330_s3 + $0xf8] sm:$0xf] %vm581_vm1, %v579_v27 }
 0x100   :  { %597 = vst.msk [vmem:[%s1330_s3 + $0x3c] sm:$0xf] %vm581_vm1, %v532_v28 }
 0x101   :  { %613 = vst.msk [vmem:[%s1330_s3 + $0x7c] sm:$0xf] %vm581_vm1, %v548_v29  ;;  %v474_v30 = vpop.f32.mrf.mxu2  ;;  %v514_v31 = vpop.f32.mrf.mxu3 }
 0x102   :  { %v475_v32 = vadd.f32 %v1005_v33, %v474_v30  ;;  %v515_v34 = vadd.f32 %v1005_v33, %v514_v31 }
 0x104   :  { %v564_v35 = vpack.c.bf16 %v475_v32, %v475_v32  ;;  %v580_v36 = vpack.c.bf16 %v515_v34, %v515_v34 }
 0x106   :  { %629 = vst.msk [vmem:[%s1330_s3 + $0xbc] sm:$0xf] %vm581_vm1, %v564_v35 }
 0x107   :  { %645 = vst.msk [vmem:[%s1330_s3 + $0xfc] sm:$0xf] %vm581_vm1, %v580_v36 }

// kernel: _lambda_.48
= control target key start
LH: loop header
LB: loop body
LE: loop exit
PB: predicated region body
PF: predicated region fallthrough
CT: control target
= control target key end

     0   :  { %s1133_s15 = smov 0   ;;  %s1135_s16 = smov 0   ;;  %s1389_s0 = inlined_call_operand.vmem [shape: bf16[2,288,90], index: 0, kind: input, shape index: {}, may-alias: {0,1}]   ;;  %s1390_s1 = inlined_call_operand.vmem [shape: bf16[2,288,90], index: 1, kind: input, shape index: {}, may-alias: {0,1}]   ;;  %s1391_s2 = inlined_call_operand.vmem [shape: bf16[90,96], index: 2, kind: input, shape index: {}]   ;;  %s1392_s3 = inlined_call_operand.vmem [shape: f32[1,32], index: 3, kind: input, shape index: {}]   ;;  %s1393_s4 = inlined_call_operand.vmem [shape: bf16[2,256,32], index: 4, kind: output, shape index: {}]  }
   0x1   :  { %s1137_s17 = smov 0   ;;  %s1139_s18 = smov 0  }
   0x2   :  { %s1141_s19 = smov 0  }
   0x3 LB: > { %s23_s20 = sadd.s32 1, %s1096_s17  ;;  %s26_s21 = sadd.s32 1, %s1100_s18  ;;  %s1104_s19 = sphi %s1141_s19, %s14_s19   ;;  %s1100_s18 = sphi %s1139_s18, %s1397_s18   ;;  %s1096_s17 = sphi %s1137_s17, %s1396_s17   ;;  %s1092_s16 = sphi %s1135_s16, %s1395_s16   ;;  %s1088_s15 = sphi %s1133_s15, %s1394_s15  }
   0x4   : > { %p24_p0 = scmp.ge.s32.totalorder %s23_s20, 2  ;;  %p903_p1 = scmp.ge.s32.totalorder %s1104_s19, 1 }
   0x5   : > { %p224_p2 = scmp.lt.s32.totalorder %s1104_s19, 5 }
   0x6   : > { %s1399_s20 = smov (%p24_p0, %s23_s20), 0  ;;  %s1401_s21 = smov (!%p24_p0, %s26_s21), %s1100_s18 }
   0x7   : > { %p225_p3 = pnand %p903_p1, %p224_p2  ;;  %p28_p4 = scmp.ge.s32.totalorder %s1401_s21, 2 }
   0x8   : > { %s1172_s26 = sshll.u32 (!%p225_p3), %s1088_s15, 4  ;;  %p280_p5 = scmp.lt.s32.totalorder (!%p225_p3), %s1092_s16, 1 }
   0x9   : > { %s1403_s21 = smov (%p28_p4, %s1401_s21), 0  ;;  %228 = sbr.rel (%p225_p3) target bundleno = 378 (0x17a), region = 36 }
   0xa   : > { %p282_p6 = scmp.lt.s32.totalorder (!%p225_p3), %s1172_s26, 35  ;;  %s992_s30 = sshll.u32 (!%p225_p3), %s1088_s15, 2 }
   0xb   : > { %s993_s5 = sadd.s32 (!%p225_p3), 4, %s992_s30  ;;  %s1106_s7 = smov (!%p225_p3), 64  }
   0xc   : > { %p295_p7 = scmp.lt.s32.totalorder (!%p225_p3), %s993_s5, 8  ;;  %p314_p9 = scmp.lt.s32.totalorder (!%p225_p3), %s1172_s26, 31 }
   0xe   : > { %v966_v0 = vld [vmem:[%s1391_s2 + $0x28] sm:$0xf]  ;;  %v999_v1 = vld [vmem:[%s1391_s2 + $0x28] sm:$0x10]  ;;  %vm450_vm0 = vcmask 1044480   ;;  %v998_v4 = vld [vmem:[%s1391_s2 + $0x20] sm:$0xff] }
   0xf   : > { %v967_v2 = vor.u32 %v999_v1, %v966_v0  ;;  %s1405_s16 = smov (!%p280_p5, %s1092_s16), 1  ;;  %v997_v5 = vld [vmem:[%s1391_s2 + $0x18] sm:$0xff]  ;;  %s1407_s5 = smov (!%p295_p7, %s993_s5), 8  ;;  %v996_v6 = vld [vmem:[%s1391_s2 + $0x10] sm:$0xff]  ;;  %v995_v7 = vld [vmem:[%s1391_s2 + $0x8] sm:$0xff]  ;;  %vm425_vm1 = vcmask 736256  }
  0x10   : > { %s283_s29 = scalar_select %p282_p6, %s1172_s26, 35  ;;  %v994_v8 = vld [vmem:[%s1391_s2] sm:$0xff]  ;;  %vm772_vm3 = vcmask 257024  }
  0x11   : > { %v452_v3 = vsel %vm450_vm0, %v967_v2, 0  ;;  %s1022_s8 = smul.u32 36, %s1405_s16  ;;  %s907_s11 = sshll.u32 %s1407_s5, 2  ;;  %v1295_v49 = vld [vmem:[%s1392_s3] ss:$0 sm:$0xff] }
  0x12   : > { %1010 = vmatpush.bf16.msra.mxu2 %v452_v3  ;;  %1011 = vmatpush.bf16.msra.mxu3 %v452_v3  ;;  %p300_p8 = scmp.lt.s32.totalorder %s907_s11, 35  ;;  %s1411_s26 = smov (!%p314_p9, %s1172_s26), 31 }
  0x13   : > { %525 = vmatpush.bf16.msra.mxu1 %v452_v3  ;;  %456 = vmatpush.bf16.msra.mxu0 %v452_v3  ;;  %s285_s12 = sadd.s32 %s1022_s8, %s283_s29  ;;  %s910_s9 = sshll.u32 %s1405_s16, 5 }
  0x14   : > { %s1409_s11 = smov (!%p300_p8, %s907_s11), 35  ;;  %s905_s15 = sshll.u32 %s285_s12, 2 }
  0x15   : > { %s303_s22 = sadd.s32 %s1022_s8, %s1409_s11  ;;  %s287_s29 = scalar_lea.vmem %s1389_s0, %s905_s15 }
  0x16   : > { %1012 = vmatpush.bf16.msra.mxu2 %v998_v4  ;;  %1013 = vmatpush.bf16.msra.mxu3 %v998_v4  ;;  %s908_s23 = sshll.u32 %s303_s22, 2  ;;  %v1003_v9 = vld [vmem:[%s287_s29 + $0x18] sm:$0xff]  ;;  %v1006_v10 = vld [vmem:[%s287_s29 + $0x30] sm:$0xff]  ;;  %v1000_v12 = vld [vmem:[%s287_s29] sm:$0xff]  ;;  %s1107_s8 = smov 96  }
  0x17   : > { %526 = vmatpush.bf16.msra.mxu1 %v998_v4  ;;  %457 = vmatpush.bf16.msra.mxu0 %v998_v4  ;;  %s305_s6 = scalar_lea.vmem %s1390_s1, %s908_s23  ;;  %v1004_v13 = vld [vmem:[%s287_s29 + $0x20] sm:$0xff]  ;;  %v1007_v14 = vld [vmem:[%s287_s29 + $0x38] sm:$0xff]  ;;  %v1001_v15 = vld [vmem:[%s287_s29 + $0x8] sm:$0xff]  ;;  %s317_s12 = sadd.s32 %s910_s9, %s1411_s26 }
  0x18   : > { %v1008_v11 = vld [vmem:[%s305_s6] sm:$0xff]  ;;  %v1009_v16 = vld [vmem:[%s305_s6 + $0x8] sm:$0xff]  ;;  %v1002_v18 = vld [vmem:[%s287_s29 + $0x10] sm:$0xff]  ;;  %s911_s13 = sshll.u32 %s317_s12, 2 }
  0x19   : > { %v1005_v17 = vld [vmem:[%s287_s29 + $0x28] sm:$0xff]  ;;  %s1301_s16 = scalar_lea.vmem %s1393_s4, %s911_s13 }
  0x1a   : > { %1014 = vmatpush.bf16.msra.mxu2 %v997_v5  ;;  %1015 = vmatpush.bf16.msra.mxu3 %v997_v5 }
  0x1b   : > { %527 = vmatpush.bf16.msra.mxu1 %v997_v5  ;;  %458 = vmatpush.bf16.msra.mxu0 %v997_v5 }
  0x1e   : > { %1016 = vmatpush.bf16.msra.mxu2 %v996_v6  ;;  %1017 = vmatpush.bf16.msra.mxu3 %v996_v6 }
  0x1f   : > { %528 = vmatpush.bf16.msra.mxu1 %v996_v6  ;;  %459 = vmatpush.bf16.msra.mxu0 %v996_v6 }
  0x22   : > { %1018 = vmatpush.bf16.msra.mxu2 %v995_v7  ;;  %1019 = vmatpush.bf16.msra.mxu3 %v995_v7 }
  0x23   : > { %529 = vmatpush.bf16.msra.mxu1 %v995_v7  ;;  %460 = vmatpush.bf16.msra.mxu0 %v995_v7 }
  0x26   : > { %1020 = vmatpush.bf16.msra.mxu2 %v994_v8  ;;  %1021 = vmatpush.bf16.msra.mxu3 %v994_v8 }
  0x27   : > { %530 = vmatpush.bf16.msra.mxu1 %v994_v8  ;;  %461 = vmatpush.bf16.msra.mxu0 %v994_v8 }
  0x29   : > { %971 = vmatmul.msk.bf16.vlgmr.msra.gmra.mxu2 %vm425_vm1, %v1003_v9  ;;  %974 = vmatmul.msk.bf16.vlgmr.msra.gmra.mxu3 %vm425_vm1, %v1006_v10 }
  0x2a   : > { %984 = vmatmul.msk.bf16.vlgmr.msra.gmra.mxu1 %vm425_vm1, %v1008_v11  ;;  %968 = vmatmul.msk.bf16.vlgmr.msra.gmra.mxu0 %vm425_vm1, %v1000_v12 }
  0x39   : > { %972 = vmatmul.msk.bf16.gmra.mxu2 %vm425_vm1, %v1004_v13  ;;  %975 = vmatmul.msk.bf16.gmra.mxu3 %vm425_vm1, %v1007_v14 }
  0x3a   : > { %969 = vmatmul.msk.bf16.gmra.mxu0 %vm425_vm1, %v1001_v15  ;;  %985 = vmatmul.msk.bf16.gmra.mxu1 %vm425_vm1, %v1009_v16 }
  0x49   : > { %973 = vmatmul.msk.bf16.gmra.mxu2 %vm425_vm1, %v1005_v17 }
  0x4a   : > { %970 = vmatmul.msk.bf16.gmra.mxu0 %vm425_vm1, %v1002_v18 }
  0xa7   : > { %v532_v19 = vpop.f32.mrf.mxu1  ;;  %v1217_v21 = vpop.f32.mrf.mxu0 }
  0xa8   : > { %648 = vrot.lane.b32.xlu1 %v532_v19, %s1106_s7  ;;  %586 = vrot.lane.b32.xlu2 %v532_v19, %s1107_s8 }
  0xac   : > { %v1213_v20 = vpop.f32.mrf.mxu2  ;;  %v1219_v22 = vpop.f32.mrf.mxu3 }
  0xad   : > { %628 = vrot.lane.b32.xlu0 %v1213_v20, %s1106_s7 }
  0xaf   : > { %v1233_v24 = vpop.f32.mrf.mxu0  ;;  %v534_v25 = vpop.f32.mrf.mxu1 }
  0xb0   : > { %578 = vrot.lane.b32.xlu1 %v1219_v22, %s1107_s8  ;;  %566 = vrot.lane.b32.xlu2 %v1213_v20, %s1107_s8 }
  0xb4   : > { %v1225_v23 = vpop.f32.mrf.mxu2  ;;  %v1235_v26 = vpop.f32.mrf.mxu3 }
  0xb5   : > { %640 = vrot.lane.b32.xlu0 %v1219_v22, %s1106_s7 }
  0xb7   : > { %v1244_v28 = vpop.f32.mrf.mxu0  ;;  %v537_v37 = vpop.f32.mrf.mxu1 }
  0xb8   : > { %630 = vrot.lane.b32.xlu1 %v1225_v23, %s1106_s7  ;;  %568 = vrot.lane.b32.xlu2 %v1225_v23, %s1107_s8 }
  0xbc   : > { %v1237_v27 = vpop.f32.mrf.mxu2  ;;  %v498_v29 = vpop.f32.mrf.mxu3 }
  0xbd   : > { %588 = vrot.lane.b32.xlu0 %v534_v25, %s1107_s8 }
  0xbf   : > { %v1254_v31 = vpop.f32.mrf.mxu0  ;;  %v539_v38 = vpop.f32.mrf.mxu1 }
  0xc0   : > { %642 = vrot.lane.b32.xlu1 %v1235_v26, %s1106_s7  ;;  %580 = vrot.lane.b32.xlu2 %v1235_v26, %s1107_s8 }
  0xc4   : > { %v1248_v30 = vpop.f32.mrf.mxu2  ;;  %v1258_v32 = vpop.f32.mrf.mxu3 }
  0xc5   : > { %558 = vrot.lane.b32.xlu0 %v1244_v28, %s1107_s8 }
  0xc7   : > { %v473_v33 = vpop.f32.mrf.mxu0 }
  0xc8   : > { %632 = vrot.lane.b32.xlu2 %v1237_v27, %s1106_s7  ;;  %572 = vrot.lane.b32.xlu1 %v1248_v30, %s1107_s8 }
  0xcc   : > { %v488_v34 = vpop.f32.mrf.mxu2 }
  0xcd   : > { %570 = vrot.lane.b32.xlu0 %v1237_v27, %s1107_s8 }
  0xcf   : > { %v475_v35 = vpop.f32.mrf.mxu0 }
  0xd0   : > { %644 = vrot.lane.b32.xlu2 %v498_v29, %s1106_s7  ;;  %584 = vrot.lane.b32.xlu1 %v1258_v32, %s1107_s8 }
  0xd4   : > { %v490_v36 = vpop.f32.mrf.mxu2 }
  0xd5   : > { %582 = vrot.lane.b32.xlu0 %v498_v29, %s1107_s8 }
  0xd8   : > { %574 = vrot.lane.b32.xlu2 %v488_v34, %s1107_s8  ;;  %562 = vrot.lane.b32.xlu1 %v473_v33, %s1107_s8 }
  0xdd   : > { %560 = vrot.lane.b32.xlu0 %v1254_v31, %s1107_s8 }
  0xe0   : > { %624 = vrot.lane.b32.xlu1 %v473_v33, %s1106_s7  ;;  %626 = vrot.lane.b32.xlu2 %v475_v35, %s1106_s7 }
  0xe5   : > { %634 = vrot.lane.b32.xlu0 %v1248_v30, %s1106_s7 }
  0xe8   : > { %636 = vrot.lane.b32.xlu1 %v488_v34, %s1106_s7  ;;  %638 = vrot.lane.b32.xlu2 %v490_v36, %s1106_s7 }
  0xed   : > { %646 = vrot.lane.b32.xlu0 %v1258_v32, %s1106_s7 }
  0xf0   : > { %650 = vrot.lane.b32.xlu2 %v534_v25, %s1106_s7  ;;  %564 = vrot.lane.b32.xlu1 %v475_v35, %s1107_s8 }
  0xf5   : > { %576 = vrot.lane.b32.xlu0 %v490_v36, %s1107_s8 }
  0xf8   : > { %654 = vrot.lane.b32.xlu1 %v539_v38, %s1106_s7 }
  0xfd   : > { %652 = vrot.lane.b32.xlu0 %v537_v37, %s1106_s7 }
 0x102   : > { %v587_v39 = vpop.permute.xlu2 %586 }
 0x103   : > { %v1281_v40 = vadd.f32 %v587_v39, %v498_v29 }
 0x10a   : > { %v567_v41 = vpop.permute.xlu2 %566 }
 0x10b   : > { %v610_v48 = vadd.f32 %v567_v41, %v473_v33 }
 0x112   : > { %v569_v42 = vpop.permute.xlu2 %568 }
 0x113   : > { %v1283_v43 = vadd.f32 %v569_v42, %v475_v35 }
 0x11a   : > { %v649_v44 = vpop.permute.xlu1 %648  ;;  %v581_v45 = vpop.permute.xlu2 %580 }
 0x11b   : > { %v1286_v46 = vadd.f32 %v581_v45, %v490_v36 }
 0x11f   : > { %v1288_v47 = vpop.permute.xlu0 %628 }
 0x122   : > { %v579_v50 = vpop.permute.xlu1 %578  ;;  %v633_v51 = vpop.permute.xlu2 %632 }
 0x123   : > { %v676_v52 = vadd.f32 %v633_v51, %v610_v48  ;;  %v616_v56 = vadd.f32 %v579_v50, %v488_v34 }
 0x125   : > { %v696_v53 = vadd.f32 %v1295_v49, %v676_v52 }
 0x127   : > { %vm712_vm2 = vcmp.ge.f32.partialorder %v696_v53, 0.0  ;;  %v728_v54 = vmul.f32 0.05, %v696_v53  ;;  %v641_v55 = vpop.permute.xlu0 %640 }
 0x129   : > { %v744_v57 = vsel %vm712_vm2, %v696_v53, %v728_v54 }
 0x12a   : > { %v760_v58 = vpack.c.bf16 %v744_v57, %v744_v57  ;;  %v1303_v59 = vpop.permute.xlu1 %630  ;;  %v645_v60 = vpop.permute.xlu2 %644 }
 0x12b   : > { %v682_v61 = vadd.f32 %v645_v60, %v616_v56 }
 0x12c   : > { %777 = vst.msk [vmem:[%s1301_s16 + $0x10] sm:$0xf] %vm772_vm3, %v760_v58 }
 0x12d   : > { %v702_v62 = vadd.f32 %v1295_v49, %v682_v61 }
 0x12f   : > { %vm718_vm4 = vcmp.ge.f32.partialorder %v702_v62, 0.0  ;;  %v734_v63 = vmul.f32 0.05, %v702_v62  ;;  %v1308_v0 = vpop.permute.xlu0 %588 }
 0x131   : > { %v750_v1 = vsel %vm718_vm4, %v702_v62, %v734_v63 }
 0x132   : > { %v766_v2 = vpack.c.bf16 %v750_v1, %v750_v1  ;;  %v1310_v3 = vpop.permute.xlu1 %642  ;;  %v575_v4 = vpop.permute.xlu2 %574 }
 0x133   : > { %v614_v5 = vadd.f32 %v575_v4, %v1237_v27 }
 0x134   : > { %783 = vst.msk [vmem:[%s1301_s16 + $0x28] sm:$0xf] %vm772_vm3, %v766_v2 }
 0x135   : > { %v680_v6 = vadd.f32 %v641_v55, %v614_v5 }
 0x137   : > { %v700_v7 = vadd.f32 %v1295_v49, %v680_v6  ;;  %v559_v8 = vpop.permute.xlu0 %558 }
 0x139   : > { %vm716_vm5 = vcmp.ge.f32.partialorder %v700_v7, 0.0  ;;  %v732_v9 = vmul.f32 0.05, %v700_v7 }
 0x13a   : > { %v573_v10 = vpop.permute.xlu1 %572  ;;  %v627_v11 = vpop.permute.xlu2 %626 }
 0x13b   : > { %v748_v12 = vsel %vm716_vm5, %v700_v7, %v732_v9  ;;  %v613_v15 = vadd.f32 %v573_v10, %v1225_v23 }
 0x13c   : > { %v764_v13 = vpack.c.bf16 %v748_v12, %v748_v12 }
 0x13e   : > { %781 = vst.msk [vmem:[%s1301_s16 + $0x20] sm:$0xf] %vm772_vm3, %v764_v13 }
 0x13f   : > { %v571_v14 = vpop.permute.xlu0 %570 }
 0x140   : > { %v612_v4 = vadd.f32 %v571_v14, %v1213_v20 }
 0x142   : > { %v585_v16 = vpop.permute.xlu1 %584  ;;  %v639_v17 = vpop.permute.xlu2 %638 }
 0x143   : > { %v679_v18 = vadd.f32 %v639_v17, %v613_v15  ;;  %v619_v33 = vadd.f32 %v585_v16, %v1235_v26 }
 0x145   : > { %v699_v19 = vadd.f32 %v1295_v49, %v679_v18 }
 0x147   : > { %vm715_vm6 = vcmp.ge.f32.partialorder %v699_v19, 0.0  ;;  %v731_v25 = vmul.f32 0.05, %v699_v19  ;;  %v583_v27 = vpop.permute.xlu0 %582 }
 0x148   : > { %v618_v29 = vadd.f32 %v583_v27, %v1219_v22 }
 0x149   : > { %v747_v34 = vsel %vm715_vm6, %v699_v19, %v731_v25 }
 0x14a   : > { %v763_v35 = vpack.c.bf16 %v747_v34, %v747_v34  ;;  %v684_v36 = vadd.f32 %v649_v44, %v618_v29  ;;  %v563_v37 = vpop.permute.xlu1 %562  ;;  %v651_v38 = vpop.permute.xlu2 %650 }
 0x14b   : > { %v608_v23 = vadd.f32 %v563_v37, %v1244_v28  ;;  %v685_v39 = vadd.f32 %v651_v38, %v619_v33  ;;  %v606_v28 = vadd.f32 %v559_v8, %v1217_v21  ;;  %v621_v37 = vadd.f32 %v1308_v0, %v1258_v32 }
 0x14c   : > { %780 = vst.msk [vmem:[%s1301_s16 + $0x1c] sm:$0xf] %vm772_vm3, %v763_v35  ;;  %v704_v41 = vadd.f32 %v1295_v49, %v684_v36 }
 0x14d   : > { %v674_v42 = vadd.f32 %v1288_v47, %v608_v23  ;;  %v705_v45 = vadd.f32 %v1295_v49, %v685_v39 }
 0x14e   : > { %vm720_vm7 = vcmp.ge.f32.partialorder %v704_v41, 0.0  ;;  %v736_v22 = vmul.f32 0.05, %v704_v41 }
 0x14f   : > { %v694_v26 = vadd.f32 %v1295_v49, %v674_v42  ;;  %vm721_vm8 = vcmp.ge.f32.partialorder %v705_v45, 0.0  ;;  %v737_v44 = vmul.f32 0.05, %v705_v45  ;;  %v561_v48 = vpop.permute.xlu0 %560 }
 0x150   : > { %v752_v50 = vsel %vm720_vm7, %v704_v41, %v736_v22  ;;  %v607_v51 = vadd.f32 %v561_v48, %v1233_v24 }
 0x151   : > { %v768_v52 = vpack.c.bf16 %v752_v50, %v752_v50  ;;  %vm710_vm9 = vcmp.ge.f32.partialorder %v694_v26, 0.0  ;;  %v726_v47 = vmul.f32 0.05, %v694_v26  ;;  %v753_v53 = vsel %vm721_vm8, %v705_v45, %v737_v44 }
 0x152   : > { %v769_v54 = vpack.c.bf16 %v753_v53, %v753_v53  ;;  %v673_v55 = vadd.f32 %v627_v11, %v607_v51  ;;  %v625_v56 = vpop.permute.xlu1 %624 }
 0x153   : > { %785 = vst.msk [vmem:[%s1301_s16 + $0x30] sm:$0xf] %vm772_vm3, %v768_v52  ;;  %v742_v57 = vsel %vm710_vm9, %v694_v26, %v726_v47  ;;  %v672_v58 = vadd.f32 %v625_v56, %v606_v28 }
 0x154   : > { %v758_v60 = vpack.c.bf16 %v742_v57, %v742_v57  ;;  %786 = vst.msk [vmem:[%s1301_s16 + $0x34] sm:$0xf] %vm772_vm3, %v769_v54  ;;  %v693_v21 = vadd.f32 %v1295_v49, %v673_v55 }
 0x155   : > { %v692_v61 = vadd.f32 %v1295_v49, %v672_v58 }
 0x156   : > { %775 = vst.msk [vmem:[%s1301_s16 + $0x8] sm:$0xf] %vm772_vm3, %v758_v60  ;;  %vm709_vm10 = vcmp.ge.f32.partialorder %v693_v21, 0.0  ;;  %v725_v24 = vmul.f32 0.05, %v693_v21 }
 0x157   : > { %vm708_vm11 = vcmp.ge.f32.partialorder %v692_v61, 0.0  ;;  %v724_v62 = vmul.f32 0.05, %v692_v61  ;;  %v635_v63 = vpop.permute.xlu0 %634 }
 0x158   : > { %v741_v1 = vsel %vm709_vm10, %v693_v21, %v725_v24  ;;  %v677_v2 = vadd.f32 %v635_v63, %v1283_v43 }
 0x159   : > { %v757_v5 = vpack.c.bf16 %v741_v1, %v741_v1  ;;  %v740_v6 = vsel %vm708_vm11, %v692_v61, %v724_v62 }
 0x15a   : > { %v756_v7 = vpack.c.bf16 %v740_v6, %v740_v6  ;;  %v697_v8 = vadd.f32 %v1295_v49, %v677_v2  ;;  %v637_v9 = vpop.permute.xlu1 %636 }
 0x15b   : > { %774 = vst.msk [vmem:[%s1301_s16 + $0x4] sm:$0xf] %vm772_vm3, %v757_v5  ;;  %v678_v10 = vadd.f32 %v637_v9, %v612_v4 }
 0x15c   : > { %773 = vst.msk [vmem:[%s1301_s16] sm:$0xf] %vm772_vm3, %v756_v7  ;;  %vm713_vm12 = vcmp.ge.f32.partialorder %v697_v8, 0.0  ;;  %v729_v11 = vmul.f32 0.05, %v697_v8 }
 0x15d   : > { %v698_v12 = vadd.f32 %v1295_v49, %v678_v10 }
 0x15e   : > { %v745_v43 = vsel %vm713_vm12, %v697_v8, %v729_v11 }
 0x15f   : > { %v761_v13 = vpack.c.bf16 %v745_v43, %v745_v43  ;;  %vm714_vm13 = vcmp.ge.f32.partialorder %v698_v12, 0.0  ;;  %v730_v20 = vmul.f32 0.05, %v698_v12  ;;  %v647_v14 = vpop.permute.xlu0 %646 }
 0x160   : > { %v683_v15 = vadd.f32 %v647_v14, %v1286_v46 }
 0x161   : > { %778 = vst.msk [vmem:[%s1301_s16 + $0x14] sm:$0xf] %vm772_vm3, %v761_v13  ;;  %v746_v16 = vsel %vm714_vm13, %v698_v12, %v730_v20 }
 0x162   : > { %v762_v17 = vpack.c.bf16 %v746_v16, %v746_v16  ;;  %v703_v18 = vadd.f32 %v1295_v49, %v683_v15  ;;  %v565_v19 = vpop.permute.xlu1 %564 }
 0x163   : > { %v609_v25 = vadd.f32 %v565_v19, %v1254_v31 }
 0x164   : > { %779 = vst.msk [vmem:[%s1301_s16 + $0x18] sm:$0xf] %vm772_vm3, %v762_v17  ;;  %vm719_vm14 = vcmp.ge.f32.partialorder %v703_v18, 0.0  ;;  %v735_v27 = vmul.f32 0.05, %v703_v18 }
 0x165   : > { %v675_v29 = vadd.f32 %v1303_v59, %v609_v25 }
 0x166   : > { %v751_v33 = vsel %vm719_vm14, %v703_v18, %v735_v27 }
 0x167   : > { %v767_v34 = vpack.c.bf16 %v751_v33, %v751_v33  ;;  %v695_v46 = vadd.f32 %v1295_v49, %v675_v29  ;;  %v577_v35 = vpop.permute.xlu0 %576 }
 0x168   : > { %v615_v36 = vadd.f32 %v577_v35, %v1248_v30 }
 0x169   : > { %784 = vst.msk [vmem:[%s1301_s16 + $0x2c] sm:$0xf] %vm772_vm3, %v767_v34  ;;  %vm711_vm15 = vcmp.ge.f32.partialorder %v695_v46, 0.0  ;;  %v727_v31 = vmul.f32 0.05, %v695_v46 }
 0x16a   : > { %v681_v38 = vadd.f32 %v1310_v3, %v615_v36  ;;  %v655_v23 = vpop.permute.xlu1 %654 }
 0x16b   : > { %v743_v39 = vsel %vm711_vm15, %v695_v46, %v727_v31  ;;  %v687_v59 = vadd.f32 %v655_v23, %v621_v37 }
 0x16c   : > { %v759_v41 = vpack.c.bf16 %v743_v39, %v743_v39  ;;  %v701_v42 = vadd.f32 %v1295_v49, %v681_v38 }
 0x16d   : > { %v707_v45 = vadd.f32 %v1295_v49, %v687_v59 }
 0x16e   : > { %776 = vst.msk [vmem:[%s1301_s16 + $0xc] sm:$0xf] %vm772_vm3, %v759_v41  ;;  %vm717_vm0 = vcmp.ge.f32.partialorder %v701_v42, 0.0  ;;  %v733_v30 = vmul.f32 0.05, %v701_v42 }
 0x16f   : > { %vm723_vm1 = vcmp.ge.f32.partialorder %v707_v45, 0.0  ;;  %v739_v32 = vmul.f32 0.05, %v707_v45  ;;  %v653_v0 = vpop.permute.xlu0 %652 }
 0x170   : > { %v749_v22 = vsel %vm717_vm0, %v701_v42, %v733_v30  ;;  %v686_v3 = vadd.f32 %v653_v0, %v1281_v40 }
 0x171   : > { %v765_v26 = vpack.c.bf16 %v749_v22, %v749_v22  ;;  %v755_v44 = vsel %vm723_vm1, %v707_v45, %v739_v32 }
 0x172   : > { %v771_v48 = vpack.c.bf16 %v755_v44, %v755_v44  ;;  %v706_v28 = vadd.f32 %v1295_v49, %v686_v3 }
 0x173   : > { %782 = vst.msk [vmem:[%s1301_s16 + $0x24] sm:$0xf] %vm772_vm3, %v765_v26 }
 0x174   : > { %788 = vst.msk [vmem:[%s1301_s16 + $0x3c] sm:$0xf] %vm772_vm3, %v771_v48  ;;  %vm722_vm2 = vcmp.ge.f32.partialorder %v706_v28, 0.0  ;;  %v738_v50 = vmul.f32 0.05, %v706_v28 }
 0x176   : > { %v754_v51 = vsel %vm722_vm2, %v706_v28, %v738_v50 }
 0x177   : > { %v770_v52 = vpack.c.bf16 %v754_v51, %v754_v51 }
 0x179   : > { %787 = vst.msk [vmem:[%s1301_s16 + $0x38] sm:$0xf] %vm772_vm3, %v770_v52 }
 0x17a PF: > { %s14_s19 = sadd.s32 1, %s1104_s19   ;;  %s1394_s15 = smov %s1096_s17 }
 0x17b   : > { %p11_p10 = scmp.ge.s32.totalorder %s14_s19, 6   ;;  %s1395_s16 = smov %s1100_s18 }
 0x17c   : > { %s1396_s17 = smov %s1399_s20  ;;  %s1397_s18 = smov %s1403_s21 }
 0x17d   :  { %13 = sbr.rel (!%p11_p10) target bundleno = 3 (0x3), region = 69 }

// kernel: _lambda_.70
= control target key start
LH: loop header
LB: loop body
LE: loop exit
PB: predicated region body
PF: predicated region fallthrough
CT: control target
= control target key end

     0   :  { %s1261_s18 = smov 0   ;;  %s1263_s19 = smov 0   ;;  %s1550_s0 = inlined_call_operand.vmem [shape: bf16[2,288,90], index: 0, kind: input, shape index: {}, may-alias: {0,1}]   ;;  %s1551_s1 = inlined_call_operand.vmem [shape: bf16[2,288,90], index: 1, kind: input, shape index: {}, may-alias: {0,1}]   ;;  %s1552_s2 = inlined_call_operand.vmem [shape: bf16[90,96], index: 2, kind: input, shape index: {}]   ;;  %s1553_s3 = inlined_call_operand.vmem [shape: f32[1,30], index: 3, kind: input, shape index: {}]   ;;  %s1554_s4 = inlined_call_operand.vmem [shape: bf16[2,256,30], index: 4, kind: input, shape index: {}]   ;;  %s1555_s5 = inlined_call_operand.vmem [shape: bf16[2,256,30], index: 5, kind: output, shape index: {}]  }
   0x1   :  { %s1265_s20 = smov 0   ;;  %s1267_s21 = smov 0  }
   0x2   :  { %s1269_s22 = smov 0  }
   0x3 LB: > { %s24_s23 = sadd.s32 1, %s1219_s20  ;;  %s27_s24 = sadd.s32 1, %s1223_s21  ;;  %s1227_s22 = sphi %s1269_s22, %s15_s22   ;;  %s1223_s21 = sphi %s1267_s21, %s1559_s21   ;;  %s1219_s20 = sphi %s1265_s20, %s1558_s20   ;;  %s1215_s19 = sphi %s1263_s19, %s1557_s19   ;;  %s1211_s18 = sphi %s1261_s18, %s1556_s18  }
   0x4   : > { %p25_p0 = scmp.ge.s32.totalorder %s24_s23, 2  ;;  %p984_p1 = scmp.ge.s32.totalorder %s1227_s22, 1 }
   0x5   : > { %p266_p2 = scmp.lt.s32.totalorder %s1227_s22, 5 }
   0x6   : > { %s1561_s23 = smov (%p25_p0, %s24_s23), 0  ;;  %s1563_s24 = smov (!%p25_p0, %s27_s24), %s1223_s21 }
   0x7   : > { %p267_p3 = pnand %p984_p1, %p266_p2  ;;  %p29_p4 = scmp.ge.s32.totalorder %s1563_s24, 2 }
   0x8   : > { %s1300_s29 = sshll.u32 (!%p267_p3), %s1211_s18, 4  ;;  %p333_p5 = scmp.lt.s32.totalorder (!%p267_p3), %s1215_s19, 1 }
   0x9   : > { %s1565_s24 = smov (%p29_p4, %s1563_s24), 0  ;;  %270 = sbr.rel (%p267_p3) target bundleno = 377 (0x179), region = 40 }
   0xa   : > { %s1076_s30 = sshll.u32 (!%p267_p3), %s1211_s18, 2  ;;  %p335_p6 = scmp.lt.s32.totalorder (!%p267_p3), %s1300_s29, 35 }
   0xb   : > { %s1077_s8 = sadd.s32 (!%p267_p3), 4, %s1076_s30  ;;  %s1230_s13 = smov (!%p267_p3), 96  }
   0xc   : > { %p348_p7 = scmp.lt.s32.totalorder (!%p267_p3), %s1077_s8, 8  ;;  %p367_p9 = scmp.lt.s32.totalorder (!%p267_p3), %s1300_s29, 31 }
   0xe   : > { %v1050_v0 = vld [vmem:[%s1552_s2 + $0x28] sm:$0xf]  ;;  %v1083_v1 = vld [vmem:[%s1552_s2 + $0x28] sm:$0x10]  ;;  %vm513_vm0 = vcmask 1044480   ;;  %v1082_v4 = vld [vmem:[%s1552_s2 + $0x20] sm:$0xff] }
   0xf   : > { %v1051_v2 = vor.u32 %v1083_v1, %v1050_v0  ;;  %s1567_s19 = smov (!%p333_p5, %s1215_s19), 1  ;;  %v1081_v5 = vld [vmem:[%s1552_s2 + $0x18] sm:$0xff]  ;;  %s1569_s8 = smov (!%p348_p7, %s1077_s8), 8  ;;  %v1080_v6 = vld [vmem:[%s1552_s2 + $0x10] sm:$0xff]  ;;  %v1079_v7 = vld [vmem:[%s1552_s2 + $0x8] sm:$0xff]  ;;  %vm488_vm1 = vcmask 736256  }
  0x10   : > { %s336_s11 = scalar_select %p335_p6, %s1300_s29, 35  ;;  %v1078_v8 = vld [vmem:[%s1552_s2] sm:$0xff]  ;;  %vm835_vm2 = vcmask 240640  }
  0x11   : > { %v515_v3 = vsel %vm513_vm0, %v1051_v2, 0  ;;  %s1145_s12 = smul.u32 36, %s1567_s19  ;;  %s988_s15 = sshll.u32 %s1569_s8, 2  ;;  %v1431_v50 = vld [vmem:[%s1553_s3] ss:$0 sm:$0xff] }
  0x12   : > { %1133 = vmatpush.bf16.msra.mxu2 %v515_v3  ;;  %1134 = vmatpush.bf16.msra.mxu3 %v515_v3  ;;  %p353_p8 = scmp.lt.s32.totalorder %s988_s15, 35  ;;  %s1573_s29 = smov (!%p367_p9, %s1300_s29), 31 }
  0x13   : > { %588 = vmatpush.bf16.msra.mxu1 %v515_v3  ;;  %519 = vmatpush.bf16.msra.mxu0 %v515_v3  ;;  %s338_s16 = sadd.s32 %s1145_s12, %s336_s11  ;;  %s991_s14 = sshll.u32 %s1567_s19, 5 }
  0x14   : > { %s1571_s15 = smov (!%p353_p8, %s988_s15), 35  ;;  %s986_s25 = sshll.u32 %s338_s16, 2 }
  0x15   : > { %s356_s26 = sadd.s32 %s1145_s12, %s1571_s15  ;;  %s340_s8 = scalar_lea.vmem %s1550_s0, %s986_s25 }
  0x16   : > { %1135 = vmatpush.bf16.msra.mxu2 %v1082_v4  ;;  %1136 = vmatpush.bf16.msra.mxu3 %v1082_v4  ;;  %s989_s27 = sshll.u32 %s356_s26, 2  ;;  %v1087_v9 = vld [vmem:[%s340_s8 + $0x18] sm:$0xff]  ;;  %v1090_v10 = vld [vmem:[%s340_s8 + $0x30] sm:$0xff]  ;;  %v1084_v12 = vld [vmem:[%s340_s8] sm:$0xff]  ;;  %s1229_s12 = smov 64  }
  0x17   : > { %589 = vmatpush.bf16.msra.mxu1 %v1082_v4  ;;  %520 = vmatpush.bf16.msra.mxu0 %v1082_v4  ;;  %s358_s11 = scalar_lea.vmem %s1551_s1, %s989_s27  ;;  %v1088_v13 = vld [vmem:[%s340_s8 + $0x20] sm:$0xff]  ;;  %v1091_v14 = vld [vmem:[%s340_s8 + $0x38] sm:$0xff]  ;;  %v1085_v15 = vld [vmem:[%s340_s8 + $0x8] sm:$0xff]  ;;  %s370_s15 = sadd.s32 %s991_s14, %s1573_s29 }
  0x18   : > { %v1092_v11 = vld [vmem:[%s358_s11] sm:$0xff]  ;;  %v1093_v16 = vld [vmem:[%s358_s11 + $0x8] sm:$0xff]  ;;  %v1086_v18 = vld [vmem:[%s340_s8 + $0x10] sm:$0xff]  ;;  %s992_s16 = sshll.u32 %s370_s15, 2 }
  0x19   : > { %v1089_v17 = vld [vmem:[%s340_s8 + $0x28] sm:$0xff]  ;;  %s1421_s25 = scalar_lea.vmem %s1554_s4, %s992_s16  ;;  %s1438_s28 = scalar_lea.vmem %s1555_s5, %s992_s16 }
  0x1a   : > { %1137 = vmatpush.bf16.msra.mxu2 %v1081_v5  ;;  %1138 = vmatpush.bf16.msra.mxu3 %v1081_v5  ;;  %v1426_v48 = vld [vmem:[%s1421_s25 + $0x10] sm:$0xff]   ;;  %v1441_v58 = vld [vmem:[%s1421_s25 + $0x28] sm:$0xff]  }
  0x1b   : > { %590 = vmatpush.bf16.msra.mxu1 %v1081_v5  ;;  %521 = vmatpush.bf16.msra.mxu0 %v1081_v5  ;;  %v1104_v53 = vunpack.c.l.bf16 %v1426_v48  ;;  %v1116_v63 = vunpack.c.l.bf16 %v1441_v58 }
  0x1e   : > { %1139 = vmatpush.bf16.msra.mxu2 %v1080_v6  ;;  %1140 = vmatpush.bf16.msra.mxu3 %v1080_v6 }
  0x1f   : > { %591 = vmatpush.bf16.msra.mxu1 %v1080_v6  ;;  %522 = vmatpush.bf16.msra.mxu0 %v1080_v6  ;;  %v1454_v6 = vld [vmem:[%s1421_s25 + $0x20] sm:$0xff]  }
  0x22   : > { %1141 = vmatpush.bf16.msra.mxu2 %v1079_v7  ;;  %1142 = vmatpush.bf16.msra.mxu3 %v1079_v7 }
  0x23   : > { %592 = vmatpush.bf16.msra.mxu1 %v1079_v7  ;;  %523 = vmatpush.bf16.msra.mxu0 %v1079_v7 }
  0x26   : > { %1143 = vmatpush.bf16.msra.mxu2 %v1078_v8  ;;  %1144 = vmatpush.bf16.msra.mxu3 %v1078_v8 }
  0x27   : > { %593 = vmatpush.bf16.msra.mxu1 %v1078_v8  ;;  %524 = vmatpush.bf16.msra.mxu0 %v1078_v8 }
  0x29   : > { %1055 = vmatmul.msk.bf16.vlgmr.msra.gmra.mxu2 %vm488_vm1, %v1087_v9  ;;  %1058 = vmatmul.msk.bf16.vlgmr.msra.gmra.mxu3 %vm488_vm1, %v1090_v10  ;;  %v1112_v9 = vunpack.c.l.bf16 %v1454_v6 }
  0x2a   : > { %1068 = vmatmul.msk.bf16.vlgmr.msra.gmra.mxu1 %vm488_vm1, %v1092_v11  ;;  %1052 = vmatmul.msk.bf16.vlgmr.msra.gmra.mxu0 %vm488_vm1, %v1084_v12 }
  0x39   : > { %1056 = vmatmul.msk.bf16.gmra.mxu2 %vm488_vm1, %v1088_v13  ;;  %1059 = vmatmul.msk.bf16.gmra.mxu3 %vm488_vm1, %v1091_v14 }
  0x3a   : > { %1053 = vmatmul.msk.bf16.gmra.mxu0 %vm488_vm1, %v1085_v15  ;;  %1069 = vmatmul.msk.bf16.gmra.mxu1 %vm488_vm1, %v1093_v16 }
  0x49   : > { %1057 = vmatmul.msk.bf16.gmra.mxu2 %vm488_vm1, %v1089_v17 }
  0x4a   : > { %1054 = vmatmul.msk.bf16.gmra.mxu0 %vm488_vm1, %v1086_v18  ;;  %v1464_v18 = vld [vmem:[%s1421_s25 + $0x18] sm:$0xff]  }
  0xa7   : > { %v595_v19 = vpop.f32.mrf.mxu1  ;;  %v1345_v21 = vpop.f32.mrf.mxu0 }
  0xa8   : > { %711 = vrot.lane.b32.xlu1 %v595_v19, %s1229_s12  ;;  %649 = vrot.lane.b32.xlu2 %v595_v19, %s1230_s13 }
  0xac   : > { %v1341_v20 = vpop.f32.mrf.mxu2  ;;  %v1347_v22 = vpop.f32.mrf.mxu3 }
  0xad   : > { %691 = vrot.lane.b32.xlu0 %v1341_v20, %s1229_s12 }
  0xaf   : > { %v1361_v24 = vpop.f32.mrf.mxu0  ;;  %v597_v25 = vpop.f32.mrf.mxu1 }
  0xb0   : > { %641 = vrot.lane.b32.xlu1 %v1347_v22, %s1230_s13  ;;  %629 = vrot.lane.b32.xlu2 %v1341_v20, %s1230_s13 }
  0xb4   : > { %v1353_v23 = vpop.f32.mrf.mxu2  ;;  %v1363_v26 = vpop.f32.mrf.mxu3 }
  0xb5   : > { %703 = vrot.lane.b32.xlu0 %v1347_v22, %s1229_s12 }
  0xb7   : > { %v1372_v28 = vpop.f32.mrf.mxu0  ;;  %v600_v37 = vpop.f32.mrf.mxu1 }
  0xb8   : > { %693 = vrot.lane.b32.xlu1 %v1353_v23, %s1229_s12  ;;  %631 = vrot.lane.b32.xlu2 %v1353_v23, %s1230_s13 }
  0xbc   : > { %v1365_v27 = vpop.f32.mrf.mxu2  ;;  %v561_v29 = vpop.f32.mrf.mxu3 }
  0xbd   : > { %651 = vrot.lane.b32.xlu0 %v597_v25, %s1230_s13 }
  0xbf   : > { %v1382_v31 = vpop.f32.mrf.mxu0  ;;  %v602_v38 = vpop.f32.mrf.mxu1 }
  0xc0   : > { %705 = vrot.lane.b32.xlu1 %v1363_v26, %s1229_s12  ;;  %643 = vrot.lane.b32.xlu2 %v1363_v26, %s1230_s13 }
  0xc4   : > { %v1376_v30 = vpop.f32.mrf.mxu2  ;;  %v1386_v32 = vpop.f32.mrf.mxu3 }
  0xc5   : > { %621 = vrot.lane.b32.xlu0 %v1372_v28, %s1230_s13 }
  0xc7   : > { %v536_v33 = vpop.f32.mrf.mxu0 }
  0xc8   : > { %695 = vrot.lane.b32.xlu2 %v1365_v27, %s1229_s12  ;;  %635 = vrot.lane.b32.xlu1 %v1376_v30, %s1230_s13 }
  0xcc   : > { %v551_v34 = vpop.f32.mrf.mxu2 }
  0xcd   : > { %633 = vrot.lane.b32.xlu0 %v1365_v27, %s1230_s13 }
  0xcf   : > { %v538_v35 = vpop.f32.mrf.mxu0 }
  0xd0   : > { %707 = vrot.lane.b32.xlu2 %v561_v29, %s1229_s12  ;;  %647 = vrot.lane.b32.xlu1 %v1386_v32, %s1230_s13 }
  0xd4   : > { %v553_v36 = vpop.f32.mrf.mxu2 }
  0xd5   : > { %645 = vrot.lane.b32.xlu0 %v561_v29, %s1230_s13 }
  0xd8   : > { %637 = vrot.lane.b32.xlu2 %v551_v34, %s1230_s13  ;;  %625 = vrot.lane.b32.xlu1 %v536_v33, %s1230_s13 }
  0xdd   : > { %623 = vrot.lane.b32.xlu0 %v1382_v31, %s1230_s13 }
  0xe0   : > { %687 = vrot.lane.b32.xlu1 %v536_v33, %s1229_s12  ;;  %689 = vrot.lane.b32.xlu2 %v538_v35, %s1229_s12 }
  0xe5   : > { %697 = vrot.lane.b32.xlu0 %v1376_v30, %s1229_s12 }
  0xe8   : > { %699 = vrot.lane.b32.xlu1 %v551_v34, %s1229_s12  ;;  %701 = vrot.lane.b32.xlu2 %v553_v36, %s1229_s12 }
  0xed   : > { %709 = vrot.lane.b32.xlu0 %v1386_v32, %s1229_s12 }
  0xf0   : > { %713 = vrot.lane.b32.xlu2 %v597_v25, %s1229_s12  ;;  %627 = vrot.lane.b32.xlu1 %v538_v35, %s1230_s13 }
  0xf5   : > { %639 = vrot.lane.b32.xlu0 %v553_v36, %s1230_s13 }
  0xf8   : > { %717 = vrot.lane.b32.xlu1 %v602_v38, %s1229_s12 }
  0xfd   : > { %715 = vrot.lane.b32.xlu0 %v600_v37, %s1229_s12 }
 0x102   : > { %v650_v39 = vpop.permute.xlu2 %649 }
 0x103   : > { %v1409_v40 = vadd.f32 %v650_v39, %v561_v29  ;;  %v1109_v29 = vunpack.c.h.bf16 %v1464_v18 }
 0x10a   : > { %v630_v41 = vpop.permute.xlu2 %629 }
 0x10b   : > { %v673_v49 = vadd.f32 %v630_v41, %v536_v33 }
 0x112   : > { %v632_v42 = vpop.permute.xlu2 %631 }
 0x113   : > { %v1412_v43 = vadd.f32 %v632_v42, %v538_v35 }
 0x11a   : > { %v712_v44 = vpop.permute.xlu1 %711  ;;  %v644_v45 = vpop.permute.xlu2 %643 }
 0x11b   : > { %v1416_v46 = vadd.f32 %v644_v45, %v553_v36  ;;  %v1131_v36 = vld [vmem:[%s1421_s25 + $0x30] sm:$0xff]  }
 0x11c   : > { %v1120_v42 = vunpack.c.l.bf16 %v1131_v36 }
 0x11f   : > { %v1423_v47 = vpop.permute.xlu0 %691 }
 0x122   : > { %v642_v51 = vpop.permute.xlu1 %641  ;;  %v696_v52 = vpop.permute.xlu2 %695 }
 0x123   : > { %v739_v54 = vadd.f32 %v696_v52, %v673_v49  ;;  %v679_v59 = vadd.f32 %v642_v51, %v551_v34 }
 0x125   : > { %v759_v55 = vadd.f32 %v1431_v50, %v739_v54 }
 0x127   : > { %v807_v56 = vadd.f32 %v1104_v53, %v759_v55  ;;  %v704_v57 = vpop.permute.xlu0 %703  ;;  %v1121_v53 = vunpack.c.h.bf16 %v1131_v36 }
 0x129   : > { %v823_v60 = vpack.c.bf16 %v807_v56, %v807_v56 }
 0x12a   : > { %v1443_v61 = vpop.permute.xlu1 %693  ;;  %v708_v62 = vpop.permute.xlu2 %707 }
 0x12b   : > { %840 = vst.msk [vmem:[%s1438_s28 + $0x10] sm:$0xf] %vm835_vm2, %v823_v60  ;;  %v745_v0 = vadd.f32 %v708_v62, %v679_v59  ;;  %v1095_v60 = vld [vmem:[%s1421_s25] sm:$0xff]  }
 0x12d   : > { %v765_v1 = vadd.f32 %v1431_v50, %v745_v0 }
 0x12f   : > { %v813_v2 = vadd.f32 %v1116_v63, %v765_v1  ;;  %v1449_v3 = vpop.permute.xlu0 %651 }
 0x131   : > { %v829_v4 = vpack.c.bf16 %v813_v2, %v813_v2 }
 0x132   : > { %v1451_v5 = vpop.permute.xlu1 %705  ;;  %v638_v7 = vpop.permute.xlu2 %637 }
 0x133   : > { %846 = vst.msk [vmem:[%s1438_s28 + $0x28] sm:$0xf] %vm835_vm2, %v829_v4  ;;  %v677_v8 = vadd.f32 %v638_v7, %v1365_v27 }
 0x135   : > { %v743_v10 = vadd.f32 %v704_v57, %v677_v8 }
 0x137   : > { %v763_v11 = vadd.f32 %v1431_v50, %v743_v10  ;;  %v622_v12 = vpop.permute.xlu0 %621 }
 0x138   : > { %v669_v0 = vadd.f32 %v622_v12, %v1345_v21 }
 0x139   : > { %v811_v13 = vadd.f32 %v1112_v9, %v763_v11  ;;  %v1096_v9 = vunpack.c.l.bf16 %v1095_v60 }
 0x13a   : > { %v636_v14 = vpop.permute.xlu1 %635  ;;  %v690_v15 = vpop.permute.xlu2 %689 }
 0x13b   : > { %v827_v16 = vpack.c.bf16 %v811_v13, %v811_v13  ;;  %v676_v19 = vadd.f32 %v636_v14, %v1353_v23  ;;  %v1473_v23 = vld [vmem:[%s1421_s25 + $0x8] sm:$0xff]  }
 0x13d   : > { %844 = vst.msk [vmem:[%s1438_s28 + $0x20] sm:$0xf] %vm835_vm2, %v827_v16 }
 0x13f   : > { %v634_v17 = vpop.permute.xlu0 %633 }
 0x142   : > { %v648_v25 = vpop.permute.xlu1 %647  ;;  %v702_v27 = vpop.permute.xlu2 %701 }
 0x143   : > { %v742_v33 = vadd.f32 %v702_v27, %v676_v19  ;;  %v682_v39 = vadd.f32 %v648_v25, %v1363_v26  ;;  %v675_v19 = vadd.f32 %v634_v17, %v1341_v20  ;;  %v1117_v20 = vunpack.c.h.bf16 %v1441_v58 }
 0x145   : > { %v762_v34 = vadd.f32 %v1431_v50, %v742_v33  ;;  %v1108_v33 = vunpack.c.l.bf16 %v1464_v18 }
 0x147   : > { %v810_v35 = vadd.f32 %v1109_v29, %v762_v34  ;;  %v646_v37 = vpop.permute.xlu0 %645 }
 0x148   : > { %v681_v38 = vadd.f32 %v646_v37, %v1347_v22  ;;  %v1100_v22 = vunpack.c.l.bf16 %v1473_v23 }
 0x149   : > { %v826_v41 = vpack.c.bf16 %v810_v35, %v810_v35 }
 0x14a   : > { %v747_v45 = vadd.f32 %v712_v44, %v681_v38  ;;  %v626_v49 = vpop.permute.xlu1 %625  ;;  %v714_v51 = vpop.permute.xlu2 %713 }
 0x14b   : > { %843 = vst.msk [vmem:[%s1438_s28 + $0x1c] sm:$0xf] %vm835_vm2, %v826_v41  ;;  %v671_v52 = vadd.f32 %v626_v49, %v1372_v28  ;;  %v748_v54 = vadd.f32 %v714_v51, %v682_v39 }
 0x14c   : > { %v767_v55 = vadd.f32 %v1431_v50, %v747_v45  ;;  %v1101_v45 = vunpack.c.h.bf16 %v1473_v23 }
 0x14d   : > { %v737_v26 = vadd.f32 %v1423_v47, %v671_v52  ;;  %v768_v56 = vadd.f32 %v1431_v50, %v748_v54  ;;  %v1097_v47 = vunpack.c.h.bf16 %v1095_v60  ;;  %v684_v54 = vadd.f32 %v1449_v3, %v1386_v32 }
 0x14e   : > { %v815_v44 = vadd.f32 %v1120_v42, %v767_v55 }
 0x14f   : > { %v757_v57 = vadd.f32 %v1431_v50, %v737_v26  ;;  %v816_v59 = vadd.f32 %v1121_v53, %v768_v56  ;;  %v624_v62 = vpop.permute.xlu0 %623  ;;  %v1132_v53 = vld [vmem:[%s1421_s25 + $0x38] sm:$0xff]  }
 0x150   : > { %v831_v28 = vpack.c.bf16 %v815_v44, %v815_v44  ;;  %v670_v63 = vadd.f32 %v624_v62, %v1361_v24  ;;  %v1125_v26 = vunpack.c.h.bf16 %v1132_v53 }
 0x151   : > { %v805_v1 = vadd.f32 %v1100_v22, %v757_v57  ;;  %v832_v2 = vpack.c.bf16 %v816_v59, %v816_v59 }
 0x152   : > { %848 = vst.msk [vmem:[%s1438_s28 + $0x30] sm:$0xf] %vm835_vm2, %v831_v28  ;;  %v736_v4 = vadd.f32 %v690_v15, %v670_v63  ;;  %v688_v7 = vpop.permute.xlu1 %687  ;;  %v1105_v15 = vunpack.c.h.bf16 %v1426_v48 }
 0x153   : > { %v821_v8 = vpack.c.bf16 %v805_v1, %v805_v1  ;;  %849 = vst.msk [vmem:[%s1438_s28 + $0x34] sm:$0xf] %vm835_vm2, %v832_v2  ;;  %v735_v10 = vadd.f32 %v688_v7, %v669_v0 }
 0x154   : > { %v756_v11 = vadd.f32 %v1431_v50, %v736_v4 }
 0x155   : > { %838 = vst.msk [vmem:[%s1438_s28 + $0x8] sm:$0xf] %vm835_vm2, %v821_v8  ;;  %v755_v21 = vadd.f32 %v1431_v50, %v735_v10 }
 0x156   : > { %v804_v24 = vadd.f32 %v1097_v47, %v756_v11 }
 0x157   : > { %v803_v12 = vadd.f32 %v1096_v9, %v755_v21  ;;  %v698_v13 = vpop.permute.xlu0 %697 }
 0x158   : > { %v820_v14 = vpack.c.bf16 %v804_v24, %v804_v24  ;;  %v740_v16 = vadd.f32 %v698_v13, %v1412_v43 }
 0x159   : > { %v819_v25 = vpack.c.bf16 %v803_v12, %v803_v12 }
 0x15a   : > { %837 = vst.msk [vmem:[%s1438_s28 + $0x4] sm:$0xf] %vm835_vm2, %v820_v14  ;;  %v760_v27 = vadd.f32 %v1431_v50, %v740_v16  ;;  %v700_v29 = vpop.permute.xlu1 %699 }
 0x15b   : > { %836 = vst.msk [vmem:[%s1438_s28] sm:$0xf] %vm835_vm2, %v819_v25  ;;  %v741_v34 = vadd.f32 %v700_v29, %v675_v19 }
 0x15c   : > { %v808_v35 = vadd.f32 %v1105_v15, %v760_v27 }
 0x15d   : > { %v761_v36 = vadd.f32 %v1431_v50, %v741_v34 }
 0x15e   : > { %v824_v48 = vpack.c.bf16 %v808_v35, %v808_v35 }
 0x15f   : > { %v809_v37 = vadd.f32 %v1108_v33, %v761_v36  ;;  %v710_v43 = vpop.permute.xlu0 %709 }
 0x160   : > { %841 = vst.msk [vmem:[%s1438_s28 + $0x14] sm:$0xf] %vm835_vm2, %v824_v48  ;;  %v746_v17 = vadd.f32 %v710_v43, %v1416_v46 }
 0x161   : > { %v825_v38 = vpack.c.bf16 %v809_v37, %v809_v37 }
 0x162   : > { %v766_v39 = vadd.f32 %v1431_v50, %v746_v17  ;;  %v628_v41 = vpop.permute.xlu1 %627 }
 0x163   : > { %842 = vst.msk [vmem:[%s1438_s28 + $0x18] sm:$0xf] %vm835_vm2, %v825_v38  ;;  %v672_v18 = vadd.f32 %v628_v41, %v1382_v31  ;;  %v1113_v31 = vunpack.c.h.bf16 %v1454_v6  ;;  %v1124_v6 = vunpack.c.l.bf16 %v1132_v53 }
 0x164   : > { %v814_v42 = vadd.f32 %v1117_v20, %v766_v39 }
 0x165   : > { %v738_v49 = vadd.f32 %v1443_v61, %v672_v18 }
 0x166   : > { %v830_v51 = vpack.c.bf16 %v814_v42, %v814_v42 }
 0x167   : > { %v758_v52 = vadd.f32 %v1431_v50, %v738_v49  ;;  %v640_v58 = vpop.permute.xlu0 %639 }
 0x168   : > { %847 = vst.msk [vmem:[%s1438_s28 + $0x2c] sm:$0xf] %vm835_vm2, %v830_v51  ;;  %v678_v46 = vadd.f32 %v640_v58, %v1376_v30 }
 0x169   : > { %v806_v55 = vadd.f32 %v1101_v45, %v758_v52 }
 0x16a   : > { %v744_v23 = vadd.f32 %v1451_v5, %v678_v46  ;;  %v718_v61 = vpop.permute.xlu1 %717 }
 0x16b   : > { %v822_v22 = vpack.c.bf16 %v806_v55, %v806_v55  ;;  %v750_v56 = vadd.f32 %v718_v61, %v684_v54 }
 0x16c   : > { %v764_v44 = vadd.f32 %v1431_v50, %v744_v23 }
 0x16d   : > { %839 = vst.msk [vmem:[%s1438_s28 + $0xc] sm:$0xf] %vm835_vm2, %v822_v22  ;;  %v770_v30 = vadd.f32 %v1431_v50, %v750_v56 }
 0x16e   : > { %v812_v57 = vadd.f32 %v1113_v31, %v764_v44 }
 0x16f   : > { %v818_v32 = vadd.f32 %v1125_v26, %v770_v30  ;;  %v716_v3 = vpop.permute.xlu0 %715 }
 0x170   : > { %v828_v59 = vpack.c.bf16 %v812_v57, %v812_v57  ;;  %v749_v60 = vadd.f32 %v716_v3, %v1409_v40 }
 0x171   : > { %v834_v5 = vpack.c.bf16 %v818_v32, %v818_v32 }
 0x172   : > { %845 = vst.msk [vmem:[%s1438_s28 + $0x24] sm:$0xf] %vm835_vm2, %v828_v59  ;;  %v769_v62 = vadd.f32 %v1431_v50, %v749_v60 }
 0x173   : > { %851 = vst.msk [vmem:[%s1438_s28 + $0x3c] sm:$0xf] %vm835_vm2, %v834_v5 }
 0x174   : > { %v817_v28 = vadd.f32 %v1124_v6, %v769_v62 }
 0x176   : > { %v833_v63 = vpack.c.bf16 %v817_v28, %v817_v28 }
 0x178   : > { %850 = vst.msk [vmem:[%s1438_s28 + $0x38] sm:$0xf] %vm835_vm2, %v833_v63 }
 0x179 PF: > { %s15_s22 = sadd.s32 1, %s1227_s22   ;;  %s1556_s18 = smov %s1219_s20 }
 0x17a   : > { %p12_p10 = scmp.ge.s32.totalorder %s15_s22, 6   ;;  %s1557_s19 = smov %s1223_s21 }
 0x17b   : > { %s1558_s20 = smov %s1561_s23  ;;  %s1559_s21 = smov %s1565_s24 }
 0x17c   :  { %14 = sbr.rel (!%p12_p10) target bundleno = 3 (0x3), region = 76 }

// kernel: _lambda_.47
= control target key start
LH: loop header
LB: loop body
LE: loop exit
PB: predicated region body
PF: predicated region fallthrough
CT: control target
= control target key end

     0   :  { %vm385_vm0 = vcmask 130048   ;;  %vm2123_vm6 = vcmask 240640   ;;  %s4735_s2 = inlined_call_operand.vmem [shape: bf16[16,30], index: 2, kind: input, shape index: {}]   ;;  %s4736_s0 = inlined_call_operand.vmem [shape: bf16[512,16], index: 0, kind: input, shape index: {}]   ;;  %s4737_s1 = inlined_call_operand.vmem [shape: bf16[512,16], index: 1, kind: input, shape index: {}]   ;;  %s4738_s3 = inlined_call_operand.vmem [shape: f32[1,30], index: 3, kind: input, shape index: {}]   ;;  %s4739_s4 = inlined_call_operand.vmem [shape: bf16[512,30], index: 4, kind: input, shape index: {}]   ;;  %s4740_s5 = inlined_call_operand.vmem [shape: bf16[512,30], index: 5, kind: output, shape index: {}]  }
   0x1   :  { %v2228_v0 = vld [vmem:[%s4735_s2] sm:$0xff]  ;;  %v2613_v33 = vld [vmem:[%s4736_s0 + $0x8] sm:$0xff]  }
   0x2   :  { %v2230_v1 = vld [vmem:[%s4736_s0] sm:$0xff]   ;;  %489 = vmatpush.bf16.msra.mxu0 %v2228_v0  ;;  %2706 = vmatpush.bf16.msra.mxu1 %v2228_v0  ;;  %v2644_v35 = vld [vmem:[%s4737_s1 + $0x8] sm:$0xff]   ;;  %v2235_v40 = vunpack.c.l.bf16 %v2613_v33  ;;  %v2236_v42 = vunpack.c.h.bf16 %v2613_v33 }
   0x3   :  { %v2358_v2 = vld [vmem:[%s4737_s1] sm:$0xff]   ;;  %v2231_v3 = vunpack.c.l.bf16 %v2230_v1  ;;  %v2232_v4 = vunpack.c.h.bf16 %v2230_v1  ;;  %2707 = vmatpush.bf16.msra.mxu2 %v2228_v0  ;;  %2708 = vmatpush.bf16.msra.mxu3 %v2228_v0  ;;  %v2621_v38 = vld [vmem:[%s4736_s0 + $0x48] sm:$0xff]   ;;  %v2363_v43 = vunpack.c.l.bf16 %v2644_v35  ;;  %v2364_v44 = vunpack.c.h.bf16 %v2644_v35 }
   0x4   :  { %v2359_v5 = vunpack.c.l.bf16 %v2358_v2  ;;  %v2360_v6 = vunpack.c.h.bf16 %v2358_v2  ;;  %v2620_v7 = vld [vmem:[%s4736_s0 + $0x40] sm:$0xff]   ;;  %v2652_v39 = vld [vmem:[%s4737_s1 + $0x48] sm:$0xff]   ;;  %v2267_v45 = vunpack.c.l.bf16 %v2621_v38  ;;  %v2268_v46 = vunpack.c.h.bf16 %v2621_v38 }
   0x5   :  { %v2651_v8 = vld [vmem:[%s4737_s1 + $0x40] sm:$0xff]   ;;  %v2263_v10 = vunpack.c.l.bf16 %v2620_v7  ;;  %v2264_v11 = vunpack.c.h.bf16 %v2620_v7  ;;  %v2395_v47 = vunpack.c.l.bf16 %v2652_v39  ;;  %v2396_v48 = vunpack.c.h.bf16 %v2652_v39  ;;  %v2629_v49 = vld [vmem:[%s4736_s0 + $0x88] sm:$0xff]  }
   0x6   :  { %v2628_v9 = vld [vmem:[%s4736_s0 + $0x80] sm:$0xff]   ;;  %v2391_v12 = vunpack.c.l.bf16 %v2651_v8  ;;  %v2392_v13 = vunpack.c.h.bf16 %v2651_v8  ;;  %v277_v17 = vadd.f32 %v2359_v5, %v2231_v3  ;;  %v278_v18 = vadd.f32 %v2360_v6, %v2232_v4  ;;  %v2660_v50 = vld [vmem:[%s4737_s1 + $0x88] sm:$0xff]   ;;  %v2614_v8 = vld [vmem:[%s4736_s0 + $0x10] sm:$0xff]  }
   0x7   :  { %v2659_v14 = vld [vmem:[%s4737_s1 + $0x80] sm:$0xff]   ;;  %v2295_v19 = vunpack.c.l.bf16 %v2628_v9  ;;  %v2296_v20 = vunpack.c.h.bf16 %v2628_v9  ;;  %v2637_v51 = vld [vmem:[%s4736_s0 + $0xc8] sm:$0xff]   ;;  %v2299_v53 = vunpack.c.l.bf16 %v2629_v49  ;;  %v2300_v54 = vunpack.c.h.bf16 %v2629_v49  ;;  %v2645_v9 = vld [vmem:[%s4737_s1 + $0x10] sm:$0xff]  }
   0x8   :  { %v2636_v15 = vld [vmem:[%s4736_s0 + $0xc0] sm:$0xff]   ;;  %v293_v21 = vadd.f32 %v2391_v12, %v2263_v10  ;;  %v294_v22 = vadd.f32 %v2392_v13, %v2264_v11  ;;  %v2423_v23 = vunpack.c.l.bf16 %v2659_v14  ;;  %v2424_v24 = vunpack.c.h.bf16 %v2659_v14  ;;  %v2668_v52 = vld [vmem:[%s4737_s1 + $0xc8] sm:$0xff]   ;;  %v2622_v11 = vld [vmem:[%s4736_s0 + $0x50] sm:$0xff]  }
   0x9   :  { %v2667_v16 = vld [vmem:[%s4737_s1 + $0xc0] sm:$0xff]   ;;  %v341_v25 = vpack.c.bf16 %v278_v18, %v277_v17  ;;  %v2327_v26 = vunpack.c.l.bf16 %v2636_v15  ;;  %v2328_v27 = vunpack.c.h.bf16 %v2636_v15  ;;  %v2427_v55 = vunpack.c.l.bf16 %v2660_v50  ;;  %v2653_v12 = vld [vmem:[%s4737_s1 + $0x50] sm:$0xff]  }
   0xa   :  { %v2455_v28 = vunpack.c.l.bf16 %v2667_v16  ;;  %v349_v29 = vpack.c.bf16 %v294_v22, %v293_v21  ;;  %v309_v30 = vadd.f32 %v2423_v23, %v2295_v19  ;;  %v310_v31 = vadd.f32 %v2424_v24, %v2296_v20  ;;  %v2630_v21 = vld [vmem:[%s4736_s0 + $0x90] sm:$0xff]  }
   0xb   :  { %v2456_v32 = vunpack.c.h.bf16 %v2667_v16  ;;  %2196 = vmatmul.msk.bf16.vlgmr.msra.gmra.mxu0 %vm385_vm0, %v341_v25  ;;  %v2428_v56 = vunpack.c.h.bf16 %v2660_v50  ;;  %v279_v57 = vadd.f32 %v2363_v43, %v2235_v40  ;;  %v280_v58 = vadd.f32 %v2364_v44, %v2236_v42  ;;  %v2661_v22 = vld [vmem:[%s4737_s1 + $0x90] sm:$0xff]   ;;  %v2615_v44 = vld [vmem:[%s4736_s0 + $0x18] sm:$0xff]  }
   0xc   :  { %v325_v34 = vadd.f32 %v2455_v28, %v2327_v26  ;;  %2204 = vmatmul.msk.bf16.vlgmr.msra.gmra.mxu1 %vm385_vm0, %v349_v29  ;;  %v357_v36 = vpack.c.bf16 %v310_v31, %v309_v30  ;;  %v295_v59 = vadd.f32 %v2395_v47, %v2267_v45  ;;  %v296_v60 = vadd.f32 %v2396_v48, %v2268_v46  ;;  %v2638_v23 = vld [vmem:[%s4736_s0 + $0xd0] sm:$0xff]   ;;  %v2646_v45 = vld [vmem:[%s4737_s1 + $0x18] sm:$0xff]  }
   0xd   :  { %v326_v37 = vadd.f32 %v2456_v32, %v2328_v27  ;;  %v2331_v61 = vunpack.c.l.bf16 %v2637_v51  ;;  %v2332_v62 = vunpack.c.h.bf16 %v2637_v51  ;;  %v2459_v63 = vunpack.c.l.bf16 %v2668_v52  ;;  %v2669_v24 = vld [vmem:[%s4737_s1 + $0xd0] sm:$0xff]   ;;  %v2623_v47 = vld [vmem:[%s4736_s0 + $0x58] sm:$0xff]  }
   0xe   :  { %2212 = vmatmul.msk.bf16.vlgmr.msra.gmra.mxu2 %vm385_vm0, %v357_v36  ;;  %v2460_v0 = vunpack.c.h.bf16 %v2668_v52  ;;  %v311_v1 = vadd.f32 %v2427_v55, %v2299_v53  ;;  %v312_v2 = vadd.f32 %v2428_v56, %v2300_v54  ;;  %v342_v3 = vpack.c.bf16 %v280_v58, %v279_v57  ;;  %v2654_v48 = vld [vmem:[%s4737_s1 + $0x58] sm:$0xff]  }
   0xf   :  { %v365_v41 = vpack.c.bf16 %v326_v37, %v325_v34  ;;  %v350_v4 = vpack.c.bf16 %v296_v60, %v295_v59  ;;  %v327_v5 = vadd.f32 %v2459_v63, %v2331_v61  ;;  %v2239_v13 = vunpack.c.l.bf16 %v2614_v8  ;;  %v2631_v57 = vld [vmem:[%s4736_s0 + $0x98] sm:$0xff]  }
  0x10   :  { %v328_v6 = vadd.f32 %v2460_v0, %v2332_v62  ;;  %v358_v7 = vpack.c.bf16 %v312_v2, %v311_v1  ;;  %v2240_v14 = vunpack.c.h.bf16 %v2614_v8  ;;  %v2367_v15 = vunpack.c.l.bf16 %v2645_v9  ;;  %v2662_v58 = vld [vmem:[%s4737_s1 + $0x98] sm:$0xff]  }
  0x11   :  { %2220 = vmatmul.msk.bf16.vlgmr.msra.gmra.mxu3 %vm385_vm0, %v365_v41  ;;  %v2368_v16 = vunpack.c.h.bf16 %v2645_v9  ;;  %v2271_v17 = vunpack.c.l.bf16 %v2622_v11  ;;  %v2272_v18 = vunpack.c.h.bf16 %v2622_v11  ;;  %v2399_v19 = vunpack.c.l.bf16 %v2653_v12  ;;  %v2639_v59 = vld [vmem:[%s4736_s0 + $0xd8] sm:$0xff]  }
  0x12   :  { %v366_v10 = vpack.c.bf16 %v328_v6, %v327_v5  ;;  %v2400_v20 = vunpack.c.h.bf16 %v2653_v12  ;;  %v2303_v25 = vunpack.c.l.bf16 %v2630_v21  ;;  %v2304_v26 = vunpack.c.h.bf16 %v2630_v21  ;;  %v2670_v60 = vld [vmem:[%s4737_s1 + $0xd8] sm:$0xff]  }
  0x13   :  { %v2431_v27 = vunpack.c.l.bf16 %v2661_v22  ;;  %v2432_v28 = vunpack.c.h.bf16 %v2661_v22  ;;  %v281_v29 = vadd.f32 %v2367_v15, %v2239_v13  ;;  %v282_v30 = vadd.f32 %v2368_v16, %v2240_v14  ;;  %v2616_v16 = vld [vmem:[%s4736_s0 + $0x20] sm:$0xff]  }
  0x14   :  { %v297_v31 = vadd.f32 %v2399_v19, %v2271_v17  ;;  %v298_v32 = vadd.f32 %v2400_v20, %v2272_v18  ;;  %v2335_v33 = vunpack.c.l.bf16 %v2638_v23  ;;  %v2336_v34 = vunpack.c.h.bf16 %v2638_v23  ;;  %v2647_v17 = vld [vmem:[%s4737_s1 + $0x20] sm:$0xff]  }
  0x15   :  { %v2463_v35 = vunpack.c.l.bf16 %v2669_v24  ;;  %v2464_v36 = vunpack.c.h.bf16 %v2669_v24  ;;  %v313_v37 = vadd.f32 %v2431_v27, %v2303_v25  ;;  %v314_v38 = vadd.f32 %v2432_v28, %v2304_v26  ;;  %v2624_v19 = vld [vmem:[%s4736_s0 + $0x60] sm:$0xff]  }
  0x16   :  { %v343_v39 = vpack.c.bf16 %v282_v30, %v281_v29  ;;  %v351_v40 = vpack.c.bf16 %v298_v32, %v297_v31  ;;  %v2243_v49 = vunpack.c.l.bf16 %v2615_v44  ;;  %v2244_v50 = vunpack.c.h.bf16 %v2615_v44  ;;  %v2655_v20 = vld [vmem:[%s4737_s1 + $0x60] sm:$0xff]  }
  0x17   :  { %v329_v41 = vadd.f32 %v2463_v35, %v2335_v33  ;;  %v330_v42 = vadd.f32 %v2464_v36, %v2336_v34  ;;  %v359_v43 = vpack.c.bf16 %v314_v38, %v313_v37  ;;  %v2371_v51 = vunpack.c.l.bf16 %v2646_v45  ;;  %v2632_v29 = vld [vmem:[%s4736_s0 + $0xa0] sm:$0xff]  }
  0x18   :  { %v2372_v52 = vunpack.c.h.bf16 %v2646_v45  ;;  %v2275_v53 = vunpack.c.l.bf16 %v2623_v47  ;;  %v2276_v54 = vunpack.c.h.bf16 %v2623_v47  ;;  %v2403_v55 = vunpack.c.l.bf16 %v2654_v48  ;;  %v2663_v30 = vld [vmem:[%s4737_s1 + $0xa0] sm:$0xff]  }
  0x19   :  { %v367_v46 = vpack.c.bf16 %v330_v42, %v329_v41  ;;  %v2404_v56 = vunpack.c.h.bf16 %v2654_v48  ;;  %v2307_v61 = vunpack.c.l.bf16 %v2631_v57  ;;  %v2308_v62 = vunpack.c.h.bf16 %v2631_v57  ;;  %v2640_v31 = vld [vmem:[%s4736_s0 + $0xe0] sm:$0xff]  }
  0x1a   :  { %v2435_v63 = vunpack.c.l.bf16 %v2662_v58  ;;  %v2436_v0 = vunpack.c.h.bf16 %v2662_v58  ;;  %v283_v1 = vadd.f32 %v2371_v51, %v2243_v49  ;;  %v284_v2 = vadd.f32 %v2372_v52, %v2244_v50  ;;  %v2671_v32 = vld [vmem:[%s4737_s1 + $0xe0] sm:$0xff]   ;;  %v2617_v52 = vld [vmem:[%s4736_s0 + $0x28] sm:$0xff]  }
  0x1b   :  { %2197 = vmatmul.msk.bf16.gmra.mxu0 %vm385_vm0, %v342_v3  ;;  %v299_v3 = vadd.f32 %v2403_v55, %v2275_v53  ;;  %v2339_v5 = vunpack.c.l.bf16 %v2639_v59  ;;  %v2340_v6 = vunpack.c.h.bf16 %v2639_v59  ;;  %v2468_v8 = vunpack.c.h.bf16 %v2670_v60  ;;  %v2648_v53 = vld [vmem:[%s4737_s1 + $0x28] sm:$0xff]  }
  0x1c   :  { %2205 = vmatmul.msk.bf16.gmra.mxu1 %vm385_vm0, %v350_v4  ;;  %v300_v4 = vadd.f32 %v2404_v56, %v2276_v54  ;;  %v315_v9 = vadd.f32 %v2435_v63, %v2307_v61  ;;  %v344_v11 = vpack.c.bf16 %v284_v2, %v283_v1  ;;  %v2247_v21 = vunpack.c.l.bf16 %v2616_v16  ;;  %v2625_v55 = vld [vmem:[%s4736_s0 + $0x68] sm:$0xff]  }
  0x1d   :  { %v332_v14 = vadd.f32 %v2468_v8, %v2340_v6  ;;  %v2248_v22 = vunpack.c.h.bf16 %v2616_v16  ;;  %v2375_v23 = vunpack.c.l.bf16 %v2647_v17  ;;  %v2376_v24 = vunpack.c.h.bf16 %v2647_v17  ;;  %v2656_v56 = vld [vmem:[%s4737_s1 + $0x68] sm:$0xff]  }
  0x1e   :  { %2213 = vmatmul.msk.bf16.gmra.mxu2 %vm385_vm0, %v358_v7  ;;  %v2467_v7 = vunpack.c.l.bf16 %v2670_v60  ;;  %v352_v12 = vpack.c.bf16 %v300_v4, %v299_v3  ;;  %v2279_v25 = vunpack.c.l.bf16 %v2624_v19  ;;  %v2280_v26 = vunpack.c.h.bf16 %v2624_v19  ;;  %v2633_v1 = vld [vmem:[%s4736_s0 + $0xa8] sm:$0xff]  }
  0x1f   :  { %v2407_v27 = vunpack.c.l.bf16 %v2655_v20  ;;  %v2408_v28 = vunpack.c.h.bf16 %v2655_v20  ;;  %v2311_v33 = vunpack.c.l.bf16 %v2632_v29  ;;  %v2312_v34 = vunpack.c.h.bf16 %v2632_v29  ;;  %v2664_v2 = vld [vmem:[%s4737_s1 + $0xa8] sm:$0xff]  }
  0x20   :  { %v331_v13 = vadd.f32 %v2467_v7, %v2339_v5  ;;  %v2439_v35 = vunpack.c.l.bf16 %v2663_v30  ;;  %v2440_v36 = vunpack.c.h.bf16 %v2663_v30  ;;  %v285_v37 = vadd.f32 %v2375_v23, %v2247_v21  ;;  %v2641_v3 = vld [vmem:[%s4736_s0 + $0xe8] sm:$0xff]  }
  0x21   :  { %2221 = vmatmul.msk.bf16.gmra.mxu3 %vm385_vm0, %v366_v10  ;;  %v316_v10 = vadd.f32 %v2436_v0, %v2308_v62  ;;  %v286_v38 = vadd.f32 %v2376_v24, %v2248_v22  ;;  %v2343_v41 = vunpack.c.l.bf16 %v2640_v31  ;;  %v2344_v42 = vunpack.c.h.bf16 %v2640_v31  ;;  %v2672_v4 = vld [vmem:[%s4737_s1 + $0xe8] sm:$0xff]   ;;  %v2618_v24 = vld [vmem:[%s4736_s0 + $0x30] sm:$0xff]  }
  0x22   :  { %v368_v18 = vpack.c.bf16 %v332_v14, %v331_v13  ;;  %v2472_v44 = vunpack.c.h.bf16 %v2671_v32  ;;  %v317_v45 = vadd.f32 %v2439_v35, %v2311_v33  ;;  %v2251_v57 = vunpack.c.l.bf16 %v2617_v52 }
  0x23   :  { %v360_v15 = vpack.c.bf16 %v316_v10, %v315_v9  ;;  %v345_v47 = vpack.c.bf16 %v286_v38, %v285_v37  ;;  %v2252_v58 = vunpack.c.h.bf16 %v2617_v52  ;;  %v2379_v59 = vunpack.c.l.bf16 %v2648_v53  ;;  %v2634_v37 = vld [vmem:[%s4736_s0 + $0xb0] sm:$0xff]  }
  0x24   :  { %v334_v50 = vadd.f32 %v2472_v44, %v2344_v42  ;;  %v2380_v60 = vunpack.c.h.bf16 %v2648_v53  ;;  %v2283_v61 = vunpack.c.l.bf16 %v2625_v55  ;;  %v2284_v62 = vunpack.c.h.bf16 %v2625_v55  ;;  %v2665_v38 = vld [vmem:[%s4737_s1 + $0xb0] sm:$0xff]  }
  0x25   :  { %v2411_v63 = vunpack.c.l.bf16 %v2656_v56  ;;  %v2412_v0 = vunpack.c.h.bf16 %v2656_v56  ;;  %v2315_v5 = vunpack.c.l.bf16 %v2633_v1  ;;  %v2316_v6 = vunpack.c.h.bf16 %v2633_v1 }
  0x26   :  { %v2443_v7 = vunpack.c.l.bf16 %v2664_v2  ;;  %v2444_v8 = vunpack.c.h.bf16 %v2664_v2  ;;  %v287_v9 = vadd.f32 %v2379_v59, %v2251_v57  ;;  %v288_v10 = vadd.f32 %v2380_v60, %v2252_v58  ;;  %v2619_v60 = vld [vmem:[%s4736_s0 + $0x38] sm:$0xff]  }
  0x27   :  { %v2347_v13 = vunpack.c.l.bf16 %v2641_v3  ;;  %v2348_v14 = vunpack.c.h.bf16 %v2641_v3  ;;  %v2476_v16 = vunpack.c.h.bf16 %v2672_v4  ;;  %v2255_v29 = vunpack.c.l.bf16 %v2618_v24 }
  0x28   :  { %v319_v17 = vadd.f32 %v2443_v7, %v2315_v5  ;;  %v346_v19 = vpack.c.bf16 %v288_v10, %v287_v9  ;;  %v2256_v30 = vunpack.c.h.bf16 %v2618_v24  ;;  %v2320_v42 = vunpack.c.h.bf16 %v2634_v37  ;;  %v2635_v9 = vld [vmem:[%s4736_s0 + $0xb8] sm:$0xff]  }
  0x29   :  { %v336_v22 = vadd.f32 %v2476_v16, %v2348_v14  ;;  %v2448_v44 = vunpack.c.h.bf16 %v2665_v38  ;;  %v2259_v1 = vunpack.c.l.bf16 %v2619_v60  ;;  %v2260_v2 = vunpack.c.h.bf16 %v2619_v60  ;;  %v2666_v10 = vld [vmem:[%s4737_s1 + $0xb8] sm:$0xff]  }
  0x2a   :  { %v2324_v14 = vunpack.c.h.bf16 %v2635_v9  ;;  %v2452_v16 = vunpack.c.h.bf16 %v2666_v10 }
  0x2b   :  { %2198 = vmatmul.msk.bf16.gmra.mxu0 %vm385_vm0, %v343_v39  ;;  %v301_v39 = vadd.f32 %v2407_v27, %v2279_v25  ;;  %v2649_v25 = vld [vmem:[%s4737_s1 + $0x30] sm:$0xff]  }
  0x2c   :  { %2206 = vmatmul.msk.bf16.gmra.mxu1 %vm385_vm0, %v351_v40  ;;  %v302_v40 = vadd.f32 %v2408_v28, %v2280_v26  ;;  %v2626_v27 = vld [vmem:[%s4736_s0 + $0x70] sm:$0xff]   ;;  %v2383_v31 = vunpack.c.l.bf16 %v2649_v25 }
  0x2d   :  { %v2657_v28 = vld [vmem:[%s4737_s1 + $0x70] sm:$0xff]   ;;  %v2287_v33 = vunpack.c.l.bf16 %v2626_v27 }
  0x2e   :  { %2214 = vmatmul.msk.bf16.gmra.mxu2 %vm385_vm0, %v359_v43  ;;  %v2471_v43 = vunpack.c.l.bf16 %v2671_v32  ;;  %v353_v48 = vpack.c.bf16 %v302_v40, %v301_v39  ;;  %v2384_v32 = vunpack.c.h.bf16 %v2649_v25  ;;  %v2415_v35 = vunpack.c.l.bf16 %v2657_v28  ;;  %v2642_v39 = vld [vmem:[%s4736_s0 + $0xf0] sm:$0xff]  }
  0x2f   :  { %v2673_v40 = vld [vmem:[%s4737_s1 + $0xf0] sm:$0xff]  }
  0x30   :  { %v333_v49 = vadd.f32 %v2471_v43, %v2343_v41  ;;  %v2319_v41 = vunpack.c.l.bf16 %v2634_v37  ;;  %v2447_v43 = vunpack.c.l.bf16 %v2665_v38  ;;  %v2480_v52 = vunpack.c.h.bf16 %v2673_v40 }
  0x31   :  { %2222 = vmatmul.msk.bf16.gmra.mxu3 %vm385_vm0, %v367_v46  ;;  %v318_v46 = vadd.f32 %v2440_v36, %v2312_v34  ;;  %v2288_v34 = vunpack.c.h.bf16 %v2626_v27  ;;  %v2416_v36 = vunpack.c.h.bf16 %v2657_v28 }
  0x32   :  { %v369_v54 = vpack.c.bf16 %v334_v50, %v333_v49  ;;  %v2351_v49 = vunpack.c.l.bf16 %v2642_v39  ;;  %v2352_v50 = vunpack.c.h.bf16 %v2642_v39  ;;  %v321_v53 = vadd.f32 %v2447_v43, %v2319_v41 }
  0x33   :  { %v361_v51 = vpack.c.bf16 %v318_v46, %v317_v45  ;;  %v289_v45 = vadd.f32 %v2383_v31, %v2255_v29  ;;  %v290_v46 = vadd.f32 %v2384_v32, %v2256_v30 }
  0x34   :  { %v338_v58 = vadd.f32 %v2480_v52, %v2352_v50 }
  0x35   :  { %v347_v55 = vpack.c.bf16 %v290_v46, %v289_v45 }
  0x3b   :  { %2199 = vmatmul.msk.bf16.gmra.mxu0 %vm385_vm0, %v344_v11  ;;  %v303_v11 = vadd.f32 %v2411_v63, %v2283_v61  ;;  %v2650_v61 = vld [vmem:[%s4737_s1 + $0x38] sm:$0xff]  }
  0x3c   :  { %2207 = vmatmul.msk.bf16.gmra.mxu1 %vm385_vm0, %v352_v12  ;;  %v304_v12 = vadd.f32 %v2412_v0, %v2284_v62  ;;  %v2627_v63 = vld [vmem:[%s4736_s0 + $0x78] sm:$0xff]   ;;  %v2387_v3 = vunpack.c.l.bf16 %v2650_v61 }
  0x3d   :  { %v2658_v0 = vld [vmem:[%s4737_s1 + $0x78] sm:$0xff]   ;;  %v2291_v5 = vunpack.c.l.bf16 %v2627_v63 }
  0x3e   :  { %2215 = vmatmul.msk.bf16.gmra.mxu2 %vm385_vm0, %v360_v15  ;;  %v2475_v15 = vunpack.c.l.bf16 %v2672_v4  ;;  %v354_v20 = vpack.c.bf16 %v304_v12, %v303_v11  ;;  %v2388_v4 = vunpack.c.h.bf16 %v2650_v61  ;;  %v2419_v7 = vunpack.c.l.bf16 %v2658_v0  ;;  %v2643_v11 = vld [vmem:[%s4736_s0 + $0xf8] sm:$0xff]   ;;  %v3244_v61 = vld [vmem:[%s4739_s4] sm:$0xff]  }
  0x3f   :  { %v2674_v12 = vld [vmem:[%s4737_s1 + $0xf8] sm:$0xff]  }
  0x40   :  { %v335_v21 = vadd.f32 %v2475_v15, %v2347_v13  ;;  %v2323_v13 = vunpack.c.l.bf16 %v2635_v9  ;;  %v2451_v15 = vunpack.c.l.bf16 %v2666_v10  ;;  %v2484_v24 = vunpack.c.h.bf16 %v2674_v12 }
  0x41   :  { %2223 = vmatmul.msk.bf16.gmra.mxu3 %vm385_vm0, %v368_v18  ;;  %v320_v18 = vadd.f32 %v2444_v8, %v2316_v6  ;;  %v2292_v6 = vunpack.c.h.bf16 %v2627_v63  ;;  %v2420_v8 = vunpack.c.h.bf16 %v2658_v0  ;;  %v3255_v63 = vld [vmem:[%s4739_s4 + $0x80] sm:$0xff]  }
  0x42   :  { %v370_v26 = vpack.c.bf16 %v336_v22, %v335_v21  ;;  %v2355_v21 = vunpack.c.l.bf16 %v2643_v11  ;;  %v2356_v22 = vunpack.c.h.bf16 %v2643_v11  ;;  %v323_v25 = vadd.f32 %v2451_v15, %v2323_v13 }
  0x43   :  { %v362_v23 = vpack.c.bf16 %v320_v18, %v319_v17  ;;  %v291_v17 = vadd.f32 %v2387_v3, %v2259_v1  ;;  %v292_v18 = vadd.f32 %v2388_v4, %v2260_v2  ;;  %v3260_v1 = vld [vmem:[%s4739_s4 + $0xc0] sm:$0xff]  }
  0x44   :  { %v340_v30 = vadd.f32 %v2484_v24, %v2356_v22  ;;  %v2583_v13 = vunpack.c.l.bf16 %v3260_v1 }
  0x45   :  { %v348_v27 = vpack.c.bf16 %v292_v18, %v291_v17 }
  0x4b   :  { %2200 = vmatmul.msk.bf16.gmra.mxu0 %vm385_vm0, %v345_v47  ;;  %v305_v47 = vadd.f32 %v2415_v35, %v2287_v33  ;;  %v3228_v33 = vld [vmem:[%s4738_s3] ss:$0 sm:$0xff] }
  0x4c   :  { %2208 = vmatmul.msk.bf16.gmra.mxu1 %vm385_vm0, %v353_v48  ;;  %v306_v48 = vadd.f32 %v2416_v36, %v2288_v34 }
  0x4e   :  { %2216 = vmatmul.msk.bf16.gmra.mxu2 %vm385_vm0, %v361_v51  ;;  %v2479_v51 = vunpack.c.l.bf16 %v2673_v40  ;;  %v355_v56 = vpack.c.bf16 %v306_v48, %v305_v47 }
  0x50   :  { %v337_v57 = vadd.f32 %v2479_v51, %v2351_v49 }
  0x51   :  { %2224 = vmatmul.msk.bf16.gmra.mxu3 %vm385_vm0, %v369_v54  ;;  %v322_v54 = vadd.f32 %v2448_v44, %v2320_v42 }
  0x52   :  { %v371_v62 = vpack.c.bf16 %v338_v58, %v337_v57 }
  0x53   :  { %v363_v59 = vpack.c.bf16 %v322_v54, %v321_v53 }
  0x5b   :  { %2201 = vmatmul.msk.bf16.gmra.mxu0 %vm385_vm0, %v346_v19  ;;  %v307_v19 = vadd.f32 %v2419_v7, %v2291_v5  ;;  %v2487_v7 = vunpack.c.l.bf16 %v3244_v61 }
  0x5c   :  { %2209 = vmatmul.msk.bf16.gmra.mxu1 %vm385_vm0, %v354_v20  ;;  %v308_v20 = vadd.f32 %v2420_v8, %v2292_v6 }
  0x5e   :  { %2217 = vmatmul.msk.bf16.gmra.mxu2 %vm385_vm0, %v362_v23  ;;  %v2483_v23 = vunpack.c.l.bf16 %v2674_v12  ;;  %v356_v28 = vpack.c.bf16 %v308_v20, %v307_v19  ;;  %v2551_v12 = vunpack.c.l.bf16 %v3255_v63 }
  0x60   :  { %v339_v29 = vadd.f32 %v2483_v23, %v2355_v21 }
  0x61   :  { %2225 = vmatmul.msk.bf16.gmra.mxu3 %vm385_vm0, %v370_v26  ;;  %v324_v26 = vadd.f32 %v2452_v16, %v2324_v14 }
  0x62   :  { %v372_v32 = vpack.c.bf16 %v340_v30, %v339_v29 }
  0x63   :  { %v364_v31 = vpack.c.bf16 %v324_v26, %v323_v25 }
  0x6b   :  { %2202 = vmatmul.msk.bf16.gmra.mxu0 %vm385_vm0, %v347_v55 }
  0x6c   :  { %2210 = vmatmul.msk.bf16.gmra.mxu1 %vm385_vm0, %v355_v56 }
  0x6e   :  { %2218 = vmatmul.msk.bf16.gmra.mxu2 %vm385_vm0, %v363_v59 }
  0x71   :  { %2226 = vmatmul.msk.bf16.gmra.mxu3 %vm385_vm0, %v371_v62  ;;  %v3250_v62 = vld [vmem:[%s4739_s4 + $0x40] sm:$0xff]  }
  0x72   :  { %v2519_v11 = vunpack.c.l.bf16 %v3250_v62  ;;  %v2520_v29 = vunpack.c.h.bf16 %v3250_v62  ;;  %v3402_v62 = vld [vmem:[%s4739_s4 + $0x8] sm:$0xff]  }
  0x7b   :  { %2203 = vmatmul.msk.bf16.gmra.mxu0 %vm385_vm0, %v348_v27 }
  0x7c   :  { %2211 = vmatmul.msk.bf16.gmra.mxu1 %vm385_vm0, %v356_v28  ;;  %v2488_v28 = vunpack.c.h.bf16 %v3244_v61 }
  0x7e   :  { %2219 = vmatmul.msk.bf16.gmra.mxu2 %vm385_vm0, %v364_v31 }
  0x81   :  { %2227 = vmatmul.msk.bf16.gmra.mxu3 %vm385_vm0, %v372_v32 }
  0x88   :  { %v491_v34 = vpop.f32.mrf.mxu0 }
  0x89   :  { %v492_v35 = vadd.f32 %v3228_v33, %v491_v34  ;;  %v531_v36 = vpop.f32.mrf.mxu1 }
  0x8a   :  { %v532_v37 = vadd.f32 %v3228_v33, %v531_v36 }
  0x8b   :  { %v651_v38 = vsub.f32 0.0, %v492_v35 }
  0x8c   :  { %v667_v39 = vsub.f32 0.0, %v532_v37 }
  0x8d   :  { %v715_v40 = vmul.f32 1.442695, %v651_v38 }
  0x8e   :  { %v747_v41 = vmul.f32 1.442695, %v667_v39 }
  0x8f   :  { %2710 = vpow2.f32 %v715_v40 }
  0x90   :  { %2712 = vpow2.f32 %v747_v41  ;;  %v493_v42 = vpop.f32.mrf.mxu0 }
  0x91   :  { %v571_v43 = vpop.f32.mrf.mxu2  ;;  %v494_v44 = vadd.f32 %v3228_v33, %v493_v42  ;;  %v533_v45 = vpop.f32.mrf.mxu1 }
  0x92   :  { %v572_v46 = vadd.f32 %v3228_v33, %v571_v43  ;;  %v534_v47 = vadd.f32 %v3228_v33, %v533_v45 }
  0x93   :  { %v652_v49 = vsub.f32 0.0, %v494_v44 }
  0x94   :  { %v611_v48 = vpop.f32.mrf.mxu3  ;;  %v683_v50 = vsub.f32 0.0, %v572_v46  ;;  %v668_v52 = vsub.f32 0.0, %v534_v47 }
  0x95   :  { %v612_v51 = vadd.f32 %v3228_v33, %v611_v48  ;;  %v2711_v53 = vpop.eup %2710  ;;  %v717_v54 = vmul.f32 1.442695, %v652_v49 }
  0x96   :  { %v2713_v55 = vpop.eup %2712  ;;  %v3236_v56 = vadd.f32 1.0, %v2711_v53  ;;  %v779_v57 = vmul.f32 1.442695, %v683_v50  ;;  %v749_v60 = vmul.f32 1.442695, %v668_v52 }
  0x97   :  { %v699_v58 = vsub.f32 0.0, %v612_v51  ;;  %v3238_v59 = vadd.f32 1.0, %v2713_v55  ;;  %2714 = vpow2.f32 %v717_v54 }
  0x98   :  { %2716 = vrcp.f32 %v3236_v56  ;;  %v916_v3 = vand.u32 2147483647, %v3236_v56  ;;  %v918_v4 = vand.u32 2147483648, %v3236_v56  ;;  %v496_v9 = vpop.f32.mrf.mxu0  ;;  %vm912_vm1 = vweird.f32 %v3236_v56 }
  0x99   :  { %2718 = vrcp.f32 %v3238_v59  ;;  %v811_v0 = vmul.f32 1.442695, %v699_v58  ;;  %v573_v2 = vpop.f32.mrf.mxu2  ;;  %v1158_v5 = vand.u32 2147483648, %v3238_v59  ;;  %v1156_v8 = vand.u32 2147483647, %v3238_v59  ;;  %v536_v18 = vpop.f32.mrf.mxu1 }
  0x9a   :  { %2720 = vpow2.f32 %v779_v57  ;;  %v574_v14 = vadd.f32 %v3228_v33, %v573_v2  ;;  %vm1152_vm2 = vweird.f32 %v3238_v59  ;;  %vm3277_vm3 = vcmp.eq.f32.partialorder %v916_v3, 8.507059e+37 }
  0x9b   :  { %2722 = vpow2.f32 %v749_v60  ;;  %v919_v22 = vor.u32 1.1754944e-38, %v918_v4  ;;  %v1159_v23 = vor.u32 1.1754944e-38, %v1158_v5  ;;  %v3282_v24 = vadd.f32 %v3228_v33, %v496_v9 }
  0x9c   :  { %v613_v6 = vpop.f32.mrf.mxu3  ;;  %2724 = vpow2.f32 %v811_v0  ;;  %vm3285_vm4 = vcmp.eq.f32.partialorder %v1156_v8, 8.507059e+37  ;;  %v684_v34 = vsub.f32 0.0, %v574_v14  ;;  %v3295_v35 = vadd.f32 %v3228_v33, %v536_v18 }
  0x9d   :  { %v2715_v10 = vpop.eup %2714  ;;  %v614_v17 = vadd.f32 %v3228_v33, %v613_v6  ;;  %v653_v41 = vsub.f32 0.0, %v3282_v24  ;;  %v2491_v8 = vunpack.c.l.bf16 %v3402_v62 }
  0x9e   :  { %v2717_v15 = vpop.eup %2716  ;;  %v3273_v16 = vadd.f32 1.0, %v2715_v10  ;;  %v669_v48 = vsub.f32 0.0, %v3295_v35  ;;  %v781_v54 = vmul.f32 1.442695, %v684_v34 }
  0x9f   :  { %v2719_v19 = vpop.eup %2718  ;;  %v908_v20 = vmul.f32 %v2717_v15, %v3236_v56  ;;  %vm913_vm5 = vweird.f32 %v2717_v15  ;;  %v700_v39 = vsub.f32 0.0, %v614_v17 }
  0xa0   :  { %v2721_v25 = vpop.eup %2720  ;;  %v1148_v26 = vmul.f32 %v2719_v19, %v3238_v59  ;;  %2726 = vrcp.f32 %v3273_v16  ;;  %vm1153_vm7 = vweird.f32 %v2719_v19  ;;  %v931_v44 = vand.u32 2147483647, %v3273_v16  ;;  %vm914_vm8 = vmor %vm912_vm1, %vm913_vm5  ;;  %v498_v58 = vpop.f32.mrf.mxu0 }
  0xa1   :  { %v2723_v30 = vpop.eup %2722  ;;  %v909_v31 = vsub.f32 1.0, %v908_v20  ;;  %v3292_v32 = vadd.f32 1.0, %v2721_v25  ;;  %v933_v45 = vand.u32 2147483648, %v3273_v16  ;;  %vm927_vm9 = vweird.f32 %v3273_v16  ;;  %vm1154_vm10 = vmor %vm1152_vm2, %vm1153_vm7 }
  0xa2   :  { %v2725_v36 = vpop.eup %2724  ;;  %v1149_v37 = vsub.f32 1.0, %v1148_v26  ;;  %v3297_v38 = vadd.f32 1.0, %v2723_v30  ;;  %v813_v55 = vmul.f32 1.442695, %v700_v39  ;;  %vm3321_vm12 = vcmp.eq.f32.partialorder %v931_v44, 8.507059e+37 }
  0xa3   :  { %v910_v40 = vmul.f32 %v2717_v15, %v909_v31  ;;  %2728 = vrcp.f32 %v3292_v32  ;;  %v3301_v43 = vadd.f32 1.0, %v2725_v36  ;;  %v1398_v47 = vand.u32 2147483648, %v3292_v32 }
  0xa4   :  { %v1150_v42 = vmul.f32 %v2719_v19, %v1149_v37  ;;  %2730 = vrcp.f32 %v3297_v38  ;;  %v1396_v51 = vand.u32 2147483647, %v3292_v32  ;;  %vm1392_vm11 = vweird.f32 %v3292_v32 }
  0xa5   :  { %v911_v46 = vadd.f32 %v2717_v15, %v910_v40  ;;  %2732 = vrcp.f32 %v3301_v43  ;;  %v934_v60 = vor.u32 1.1754944e-38, %v933_v45  ;;  %v1399_v3 = vor.u32 1.1754944e-38, %v1398_v47 }
  0xa6   :  { %v2727_v49 = vpop.eup %2726  ;;  %v1151_v50 = vadd.f32 %v2719_v19, %v1150_v42  ;;  %v1638_v4 = vand.u32 2147483648, %v3301_v43  ;;  %vm3333_vm13 = vcmp.eq.f32.partialorder %v1396_v51, 8.507059e+37  ;;  %v1636_v9 = vand.u32 2147483647, %v3301_v43 }
  0xa7   :  { %v915_v52 = vsel %vm914_vm8, %v2717_v15, %v911_v46  ;;  %v923_v53 = vmul.f32 %v2727_v49, %v3273_v16  ;;  %vm1632_vm14 = vweird.f32 %v3301_v43  ;;  %vm928_vm15 = vweird.f32 %v2727_v49 }
  0xa8   :  { %v920_v56 = vsel %vm3277_vm3, %v919_v22, %v915_v52  ;;  %v1155_v57 = vsel %vm1154_vm10, %v2719_v19, %v1151_v50  ;;  %vm1167_vm0 = vweird.f32 %v3297_v38  ;;  %2734 = vpow2.f32 %v781_v54  ;;  %vm929_vm3 = vmor %vm927_vm9, %vm928_vm15 }
  0xa9   :  { %v2729_v0 = vpop.eup %2728  ;;  %v1995_v59 = vmul.f32 %v2487_v7, %v920_v56  ;;  %v1160_v2 = vsel %vm3285_vm4, %v1159_v23, %v1155_v57  ;;  %v924_v10 = vsub.f32 1.0, %v923_v53  ;;  %v1639_v21 = vor.u32 1.1754944e-38, %v1638_v4  ;;  %v576_v53 = vpop.f32.mrf.mxu2 }
  0xaa   :  { %v2011_v5 = vmul.f32 %v2519_v11, %v1160_v2  ;;  %v1388_v6 = vmul.f32 %v2729_v0, %v3292_v32  ;;  %v2731_v14 = vpop.eup %2730  ;;  %v1171_v22 = vand.u32 2147483647, %v3297_v38  ;;  %v1173_v23 = vand.u32 2147483648, %v3297_v38 }
  0xab   :  { %v2059_v7 = vpack.c.bf16 %v1995_v59, %v1995_v59  ;;  %v2733_v15 = vpop.eup %2732  ;;  %v925_v18 = vmul.f32 %v2727_v49, %v924_v10  ;;  %v1163_v19 = vmul.f32 %v2731_v14, %v3297_v38  ;;  %vm1393_vm1 = vweird.f32 %v2729_v0 }
  0xac   :  { %v2075_v17 = vpack.c.bf16 %v2011_v5, %v2011_v5  ;;  %v1389_v11 = vsub.f32 1.0, %v1388_v6  ;;  %v1628_v20 = vmul.f32 %v2733_v15, %v3301_v43  ;;  %vm1633_vm2 = vweird.f32 %v2733_v15  ;;  %vm1394_vm5 = vmor %vm1392_vm11, %vm1393_vm1 }
  0xad   :  { %2124 = vst.msk [vmem:[%s4740_s5] sm:$0xf] %vm2123_vm6, %v2059_v7  ;;  %v926_v26 = vadd.f32 %v2727_v49, %v925_v18  ;;  %v1164_v27 = vsub.f32 1.0, %v1163_v19  ;;  %vm1168_vm4 = vweird.f32 %v2731_v14  ;;  %2736 = vpow2.f32 %v813_v55  ;;  %vm1634_vm9 = vmor %vm1632_vm14, %vm1633_vm2  ;;  %v616_v55 = vpop.f32.mrf.mxu3 }
  0xae   :  { %2140 = vst.msk [vmem:[%s4740_s5 + $0x40] sm:$0xf] %vm2123_vm6, %v2075_v17  ;;  %v1390_v25 = vmul.f32 %v2729_v0, %v1389_v11  ;;  %v1629_v30 = vsub.f32 1.0, %v1628_v20  ;;  %v719_v37 = vmul.f32 1.442695, %v653_v41  ;;  %v2735_v39 = vpop.eup %2734  ;;  %vm3361_vm7 = vcmp.eq.f32.partialorder %v1171_v22, 8.507059e+37  ;;  %vm1169_vm8 = vmor %vm1167_vm0, %vm1168_vm4 }
  0xaf   :  { %v930_v34 = vsel %vm929_vm3, %v2727_v49, %v926_v26  ;;  %v1165_v36 = vmul.f32 %v2731_v14, %v1164_v27  ;;  %v1174_v16 = vor.u32 1.1754944e-38, %v1173_v23  ;;  %v3367_v24 = vadd.f32 1.0, %v2735_v39 }
  0xb0   :  { %v1391_v31 = vadd.f32 %v2729_v0, %v1390_v25  ;;  %v1630_v40 = vmul.f32 %v2733_v15, %v1629_v30  ;;  %v935_v42 = vsel %vm3321_vm12, %v934_v60, %v930_v34  ;;  %2738 = vpow2.f32 %v719_v37 }
  0xb1   :  { %v1996_v46 = vmul.f32 %v2488_v28, %v935_v42  ;;  %v1166_v47 = vadd.f32 %v2731_v14, %v1165_v36  ;;  %v751_v49 = vmul.f32 1.442695, %v669_v48  ;;  %2740 = vrcp.f32 %v3367_v24 }
  0xb2   :  { %v1395_v45 = vsel %vm1394_vm5, %v2729_v0, %v1391_v31  ;;  %v1631_v41 = vadd.f32 %v2733_v15, %v1630_v40  ;;  %vm1637_vm10 = vcmp.eq.f32.partialorder %v1636_v9, 8.507059e+37  ;;  %v1411_v57 = vand.u32 2147483647, %v3367_v24 }
  0xb3   :  { %v1400_v32 = vsel %vm3333_vm13, %v1399_v3, %v1395_v45  ;;  %v2060_v61 = vpack.c.bf16 %v1996_v46, %v1996_v46  ;;  %v1170_v28 = vsel %vm1169_vm8, %v2731_v14, %v1166_v47  ;;  %v2737_v51 = vpop.eup %2736  ;;  %2742 = vpow2.f32 %v751_v49  ;;  %v3460_v45 = vld [vmem:[%s4739_s4 + $0xc8] sm:$0xff]   ;;  %v538_v47 = vpop.f32.mrf.mxu1 }
  0xb4   :  { %v2027_v50 = vmul.f32 %v2551_v12, %v1400_v32  ;;  %v1635_v52 = vsel %vm1634_vm9, %v2733_v15, %v1631_v41  ;;  %v1175_v38 = vsel %vm3361_vm7, %v1174_v16, %v1170_v28  ;;  %v3392_v54 = vadd.f32 1.0, %v2737_v51  ;;  %v3438_v15 = vld [vmem:[%s4739_s4 + $0x88] sm:$0xff]  }
  0xb5   :  { %v1640_v48 = vsel %vm1637_vm10, %v1639_v21, %v1635_v52  ;;  %2125 = vst.msk [vmem:[%s4740_s5 + $0x4] sm:$0xf] %vm2123_vm6, %v2060_v61  ;;  %v2012_v12 = vmul.f32 %v2520_v29, %v1175_v38  ;;  %v577_v29 = vadd.f32 %v3228_v33, %v576_v53  ;;  %v2552_v59 = vunpack.c.h.bf16 %v3255_v63 }
  0xb6   :  { %v2091_v35 = vpack.c.bf16 %v2027_v50, %v2027_v50  ;;  %v2043_v43 = vmul.f32 %v2583_v13, %v1640_v48  ;;  %v3407_v13 = vld [vmem:[%s4739_s4 + $0x48] sm:$0xff]   ;;  %v2739_v60 = vpop.eup %2738  ;;  %2744 = vrcp.f32 %v3392_v54  ;;  %v2584_v3 = vunpack.c.h.bf16 %v3260_v1 }
  0xb7   :  { %v2076_v56 = vpack.c.bf16 %v2012_v12, %v2012_v12  ;;  %v2741_v2 = vpop.eup %2740  ;;  %v3417_v4 = vadd.f32 1.0, %v2739_v60  ;;  %v685_v5 = vsub.f32 0.0, %v577_v29  ;;  %v617_v6 = vadd.f32 %v3228_v33, %v616_v55 }
  0xb8   :  { %2156 = vst.msk [vmem:[%s4740_s5 + $0x80] sm:$0xf] %vm2123_vm6, %v2091_v35  ;;  %v2107_v0 = vpack.c.bf16 %v2043_v43, %v2043_v43  ;;  %v1403_v63 = vmul.f32 %v2741_v2, %v3367_v24  ;;  %v2523_v9 = vunpack.c.l.bf16 %v3407_v13  ;;  %v499_v10 = vadd.f32 %v3228_v33, %v498_v58 }
  0xb9   :  { %2141 = vst.msk [vmem:[%s4740_s5 + $0x44] sm:$0xf] %vm2123_vm6, %v2076_v56  ;;  %vm1407_vm11 = vweird.f32 %v3367_v24  ;;  %vm3429_vm12 = vcmp.eq.f32.partialorder %v1411_v57, 8.507059e+37  ;;  %v1413_v7 = vand.u32 2147483648, %v3367_v24  ;;  %2746 = vrcp.f32 %v3417_v4  ;;  %v2743_v17 = vpop.eup %2742 }
  0xba   :  { %2172 = vst.msk [vmem:[%s4740_s5 + $0xc0] sm:$0xf] %vm2123_vm6, %v2107_v0  ;;  %v1404_v11 = vsub.f32 1.0, %v1403_v63  ;;  %v1651_v18 = vand.u32 2147483647, %v3392_v54  ;;  %v701_v20 = vsub.f32 0.0, %v617_v6  ;;  %vm1408_vm13 = vweird.f32 %v2741_v2 }
  0xbb   :  { %v783_v19 = vmul.f32 1.442695, %v685_v5  ;;  %v1653_v21 = vand.u32 2147483648, %v3392_v54  ;;  %v3442_v22 = vadd.f32 1.0, %v2743_v17  ;;  %v654_v23 = vsub.f32 0.0, %v499_v10  ;;  %vm1409_vm0 = vmor %vm1407_vm11, %vm1408_vm13 }
  0xbc   :  { %v2745_v25 = vpop.eup %2744  ;;  %v1405_v26 = vmul.f32 %v2741_v2, %v1404_v11  ;;  %v946_v27 = vand.u32 2147483647, %v3417_v4  ;;  %v815_v30 = vmul.f32 1.442695, %v701_v20  ;;  %v1414_v31 = vor.u32 1.1754944e-38, %v1413_v7 }
  0xbd   :  { %2748 = vpow2.f32 %v783_v19  ;;  %v1643_v34 = vmul.f32 %v2745_v25, %v3392_v54  ;;  %v2555_v36 = vunpack.c.l.bf16 %v3438_v15  ;;  %vm1647_vm14 = vweird.f32 %v3392_v54  ;;  %v618_v19 = vpop.f32.mrf.mxu3 }
  0xbe   :  { %2750 = vrcp.f32 %v3442_v22  ;;  %v1406_v37 = vadd.f32 %v2741_v2, %v1405_v26  ;;  %vm3449_vm15 = vcmp.eq.f32.partialorder %v1651_v18, 8.507059e+37  ;;  %v1654_v44 = vor.u32 1.1754944e-38, %v1653_v21  ;;  %v578_v18 = vpop.f32.mrf.mxu2 }
  0xbf   :  { %2752 = vpow2.f32 %v815_v30  ;;  %v2747_v40 = vpop.eup %2746  ;;  %v1644_v42 = vsub.f32 1.0, %v1643_v34  ;;  %v948_v16 = vand.u32 2147483648, %v3417_v4  ;;  %v721_v46 = vmul.f32 1.442695, %v654_v23 }
  0xc0   :  { %v1410_v32 = vsel %vm1409_vm0, %v2741_v2, %v1406_v37  ;;  %v938_v41 = vmul.f32 %v2747_v40, %v3417_v4  ;;  %vm942_vm1 = vweird.f32 %v3417_v4  ;;  %vm3464_vm2 = vcmp.eq.f32.partialorder %v946_v27, 8.507059e+37  ;;  %v501_v4 = vpop.f32.mrf.mxu0 }
  0xc1   :  { %v1415_v24 = vsel %vm3429_vm12, %v1414_v31, %v1410_v32  ;;  %v1645_v50 = vmul.f32 %v2745_v25, %v1644_v42  ;;  %vm1648_vm3 = vweird.f32 %v2745_v25  ;;  %2754 = vpow2.f32 %v721_v46 }
  0xc2   :  { %v2028_v28 = vmul.f32 %v2552_v59, %v1415_v24  ;;  %v939_v51 = vsub.f32 1.0, %v938_v41  ;;  %v2587_v52 = vunpack.c.l.bf16 %v3460_v45  ;;  %v539_v38 = vadd.f32 %v3228_v33, %v538_v47  ;;  %vm1649_vm5 = vmor %vm1647_vm14, %vm1648_vm3 }
  0xc3   :  { %v2749_v61 = vpop.eup %2748  ;;  %v1646_v35 = vadd.f32 %v2745_v25, %v1645_v50  ;;  %v949_v48 = vor.u32 1.1754944e-38, %v948_v16  ;;  %vm1182_vm4 = vweird.f32 %v3442_v22  ;;  %vm943_vm7 = vweird.f32 %v2747_v40 }
  0xc4   :  { %v2751_v53 = vpop.eup %2750  ;;  %v3473_v12 = vadd.f32 1.0, %v2749_v61  ;;  %v2092_v55 = vpack.c.bf16 %v2028_v28, %v2028_v28  ;;  %v940_v56 = vmul.f32 %v2747_v40, %v939_v51  ;;  %v1186_v58 = vand.u32 2147483647, %v3442_v22  ;;  %vm944_vm8 = vmor %vm942_vm1, %vm943_vm7  ;;  %v541_v28 = vpop.f32.mrf.mxu1 }
  0xc5   :  { %v2753_v43 = vpop.eup %2752  ;;  %v1178_v57 = vmul.f32 %v2751_v53, %v3442_v22  ;;  %v1650_v29 = vsel %vm1649_vm5, %v2745_v25, %v1646_v35  ;;  %v1188_v60 = vand.u32 2147483648, %v3442_v22  ;;  %v670_v2 = vsub.f32 0.0, %v539_v38  ;;  %v621_v42 = vpop.f32.mrf.mxu3 }
  0xc6   :  { %2756 = vrcp.f32 %v3473_v12  ;;  %2157 = vst.msk [vmem:[%s4740_s5 + $0x84] sm:$0xf] %vm2123_vm6, %v2092_v55  ;;  %v1655_v54 = vsel %vm3449_vm15, %v1654_v44, %v1650_v29  ;;  %v941_v0 = vadd.f32 %v2747_v40, %v940_v56  ;;  %vm1183_vm9 = vweird.f32 %v2751_v53 }
  0xc7   :  { %v1179_v59 = vsub.f32 1.0, %v1178_v57  ;;  %v2755_v5 = vpop.eup %2754  ;;  %v2044_v6 = vmul.f32 %v2584_v3, %v1655_v54  ;;  %v3491_v63 = vadd.f32 1.0, %v2753_v43  ;;  %v2492_v10 = vunpack.c.h.bf16 %v3402_v62  ;;  %vm1184_vm11 = vmor %vm1182_vm4, %vm1183_vm9 }
  0xc8   :  { %v945_v14 = vsel %vm944_vm8, %v2747_v40, %v941_v0  ;;  %v1426_v17 = vand.u32 2147483647, %v3473_v12  ;;  %v3495_v11 = vadd.f32 1.0, %v2755_v5  ;;  %v1428_v3 = vand.u32 2147483648, %v3473_v12 }
  0xc9   :  { %v1180_v7 = vmul.f32 %v2751_v53, %v1179_v59  ;;  %v2108_v20 = vpack.c.bf16 %v2044_v6, %v2044_v6  ;;  %v950_v1 = vsel %vm3464_vm2, %v949_v48, %v945_v14  ;;  %2758 = vrcp.f32 %v3491_v63 }
  0xca   :  { %v1997_v21 = vmul.f32 %v2491_v8, %v950_v1  ;;  %vm1187_vm10 = vcmp.eq.f32.partialorder %v1186_v58, 8.507059e+37  ;;  %v753_v25 = vmul.f32 1.442695, %v670_v2  ;;  %v1189_v27 = vor.u32 1.1754944e-38, %v1188_v60 }
  0xcb   :  { %v1181_v23 = vadd.f32 %v2751_v53, %v1180_v7  ;;  %2173 = vst.msk [vmem:[%s4740_s5 + $0xc4] sm:$0xf] %vm2123_vm6, %v2108_v20  ;;  %2760 = vrcp.f32 %v3495_v11  ;;  %v579_v30 = vadd.f32 %v3228_v33, %v578_v18  ;;  %v619_v8 = vadd.f32 %v3228_v33, %v618_v19  ;;  %v581_v7 = vpop.f32.mrf.mxu2 }
  0xcc   :  { %v2757_v26 = vpop.eup %2756  ;;  %v2061_v31 = vpack.c.bf16 %v1997_v21, %v1997_v21  ;;  %v502_v39 = vadd.f32 %v3228_v33, %v501_v4  ;;  %vm1422_vm12 = vweird.f32 %v3473_v12  ;;  %vm3516_vm13 = vcmp.eq.f32.partialorder %v1426_v17, 8.507059e+37 }
  0xcd   :  { %v1185_v34 = vsel %vm1184_vm11, %v2751_v53, %v1181_v23  ;;  %v1418_v37 = vmul.f32 %v2757_v26, %v3473_v12  ;;  %v1429_v22 = vor.u32 1.1754944e-38, %v1428_v3  ;;  %vm1662_vm14 = vweird.f32 %v3491_v63 }
  0xce   :  { %v1190_v40 = vsel %vm1187_vm10, %v1189_v27, %v1185_v34  ;;  %2126 = vst.msk [vmem:[%s4740_s5 + $0x8] sm:$0xf] %vm2123_vm6, %v2061_v31  ;;  %2762 = vpow2.f32 %v753_v25  ;;  %v1666_v47 = vand.u32 2147483647, %v3491_v63  ;;  %v961_v32 = vand.u32 2147483647, %v3495_v11 }
  0xcf   :  { %v2013_v44 = vmul.f32 %v2523_v9, %v1190_v40  ;;  %v1419_v16 = vsub.f32 1.0, %v1418_v37  ;;  %v2759_v46 = vpop.eup %2758  ;;  %v686_v41 = vsub.f32 0.0, %v579_v30  ;;  %v702_v49 = vsub.f32 0.0, %v619_v8  ;;  %v3568_v31 = vld [vmem:[%s4739_s4 + $0x10] sm:$0xff]  }
  0xd0   :  { %vm1423_vm15 = vweird.f32 %v2757_v26  ;;  %v1658_v61 = vmul.f32 %v2759_v46, %v3491_v63  ;;  %v1668_v9 = vand.u32 2147483648, %v3491_v63  ;;  %v655_v35 = vsub.f32 0.0, %v502_v39 }
  0xd1   :  { %v2077_v24 = vpack.c.bf16 %v2013_v44, %v2013_v44  ;;  %v1420_v50 = vmul.f32 %v2757_v26, %v1419_v16  ;;  %v2761_v51 = vpop.eup %2760  ;;  %v785_v38 = vmul.f32 1.442695, %v686_v41  ;;  %v817_v53 = vmul.f32 1.442695, %v702_v49  ;;  %vm1424_vm0 = vmor %vm1422_vm12, %vm1423_vm15 }
  0xd2   :  { %v1659_v43 = vsub.f32 1.0, %v1658_v61  ;;  %v953_v55 = vmul.f32 %v2761_v51, %v3495_v11  ;;  %v963_v56 = vand.u32 2147483648, %v3495_v11  ;;  %vm1663_vm1 = vweird.f32 %v2759_v46 }
  0xd3   :  { %2142 = vst.msk [vmem:[%s4740_s5 + $0x48] sm:$0xf] %vm2123_vm6, %v2077_v24  ;;  %v1421_v48 = vadd.f32 %v2757_v26, %v1420_v50  ;;  %2764 = vpow2.f32 %v785_v38  ;;  %v723_v57 = vmul.f32 1.442695, %v655_v35  ;;  %v542_v29 = vadd.f32 %v3228_v33, %v541_v28  ;;  %vm1664_vm3 = vmor %vm1662_vm14, %vm1663_vm1 }
  0xd4   :  { %v2763_v58 = vpop.eup %2762  ;;  %v1660_v54 = vmul.f32 %v2759_v46, %v1659_v43  ;;  %v954_v0 = vsub.f32 1.0, %v953_v55  ;;  %2766 = vpow2.f32 %v817_v53  ;;  %vm958_vm2 = vweird.f32 %v2761_v51 }
  0xd5   :  { %v1425_v60 = vsel %vm1424_vm0, %v2757_v26, %v1421_v48  ;;  %v3542_v2 = vadd.f32 1.0, %v2763_v58  ;;  %v671_v5 = vsub.f32 0.0, %v542_v29  ;;  %2768 = vpow2.f32 %v723_v57 }
  0xd6   :  { %v1430_v59 = vsel %vm3516_vm13, %v1429_v22, %v1425_v60  ;;  %v1661_v6 = vadd.f32 %v2759_v46, %v1660_v54  ;;  %v955_v14 = vmul.f32 %v2761_v51, %v954_v0  ;;  %vm1667_vm4 = vcmp.eq.f32.partialorder %v1666_v47, 8.507059e+37  ;;  %v583_v60 = vpop.f32.mrf.mxu2 }
  0xd7   :  { %v2029_v12 = vmul.f32 %v2555_v36, %v1430_v59  ;;  %v1669_v17 = vor.u32 1.1754944e-38, %v1668_v9  ;;  %vm957_vm5 = vweird.f32 %v3495_v11  ;;  %2770 = vrcp.f32 %v3542_v2 }
  0xd8   :  { %v1665_v19 = vsel %vm1664_vm3, %v2759_v46, %v1661_v6  ;;  %v956_v20 = vadd.f32 %v2761_v51, %v955_v14  ;;  %v755_v1 = vmul.f32 1.442695, %v671_v5  ;;  %vm959_vm7 = vmor %vm957_vm5, %vm958_vm2  ;;  %vm962_vm8 = vcmp.eq.f32.partialorder %v961_v32, 8.507059e+37 }
  0xd9   :  { %v2093_v18 = vpack.c.bf16 %v2029_v12, %v2029_v12  ;;  %v2765_v3 = vpop.eup %2764  ;;  %v1670_v36 = vsel %vm1667_vm4, %v1669_v17, %v1665_v19  ;;  %v964_v4 = vor.u32 1.1754944e-38, %v963_v56  ;;  %v582_v21 = vadd.f32 %v3228_v33, %v581_v7 }
  0xda   :  { %v2767_v63 = vpop.eup %2766  ;;  %v2045_v11 = vmul.f32 %v2587_v52, %v1670_v36  ;;  %v960_v23 = vsel %vm959_vm7, %v2761_v51, %v956_v20  ;;  %v3559_v25 = vadd.f32 1.0, %v2765_v3  ;;  %2772 = vpow2.f32 %v755_v1  ;;  %v3573_v52 = vld [vmem:[%s4739_s4 + $0x50] sm:$0xff]  }
  0xdb   :  { %2158 = vst.msk [vmem:[%s4740_s5 + $0x88] sm:$0xf] %vm2123_vm6, %v2093_v18  ;;  %v965_v26 = vsel %vm962_vm8, %v964_v4, %v960_v23  ;;  %v1201_v27 = vand.u32 2147483647, %v3542_v2  ;;  %v2524_v30 = vunpack.c.h.bf16 %v3407_v13  ;;  %v3563_v8 = vadd.f32 1.0, %v2767_v63  ;;  %v2769_v34 = vpop.eup %2768  ;;  %v503_v4 = vpop.f32.mrf.mxu0 }
  0xdc   :  { %v2109_v37 = vpack.c.bf16 %v2045_v11, %v2045_v11  ;;  %v1998_v39 = vmul.f32 %v2492_v10, %v965_v26  ;;  %2774 = vrcp.f32 %v3559_v25  ;;  %v687_v40 = vsub.f32 0.0, %v582_v21 }
  0xdd   :  { %v2771_v22 = vpop.eup %2770  ;;  %v1203_v44 = vand.u32 2147483648, %v3542_v2  ;;  %v2556_v16 = vunpack.c.h.bf16 %v3438_v15  ;;  %2776 = vrcp.f32 %v3563_v8  ;;  %v2588_v46 = vunpack.c.h.bf16 %v3460_v45 }
  0xde   :  { %2174 = vst.msk [vmem:[%s4740_s5 + $0xc8] sm:$0xf] %vm2123_vm6, %v2109_v37  ;;  %v2062_v62 = vpack.c.bf16 %v1998_v39, %v1998_v39  ;;  %v1193_v10 = vmul.f32 %v2771_v22, %v3542_v2  ;;  %v2495_v47 = vunpack.c.l.bf16 %v3568_v31  ;;  %v2527_v32 = vunpack.c.l.bf16 %v3573_v52 }
  0xdf   :  { %vm3589_vm9 = vcmp.eq.f32.partialorder %v1201_v27, 8.507059e+37  ;;  %v1441_v49 = vand.u32 2147483647, %v3559_v25  ;;  %v3594_v24 = vadd.f32 1.0, %v2769_v34  ;;  %v622_v50 = vadd.f32 %v3228_v33, %v621_v42 }
  0xe0   :  { %v2773_v61 = vpop.eup %2772  ;;  %2127 = vst.msk [vmem:[%s4740_s5 + $0xc] sm:$0xf] %vm2123_vm6, %v2062_v62  ;;  %v1194_v28 = vsub.f32 1.0, %v1193_v10  ;;  %vm1197_vm10 = vweird.f32 %v3542_v2  ;;  %v1443_v51 = vand.u32 2147483648, %v3559_v25  ;;  %v787_v9 = vmul.f32 1.442695, %v687_v40 }
  0xe1   :  { %v1204_v38 = vor.u32 1.1754944e-38, %v1203_v44  ;;  %v1681_v53 = vand.u32 2147483647, %v3563_v8  ;;  %v1683_v35 = vand.u32 2147483648, %v3563_v8  ;;  %2778 = vrcp.f32 %v3594_v24 }
  0xe2   :  { %v2775_v48 = vpop.eup %2774  ;;  %v1195_v43 = vmul.f32 %v2771_v22, %v1194_v28  ;;  %vm1198_vm11 = vweird.f32 %v2771_v22  ;;  %v3606_v55 = vadd.f32 1.0, %v2773_v61  ;;  %2780 = vpow2.f32 %v787_v9 }
  0xe3   :  { %v2777_v56 = vpop.eup %2776  ;;  %v1433_v57 = vmul.f32 %v2775_v48, %v3559_v25  ;;  %vm1437_vm12 = vweird.f32 %v3559_v25  ;;  %vm1677_vm13 = vweird.f32 %v3563_v8  ;;  %v703_v29 = vsub.f32 0.0, %v622_v50  ;;  %vm1199_vm15 = vmor %vm1197_vm10, %vm1198_vm11 }
  0xe4   :  { %v1196_v58 = vadd.f32 %v2771_v22, %v1195_v43  ;;  %vm3611_vm14 = vcmp.eq.f32.partialorder %v1441_v49, 8.507059e+37  ;;  %v1444_v54 = vor.u32 1.1754944e-38, %v1443_v51  ;;  %v1673_v0 = vmul.f32 %v2777_v56, %v3563_v8 }
  0xe5   :  { %v1434_v59 = vsub.f32 1.0, %v1433_v57  ;;  %vm3618_vm0 = vcmp.eq.f32.partialorder %v1681_v53, 8.507059e+37  ;;  %v1684_v12 = vor.u32 1.1754944e-38, %v1683_v35  ;;  %2782 = vrcp.f32 %v3606_v55 }
  0xe6   :  { %v1200_v6 = vsel %vm1199_vm15, %v2771_v22, %v1196_v58  ;;  %v1674_v14 = vsub.f32 1.0, %v1673_v0  ;;  %v976_v7 = vand.u32 2147483647, %v3594_v24  ;;  %v819_v17 = vmul.f32 1.442695, %v703_v29  ;;  %v543_v22 = vpop.f32.mrf.mxu1  ;;  %v3687_v58 = vld [vmem:[%s4739_s4 + $0xd0] sm:$0xff]  }
  0xe7   :  { %v2779_v18 = vpop.eup %2778  ;;  %v1205_v19 = vsel %vm3589_vm9, %v1204_v38, %v1200_v6  ;;  %v1435_v20 = vmul.f32 %v2775_v48, %v1434_v59  ;;  %vm1438_vm1 = vweird.f32 %v2775_v48  ;;  %vm972_vm2 = vweird.f32 %v3594_v24  ;;  %v506_v6 = vpop.f32.mrf.mxu0 }
  0xe8   :  { %v2781_v2 = vpop.eup %2780  ;;  %v2014_v1 = vmul.f32 %v2524_v30, %v1205_v19  ;;  %v1675_v3 = vmul.f32 %v2777_v56, %v1674_v14  ;;  %vm1678_vm3 = vweird.f32 %v2777_v56  ;;  %v968_v36 = vmul.f32 %v2779_v18, %v3594_v24  ;;  %vm1439_vm4 = vmor %vm1437_vm12, %vm1438_vm1 }
  0xe9   :  { %v1436_v21 = vadd.f32 %v2775_v48, %v1435_v20  ;;  %v978_v63 = vand.u32 2147483648, %v3594_v24  ;;  %v3631_v11 = vadd.f32 1.0, %v2781_v2  ;;  %2784 = vpow2.f32 %v819_v17  ;;  %vm1679_vm7 = vmor %vm1677_vm13, %vm1678_vm3  ;;  %v3704_v20 = vld [vmem:[%s4738_s3] ss:$0 sm:$0xff] }
  0xea   :  { %v2078_v23 = vpack.c.bf16 %v2014_v1, %v2014_v1  ;;  %v1676_v26 = vadd.f32 %v2777_v56, %v1675_v3  ;;  %v969_v27 = vsub.f32 1.0, %v968_v36  ;;  %vm3635_vm5 = vcmp.eq.f32.partialorder %v976_v7, 8.507059e+37 }
  0xeb   :  { %v2783_v30 = vpop.eup %2782  ;;  %v1440_v34 = vsel %vm1439_vm4, %v2775_v48, %v1436_v21  ;;  %vm973_vm8 = vweird.f32 %v2779_v18  ;;  %2786 = vrcp.f32 %v3631_v11  ;;  %v504_v37 = vadd.f32 %v3228_v33, %v503_v4 }
  0xec   :  { %2143 = vst.msk [vmem:[%s4740_s5 + $0x4c] sm:$0xf] %vm2123_vm6, %v2078_v23  ;;  %v1445_v25 = vsel %vm3611_vm14, %v1444_v54, %v1440_v34  ;;  %v1680_v39 = vsel %vm1679_vm7, %v2777_v56, %v1676_v26  ;;  %v970_v40 = vmul.f32 %v2779_v18, %v969_v27  ;;  %v1208_v42 = vmul.f32 %v2783_v30, %v3606_v55  ;;  %vm974_vm10 = vmor %vm972_vm2, %vm973_vm8 }
  0xed   :  { %v2030_v8 = vmul.f32 %v2556_v16, %v1445_v25  ;;  %v1685_v44 = vsel %vm3618_vm0, %v1684_v12, %v1680_v39  ;;  %v979_v62 = vor.u32 1.1754944e-38, %v978_v63  ;;  %vm1212_vm9 = vweird.f32 %v3606_v55  ;;  %v3665_v16 = vld [vmem:[%s4739_s4 + $0x90] sm:$0xff]   ;;  %v623_v12 = vpop.f32.mrf.mxu3 }
  0xee   :  { %v2046_v10 = vmul.f32 %v2588_v46, %v1685_v44  ;;  %v971_v41 = vadd.f32 %v2779_v18, %v970_v40  ;;  %v1209_v49 = vsub.f32 1.0, %v1208_v42  ;;  %v1216_v50 = vand.u32 2147483647, %v3606_v55  ;;  %v546_v36 = vpop.f32.mrf.mxu1 }
  0xef   :  { %v2785_v61 = vpop.eup %2784  ;;  %v2094_v28 = vpack.c.bf16 %v2030_v8, %v2030_v8  ;;  %v1218_v15 = vand.u32 2147483648, %v3606_v55  ;;  %v656_v51 = vsub.f32 0.0, %v504_v37  ;;  %v544_v45 = vadd.f32 %v3228_v33, %v543_v22 }
  0xf0   :  { %v2110_v46 = vpack.c.bf16 %v2046_v10, %v2046_v10  ;;  %v975_v9 = vsel %vm974_vm10, %v2779_v18, %v971_v41  ;;  %v1210_v38 = vmul.f32 %v2783_v30, %v1209_v49  ;;  %vm1213_vm11 = vweird.f32 %v2783_v30  ;;  %v586_v10 = vpop.f32.mrf.mxu2 }
  0xf1   :  { %v2787_v53 = vpop.eup %2786  ;;  %2159 = vst.msk [vmem:[%s4740_s5 + $0x8c] sm:$0xf] %vm2123_vm6, %v2094_v28  ;;  %v980_v24 = vsel %vm3635_vm5, %v979_v62, %v975_v9  ;;  %v3674_v35 = vadd.f32 1.0, %v2785_v61  ;;  %v725_v48 = vmul.f32 1.442695, %v656_v51  ;;  %v672_v43 = vsub.f32 0.0, %v544_v45  ;;  %vm1214_vm12 = vmor %vm1212_vm9, %vm1213_vm11 }
  0xf2   :  { %2175 = vst.msk [vmem:[%s4740_s5 + $0xcc] sm:$0xf] %vm2123_vm6, %v2110_v46  ;;  %v1999_v33 = vmul.f32 %v2495_v47, %v980_v24  ;;  %v1211_v56 = vadd.f32 %v2783_v30, %v1210_v38  ;;  %v1448_v57 = vmul.f32 %v2787_v53, %v3631_v11  ;;  %v2559_v29 = vunpack.c.l.bf16 %v3665_v16  ;;  %v3732_v51 = vld [vmem:[%s4739_s4 + $0x18] sm:$0xff]  }
  0xf3   :  { %vm1217_vm13 = vcmp.eq.f32.partialorder %v1216_v50, 8.507059e+37  ;;  %v1219_v54 = vor.u32 1.1754944e-38, %v1218_v15  ;;  %v1456_v0 = vand.u32 2147483647, %v3631_v11  ;;  %2788 = vrcp.f32 %v3674_v35 }
  0xf4   :  { %v2063_v47 = vpack.c.bf16 %v1999_v33, %v1999_v33  ;;  %v1215_v59 = vsel %vm1214_vm12, %v2783_v30, %v1211_v56  ;;  %v1449_v5 = vsub.f32 1.0, %v1448_v57  ;;  %2790 = vpow2.f32 %v725_v48 }
  0xf5   :  { %v1220_v14 = vsel %vm1217_vm13, %v1219_v54, %v1215_v59  ;;  %v1458_v7 = vand.u32 2147483648, %v3631_v11  ;;  %v2591_v17 = vunpack.c.l.bf16 %v3687_v58  ;;  %v757_v18 = vmul.f32 1.442695, %v672_v43 }
  0xf6   :  { %2128 = vst.msk [vmem:[%s4740_s5 + $0x10] sm:$0xf] %vm2123_vm6, %v2063_v47  ;;  %v2015_v55 = vmul.f32 %v2527_v32, %v1220_v14  ;;  %v1450_v19 = vmul.f32 %v2787_v53, %v1449_v5  ;;  %vm1453_vm14 = vweird.f32 %v2787_v53  ;;  %v584_v2 = vadd.f32 %v3704_v20, %v583_v60 }
  0xf7   :  { %vm1452_vm15 = vweird.f32 %v3631_v11  ;;  %2792 = vpow2.f32 %v757_v18  ;;  %v624_v1 = vadd.f32 %v3704_v20, %v623_v12  ;;  %v507_v3 = vadd.f32 %v3704_v20, %v506_v6 }
  0xf8   :  { %v2079_v4 = vpack.c.bf16 %v2015_v55, %v2015_v55  ;;  %v1451_v21 = vadd.f32 %v2787_v53, %v1450_v19  ;;  %vm1457_vm0 = vcmp.eq.f32.partialorder %v1456_v0, 8.507059e+37  ;;  %v688_v32 = vsub.f32 0.0, %v584_v2  ;;  %vm1454_vm1 = vmor %vm1452_vm15, %vm1453_vm14 }
  0xf9   :  { %v2789_v63 = vpop.eup %2788  ;;  %v1459_v23 = vor.u32 1.1754944e-38, %v1458_v7  ;;  %v1696_v26 = vand.u32 2147483647, %v3674_v35  ;;  %v704_v27 = vsub.f32 0.0, %v624_v1  ;;  %v657_v13 = vsub.f32 0.0, %v507_v3 }
  0xfa   :  { %v2791_v30 = vpop.eup %2790  ;;  %2144 = vst.msk [vmem:[%s4740_s5 + $0x50] sm:$0xf] %vm2123_vm6, %v2079_v4  ;;  %v1455_v11 = vsel %vm1454_vm1, %v2787_v53, %v1451_v21  ;;  %v1688_v34 = vmul.f32 %v2789_v63, %v3674_v35  ;;  %v789_v37 = vmul.f32 1.442695, %v688_v32  ;;  %v547_v25 = vadd.f32 %v3704_v20, %v546_v36  ;;  %v626_v36 = vpop.f32.mrf.mxu3 }
  0xfb   :  { %v1460_v39 = vsel %vm1457_vm0, %v1459_v23, %v1455_v11  ;;  %v3717_v40 = vadd.f32 1.0, %v2791_v30  ;;  %v821_v42 = vmul.f32 1.442695, %v704_v27  ;;  %v727_v22 = vmul.f32 1.442695, %v657_v13  ;;  %v508_v4 = vpop.f32.mrf.mxu0 }
  0xfc   :  { %v2031_v8 = vmul.f32 %v2559_v29, %v1460_v39  ;;  %v1689_v44 = vsub.f32 1.0, %v1688_v34  ;;  %v1698_v62 = vand.u32 2147483648, %v3674_v35  ;;  %2794 = vpow2.f32 %v789_v37 }
  0xfd   :  { %v2793_v41 = vpop.eup %2792  ;;  %vm1692_vm2 = vweird.f32 %v3674_v35  ;;  %vm1693_vm3 = vweird.f32 %v2789_v63  ;;  %2796 = vrcp.f32 %v3717_v40  ;;  %v2496_v49 = vunpack.c.h.bf16 %v3568_v31 }
  0xfe   :  { %v2095_v50 = vpack.c.bf16 %v2031_v8, %v2031_v8  ;;  %v1690_v61 = vmul.f32 %v2789_v63, %v1689_v44  ;;  %v3723_v28 = vadd.f32 1.0, %v2793_v41  ;;  %2798 = vpow2.f32 %v821_v42  ;;  %vm1694_vm5 = vmor %vm1692_vm2, %vm1693_vm3 }
  0xff   :  { %vm3725_vm4 = vcmp.eq.f32.partialorder %v1696_v26, 8.507059e+37  ;;  %2800 = vpow2.f32 %v727_v22  ;;  %v673_v45 = vsub.f32 0.0, %v547_v25  ;;  %v587_v46 = vadd.f32 %v3704_v20, %v586_v10 }
 0x100   :  { %2160 = vst.msk [vmem:[%s4740_s5 + $0x90] sm:$0xf] %vm2123_vm6, %v2095_v50  ;;  %v1691_v9 = vadd.f32 %v2789_v63, %v1690_v61  ;;  %v1699_v38 = vor.u32 1.1754944e-38, %v1698_v62  ;;  %v991_v53 = vand.u32 2147483647, %v3717_v40  ;;  %2802 = vrcp.f32 %v3723_v28 }
 0x101   :  { %v993_v24 = vand.u32 2147483648, %v3717_v40  ;;  %v2528_v48 = vunpack.c.h.bf16 %v3573_v52  ;;  %v2560_v43 = vunpack.c.h.bf16 %v3665_v16  ;;  %v759_v33 = vmul.f32 1.442695, %v673_v45 }
 0x102   :  { %v2795_v56 = vpop.eup %2794  ;;  %v1695_v57 = vsel %vm1694_vm5, %v2789_v63, %v1691_v9  ;;  %v1231_v29 = vand.u32 2147483647, %v3723_v28  ;;  %v2592_v60 = vunpack.c.h.bf16 %v3687_v58  ;;  %v2499_v54 = vunpack.c.l.bf16 %v3732_v51 }
 0x103   :  { %v2797_v0 = vpop.eup %2796  ;;  %v1700_v35 = vsel %vm3725_vm4, %v1699_v38, %v1695_v57  ;;  %v3752_v47 = vadd.f32 1.0, %v2795_v56  ;;  %2804 = vpow2.f32 %v759_v33  ;;  %v689_v59 = vsub.f32 0.0, %v587_v46 }
 0x104   :  { %v2799_v5 = vpop.eup %2798  ;;  %v2047_v12 = vmul.f32 %v2591_v17, %v1700_v35  ;;  %v983_v6 = vmul.f32 %v2797_v0, %v3717_v40  ;;  %vm987_vm7 = vweird.f32 %v3717_v40  ;;  %vm3758_vm8 = vcmp.eq.f32.partialorder %v991_v53, 8.507059e+37 }
 0x105   :  { %v2801_v7 = vpop.eup %2800  ;;  %v994_v18 = vor.u32 1.1754944e-38, %v993_v24  ;;  %vm1227_vm9 = vweird.f32 %v3723_v28  ;;  %v1233_v55 = vand.u32 2147483648, %v3723_v28  ;;  %2806 = vrcp.f32 %v3752_v47 }
 0x106   :  { %v2803_v19 = vpop.eup %2802  ;;  %v2111_v2 = vpack.c.bf16 %v2047_v12, %v2047_v12  ;;  %v984_v1 = vsub.f32 1.0, %v983_v6  ;;  %v3765_v17 = vadd.f32 1.0, %v2799_v5  ;;  %v3767_v3 = vadd.f32 1.0, %v2801_v7 }
 0x107   :  { %vm988_vm10 = vweird.f32 %v2797_v0  ;;  %v1223_v21 = vmul.f32 %v2803_v19, %v3723_v28  ;;  %vm3770_vm11 = vcmp.eq.f32.partialorder %v1231_v29, 8.507059e+37  ;;  %v791_v63 = vmul.f32 1.442695, %v689_v59 }
 0x108   :  { %2176 = vst.msk [vmem:[%s4740_s5 + $0xd0] sm:$0xf] %vm2123_vm6, %v2111_v2  ;;  %v985_v23 = vmul.f32 %v2797_v0, %v984_v1  ;;  %v1471_v26 = vand.u32 2147483647, %v3752_v47  ;;  %v1473_v27 = vand.u32 2147483648, %v3752_v47  ;;  %2808 = vrcp.f32 %v3765_v17  ;;  %vm989_vm14 = vmor %vm987_vm7, %vm988_vm10 }
 0x109   :  { %v2805_v13 = vpop.eup %2804  ;;  %v1224_v30 = vsub.f32 1.0, %v1223_v21  ;;  %2810 = vrcp.f32 %v3767_v3  ;;  %v3783_v11 = vadd.f32 %v3704_v20, %v626_v36  ;;  %v3786_v34 = vadd.f32 %v3704_v20, %v508_v4  ;;  %v548_v21 = vpop.f32.mrf.mxu1 }
 0x10a   :  { %v986_v37 = vadd.f32 %v2797_v0, %v985_v23  ;;  %vm1228_vm12 = vweird.f32 %v2803_v19  ;;  %v1234_v25 = vor.u32 1.1754944e-38, %v1233_v55  ;;  %vm1467_vm13 = vweird.f32 %v3752_v47 }
 0x10b   :  { %v2807_v39 = vpop.eup %2806  ;;  %v1225_v42 = vmul.f32 %v2803_v19, %v1224_v30  ;;  %v1711_v22 = vand.u32 2147483647, %v3765_v17  ;;  %v3793_v8 = vadd.f32 1.0, %v2805_v13  ;;  %2812 = vpow2.f32 %v791_v63  ;;  %vm1229_vm1 = vmor %vm1227_vm9, %vm1228_vm12 }
 0x10c   :  { %v990_v44 = vsel %vm989_vm14, %v2797_v0, %v986_v37  ;;  %v1463_v62 = vmul.f32 %v2807_v39, %v3752_v47  ;;  %vm3796_vm15 = vcmp.eq.f32.partialorder %v1471_v26, 8.507059e+37  ;;  %v1474_v41 = vor.u32 1.1754944e-38, %v1473_v27  ;;  %v3854_v26 = vld [vmem:[%s4739_s4 + $0x58] sm:$0xff]  }
 0x10d   :  { %v1713_v50 = vand.u32 2147483648, %v3765_v17  ;;  %v995_v40 = vsel %vm3758_vm8, %v994_v18, %v990_v44  ;;  %v1226_v61 = vadd.f32 %v2803_v19, %v1225_v42  ;;  %vm1707_vm0 = vweird.f32 %v3765_v17  ;;  %v3865_v37 = vld [vmem:[%s4739_s4 + $0x98] sm:$0xff]  }
 0x10e   :  { %v1006_v15 = vand.u32 2147483647, %v3767_v3  ;;  %2814 = vrcp.f32 %v3793_v8  ;;  %v2809_v45 = vpop.eup %2808  ;;  %v2000_v46 = vmul.f32 %v2496_v49, %v995_v40  ;;  %v1464_v9 = vsub.f32 1.0, %v1463_v62 }
 0x10f   :  { %vm1002_vm2 = vweird.f32 %v3767_v3  ;;  %v1008_v38 = vand.u32 2147483648, %v3767_v3  ;;  %v2811_v53 = vpop.eup %2810  ;;  %v1230_v24 = vsel %vm1229_vm1, %v2803_v19, %v1226_v61  ;;  %vm1468_vm3 = vweird.f32 %v2807_v39  ;;  %v628_v61 = vpop.f32.mrf.mxu3 }
 0x110   :  { %v1703_v33 = vmul.f32 %v2809_v45, %v3765_v17  ;;  %vm3814_vm4 = vcmp.eq.f32.partialorder %v1711_v22, 8.507059e+37  ;;  %v2064_v31 = vpack.c.bf16 %v2000_v46, %v2000_v46  ;;  %v1235_v49 = vsel %vm3770_vm11, %v1234_v25, %v1230_v24  ;;  %vm1469_vm7 = vmor %vm1467_vm13, %vm1468_vm3  ;;  %v588_v25 = vpop.f32.mrf.mxu2 }
 0x111   :  { %v1465_v28 = vmul.f32 %v2807_v39, %v1464_v9  ;;  %v998_v57 = vmul.f32 %v2811_v53, %v3767_v3  ;;  %v2813_v29 = vpop.eup %2812  ;;  %v2016_v0 = vmul.f32 %v2528_v48, %v1235_v49  ;;  %v1714_v59 = vor.u32 1.1754944e-38, %v1713_v50 }
 0x112   :  { %v1704_v35 = vsub.f32 1.0, %v1703_v33  ;;  %vm3823_vm5 = vcmp.eq.f32.partialorder %v1006_v15, 8.507059e+37  ;;  %2129 = vst.msk [vmem:[%s4740_s5 + $0x14] sm:$0xf] %vm2123_vm6, %v2064_v31  ;;  %v1009_v14 = vor.u32 1.1754944e-38, %v1008_v38  ;;  %v3831_v7 = vadd.f32 1.0, %v2813_v29  ;;  %v511_v15 = vpop.f32.mrf.mxu0  ;;  %v551_v29 = vpop.f32.mrf.mxu1 }
 0x113   :  { %v1466_v12 = vadd.f32 %v2807_v39, %v1465_v28  ;;  %v999_v6 = vsub.f32 1.0, %v998_v57  ;;  %v2080_v55 = vpack.c.bf16 %v2016_v0, %v2016_v0  ;;  %vm1708_vm8 = vweird.f32 %v2809_v45 }
 0x114   :  { %v2815_v18 = vpop.eup %2814  ;;  %v1705_v52 = vmul.f32 %v2809_v45, %v1704_v35  ;;  %v705_v48 = vsub.f32 0.0, %v3783_v11  ;;  %vm1003_vm9 = vweird.f32 %v2811_v53  ;;  %v1246_v47 = vand.u32 2147483647, %v3793_v8  ;;  %vm1709_vm10 = vmor %vm1707_vm0, %vm1708_vm8 }
 0x115   :  { %v1470_v19 = vsel %vm1469_vm7, %v2807_v39, %v1466_v12  ;;  %v1000_v2 = vmul.f32 %v2811_v53, %v999_v6  ;;  %v1238_v1 = vmul.f32 %v2815_v18, %v3793_v8  ;;  %2145 = vst.msk [vmem:[%s4740_s5 + $0x54] sm:$0xf] %vm2123_vm6, %v2080_v55  ;;  %2816 = vrcp.f32 %v3831_v7  ;;  %vm1004_vm12 = vmor %vm1002_vm2, %vm1003_vm9 }
 0x116   :  { %v1475_v36 = vsel %vm3796_vm15, %v1474_v41, %v1470_v19  ;;  %v1706_v4 = vadd.f32 %v2809_v45, %v1705_v52  ;;  %vm1242_vm11 = vweird.f32 %v3793_v8  ;;  %vm1243_vm13 = vweird.f32 %v2815_v18 }
 0x117   :  { %v2032_v32 = vmul.f32 %v2560_v43, %v1475_v36  ;;  %v1001_v63 = vadd.f32 %v2811_v53, %v1000_v2  ;;  %v1239_v23 = vsub.f32 1.0, %v1238_v1  ;;  %v1248_v16 = vand.u32 2147483648, %v3793_v8  ;;  %vm1244_vm15 = vmor %vm1242_vm11, %vm1243_vm13  ;;  %v3916_v2 = vld [vmem:[%s4739_s4 + $0xd8] sm:$0xff]  }
 0x118   :  { %v1710_v27 = vsel %vm1709_vm10, %v2809_v45, %v1706_v4  ;;  %v823_v43 = vmul.f32 1.442695, %v705_v48  ;;  %vm3871_vm14 = vcmp.eq.f32.partialorder %v1246_v47, 8.507059e+37  ;;  %v2531_v22 = vunpack.c.l.bf16 %v3854_v26  ;;  %v591_v48 = vpop.f32.mrf.mxu2 }
 0x119   :  { %v2096_v17 = vpack.c.bf16 %v2032_v32, %v2032_v32  ;;  %v1715_v13 = vsel %vm3814_vm4, %v1714_v59, %v1710_v27  ;;  %v1005_v30 = vsel %vm1004_vm12, %v2811_v53, %v1001_v63  ;;  %v1240_v11 = vmul.f32 %v2815_v18, %v1239_v23  ;;  %v631_v27 = vpop.f32.mrf.mxu3 }
 0x11a   :  { %v2048_v3 = vmul.f32 %v2592_v60, %v1715_v13  ;;  %v1010_v39 = vsel %vm3823_vm5, %v1009_v14, %v1005_v30  ;;  %2818 = vpow2.f32 %v823_v43  ;;  %v658_v58 = vsub.f32 0.0, %v3786_v34 }
 0x11b   :  { %2161 = vst.msk [vmem:[%s4740_s5 + $0x94] sm:$0xf] %vm2123_vm6, %v2096_v17  ;;  %v2001_v44 = vmul.f32 %v2499_v54, %v1010_v39  ;;  %v1241_v62 = vadd.f32 %v2815_v18, %v1240_v11  ;;  %v2817_v60 = vpop.eup %2816  ;;  %v1249_v41 = vor.u32 1.1754944e-38, %v1248_v16  ;;  %v2563_v50 = vunpack.c.l.bf16 %v3865_v37  ;;  %v3929_v11 = vld [vmem:[%s4739_s4 + $0x20] sm:$0xff]  }
 0x11c   :  { %v2112_v10 = vpack.c.bf16 %v2048_v3, %v2048_v3  ;;  %v549_v40 = vadd.f32 %v3704_v20, %v548_v21  ;;  %v1478_v54 = vmul.f32 %v2817_v60, %v3831_v7  ;;  %v1486_v9 = vand.u32 2147483647, %v3831_v7 }
 0x11d   :  { %v2065_v45 = vpack.c.bf16 %v2001_v44, %v2001_v44  ;;  %v1245_v46 = vsel %vm1244_vm15, %v2815_v18, %v1241_v62  ;;  %v729_v8 = vmul.f32 1.442695, %v658_v58  ;;  %v589_v53 = vadd.f32 %v3704_v20, %v588_v25 }
 0x11e   :  { %2177 = vst.msk [vmem:[%s4740_s5 + $0xd4] sm:$0xf] %vm2123_vm6, %v2112_v10  ;;  %v1250_v34 = vsel %vm3871_vm14, %v1249_v41, %v1245_v46  ;;  %v674_v38 = vsub.f32 0.0, %v549_v40  ;;  %v1479_v33 = vsub.f32 1.0, %v1478_v54  ;;  %v629_v56 = vadd.f32 %v3704_v20, %v628_v61 }
 0x11f   :  { %2130 = vst.msk [vmem:[%s4740_s5 + $0x18] sm:$0xf] %vm2123_vm6, %v2065_v45  ;;  %v2017_v24 = vmul.f32 %v2531_v22, %v1250_v34  ;;  %v512_v31 = vadd.f32 %v3704_v20, %v511_v15  ;;  %v1488_v49 = vand.u32 2147483648, %v3831_v7  ;;  %2820 = vpow2.f32 %v729_v8 }
 0x120   :  { %v761_v28 = vmul.f32 1.442695, %v674_v38  ;;  %v690_v57 = vsub.f32 0.0, %v589_v53  ;;  %v2819_v0 = vpop.eup %2818  ;;  %v1480_v59 = vmul.f32 %v2817_v60, %v1479_v33  ;;  %vm1483_vm0 = vweird.f32 %v2817_v60 }
 0x121   :  { %v2081_v35 = vpack.c.bf16 %v2017_v24, %v2017_v24  ;;  %v706_v5 = vsub.f32 0.0, %v629_v56  ;;  %vm1482_vm1 = vweird.f32 %v3831_v7  ;;  %v3905_v12 = vadd.f32 1.0, %v2819_v0 }
 0x122   :  { %2822 = vpow2.f32 %v761_v28  ;;  %v793_v6 = vmul.f32 1.442695, %v690_v57  ;;  %v1481_v14 = vadd.f32 %v2817_v60, %v1480_v59  ;;  %v659_v55 = vsub.f32 0.0, %v512_v31  ;;  %vm1484_vm2 = vmor %vm1482_vm1, %vm1483_vm0 }
 0x123   :  { %2146 = vst.msk [vmem:[%s4740_s5 + $0x58] sm:$0xf] %vm2123_vm6, %v2081_v35  ;;  %v825_v18 = vmul.f32 1.442695, %v706_v5  ;;  %v552_v52 = vadd.f32 %v3704_v20, %v551_v29  ;;  %v1489_v19 = vor.u32 1.1754944e-38, %v1488_v49  ;;  %2824 = vrcp.f32 %v3905_v12 }
 0x124   :  { %v1485_v7 = vsel %vm1484_vm2, %v2817_v60, %v1481_v14  ;;  %vm1487_vm3 = vcmp.eq.f32.partialorder %v1486_v9, 8.507059e+37  ;;  %2826 = vpow2.f32 %v793_v6  ;;  %v731_v1 = vmul.f32 1.442695, %v659_v55  ;;  %v513_v60 = vpop.f32.mrf.mxu0 }
 0x125   :  { %v2821_v36 = vpop.eup %2820  ;;  %v1490_v4 = vsel %vm1487_vm3, %v1489_v19, %v1485_v7  ;;  %v1726_v47 = vand.u32 2147483647, %v3905_v12  ;;  %2828 = vpow2.f32 %v825_v18  ;;  %v592_v21 = vadd.f32 %v3704_v20, %v591_v48 }
 0x126   :  { %v2033_v32 = vmul.f32 %v2563_v50, %v1490_v4  ;;  %v3920_v63 = vadd.f32 1.0, %v2821_v36  ;;  %2830 = vpow2.f32 %v731_v1  ;;  %v675_v23 = vsub.f32 0.0, %v552_v52 }
 0x127   :  { %v1728_v43 = vand.u32 2147483648, %v3905_v12  ;;  %v2595_v17 = vunpack.c.l.bf16 %v3916_v2  ;;  %v2500_v13 = vunpack.c.h.bf16 %v3732_v51  ;;  %v2532_v30 = vunpack.c.h.bf16 %v3854_v26 }
 0x128   :  { %v2823_v16 = vpop.eup %2822  ;;  %v2097_v25 = vpack.c.bf16 %v2033_v32, %v2033_v32  ;;  %2832 = vrcp.f32 %v3920_v63  ;;  %v2564_v3 = vunpack.c.h.bf16 %v3865_v37  ;;  %v2596_v39 = vunpack.c.h.bf16 %v3916_v2 }
 0x129   :  { %v2825_v42 = vpop.eup %2824  ;;  %v3934_v22 = vadd.f32 1.0, %v2823_v16  ;;  %v763_v44 = vmul.f32 1.442695, %v675_v23  ;;  %v691_v62 = vsub.f32 0.0, %v592_v21  ;;  %v632_v58 = vadd.f32 %v3704_v20, %v631_v27 }
 0x12a   :  { %v2827_v10 = vpop.eup %2826  ;;  %2162 = vst.msk [vmem:[%s4740_s5 + $0x98] sm:$0xf] %vm2123_vm6, %v2097_v25  ;;  %v1718_v41 = vmul.f32 %v2825_v42, %v3905_v12  ;;  %vm1722_vm4 = vweird.f32 %v3905_v12  ;;  %vm3943_vm5 = vcmp.eq.f32.partialorder %v1726_v47, 8.507059e+37  ;;  %v2503_v40 = vunpack.c.l.bf16 %v3929_v11 }
 0x12b   :  { %v2829_v61 = vpop.eup %2828  ;;  %v1729_v15 = vor.u32 1.1754944e-38, %v1728_v43  ;;  %v1021_v45 = vand.u32 2147483647, %v3920_v63  ;;  %v1023_v46 = vand.u32 2147483648, %v3920_v63  ;;  %2834 = vrcp.f32 %v3934_v22 }
 0x12c   :  { %v2831_v54 = vpop.eup %2830  ;;  %v1719_v9 = vsub.f32 1.0, %v1718_v41  ;;  %v3951_v34 = vadd.f32 1.0, %v2827_v10  ;;  %v3953_v8 = vadd.f32 1.0, %v2829_v61  ;;  %v3956_v38 = vadd.f32 %v3704_v20, %v513_v60 }
 0x12d   :  { %vm1017_vm7 = vweird.f32 %v3920_v63  ;;  %2836 = vpow2.f32 %v763_v44  ;;  %v3959_v53 = vmul.f32 1.442695, %v691_v62  ;;  %v707_v24 = vsub.f32 0.0, %v632_v58 }
 0x12e   :  { %v2833_v33 = vpop.eup %2832  ;;  %v1720_v56 = vmul.f32 %v2825_v42, %v1719_v9  ;;  %vm1723_vm8 = vweird.f32 %v2825_v42  ;;  %v1261_v31 = vand.u32 2147483647, %v3934_v22  ;;  %2838 = vrcp.f32 %v3951_v34 }
 0x12f   :  { %v1013_v49 = vmul.f32 %v2833_v33, %v3920_v63  ;;  %vm3964_vm9 = vcmp.eq.f32.partialorder %v1021_v45, 8.507059e+37  ;;  %v1024_v57 = vor.u32 1.1754944e-38, %v1023_v46  ;;  %v3968_v29 = vadd.f32 1.0, %v2831_v54  ;;  %vm1724_vm11 = vmor %vm1722_vm4, %vm1723_vm8 }
 0x130   :  { %v1721_v0 = vadd.f32 %v2825_v42, %v1720_v56  ;;  %vm1257_vm10 = vweird.f32 %v3934_v22  ;;  %v1263_v35 = vand.u32 2147483648, %v3934_v22  ;;  %2840 = vrcp.f32 %v3953_v8 }
 0x131   :  { %v2835_v59 = vpop.eup %2834  ;;  %v1014_v5 = vsub.f32 1.0, %v1013_v49  ;;  %v1501_v6 = vand.u32 2147483647, %v3951_v34  ;;  %v1503_v14 = vand.u32 2147483648, %v3951_v34  ;;  %v3977_v18 = vmul.f32 1.442695, %v707_v24 }
 0x132   :  { %v1725_v55 = vsel %vm1724_vm11, %v2825_v42, %v1721_v0  ;;  %vm1018_vm12 = vweird.f32 %v2833_v33  ;;  %v1253_v52 = vmul.f32 %v2835_v59, %v3934_v22  ;;  %vm3980_vm13 = vcmp.eq.f32.partialorder %v1261_v31, 8.507059e+37 }
 0x133   :  { %v1743_v19 = vand.u32 2147483648, %v3953_v8  ;;  %v2837_v7 = vpop.eup %2836  ;;  %v1730_v12 = vsel %vm3943_vm5, %v1729_v15, %v1725_v55  ;;  %v1015_v1 = vmul.f32 %v2833_v33, %v1014_v5  ;;  %v1741_v36 = vand.u32 2147483647, %v3953_v8  ;;  %vm1019_vm2 = vmor %vm1017_vm7, %vm1018_vm12 }
 0x134   :  { %2842 = vrcp.f32 %v3968_v29  ;;  %v2839_v4 = vpop.eup %2838  ;;  %v2049_v47 = vmul.f32 %v2595_v17, %v1730_v12  ;;  %v1254_v21 = vsub.f32 1.0, %v1253_v52  ;;  %v1264_v32 = vor.u32 1.1754944e-38, %v1263_v35  ;;  %v593_v52 = vpop.f32.mrf.mxu2 }
 0x135   :  { %vm1497_vm14 = vweird.f32 %v3951_v34  ;;  %v1016_v23 = vadd.f32 %v2833_v33, %v1015_v1  ;;  %vm1258_vm15 = vweird.f32 %v2835_v59  ;;  %v1493_v27 = vmul.f32 %v2839_v4, %v3951_v34 }
 0x136   :  { %vm3993_vm0 = vcmp.eq.f32.partialorder %v1501_v6, 8.507059e+37  ;;  %v1504_v43 = vor.u32 1.1754944e-38, %v1503_v14  ;;  %vm1737_vm1 = vweird.f32 %v3953_v8  ;;  %v2841_v25 = vpop.eup %2840  ;;  %v2113_v42 = vpack.c.bf16 %v2049_v47, %v2049_v47  ;;  %vm1259_vm4 = vmor %vm1257_vm10, %vm1258_vm15 }
 0x137   :  { %v1255_v17 = vmul.f32 %v2835_v59, %v1254_v21  ;;  %v1744_v44 = vor.u32 1.1754944e-38, %v1743_v19  ;;  %v4001_v62 = vadd.f32 1.0, %v2837_v7  ;;  %v1020_v58 = vsel %vm1019_vm2, %v2833_v33, %v1016_v23  ;;  %v633_v21 = vpop.f32.mrf.mxu3 }
 0x138   :  { %v1494_v60 = vsub.f32 1.0, %v1493_v27  ;;  %v1733_v10 = vmul.f32 %v2841_v25, %v3953_v8  ;;  %vm4004_vm3 = vcmp.eq.f32.partialorder %v1741_v36, 8.507059e+37  ;;  %v1036_v50 = vand.u32 2147483647, %v3968_v29  ;;  %2178 = vst.msk [vmem:[%s4740_s5 + $0xd8] sm:$0xf] %vm2123_vm6, %v2113_v42 }
 0x139   :  { %v1025_v63 = vsel %vm3964_vm9, %v1024_v57, %v1020_v58  ;;  %v1256_v61 = vadd.f32 %v2835_v59, %v1255_v17  ;;  %v1038_v15 = vand.u32 2147483648, %v3968_v29  ;;  %2844 = vrcp.f32 %v4001_v62  ;;  %v4065_v36 = vld [vmem:[%s4739_s4 + $0x60] sm:$0xff]  }
 0x13a   :  { %v2843_v45 = vpop.eup %2842  ;;  %v2002_v46 = vmul.f32 %v2500_v13, %v1025_v63  ;;  %v1495_v54 = vmul.f32 %v2839_v4, %v1494_v60  ;;  %vm1498_vm5 = vweird.f32 %v2839_v4  ;;  %v1734_v9 = vsub.f32 1.0, %v1733_v10  ;;  %v4092_v60 = vld [vmem:[%s4739_s4 + $0xa0] sm:$0xff]  }
 0x13b   :  { %v1260_v24 = vsel %vm1259_vm4, %v2835_v59, %v1256_v61  ;;  %vm1738_vm7 = vweird.f32 %v2841_v25  ;;  %v1028_v33 = vmul.f32 %v2843_v45, %v3968_v29  ;;  %vm1032_vm8 = vweird.f32 %v3968_v29  ;;  %vm1499_vm9 = vmor %vm1497_vm14, %vm1498_vm5  ;;  %v516_v61 = vpop.f32.mrf.mxu0 }
 0x13c   :  { %v2066_v56 = vpack.c.bf16 %v2002_v46, %v2002_v46  ;;  %v1265_v31 = vsel %vm3980_vm13, %v1264_v32, %v1260_v24  ;;  %v1496_v49 = vadd.f32 %v2839_v4, %v1495_v54  ;;  %v1735_v51 = vmul.f32 %v2841_v25, %v1734_v9  ;;  %vm1739_vm12 = vmor %vm1737_vm1, %vm1738_vm7 }
 0x13d   :  { %v2018_v13 = vmul.f32 %v2532_v30, %v1265_v31  ;;  %v1029_v22 = vsub.f32 1.0, %v1028_v33  ;;  %vm4030_vm10 = vcmp.eq.f32.partialorder %v1036_v50, 8.507059e+37  ;;  %v1039_v57 = vor.u32 1.1754944e-38, %v1038_v15  ;;  %v4103_v50 = vld [vmem:[%s4739_s4 + $0xe0] sm:$0xff]  }
 0x13e   :  { %2131 = vst.msk [vmem:[%s4740_s5 + $0x1c] sm:$0xf] %vm2123_vm6, %v2066_v56  ;;  %v1500_v0 = vsel %vm1499_vm9, %v2839_v4, %v1496_v49  ;;  %v1736_v35 = vadd.f32 %v2841_v25, %v1735_v51  ;;  %vm1272_vm11 = vweird.f32 %v4001_v62  ;;  %2846 = vpow2.f32 %v3959_v53  ;;  %v553_v53 = vpop.f32.mrf.mxu1 }
 0x13f   :  { %v2845_v26 = vpop.eup %2844  ;;  %v2082_v30 = vpack.c.bf16 %v2018_v13, %v2018_v13  ;;  %v1505_v34 = vsel %vm3993_vm0, %v1504_v43, %v1500_v0  ;;  %v1030_v59 = vmul.f32 %v2843_v45, %v1029_v22  ;;  %vm1033_vm13 = vweird.f32 %v2843_v45 }
 0x140   :  { %v2034_v5 = vmul.f32 %v2564_v3, %v1505_v34  ;;  %v1740_v6 = vsel %vm1739_vm12, %v2841_v25, %v1736_v35  ;;  %v1268_v14 = vmul.f32 %v2845_v26, %v4001_v62  ;;  %v1276_v55 = vand.u32 2147483647, %v4001_v62  ;;  %vm1034_vm14 = vmor %vm1032_vm8, %vm1033_vm13 }
 0x141   :  { %2147 = vst.msk [vmem:[%s4740_s5 + $0x5c] sm:$0xf] %vm2123_vm6, %v2082_v30  ;;  %v1745_v8 = vsel %vm4004_vm3, %v1744_v44, %v1740_v6  ;;  %v1031_v48 = vadd.f32 %v2843_v45, %v1030_v59  ;;  %v1278_v19 = vand.u32 2147483648, %v4001_v62  ;;  %2848 = vpow2.f32 %v3977_v18 }
 0x142   :  { %v2098_v37 = vpack.c.bf16 %v2034_v5, %v2034_v5  ;;  %v2050_v3 = vmul.f32 %v2596_v39, %v1745_v8  ;;  %v1269_v7 = vsub.f32 1.0, %v1268_v14  ;;  %v660_v12 = vsub.f32 0.0, %v3956_v38 }
 0x143   :  { %v1035_v1 = vsel %vm1034_vm14, %v2843_v45, %v1031_v48  ;;  %vm1273_vm15 = vweird.f32 %v2845_v26  ;;  %v554_v4 = vadd.f32 %v3704_v20, %v553_v53  ;;  %v594_v18 = vadd.f32 %v3704_v20, %v593_v52 }
 0x144   :  { %v2847_v47 = vpop.eup %2846  ;;  %2163 = vst.msk [vmem:[%s4740_s5 + $0x9c] sm:$0xf] %vm2123_vm6, %v2098_v37  ;;  %v2114_v2 = vpack.c.bf16 %v2050_v3, %v2050_v3  ;;  %v1040_v39 = vsel %vm4030_vm10, %v1039_v57, %v1035_v1  ;;  %v1270_v38 = vmul.f32 %v2845_v26, %v1269_v7  ;;  %v733_v29 = vmul.f32 1.442695, %v660_v12  ;;  %vm1274_vm0 = vmor %vm1272_vm11, %vm1273_vm15 }
 0x145   :  { %v2003_v32 = vmul.f32 %v2503_v40, %v1040_v39  ;;  %v4077_v23 = vadd.f32 1.0, %v2847_v47  ;;  %v676_v27 = vsub.f32 0.0, %v554_v4  ;;  %v2535_v43 = vunpack.c.l.bf16 %v4065_v36  ;;  %v596_v39 = vpop.f32.mrf.mxu2 }
 0x146   :  { %2179 = vst.msk [vmem:[%s4740_s5 + $0xdc] sm:$0xf] %vm2123_vm6, %v2114_v2  ;;  %v1271_v16 = vadd.f32 %v2845_v26, %v1270_v38  ;;  %2850 = vpow2.f32 %v733_v29  ;;  %v692_v25 = vsub.f32 0.0, %v594_v18  ;;  %v1279_v40 = vor.u32 1.1754944e-38, %v1278_v19  ;;  %v556_v59 = vpop.f32.mrf.mxu1  ;;  %v636_v38 = vpop.f32.mrf.mxu3 }
 0x147   :  { %v2849_v42 = vpop.eup %2848  ;;  %v2067_v17 = vpack.c.bf16 %v2003_v32, %v2003_v32  ;;  %2852 = vrcp.f32 %v4077_v23  ;;  %v634_v44 = vadd.f32 %v3704_v20, %v633_v21  ;;  %vm1277_vm1 = vcmp.eq.f32.partialorder %v1276_v55, 8.507059e+37 }
 0x148   :  { %v1275_v58 = vsel %vm1274_vm0, %v2845_v26, %v1271_v16  ;;  %v4094_v10 = vadd.f32 1.0, %v2849_v42  ;;  %v765_v41 = vmul.f32 1.442695, %v676_v27  ;;  %v797_v63 = vmul.f32 1.442695, %v692_v25 }
 0x149   :  { %2132 = vst.msk [vmem:[%s4740_s5 + $0x20] sm:$0xf] %vm2123_vm6, %v2067_v17  ;;  %v1280_v62 = vsel %vm1277_vm1, %v1279_v40, %v1275_v58  ;;  %v1516_v45 = vand.u32 2147483647, %v4077_v23  ;;  %v1518_v46 = vand.u32 2147483648, %v4077_v23  ;;  %v2567_v54 = vunpack.c.l.bf16 %v4092_v60 }
 0x14a   :  { %v2019_v15 = vmul.f32 %v2535_v43, %v1280_v62  ;;  %2854 = vrcp.f32 %v4094_v10  ;;  %v708_v9 = vsub.f32 0.0, %v634_v44  ;;  %v2599_v56 = vunpack.c.l.bf16 %v4103_v50 }
 0x14b   :  { %2856 = vpow2.f32 %v765_v41  ;;  %v517_v31 = vadd.f32 %v3704_v20, %v516_v61  ;;  %v2504_v13 = vunpack.c.h.bf16 %v3929_v11  ;;  %v2536_v22 = vunpack.c.h.bf16 %v4065_v36 }
 0x14c   :  { %v2851_v24 = vpop.eup %2850  ;;  %v2083_v33 = vpack.c.bf16 %v2019_v15, %v2019_v15  ;;  %2858 = vpow2.f32 %v797_v63  ;;  %v829_v28 = vmul.f32 1.442695, %v708_v9  ;;  %vm1512_vm2 = vweird.f32 %v4077_v23 }
 0x14d   :  { %v2853_v49 = vpop.eup %2852  ;;  %v4111_v51 = vadd.f32 1.0, %v2851_v24  ;;  %vm4121_vm3 = vcmp.eq.f32.partialorder %v1516_v45, 8.507059e+37  ;;  %v661_v35 = vsub.f32 0.0, %v517_v31  ;;  %v1519_v26 = vor.u32 1.1754944e-38, %v1518_v46 }
 0x14e   :  { %2148 = vst.msk [vmem:[%s4740_s5 + $0x60] sm:$0xf] %vm2123_vm6, %v2083_v33  ;;  %v1508_v57 = vmul.f32 %v2853_v49, %v4077_v23  ;;  %v1756_v30 = vand.u32 2147483647, %v4094_v10  ;;  %v2568_v34 = vunpack.c.h.bf16 %v4092_v60  ;;  %v1758_v14 = vand.u32 2147483648, %v4094_v10 }
 0x14f   :  { %2860 = vrcp.f32 %v4111_v51  ;;  %v735_v55 = vmul.f32 1.442695, %v661_v35  ;;  %vm1513_vm4 = vweird.f32 %v2853_v49  ;;  %v1051_v8 = vand.u32 2147483647, %v4111_v51 }
 0x150   :  { %v2855_v5 = vpop.eup %2854  ;;  %v1509_v6 = vsub.f32 1.0, %v1508_v57  ;;  %2862 = vpow2.f32 %v829_v28  ;;  %v1053_v48 = vand.u32 2147483648, %v4111_v51  ;;  %v557_v7 = vadd.f32 %v3704_v20, %v556_v59  ;;  %vm1514_vm8 = vmor %vm1512_vm2, %vm1513_vm4 }
 0x151   :  { %v2857_v53 = vpop.eup %2856  ;;  %v1748_v52 = vmul.f32 %v2855_v5, %v4094_v10  ;;  %2864 = vpow2.f32 %v735_v55  ;;  %vm1752_vm5 = vweird.f32 %v4094_v10  ;;  %v2600_v4 = vunpack.c.h.bf16 %v4103_v50 }
 0x152   :  { %v2859_v19 = vpop.eup %2858  ;;  %v1510_v37 = vmul.f32 %v2853_v49, %v1509_v6  ;;  %v4132_v3 = vadd.f32 1.0, %v2857_v53  ;;  %vm4139_vm7 = vcmp.eq.f32.partialorder %v1756_v30, 8.507059e+37  ;;  %v1759_v2 = vor.u32 1.1754944e-38, %v1758_v14 }
 0x153   :  { %v1749_v12 = vsub.f32 1.0, %v1748_v52  ;;  %v4136_v1 = vadd.f32 1.0, %v2859_v19  ;;  %vm1753_vm9 = vweird.f32 %v2855_v5  ;;  %vm1047_vm10 = vweird.f32 %v4111_v51 }
 0x154   :  { %v1511_v18 = vadd.f32 %v2853_v49, %v1510_v37  ;;  %2866 = vrcp.f32 %v4132_v3  ;;  %vm4150_vm11 = vcmp.eq.f32.partialorder %v1051_v8, 8.507059e+37  ;;  %v1054_v25 = vor.u32 1.1754944e-38, %v1053_v48  ;;  %vm1754_vm12 = vmor %vm1752_vm5, %vm1753_vm9 }
 0x155   :  { %v2861_v29 = vpop.eup %2860  ;;  %v1750_v21 = vmul.f32 %v2855_v5, %v1749_v12  ;;  %2868 = vrcp.f32 %v4136_v1  ;;  %v677_v42 = vsub.f32 0.0, %v557_v7  ;;  %v597_v40 = vadd.f32 %v3704_v20, %v596_v39 }
 0x156   :  { %v2863_v32 = vpop.eup %2862  ;;  %v1515_v27 = vsel %vm1514_vm8, %v2853_v49, %v1511_v18  ;;  %v1043_v16 = vmul.f32 %v2861_v29, %v4111_v51  ;;  %v4158_v44 = vadd.f32 %v3704_v20, %v636_v38  ;;  %v1291_v63 = vand.u32 2147483647, %v4132_v3 }
 0x157   :  { %v1520_v23 = vsel %vm4121_vm3, %v1519_v26, %v1515_v27  ;;  %v1751_v17 = vadd.f32 %v2855_v5, %v1750_v21  ;;  %v2865_v58 = vpop.eup %2864  ;;  %v4166_v61 = vadd.f32 1.0, %v2863_v32  ;;  %vm1048_vm13 = vweird.f32 %v2861_v29  ;;  %v518_v27 = vpop.f32.mrf.mxu0 }
 0x158   :  { %v2035_v41 = vmul.f32 %v2567_v54, %v1520_v23  ;;  %v1044_v62 = vsub.f32 1.0, %v1043_v16  ;;  %vm1287_vm14 = vweird.f32 %v4132_v3  ;;  %v1293_v20 = vand.u32 2147483648, %v4132_v3  ;;  %vm1049_vm1 = vmor %vm1047_vm10, %vm1048_vm13 }
 0x159   :  { %v1755_v15 = vsel %vm1754_vm12, %v2855_v5, %v1751_v17  ;;  %v1531_v45 = vand.u32 2147483647, %v4136_v1  ;;  %v4173_v24 = vadd.f32 1.0, %v2865_v58  ;;  %vm1527_vm15 = vweird.f32 %v4136_v1  ;;  %v558_v17 = vpop.f32.mrf.mxu1 }
 0x15a   :  { %v2867_v46 = vpop.eup %2866  ;;  %v2099_v9 = vpack.c.bf16 %v2035_v41, %v2035_v41  ;;  %v1760_v54 = vsel %vm4139_vm7, %v1759_v2, %v1755_v15  ;;  %v1045_v10 = vmul.f32 %v2861_v29, %v1044_v62  ;;  %2870 = vrcp.f32 %v4166_v61 }
 0x15b   :  { %v2869_v33 = vpop.eup %2868  ;;  %v2051_v31 = vmul.f32 %v2599_v56, %v1760_v54  ;;  %v1283_v49 = vmul.f32 %v2867_v46, %v4132_v3  ;;  %vm4184_vm0 = vcmp.eq.f32.partialorder %v1291_v63, 8.507059e+37  ;;  %v1533_v56 = vand.u32 2147483648, %v4136_v1 }
 0x15c   :  { %2164 = vst.msk [vmem:[%s4740_s5 + $0xa0] sm:$0xf] %vm2123_vm6, %v2099_v9  ;;  %v1046_v28 = vadd.f32 %v2861_v29, %v1045_v10  ;;  %v1523_v0 = vmul.f32 %v2869_v33, %v4136_v1  ;;  %v1294_v30 = vor.u32 1.1754944e-38, %v1293_v20  ;;  %v767_v59 = vmul.f32 1.442695, %v677_v42 }
 0x15d   :  { %v2115_v35 = vpack.c.bf16 %v2051_v31, %v2051_v31  ;;  %v1284_v26 = vsub.f32 1.0, %v1283_v49  ;;  %vm4193_vm2 = vcmp.eq.f32.partialorder %v1531_v45, 8.507059e+37  ;;  %2872 = vrcp.f32 %v4173_v24 }
 0x15e   :  { %v1050_v5 = vsel %vm1049_vm1, %v2861_v29, %v1046_v28  ;;  %v1524_v6 = vsub.f32 1.0, %v1523_v0  ;;  %vm1288_vm3 = vweird.f32 %v2867_v46  ;;  %v1773_v53 = vand.u32 2147483648, %v4166_v61  ;;  %v4265_v28 = vld [vmem:[%s4739_s4 + $0x68] sm:$0xff]  }
 0x15f   :  { %2180 = vst.msk [vmem:[%s4740_s5 + $0xe0] sm:$0xf] %vm2123_vm6, %v2115_v35  ;;  %v1055_v51 = vsel %vm4150_vm11, %v1054_v25, %v1050_v5  ;;  %v1285_v55 = vmul.f32 %v2867_v46, %v1284_v26  ;;  %vm1528_vm4 = vweird.f32 %v2869_v33  ;;  %v1534_v48 = vor.u32 1.1754944e-38, %v1533_v56  ;;  %vm1289_vm7 = vmor %vm1287_vm14, %vm1288_vm3  ;;  %v598_v26 = vpop.f32.mrf.mxu2 }
 0x160   :  { %v2004_v52 = vmul.f32 %v2504_v13, %v1055_v51  ;;  %v1525_v8 = vmul.f32 %v2869_v33, %v1524_v6  ;;  %v2871_v19 = vpop.eup %2870  ;;  %vm1767_vm5 = vweird.f32 %v4166_v61  ;;  %2874 = vpow2.f32 %v767_v59  ;;  %vm1529_vm8 = vmor %vm1527_vm15, %vm1528_vm4 }
 0x161   :  { %v1286_v37 = vadd.f32 %v2867_v46, %v1285_v55  ;;  %v693_v7 = vsub.f32 0.0, %v597_v40  ;;  %v1763_v47 = vmul.f32 %v2871_v19, %v4166_v61  ;;  %v1771_v2 = vand.u32 2147483647, %v4166_v61 }
 0x162   :  { %v2068_v12 = vpack.c.bf16 %v2004_v52, %v2004_v52  ;;  %v1526_v18 = vadd.f32 %v2869_v33, %v1525_v8  ;;  %v1774_v13 = vor.u32 1.1754944e-38, %v1773_v53  ;;  %vm1062_vm9 = vweird.f32 %v4173_v24 }
 0x163   :  { %v1290_v11 = vsel %vm1289_vm7, %v2867_v46, %v1286_v37  ;;  %v799_v39 = vmul.f32 1.442695, %v693_v7  ;;  %v2873_v38 = vpop.eup %2872  ;;  %v1764_v21 = vsub.f32 1.0, %v1763_v47  ;;  %v1066_v32 = vand.u32 2147483647, %v4173_v24 }
 0x164   :  { %2133 = vst.msk [vmem:[%s4740_s5 + $0x24] sm:$0xf] %vm2123_vm6, %v2068_v12  ;;  %v1295_v3 = vsel %vm4184_vm0, %v1294_v30, %v1290_v11  ;;  %v1530_v29 = vsel %vm1529_vm8, %v2869_v33, %v1526_v18  ;;  %vm1768_vm10 = vweird.f32 %v2871_v19  ;;  %v1058_v43 = vmul.f32 %v2873_v38, %v4173_v24  ;;  %v638_v30 = vpop.f32.mrf.mxu3 }
 0x165   :  { %v2020_v1 = vmul.f32 %v2536_v22, %v1295_v3  ;;  %v1535_v16 = vsel %vm4193_vm2, %v1534_v48, %v1530_v29  ;;  %v1765_v42 = vmul.f32 %v2871_v19, %v1764_v21  ;;  %2876 = vpow2.f32 %v799_v39  ;;  %v4234_v22 = vld [vmem:[%s4738_s3] ss:$0 sm:$0xff]  ;;  %vm1769_vm11 = vmor %vm1767_vm5, %vm1768_vm10 }
 0x166   :  { %v2036_v25 = vmul.f32 %v2568_v34, %v1535_v16  ;;  %v709_v23 = vsub.f32 0.0, %v4158_v44  ;;  %v2875_v40 = vpop.eup %2874  ;;  %v1059_v41 = vsub.f32 1.0, %v1058_v43  ;;  %v1068_v36 = vand.u32 2147483648, %v4173_v24  ;;  %v4240_v34 = vld [vmem:[%s4739_s4 + $0x28] sm:$0xff]  }
 0x167   :  { %v2084_v58 = vpack.c.bf16 %v2020_v1, %v2020_v1  ;;  %v519_v62 = vadd.f32 %v4234_v22, %v518_v27  ;;  %v1766_v60 = vadd.f32 %v2871_v19, %v1765_v42  ;;  %v4242_v44 = vadd.f32 1.0, %v2875_v40  ;;  %v4277_v24 = vld [vmem:[%s4739_s4 + $0xe8] sm:$0xff]   ;;  %v521_v40 = vpop.f32.mrf.mxu0 }
 0x168   :  { %v2100_v63 = vpack.c.bf16 %v2036_v25, %v2036_v25  ;;  %v831_v15 = vmul.f32 1.442695, %v709_v23  ;;  %v1060_v20 = vmul.f32 %v2873_v38, %v1059_v41  ;;  %vm1063_vm12 = vweird.f32 %v2873_v38 }
 0x169   :  { %2149 = vst.msk [vmem:[%s4740_s5 + $0x64] sm:$0xf] %vm2123_vm6, %v2084_v58  ;;  %v662_v45 = vsub.f32 0.0, %v519_v62  ;;  %v559_v46 = vadd.f32 %v4234_v22, %v558_v17  ;;  %v1770_v9 = vsel %vm1769_vm11, %v2871_v19, %v1766_v60  ;;  %vm1772_vm13 = vcmp.eq.f32.partialorder %v1771_v2, 8.507059e+37  ;;  %vm1064_vm14 = vmor %vm1062_vm9, %vm1063_vm12 }
 0x16a   :  { %2165 = vst.msk [vmem:[%s4740_s5 + $0xa4] sm:$0xf] %vm2123_vm6, %v2100_v63  ;;  %2878 = vrcp.f32 %v4242_v44  ;;  %v1775_v54 = vsel %vm1772_vm13, %v1774_v13, %v1770_v9  ;;  %v1061_v10 = vadd.f32 %v2873_v38, %v1060_v20  ;;  %v2507_v33 = vunpack.c.l.bf16 %v4240_v34 }
 0x16b   :  { %2880 = vpow2.f32 %v831_v15  ;;  %v2877_v61 = vpop.eup %2876  ;;  %v2052_v31 = vmul.f32 %v2600_v4, %v1775_v54  ;;  %v1069_v49 = vor.u32 1.1754944e-38, %v1068_v36  ;;  %v737_v57 = vmul.f32 1.442695, %v662_v45  ;;  %v4272_v4 = vld [vmem:[%s4739_s4 + $0xa8] sm:$0xff]   ;;  %v561_v15 = vpop.f32.mrf.mxu1 }
 0x16c   :  { %v678_v0 = vsub.f32 0.0, %v559_v46  ;;  %v1065_v56 = vsel %vm1064_vm14, %v2873_v38, %v1061_v10  ;;  %vm1067_vm15 = vcmp.eq.f32.partialorder %v1066_v32, 8.507059e+37  ;;  %v4267_v35 = vadd.f32 1.0, %v2877_v61 }
 0x16d   :  { %v2116_v59 = vpack.c.bf16 %v2052_v31, %v2052_v31  ;;  %v1070_v50 = vsel %vm1067_vm15, %v1069_v49, %v1065_v56  ;;  %2882 = vpow2.f32 %v737_v57  ;;  %v1306_v14 = vand.u32 2147483647, %v4242_v44 }
 0x16e   :  { %v769_v5 = vmul.f32 1.442695, %v678_v0  ;;  %v2005_v6 = vmul.f32 %v2507_v33, %v1070_v50  ;;  %v2539_v51 = vunpack.c.l.bf16 %v4265_v28  ;;  %2884 = vrcp.f32 %v4267_v35 }
 0x16f   :  { %2181 = vst.msk [vmem:[%s4740_s5 + $0xe4] sm:$0xf] %vm2123_vm6, %v2116_v59  ;;  %v1308_v53 = vand.u32 2147483648, %v4242_v44  ;;  %v599_v52 = vadd.f32 %v4234_v22, %v598_v26  ;;  %v639_v8 = vadd.f32 %v4234_v22, %v638_v30  ;;  %v2571_v7 = vunpack.c.l.bf16 %v4272_v4 }
 0x170   :  { %v2879_v55 = vpop.eup %2878  ;;  %2886 = vpow2.f32 %v769_v5  ;;  %v2069_v19 = vpack.c.bf16 %v2005_v6, %v2005_v6  ;;  %v2603_v12 = vunpack.c.l.bf16 %v4277_v24  ;;  %v1546_v18 = vand.u32 2147483647, %v4267_v35 }
 0x171   :  { %v2881_v48 = vpop.eup %2880  ;;  %v1298_v37 = vmul.f32 %v2879_v55, %v4242_v44  ;;  %v2508_v2 = vunpack.c.h.bf16 %v4240_v34  ;;  %v694_v11 = vsub.f32 0.0, %v599_v52  ;;  %vm1302_vm0 = vweird.f32 %v4242_v44 }
 0x172   :  { %v4293_v47 = vadd.f32 1.0, %v2881_v48  ;;  %2134 = vst.msk [vmem:[%s4740_s5 + $0x28] sm:$0xf] %vm2123_vm6, %v2069_v19  ;;  %v1548_v39 = vand.u32 2147483648, %v4267_v35  ;;  %v710_v38 = vsub.f32 0.0, %v639_v8  ;;  %vm1303_vm1 = vweird.f32 %v2879_v55 }
 0x173   :  { %v1299_v13 = vsub.f32 1.0, %v1298_v37  ;;  %v2883_v3 = vpop.eup %2882  ;;  %vm4302_vm2 = vcmp.eq.f32.partialorder %v1306_v14, 8.507059e+37  ;;  %v1309_v21 = vor.u32 1.1754944e-38, %v1308_v53  ;;  %v801_v16 = vmul.f32 1.442695, %v694_v11  ;;  %vm1304_vm5 = vmor %vm1302_vm0, %vm1303_vm1 }
 0x174   :  { %2888 = vrcp.f32 %v4293_v47  ;;  %v2885_v32 = vpop.eup %2884  ;;  %v4307_v1 = vadd.f32 1.0, %v2883_v3  ;;  %v833_v43 = vmul.f32 1.442695, %v710_v38  ;;  %vm1542_vm3 = vweird.f32 %v4267_v35 }
 0x175   :  { %v1300_v27 = vmul.f32 %v2879_v55, %v1299_v13  ;;  %v1538_v42 = vmul.f32 %v2885_v32, %v4267_v35  ;;  %vm4311_vm4 = vcmp.eq.f32.partialorder %v1546_v18, 8.507059e+37  ;;  %v2540_v17 = vunpack.c.h.bf16 %v4265_v28 }
 0x176   :  { %v2887_v25 = vpop.eup %2886  ;;  %v1549_v41 = vor.u32 1.1754944e-38, %v1548_v39  ;;  %v1786_v36 = vand.u32 2147483647, %v4293_v47  ;;  %2890 = vrcp.f32 %v4307_v1  ;;  %v1788_v63 = vand.u32 2147483648, %v4293_v47 }
 0x177   :  { %v1301_v58 = vadd.f32 %v2879_v55, %v1300_v27  ;;  %v1539_v62 = vsub.f32 1.0, %v1538_v42  ;;  %v4322_v60 = vadd.f32 1.0, %v2887_v25  ;;  %2892 = vpow2.f32 %v801_v16 }
 0x178   :  { %vm1543_vm7 = vweird.f32 %v2885_v32  ;;  %2894 = vpow2.f32 %v833_v43  ;;  %v522_v45 = vadd.f32 %v4234_v22, %v521_v40  ;;  %v1081_v44 = vand.u32 2147483647, %v4307_v1 }
 0x179   :  { %v1305_v20 = vsel %vm1304_vm5, %v2879_v55, %v1301_v58  ;;  %v1540_v54 = vmul.f32 %v2885_v32, %v1539_v62  ;;  %2896 = vrcp.f32 %v4322_v60  ;;  %v2572_v61 = vunpack.c.h.bf16 %v4272_v4  ;;  %vm1544_vm10 = vmor %vm1542_vm3, %vm1543_vm7  ;;  %v4441_v4 = vld [vmem:[%s4739_s4 + $0x70] sm:$0xff]  }
 0x17a   :  { %v2889_v46 = vpop.eup %2888  ;;  %v1310_v9 = vsel %vm4302_vm2, %v1309_v21, %v1305_v20  ;;  %v4332_v31 = vadd.f32 %v4234_v22, %v561_v15  ;;  %vm1782_vm8 = vweird.f32 %v4293_v47  ;;  %vm4335_vm9 = vcmp.eq.f32.partialorder %v1786_v36, 8.507059e+37 }
 0x17b   :  { %v2021_v10 = vmul.f32 %v2539_v51, %v1310_v9  ;;  %v1778_v33 = vmul.f32 %v2889_v46, %v4293_v47  ;;  %v1541_v49 = vadd.f32 %v2885_v32, %v1540_v54  ;;  %v1789_v0 = vor.u32 1.1754944e-38, %v1788_v63 }
 0x17c   :  { %v2891_v56 = vpop.eup %2890  ;;  %vm1077_vm11 = vweird.f32 %v4307_v1  ;;  %v1083_v59 = vand.u32 2147483648, %v4307_v1  ;;  %vm4345_vm12 = vcmp.eq.f32.partialorder %v1081_v44, 8.507059e+37  ;;  %v2604_v51 = vunpack.c.h.bf16 %v4277_v24  ;;  %v4454_v24 = vld [vmem:[%s4739_s4 + $0xf0] sm:$0xff]  }
 0x17d   :  { %v2085_v26 = vpack.c.bf16 %v2021_v10, %v2021_v10  ;;  %v1779_v30 = vsub.f32 1.0, %v1778_v33  ;;  %v2893_v50 = vpop.eup %2892  ;;  %v1545_v5 = vsel %vm1544_vm10, %v2885_v32, %v1541_v49  ;;  %v1073_v6 = vmul.f32 %v2891_v56, %v4307_v1  ;;  %v641_v10 = vpop.f32.mrf.mxu3 }
 0x17e   :  { %v663_v55 = vsub.f32 0.0, %v522_v45  ;;  %v2895_v53 = vpop.eup %2894  ;;  %v1550_v35 = vsel %vm4311_vm4, %v1549_v41, %v1545_v5  ;;  %vm1783_vm13 = vweird.f32 %v2889_v46  ;;  %v4356_v8 = vadd.f32 1.0, %v2893_v50 }
 0x17f   :  { %2150 = vst.msk [vmem:[%s4740_s5 + $0x68] sm:$0xf] %vm2123_vm6, %v2085_v26  ;;  %v1780_v52 = vmul.f32 %v2889_v46, %v1779_v30  ;;  %v2897_v48 = vpop.eup %2896  ;;  %v2037_v19 = vmul.f32 %v2571_v7, %v1550_v35  ;;  %v1074_v37 = vsub.f32 1.0, %v1073_v6  ;;  %v1321_v18 = vand.u32 2147483647, %v4322_v60  ;;  %vm1784_vm14 = vmor %vm1782_vm8, %vm1783_vm13  ;;  %v601_v7 = vpop.f32.mrf.mxu2 }
 0x180   :  { %v4361_v11 = vadd.f32 1.0, %v2895_v53  ;;  %v1313_v39 = vmul.f32 %v2897_v48, %v4322_v60  ;;  %v1323_v38 = vand.u32 2147483648, %v4322_v60  ;;  %2898 = vrcp.f32 %v4356_v8  ;;  %v523_v26 = vpop.f32.mrf.mxu0 }
 0x181   :  { %v1781_v13 = vadd.f32 %v2889_v46, %v1780_v52  ;;  %v2101_v3 = vpack.c.bf16 %v2037_v19, %v2037_v19  ;;  %v1075_v29 = vmul.f32 %v2891_v56, %v1074_v37  ;;  %vm1078_vm15 = vweird.f32 %v2891_v56 }
 0x182   :  { %v739_v21 = vmul.f32 1.442695, %v663_v55  ;;  %v1084_v27 = vor.u32 1.1754944e-38, %v1083_v59  ;;  %v1314_v16 = vsub.f32 1.0, %v1313_v39  ;;  %2900 = vrcp.f32 %v4361_v11  ;;  %vm1079_vm1 = vmor %vm1077_vm11, %vm1078_vm15 }
 0x183   :  { %v1785_v32 = vsel %vm1784_vm14, %v2889_v46, %v1781_v13  ;;  %2166 = vst.msk [vmem:[%s4740_s5 + $0xa8] sm:$0xf] %vm2123_vm6, %v2101_v3  ;;  %v1076_v25 = vadd.f32 %v2891_v56, %v1075_v29  ;;  %vm1317_vm0 = vweird.f32 %v4322_v60  ;;  %v679_v47 = vsub.f32 0.0, %v4332_v31 }
 0x184   :  { %v1790_v43 = vsel %vm4335_vm9, %v1789_v0, %v1785_v32  ;;  %v1315_v23 = vmul.f32 %v2897_v48, %v1314_v16  ;;  %vm1318_vm2 = vweird.f32 %v2897_v48  ;;  %v602_v40 = vadd.f32 %v4234_v22, %v601_v7 }
 0x185   :  { %v2053_v42 = vmul.f32 %v2603_v12, %v1790_v43  ;;  %v1080_v58 = vsel %vm1079_vm1, %v2891_v56, %v1076_v25  ;;  %vm4382_vm3 = vcmp.eq.f32.partialorder %v1321_v18, 8.507059e+37  ;;  %v1324_v36 = vor.u32 1.1754944e-38, %v1323_v38  ;;  %vm1319_vm5 = vmor %vm1317_vm0, %vm1318_vm2  ;;  %v563_v18 = vpop.f32.mrf.mxu1 }
 0x186   :  { %2902 = vpow2.f32 %v739_v21  ;;  %v2899_v62 = vpop.eup %2898  ;;  %v1085_v15 = vsel %vm4345_vm12, %v1084_v27, %v1080_v58  ;;  %v1316_v12 = vadd.f32 %v2897_v48, %v1315_v23  ;;  %vm1557_vm4 = vweird.f32 %v4356_v8 }
 0x187   :  { %v2117_v63 = vpack.c.bf16 %v2053_v42, %v2053_v42  ;;  %v2006_v1 = vmul.f32 %v2508_v2, %v1085_v15  ;;  %v1553_v20 = vmul.f32 %v2899_v62, %v4356_v8  ;;  %v1561_v45 = vand.u32 2147483647, %v4356_v8  ;;  %v603_v21 = vpop.f32.mrf.mxu2 }
 0x188   :  { %v1801_v46 = vand.u32 2147483647, %v4361_v11  ;;  %v2901_v9 = vpop.eup %2900  ;;  %v1320_v54 = vsel %vm1319_vm5, %v2897_v48, %v1316_v12  ;;  %v1563_v44 = vand.u32 2147483648, %v4356_v8  ;;  %v771_v34 = vmul.f32 1.442695, %v679_v47  ;;  %v4427_v8 = vld [vmem:[%s4739_s4 + $0x30] sm:$0xff]  }
 0x189   :  { %2182 = vst.msk [vmem:[%s4740_s5 + $0xe8] sm:$0xf] %vm2123_vm6, %v2117_v63  ;;  %v695_v2 = vsub.f32 0.0, %v602_v40  ;;  %v2070_v60 = vpack.c.bf16 %v2006_v1, %v2006_v1  ;;  %v1325_v33 = vsel %vm4382_vm3, %v1324_v36, %v1320_v54  ;;  %v1554_v31 = vsub.f32 1.0, %v1553_v20 }
 0x18a   :  { %v1793_v49 = vmul.f32 %v2901_v9, %v4361_v11  ;;  %v2022_v57 = vmul.f32 %v2540_v17, %v1325_v33  ;;  %v1803_v0 = vand.u32 2147483648, %v4361_v11  ;;  %2904 = vpow2.f32 %v771_v34 }
 0x18b   :  { %v803_v56 = vmul.f32 1.442695, %v695_v2  ;;  %2135 = vst.msk [vmem:[%s4740_s5 + $0x2c] sm:$0xf] %vm2123_vm6, %v2070_v60  ;;  %v1555_v59 = vmul.f32 %v2899_v62, %v1554_v31  ;;  %vm1558_vm7 = vweird.f32 %v2899_v62  ;;  %v642_v5 = vadd.f32 %v4234_v22, %v641_v10  ;;  %v643_v31 = vpop.f32.mrf.mxu3 }
 0x18c   :  { %v2903_v30 = vpop.eup %2902  ;;  %v1794_v50 = vsub.f32 1.0, %v1793_v49  ;;  %v2086_v6 = vpack.c.bf16 %v2022_v57, %v2022_v57  ;;  %vm1798_vm8 = vweird.f32 %v2901_v9  ;;  %v524_v53 = vadd.f32 %v4234_v22, %v523_v26  ;;  %vm1559_vm9 = vmor %vm1557_vm4, %vm1558_vm7 }
 0x18d   :  { %v4412_v28 = vadd.f32 1.0, %v2903_v30  ;;  %2906 = vpow2.f32 %v803_v56  ;;  %v1556_v17 = vadd.f32 %v2899_v62, %v1555_v59  ;;  %v711_v55 = vsub.f32 0.0, %v642_v5 }
 0x18e   :  { %v1795_v14 = vmul.f32 %v2901_v9, %v1794_v50  ;;  %2151 = vst.msk [vmem:[%s4740_s5 + $0x6c] sm:$0xf] %vm2123_vm6, %v2086_v6  ;;  %vm1562_vm10 = vcmp.eq.f32.partialorder %v1561_v45, 8.507059e+37  ;;  %v1564_v35 = vor.u32 1.1754944e-38, %v1563_v44  ;;  %vm1797_vm11 = vweird.f32 %v4361_v11 }
 0x18f   :  { %2908 = vrcp.f32 %v4412_v28  ;;  %v1560_v52 = vsel %vm1559_vm9, %v2899_v62, %v1556_v17  ;;  %v835_v19 = vmul.f32 1.442695, %v711_v55  ;;  %v664_v37 = vsub.f32 0.0, %v524_v53  ;;  %vm1799_vm12 = vmor %vm1797_vm11, %vm1798_vm8 }
 0x190   :  { %v1796_v48 = vadd.f32 %v2901_v9, %v1795_v14  ;;  %v2905_v13 = vpop.eup %2904  ;;  %v1565_v39 = vsel %vm1562_vm10, %v1564_v35, %v1560_v52  ;;  %vm1802_vm13 = vcmp.eq.f32.partialorder %v1801_v46, 8.507059e+37  ;;  %v1804_v38 = vor.u32 1.1754944e-38, %v1803_v0  ;;  %v526_v14 = vpop.f32.mrf.mxu0 }
 0x191   :  { %v2038_v11 = vmul.f32 %v2572_v61, %v1565_v39  ;;  %v4431_v29 = vadd.f32 1.0, %v2905_v13  ;;  %2910 = vpow2.f32 %v835_v19  ;;  %v741_v27 = vmul.f32 1.442695, %v664_v37  ;;  %v4446_v61 = vld [vmem:[%s4739_s4 + $0xb0] sm:$0xff]  }
 0x192   :  { %v1800_v3 = vsel %vm1799_vm12, %v2901_v9, %v1796_v48  ;;  %v564_v16 = vadd.f32 %v4234_v22, %v563_v18  ;;  %v2511_v47 = vunpack.c.l.bf16 %v4427_v8  ;;  %v1096_v23 = vand.u32 2147483647, %v4412_v28 }
 0x193   :  { %v2907_v7 = vpop.eup %2906  ;;  %v1805_v32 = vsel %vm1802_vm13, %v1804_v38, %v1800_v3  ;;  %v2102_v43 = vpack.c.bf16 %v2038_v11, %v2038_v11  ;;  %2912 = vrcp.f32 %v4431_v29  ;;  %v1098_v36 = vand.u32 2147483648, %v4412_v28 }
 0x194   :  { %v2054_v25 = vmul.f32 %v2604_v51, %v1805_v32  ;;  %v4449_v40 = vadd.f32 1.0, %v2907_v7  ;;  %2914 = vpow2.f32 %v741_v27  ;;  %v604_v51 = vadd.f32 %v4234_v22, %v603_v21 }
 0x195   :  { %v2909_v42 = vpop.eup %2908  ;;  %2167 = vst.msk [vmem:[%s4740_s5 + $0xac] sm:$0xf] %vm2123_vm6, %v2102_v43  ;;  %v680_v62 = vsub.f32 0.0, %v564_v16  ;;  %v1336_v63 = vand.u32 2147483647, %v4431_v29  ;;  %v2543_v15 = vunpack.c.l.bf16 %v4441_v4  ;;  %v2575_v12 = vunpack.c.l.bf16 %v4446_v61 }
 0x196   :  { %v2118_v58 = vpack.c.bf16 %v2054_v25, %v2054_v25  ;;  %v1088_v41 = vmul.f32 %v2909_v42, %v4412_v28  ;;  %2916 = vrcp.f32 %v4449_v40  ;;  %vm1092_vm14 = vweird.f32 %v4412_v28 }
 0x197   :  { %v2911_v1 = vpop.eup %2910  ;;  %v1338_v45 = vand.u32 2147483648, %v4431_v29  ;;  %v2607_v46 = vunpack.c.l.bf16 %v4454_v24  ;;  %vm4474_vm15 = vcmp.eq.f32.partialorder %v1096_v23, 8.507059e+37  ;;  %v773_v44 = vmul.f32 1.442695, %v680_v62 }
 0x198   :  { %2183 = vst.msk [vmem:[%s4740_s5 + $0xec] sm:$0xf] %vm2123_vm6, %v2118_v58  ;;  %v1089_v20 = vsub.f32 1.0, %v1088_v41  ;;  %v4478_v54 = vadd.f32 1.0, %v2911_v1  ;;  %v696_v34 = vsub.f32 0.0, %v604_v51  ;;  %vm1093_vm0 = vweird.f32 %v2909_v42 }
 0x199   :  { %v2913_v2 = vpop.eup %2912  ;;  %v1099_v60 = vor.u32 1.1754944e-38, %v1098_v36  ;;  %v1576_v33 = vand.u32 2147483647, %v4449_v40  ;;  %vm1332_vm1 = vweird.f32 %v4431_v29  ;;  %vm4483_vm2 = vcmp.eq.f32.partialorder %v1336_v63, 8.507059e+37  ;;  %vm1094_vm3 = vmor %vm1092_vm14, %vm1093_vm0 }
 0x19a   :  { %v1090_v10 = vmul.f32 %v2909_v42, %v1089_v20  ;;  %v2915_v49 = vpop.eup %2914  ;;  %v1328_v57 = vmul.f32 %v2913_v2, %v4431_v29  ;;  %2918 = vrcp.f32 %v4478_v54  ;;  %v1339_v26 = vor.u32 1.1754944e-38, %v1338_v45 }
 0x19b   :  { %v1578_v30 = vand.u32 2147483648, %v4449_v40  ;;  %v4489_v59 = vadd.f32 1.0, %v2915_v49  ;;  %2920 = vpow2.f32 %v773_v44  ;;  %v805_v6 = vmul.f32 1.442695, %v696_v34 }
 0x19c   :  { %v1091_v56 = vadd.f32 %v2909_v42, %v1090_v10  ;;  %v2917_v50 = vpop.eup %2916  ;;  %v1329_v5 = vsub.f32 1.0, %v1328_v57  ;;  %v644_v17 = vadd.f32 %v4234_v22, %v643_v31  ;;  %vm1572_vm4 = vweird.f32 %v4449_v40  ;;  %v606_v57 = vpop.f32.mrf.mxu2 }
 0x19d   :  { %v1568_v53 = vmul.f32 %v2917_v50, %v4449_v40  ;;  %vm4496_vm5 = vcmp.eq.f32.partialorder %v1576_v33, 8.507059e+37  ;;  %vm1333_vm7 = vweird.f32 %v2913_v2  ;;  %2922 = vrcp.f32 %v4489_v59 }
 0x19e   :  { %v1095_v55 = vsel %vm1094_vm3, %v2909_v42, %v1091_v56  ;;  %v1330_v28 = vmul.f32 %v2913_v2, %v1329_v5  ;;  %v1579_v37 = vor.u32 1.1754944e-38, %v1578_v30  ;;  %v527_v18 = vadd.f32 %v4234_v22, %v526_v14  ;;  %vm1334_vm8 = vmor %vm1332_vm1, %vm1333_vm7 }
 0x19f   :  { %v1100_v52 = vsel %vm4474_vm15, %v1099_v60, %v1095_v55  ;;  %v1569_v19 = vsub.f32 1.0, %v1568_v53  ;;  %v1816_v38 = vand.u32 2147483647, %v4478_v54  ;;  %2924 = vpow2.f32 %v805_v6 }
 0x1a0   :  { %v2007_v48 = vmul.f32 %v2511_v47, %v1100_v52  ;;  %v2919_v13 = vpop.eup %2918  ;;  %v1331_v39 = vadd.f32 %v2913_v2, %v1330_v28  ;;  %v712_v11 = vsub.f32 0.0, %v644_v17  ;;  %vm1573_vm9 = vweird.f32 %v2917_v50 }
 0x1a1   :  { %v1570_v21 = vmul.f32 %v2917_v50, %v1569_v19  ;;  %v1808_v7 = vmul.f32 %v2919_v13, %v4478_v54  ;;  %v2921_v32 = vpop.eup %2920  ;;  %vm1812_vm10 = vweird.f32 %v4478_v54  ;;  %v1818_v16 = vand.u32 2147483648, %v4478_v54  ;;  %vm1574_vm11 = vmor %vm1572_vm4, %vm1573_vm9 }
 0x1a2   :  { %v2071_v3 = vpack.c.bf16 %v2007_v48, %v2007_v48  ;;  %v1335_v27 = vsel %vm1334_vm8, %v2913_v2, %v1331_v39  ;;  %v837_v43 = vmul.f32 1.442695, %v712_v11  ;;  %v4516_v42 = vadd.f32 1.0, %v2921_v32  ;;  %v4642_v32 = vld [vmem:[%s4739_s4 + $0xb8] sm:$0xff]  }
 0x1a3   :  { %v1340_v29 = vsel %vm4483_vm2, %v1339_v26, %v1335_v27  ;;  %v1571_v25 = vadd.f32 %v2917_v50, %v1570_v21  ;;  %v1809_v47 = vsub.f32 1.0, %v1808_v7  ;;  %v2923_v23 = vpop.eup %2922  ;;  %vm4522_vm12 = vcmp.eq.f32.partialorder %v1816_v38, 8.507059e+37  ;;  %v646_v21 = vpop.f32.mrf.mxu3 }
 0x1a4   :  { %2136 = vst.msk [vmem:[%s4740_s5 + $0x30] sm:$0xf] %vm2123_vm6, %v2071_v3  ;;  %v2023_v51 = vmul.f32 %v2543_v15, %v1340_v29  ;;  %2926 = vpow2.f32 %v837_v43  ;;  %v665_v41 = vsub.f32 0.0, %v527_v18  ;;  %vm1813_vm13 = vweird.f32 %v2919_v13 }
 0x1a5   :  { %v1575_v36 = vsel %vm1574_vm11, %v2917_v50, %v1571_v25  ;;  %v1810_v62 = vmul.f32 %v2919_v13, %v1809_v47  ;;  %v1103_v63 = vmul.f32 %v2923_v23, %v4489_v59  ;;  %v2925_v1 = vpop.eup %2924  ;;  %v1111_v15 = vand.u32 2147483647, %v4489_v59  ;;  %vm1814_vm14 = vmor %vm1812_vm10, %vm1813_vm13  ;;  %v528_v25 = vpop.f32.mrf.mxu0 }
 0x1a6   :  { %v2087_v20 = vpack.c.bf16 %v2023_v51, %v2023_v51  ;;  %v1580_v45 = vsel %vm4496_vm5, %v1579_v37, %v1575_v36  ;;  %2928 = vrcp.f32 %v4516_v42  ;;  %v1113_v34 = vand.u32 2147483648, %v4489_v59 }
 0x1a7   :  { %v2039_v40 = vmul.f32 %v2575_v12, %v1580_v45  ;;  %v1811_v9 = vadd.f32 %v2919_v13, %v1810_v62  ;;  %v1104_v44 = vsub.f32 1.0, %v1103_v63  ;;  %v1819_v2 = vor.u32 1.1754944e-38, %v1818_v16  ;;  %v566_v12 = vpop.f32.mrf.mxu1 }
 0x1a8   :  { %2152 = vst.msk [vmem:[%s4740_s5 + $0x70] sm:$0xf] %vm2123_vm6, %v2087_v20  ;;  %v4540_v10 = vadd.f32 1.0, %v2925_v1  ;;  %v743_v60 = vmul.f32 1.442695, %v665_v41  ;;  %vm1108_vm15 = vweird.f32 %v2923_v23  ;;  %v2512_v26 = vunpack.c.h.bf16 %v4427_v8 }
 0x1a9   :  { %v2103_v33 = vpack.c.bf16 %v2039_v40, %v2039_v40  ;;  %v1815_v31 = vsel %vm1814_vm14, %v2919_v13, %v1811_v9  ;;  %v1105_v49 = vmul.f32 %v2923_v23, %v1104_v44  ;;  %vm1107_vm0 = vweird.f32 %v4489_v59 }
 0x1aa   :  { %v2927_v0 = vpop.eup %2926  ;;  %v1820_v56 = vsel %vm4522_vm12, %v1819_v2, %v1815_v31  ;;  %2930 = vrcp.f32 %v4540_v10  ;;  %v1114_v50 = vor.u32 1.1754944e-38, %v1113_v34  ;;  %vm1109_vm1 = vmor %vm1107_vm0, %vm1108_vm15  ;;  %v567_v8 = vadd.f32 %v4234_v22, %v566_v12 }
 0x1ab   :  { %2168 = vst.msk [vmem:[%s4740_s5 + $0xb0] sm:$0xf] %vm2123_vm6, %v2103_v33  ;;  %v2055_v54 = vmul.f32 %v2607_v46, %v1820_v56  ;;  %v1106_v30 = vadd.f32 %v2923_v23, %v1105_v49  ;;  %v4553_v6 = vadd.f32 1.0, %v2927_v0  ;;  %2932 = vpow2.f32 %v743_v60 }
 0x1ac   :  { %v2929_v5 = vpop.eup %2928  ;;  %v607_v17 = vadd.f32 %v4234_v22, %v606_v57  ;;  %vm1112_vm2 = vcmp.eq.f32.partialorder %v1111_v15, 8.507059e+37  ;;  %v1351_v46 = vand.u32 2147483647, %v4516_v42  ;;  %v1353_v59 = vand.u32 2147483648, %v4516_v42 }
 0x1ad   :  { %v2119_v14 = vpack.c.bf16 %v2055_v54, %v2055_v54  ;;  %v1110_v55 = vsel %vm1109_vm1, %v2923_v23, %v1106_v30  ;;  %v1343_v53 = vmul.f32 %v2929_v5, %v4516_v42  ;;  %2934 = vrcp.f32 %v4553_v6 }
 0x1ae   :  { %v1115_v35 = vsel %vm1112_vm2, %v1114_v50, %v1110_v55  ;;  %v2544_v48 = vunpack.c.h.bf16 %v4441_v4  ;;  %v2576_v19 = vunpack.c.h.bf16 %v4446_v61  ;;  %vm1347_vm3 = vweird.f32 %v4516_v42 }
 0x1af   :  { %2184 = vst.msk [vmem:[%s4740_s5 + $0xf0] sm:$0xf] %vm2123_vm6, %v2119_v14  ;;  %v2008_v52 = vmul.f32 %v2512_v26, %v1115_v35  ;;  %v1344_v28 = vsub.f32 1.0, %v1343_v53  ;;  %v1591_v18 = vand.u32 2147483647, %v4540_v10  ;;  %v681_v13 = vsub.f32 0.0, %v567_v8  ;;  %v568_v63 = vpop.f32.mrf.mxu1 }
 0x1b0   :  { %v2931_v37 = vpop.eup %2930  ;;  %v697_v39 = vsub.f32 0.0, %v607_v17  ;;  %vm1348_vm4 = vweird.f32 %v2929_v5  ;;  %vm4570_vm5 = vcmp.eq.f32.partialorder %v1351_v46, 8.507059e+37  ;;  %v1354_v4 = vor.u32 1.1754944e-38, %v1353_v59 }
 0x1b1   :  { %v2072_v38 = vpack.c.bf16 %v2008_v52, %v2008_v52  ;;  %v1345_v11 = vmul.f32 %v2929_v5, %v1344_v28  ;;  %v1583_v3 = vmul.f32 %v2931_v37, %v4540_v10  ;;  %v2933_v7 = vpop.eup %2932  ;;  %v1593_v61 = vand.u32 2147483648, %v4540_v10  ;;  %vm1349_vm8 = vmor %vm1347_vm3, %vm1348_vm4  ;;  %v648_v28 = vpop.f32.mrf.mxu3 }
 0x1b2   :  { %v775_v27 = vmul.f32 1.442695, %v681_v13  ;;  %vm1587_vm7 = vweird.f32 %v4540_v10  ;;  %v4580_v29 = vadd.f32 1.0, %v2933_v7  ;;  %vm4585_vm9 = vcmp.eq.f32.partialorder %v1591_v18, 8.507059e+37 }
 0x1b3   :  { %2137 = vst.msk [vmem:[%s4740_s5 + $0x34] sm:$0xf] %vm2123_vm6, %v2072_v38  ;;  %v1346_v16 = vadd.f32 %v2929_v5, %v1345_v11  ;;  %v1584_v43 = vsub.f32 1.0, %v1583_v3  ;;  %v2935_v47 = vpop.eup %2934  ;;  %v807_v51 = vmul.f32 1.442695, %v697_v39  ;;  %v647_v58 = vadd.f32 %v4234_v22, %v646_v21  ;;  %v4630_v38 = vld [vmem:[%s4739_s4 + $0x78] sm:$0xff]  }
 0x1b4   :  { %2936 = vpow2.f32 %v775_v27  ;;  %vm1588_vm10 = vweird.f32 %v2931_v37  ;;  %v1823_v62 = vmul.f32 %v2935_v47, %v4553_v6  ;;  %v1594_v20 = vor.u32 1.1754944e-38, %v1593_v61 }
 0x1b5   :  { %v1350_v41 = vsel %vm1349_vm8, %v2929_v5, %v1346_v16  ;;  %v1585_v36 = vmul.f32 %v2931_v37, %v1584_v43  ;;  %2938 = vrcp.f32 %v4580_v29  ;;  %v529_v42 = vadd.f32 %v4234_v22, %v528_v25  ;;  %vm1589_vm11 = vmor %vm1587_vm7, %vm1588_vm10 }
 0x1b6   :  { %v1355_v1 = vsel %vm4570_vm5, %v1354_v4, %v1350_v41  ;;  %v1824_v40 = vsub.f32 1.0, %v1823_v62  ;;  %v1831_v9 = vand.u32 2147483647, %v4553_v6  ;;  %v1833_v44 = vand.u32 2147483648, %v4553_v6 }
 0x1b7   :  { %v2024_v45 = vmul.f32 %v2544_v48, %v1355_v1  ;;  %v1586_v15 = vadd.f32 %v2931_v37, %v1585_v36  ;;  %2940 = vpow2.f32 %v807_v51  ;;  %v713_v34 = vsub.f32 0.0, %v647_v58 }
 0x1b8   :  { %v569_v2 = vadd.f32 %v4234_v22, %v568_v63  ;;  %v1825_v31 = vmul.f32 %v2935_v47, %v1824_v40  ;;  %vm1828_vm12 = vweird.f32 %v2935_v47  ;;  %v2608_v57 = vunpack.c.h.bf16 %v4454_v24  ;;  %v608_v24 = vpop.f32.mrf.mxu2  ;;  %v4656_v63 = vld [vmem:[%s4739_s4 + $0xf8] sm:$0xff]  }
 0x1b9   :  { %v2088_v60 = vpack.c.bf16 %v2024_v45, %v2024_v45  ;;  %v1590_v33 = vsel %vm1589_vm11, %v2931_v37, %v1586_v15  ;;  %v839_v0 = vmul.f32 1.442695, %v713_v34  ;;  %v666_v56 = vsub.f32 0.0, %v529_v42  ;;  %v4625_v37 = vld [vmem:[%s4739_s4 + $0x38] sm:$0xff]  }
 0x1ba   :  { %v2937_v49 = vpop.eup %2936  ;;  %v1595_v12 = vsel %vm4585_vm9, %v1594_v20, %v1590_v33  ;;  %v1826_v26 = vadd.f32 %v2935_v47, %v1825_v31  ;;  %vm1827_vm13 = vweird.f32 %v4553_v6  ;;  %v1834_v50 = vor.u32 1.1754944e-38, %v1833_v44 }
 0x1bb   :  { %2153 = vst.msk [vmem:[%s4740_s5 + $0x74] sm:$0xf] %vm2123_vm6, %v2088_v60  ;;  %v2040_v10 = vmul.f32 %v2576_v19, %v1595_v12  ;;  %v4608_v54 = vadd.f32 1.0, %v2937_v49  ;;  %v2939_v30 = vpop.eup %2938  ;;  %vm1829_vm14 = vmor %vm1827_vm13, %vm1828_vm12  ;;  %2942 = vpow2.f32 %v839_v0  ;;  %v745_v5 = vmul.f32 1.442695, %v666_v56 }
 0x1bc   :  { %v682_v8 = vsub.f32 0.0, %v569_v2  ;;  %v1830_v14 = vsel %vm1829_vm14, %v2935_v47, %v1826_v26  ;;  %vm1832_vm15 = vcmp.eq.f32.partialorder %v1831_v9, 8.507059e+37  ;;  %v1118_v55 = vmul.f32 %v2939_v30, %v4580_v29 }
 0x1bd   :  { %v2104_v17 = vpack.c.bf16 %v2040_v10, %v2040_v10  ;;  %v2941_v53 = vpop.eup %2940  ;;  %v1835_v35 = vsel %vm1832_vm15, %v1834_v50, %v1830_v14  ;;  %vm1122_vm0 = vweird.f32 %v4580_v29  ;;  %2944 = vrcp.f32 %v4608_v54 }
 0x1be   :  { %v2056_v6 = vmul.f32 %v2608_v57, %v1835_v35  ;;  %v1119_v46 = vsub.f32 1.0, %v1118_v55  ;;  %v4617_v59 = vadd.f32 1.0, %v2941_v53  ;;  %v609_v52 = vadd.f32 %v4234_v22, %v608_v24 }
 0x1bf   :  { %2169 = vst.msk [vmem:[%s4740_s5 + $0xb4] sm:$0xf] %vm2123_vm6, %v2104_v17  ;;  %v1126_v48 = vand.u32 2147483647, %v4580_v29  ;;  %v1128_v19 = vand.u32 2147483648, %v4580_v29  ;;  %2946 = vpow2.f32 %v745_v5  ;;  %vm1123_vm1 = vweird.f32 %v2939_v30 }
 0x1c0   :  { %v777_v18 = vmul.f32 1.442695, %v682_v8  ;;  %v2120_v13 = vpack.c.bf16 %v2056_v6, %v2056_v6  ;;  %v1120_v39 = vmul.f32 %v2939_v30, %v1119_v46  ;;  %2948 = vrcp.f32 %v4617_v59  ;;  %vm1124_vm2 = vmor %vm1122_vm0, %vm1123_vm1 }
 0x1c1   :  { %v2943_v11 = vpop.eup %2942  ;;  %v649_v3 = vadd.f32 %v4234_v22, %v648_v28  ;;  %v2515_v7 = vunpack.c.l.bf16 %v4625_v37  ;;  %v698_v61 = vsub.f32 0.0, %v609_v52  ;;  %v1129_v22 = vor.u32 1.1754944e-38, %v1128_v19 }
 0x1c2   :  { %2950 = vpow2.f32 %v777_v18  ;;  %2185 = vst.msk [vmem:[%s4740_s5 + $0xf4] sm:$0xf] %vm2123_vm6, %v2120_v13  ;;  %v1121_v21 = vadd.f32 %v2939_v30, %v1120_v39  ;;  %v4644_v4 = vadd.f32 1.0, %v2943_v11  ;;  %v2547_v16 = vunpack.c.l.bf16 %v4630_v38 }
 0x1c3   :  { %v2945_v27 = vpop.eup %2944  ;;  %vm1127_vm3 = vcmp.eq.f32.partialorder %v1126_v48, 8.507059e+37  ;;  %v1366_v51 = vand.u32 2147483647, %v4608_v54  ;;  %v2579_v58 = vunpack.c.l.bf16 %v4642_v32  ;;  %v714_v41 = vsub.f32 0.0, %v649_v3 }
 0x1c4   :  { %v1125_v43 = vsel %vm1124_vm2, %v2939_v30, %v1121_v21  ;;  %v1358_v25 = vmul.f32 %v2945_v27, %v4608_v54  ;;  %2952 = vrcp.f32 %v4644_v4  ;;  %v809_v20 = vmul.f32 1.442695, %v698_v61 }
 0x1c5   :  { %v2947_v47 = vpop.eup %2946  ;;  %v1130_v23 = vsel %vm1127_vm3, %v1129_v22, %v1125_v43  ;;  %vm1362_vm4 = vweird.f32 %v4608_v54  ;;  %v1368_v45 = vand.u32 2147483648, %v4608_v54  ;;  %v1606_v40 = vand.u32 2147483647, %v4617_v59 }
 0x1c6   :  { %v2949_v36 = vpop.eup %2948  ;;  %v2009_v62 = vmul.f32 %v2515_v7, %v1130_v23  ;;  %v1359_v29 = vsub.f32 1.0, %v1358_v25  ;;  %v4658_v1 = vadd.f32 1.0, %v2947_v47  ;;  %vm1363_vm5 = vweird.f32 %v2945_v27 }
 0x1c7   :  { %v1598_v15 = vmul.f32 %v2949_v36, %v4617_v59  ;;  %v1608_v2 = vand.u32 2147483648, %v4617_v59  ;;  %v2611_v60 = vunpack.c.l.bf16 %v4656_v63  ;;  %vm1367_vm7 = vcmp.eq.f32.partialorder %v1366_v51, 8.507059e+37  ;;  %vm1364_vm8 = vmor %vm1362_vm4, %vm1363_vm5 }
 0x1c8   :  { %v2951_v42 = vpop.eup %2950  ;;  %v2073_v9 = vpack.c.bf16 %v2009_v62, %v2009_v62  ;;  %v1360_v44 = vmul.f32 %v2945_v27, %v1359_v29  ;;  %2954 = vrcp.f32 %v4658_v1  ;;  %v841_v12 = vmul.f32 1.442695, %v714_v41 }
 0x1c9   :  { %v1599_v34 = vsub.f32 1.0, %v1598_v15  ;;  %v4667_v33 = vadd.f32 1.0, %v2951_v42  ;;  %2956 = vpow2.f32 %v809_v20  ;;  %v1369_v57 = vor.u32 1.1754944e-38, %v1368_v45 }
 0x1ca   :  { %v2953_v31 = vpop.eup %2952  ;;  %2138 = vst.msk [vmem:[%s4740_s5 + $0x38] sm:$0xf] %vm2123_vm6, %v2073_v9  ;;  %v1361_v49 = vadd.f32 %v2945_v27, %v1360_v44  ;;  %vm1603_vm9 = vweird.f32 %v2949_v36  ;;  %vm1602_vm10 = vweird.f32 %v4617_v59  ;;  %vm4677_vm11 = vcmp.eq.f32.partialorder %v1606_v40, 8.507059e+37 }
 0x1cb   :  { %v1600_v0 = vmul.f32 %v2949_v36, %v1599_v34  ;;  %v1838_v56 = vmul.f32 %v2953_v31, %v4644_v4  ;;  %2958 = vrcp.f32 %v4667_v33  ;;  %v1609_v5 = vor.u32 1.1754944e-38, %v1608_v2  ;;  %vm1604_vm12 = vmor %vm1602_vm10, %vm1603_vm9 }
 0x1cc   :  { %v1365_v10 = vsel %vm1364_vm8, %v2945_v27, %v1361_v49  ;;  %v1846_v17 = vand.u32 2147483647, %v4644_v4  ;;  %v1848_v14 = vand.u32 2147483648, %v4644_v4  ;;  %2960 = vpow2.f32 %v841_v12 }
 0x1cd   :  { %v1370_v30 = vsel %vm1367_vm7, %v1369_v57, %v1365_v10  ;;  %v1601_v50 = vadd.f32 %v2949_v36, %v1600_v0  ;;  %v1839_v8 = vsub.f32 1.0, %v1838_v56  ;;  %vm1843_vm13 = vweird.f32 %v2953_v31 }
 0x1ce   :  { %v2955_v54 = vpop.eup %2954  ;;  %v2025_v24 = vmul.f32 %v2547_v16, %v1370_v30  ;;  %vm1842_vm14 = vweird.f32 %v4644_v4  ;;  %v1141_v52 = vand.u32 2147483647, %v4658_v1  ;;  %vm1847_vm0 = vcmp.eq.f32.partialorder %v1846_v17, 8.507059e+37 }
 0x1cf   :  { %v1605_v55 = vsel %vm1604_vm12, %v2949_v36, %v1601_v50  ;;  %v1840_v53 = vmul.f32 %v2953_v31, %v1839_v8  ;;  %v1133_v35 = vmul.f32 %v2955_v54, %v4658_v1  ;;  %v2957_v6 = vpop.eup %2956  ;;  %vm1844_vm15 = vmor %vm1842_vm14, %vm1843_vm13  ;;  %v1849_v39 = vor.u32 1.1754944e-38, %v1848_v14 }
 0x1d0   :  { %v2089_v46 = vpack.c.bf16 %v2025_v24, %v2025_v24  ;;  %v1610_v59 = vsel %vm4677_vm11, %v1609_v5, %v1605_v55  ;;  %v4689_v18 = vadd.f32 1.0, %v2957_v6  ;;  %vm1138_vm1 = vweird.f32 %v2955_v54 }
 0x1d1   :  { %v2041_v28 = vmul.f32 %v2579_v58, %v1610_v59  ;;  %v1841_v48 = vadd.f32 %v2953_v31, %v1840_v53  ;;  %v1134_v19 = vsub.f32 1.0, %v1133_v35  ;;  %v2959_v13 = vpop.eup %2958  ;;  %v1143_v11 = vand.u32 2147483648, %v4658_v1 }
 0x1d2   :  { %2154 = vst.msk [vmem:[%s4740_s5 + $0x78] sm:$0xf] %vm2123_vm6, %v2089_v46  ;;  %v1373_v4 = vmul.f32 %v2959_v13, %v4667_v33  ;;  %v2961_v61 = vpop.eup %2960  ;;  %vm1137_vm2 = vweird.f32 %v4658_v1  ;;  %v2516_v22 = vunpack.c.h.bf16 %v4625_v37  ;;  %2962 = vrcp.f32 %v4689_v18 }
 0x1d3   :  { %v2105_v3 = vpack.c.bf16 %v2041_v28, %v2041_v28  ;;  %v1845_v21 = vsel %vm1844_vm15, %v2953_v31, %v1841_v48  ;;  %v1135_v7 = vmul.f32 %v2955_v54, %v1134_v19  ;;  %vm1142_vm3 = vcmp.eq.f32.partialorder %v1141_v52, 8.507059e+37  ;;  %vm1139_vm4 = vmor %vm1137_vm2, %vm1138_vm1 }
 0x1d4   :  { %v1850_v27 = vsel %vm1847_vm0, %v1849_v39, %v1845_v21  ;;  %v1374_v25 = vsub.f32 1.0, %v1373_v4  ;;  %v1144_v47 = vor.u32 1.1754944e-38, %v1143_v11  ;;  %v1381_v23 = vand.u32 2147483647, %v4667_v33 }
 0x1d5   :  { %2170 = vst.msk [vmem:[%s4740_s5 + $0xb8] sm:$0xf] %vm2123_vm6, %v2105_v3  ;;  %v2057_v16 = vmul.f32 %v2611_v60, %v1850_v27  ;;  %v1136_v43 = vadd.f32 %v2955_v54, %v1135_v7  ;;  %v1383_v51 = vand.u32 2147483648, %v4667_v33  ;;  %v906_v58 = vadd.f32 1.0, %v2961_v61 }
 0x1d6   :  { %v1375_v36 = vmul.f32 %v2959_v13, %v1374_v25  ;;  %vm1378_vm5 = vweird.f32 %v2959_v13  ;;  %vm1377_vm7 = vweird.f32 %v4667_v33  ;;  %v2548_v20 = vunpack.c.h.bf16 %v4630_v38 }
 0x1d7   :  { %v2121_v37 = vpack.c.bf16 %v2057_v16, %v2057_v16  ;;  %v1140_v41 = vsel %vm1139_vm4, %v2955_v54, %v1136_v43  ;;  %2964 = vrcp.f32 %v906_v58  ;;  %vm1379_vm8 = vmor %vm1377_vm7, %vm1378_vm5  ;;  %v1384_v45 = vor.u32 1.1754944e-38, %v1383_v51 }
 0x1d8   :  { %v1145_v62 = vsel %vm1142_vm3, %v1144_v47, %v1140_v41  ;;  %v1376_v1 = vadd.f32 %v2959_v13, %v1375_v36  ;;  %v2963_v42 = vpop.eup %2962  ;;  %vm1382_vm9 = vcmp.eq.f32.partialorder %v1381_v23, 8.507059e+37  ;;  %v1621_v33 = vand.u32 2147483647, %v4689_v18 }
 0x1d9   :  { %2186 = vst.msk [vmem:[%s4740_s5 + $0xf8] sm:$0xf] %vm2123_vm6, %v2121_v37  ;;  %v2010_v29 = vmul.f32 %v2516_v22, %v1145_v62  ;;  %v1613_v9 = vmul.f32 %v2963_v42, %v4689_v18  ;;  %v1623_v38 = vand.u32 2147483648, %v4689_v18  ;;  %vm1618_vm10 = vweird.f32 %v2963_v42 }
 0x1da   :  { %v1380_v40 = vsel %vm1379_vm8, %v2959_v13, %v1376_v1  ;;  %vm1617_vm11 = vweird.f32 %v4689_v18  ;;  %v2580_v0 = vunpack.c.h.bf16 %v4642_v32  ;;  %vm1622_vm13 = vcmp.eq.f32.partialorder %v1621_v33, 8.507059e+37 }
 0x1db   :  { %v2074_v15 = vpack.c.bf16 %v2010_v29, %v2010_v29  ;;  %v1385_v44 = vsel %vm1382_vm9, %v1384_v45, %v1380_v40  ;;  %v1614_v2 = vsub.f32 1.0, %v1613_v9  ;;  %vm1619_vm12 = vmor %vm1617_vm11, %vm1618_vm10  ;;  %v1624_v10 = vor.u32 1.1754944e-38, %v1623_v38 }
 0x1dc   :  { %v2026_v34 = vmul.f32 %v2548_v20, %v1385_v44  ;;  %v1863_v26 = vand.u32 2147483648, %v906_v58  ;;  %v1861_v5 = vand.u32 2147483647, %v906_v58  ;;  %vm1857_vm15 = vweird.f32 %v906_v58 }
 0x1dd   :  { %2139 = vst.msk [vmem:[%s4740_s5 + $0x3c] sm:$0xf] %vm2123_vm6, %v2074_v15  ;;  %v2965_v60 = vpop.eup %2964  ;;  %v1615_v49 = vmul.f32 %v2963_v42, %v1614_v2  ;;  %v2612_v17 = vunpack.c.h.bf16 %v4656_v63 }
 0x1de   :  { %v2090_v31 = vpack.c.bf16 %v2026_v34, %v2026_v34  ;;  %v1853_v12 = vmul.f32 %v2965_v60, %v906_v58  ;;  %vm1858_vm14 = vweird.f32 %v2965_v60  ;;  %v1864_v14 = vor.u32 1.1754944e-38, %v1863_v26 }
 0x1df   :  { %v1616_v57 = vadd.f32 %v2963_v42, %v1615_v49  ;;  %vm1859_vm0 = vmor %vm1857_vm15, %vm1858_vm14  ;;  %vm1862_vm1 = vcmp.eq.f32.partialorder %v1861_v5, 8.507059e+37 }
 0x1e0   :  { %2155 = vst.msk [vmem:[%s4740_s5 + $0x7c] sm:$0xf] %vm2123_vm6, %v2090_v31  ;;  %v1854_v56 = vsub.f32 1.0, %v1853_v12 }
 0x1e1   :  { %v1620_v30 = vsel %vm1619_vm12, %v2963_v42, %v1616_v57 }
 0x1e2   :  { %v1855_v50 = vmul.f32 %v2965_v60, %v1854_v56  ;;  %v1625_v8 = vsel %vm1622_vm13, %v1624_v10, %v1620_v30 }
 0x1e3   :  { %v2042_v54 = vmul.f32 %v2580_v0, %v1625_v8 }
 0x1e4   :  { %v1856_v24 = vadd.f32 %v2965_v60, %v1855_v50 }
 0x1e5   :  { %v2106_v55 = vpack.c.bf16 %v2042_v54, %v2042_v54 }
 0x1e6   :  { %v1860_v53 = vsel %vm1859_vm0, %v2965_v60, %v1856_v24 }
 0x1e7   :  { %v1865_v32 = vsel %vm1862_vm1, %v1864_v14, %v1860_v53  ;;  %2171 = vst.msk [vmem:[%s4740_s5 + $0xbc] sm:$0xf] %vm2123_vm6, %v2106_v55 }
 0x1e8   :  { %v2058_v35 = vmul.f32 %v2612_v17, %v1865_v32 }
 0x1ea   :  { %v2122_v6 = vpack.c.bf16 %v2058_v35, %v2058_v35 }
 0x1ec   :  { %2187 = vst.msk [vmem:[%s4740_s5 + $0xfc] sm:$0xf] %vm2123_vm6, %v2122_v6 }

// kernel: _lambda_.71
= control target key start
LH: loop header
LB: loop body
LE: loop exit
PB: predicated region body
PF: predicated region fallthrough
CT: control target
= control target key end

     0   :  { %s1085_s15 = smov 0   ;;  %s1087_s16 = smov 0   ;;  %s1338_s0 = inlined_call_operand.vmem [shape: bf16[2,288,90], index: 0, kind: input, shape index: {}, may-alias: {0,1}]   ;;  %s1339_s1 = inlined_call_operand.vmem [shape: bf16[2,288,90], index: 1, kind: input, shape index: {}, may-alias: {0,1}]   ;;  %s1340_s2 = inlined_call_operand.vmem [shape: bf16[90,96], index: 2, kind: input, shape index: {}]   ;;  %s1341_s3 = inlined_call_operand.vmem [shape: f32[1,27], index: 3, kind: input, shape index: {}]   ;;  %s1342_s4 = inlined_call_operand.vmem [shape: bf16[2,256,27], index: 4, kind: output, shape index: {}]  }
   0x1   :  { %s1089_s17 = smov 0   ;;  %s1091_s18 = smov 0  }
   0x2   :  { %s1093_s19 = smov 0  }
   0x3 LB: > { %s23_s20 = sadd.s32 1, %s1048_s17  ;;  %s26_s21 = sadd.s32 1, %s1052_s18  ;;  %s1056_s19 = sphi %s1093_s19, %s14_s19   ;;  %s1052_s18 = sphi %s1091_s18, %s1346_s18   ;;  %s1048_s17 = sphi %s1089_s17, %s1345_s17   ;;  %s1044_s16 = sphi %s1087_s16, %s1344_s16   ;;  %s1040_s15 = sphi %s1085_s15, %s1343_s15  }
   0x4   : > { %p24_p0 = scmp.ge.s32.totalorder %s23_s20, 2  ;;  %p855_p1 = scmp.ge.s32.totalorder %s1056_s19, 1 }
   0x5   : > { %p224_p2 = scmp.lt.s32.totalorder %s1056_s19, 5 }
   0x6   : > { %s1348_s20 = smov (%p24_p0, %s23_s20), 0  ;;  %s1350_s21 = smov (!%p24_p0, %s26_s21), %s1052_s18 }
   0x7   : > { %p225_p3 = pnand %p855_p1, %p224_p2  ;;  %p28_p4 = scmp.ge.s32.totalorder %s1350_s21, 2 }
   0x8   : > { %s1124_s26 = sshll.u32 (!%p225_p3), %s1040_s15, 4  ;;  %p280_p5 = scmp.lt.s32.totalorder (!%p225_p3), %s1044_s16, 1 }
   0x9   : > { %s1352_s21 = smov (%p28_p4, %s1350_s21), 0  ;;  %228 = sbr.rel (%p225_p3) target bundleno = 375 (0x177), region = 36 }
   0xa   : > { %s944_s27 = sshll.u32 (!%p225_p3), %s1040_s15, 2  ;;  %p282_p6 = scmp.lt.s32.totalorder (!%p225_p3), %s1124_s26, 35 }
   0xb   : > { %s945_s30 = sadd.s32 (!%p225_p3), 4, %s944_s27  ;;  %p314_p9 = scmp.lt.s32.totalorder (!%p225_p3), %s1124_s26, 31 }
   0xc   : > { %p295_p7 = scmp.lt.s32.totalorder (!%p225_p3), %s945_s30, 8 }
   0xe   : > { %v918_v0 = vld [vmem:[%s1340_s2 + $0x28] sm:$0xf]  ;;  %v951_v1 = vld [vmem:[%s1340_s2 + $0x28] sm:$0x10]  ;;  %vm450_vm0 = vcmask 1044480   ;;  %v950_v4 = vld [vmem:[%s1340_s2 + $0x20] sm:$0xff] }
   0xf   : > { %v919_v2 = vor.u32 %v951_v1, %v918_v0  ;;  %s1354_s16 = smov (!%p280_p5, %s1044_s16), 1  ;;  %v949_v5 = vld [vmem:[%s1340_s2 + $0x18] sm:$0xff]  ;;  %s1356_s30 = smov (!%p295_p7, %s945_s30), 8  ;;  %v948_v6 = vld [vmem:[%s1340_s2 + $0x10] sm:$0xff]  ;;  %v947_v7 = vld [vmem:[%s1340_s2 + $0x8] sm:$0xff]  ;;  %vm425_vm1 = vcmask 736256  }
  0x10   : > { %s283_s7 = scalar_select %p282_p6, %s1124_s26, 35  ;;  %v946_v8 = vld [vmem:[%s1340_s2] sm:$0xff]  ;;  %vm724_vm2 = vcmask 216064  }
  0x11   : > { %v452_v3 = vsel %vm450_vm0, %v919_v2, 0  ;;  %s974_s8 = smul.u32 36, %s1354_s16  ;;  %s859_s11 = sshll.u32 %s1356_s30, 2  ;;  %v1245_v49 = vld [vmem:[%s1341_s3] ss:$0 sm:$0xff] }
  0x12   : > { %962 = vmatpush.bf16.msra.mxu2 %v452_v3  ;;  %963 = vmatpush.bf16.msra.mxu3 %v452_v3  ;;  %p300_p8 = scmp.lt.s32.totalorder %s859_s11, 35  ;;  %s1360_s26 = smov (!%p314_p9, %s1124_s26), 31 }
  0x13   : > { %525 = vmatpush.bf16.msra.mxu1 %v452_v3  ;;  %456 = vmatpush.bf16.msra.mxu0 %v452_v3  ;;  %s285_s12 = sadd.s32 %s974_s8, %s283_s7  ;;  %s1058_s7 = smov 64  }
  0x14   : > { %s1358_s11 = smov (!%p300_p8, %s859_s11), 35  ;;  %s857_s15 = sshll.u32 %s285_s12, 2 }
  0x15   : > { %s303_s22 = sadd.s32 %s974_s8, %s1358_s11  ;;  %s287_s29 = scalar_lea.vmem %s1338_s0, %s857_s15 }
  0x16   : > { %964 = vmatpush.bf16.msra.mxu2 %v950_v4  ;;  %965 = vmatpush.bf16.msra.mxu3 %v950_v4  ;;  %s860_s23 = sshll.u32 %s303_s22, 2  ;;  %v955_v9 = vld [vmem:[%s287_s29 + $0x18] sm:$0xff]  ;;  %v958_v10 = vld [vmem:[%s287_s29 + $0x30] sm:$0xff]  ;;  %v952_v12 = vld [vmem:[%s287_s29] sm:$0xff]  ;;  %s1059_s8 = smov 96  }
  0x17   : > { %526 = vmatpush.bf16.msra.mxu1 %v950_v4  ;;  %457 = vmatpush.bf16.msra.mxu0 %v950_v4  ;;  %s305_s6 = scalar_lea.vmem %s1339_s1, %s860_s23  ;;  %v956_v13 = vld [vmem:[%s287_s29 + $0x20] sm:$0xff]  ;;  %v959_v14 = vld [vmem:[%s287_s29 + $0x38] sm:$0xff]  ;;  %v953_v15 = vld [vmem:[%s287_s29 + $0x8] sm:$0xff]  ;;  %s862_s9 = sshll.u32 %s1354_s16, 5 }
  0x18   : > { %v960_v11 = vld [vmem:[%s305_s6] sm:$0xff]  ;;  %v961_v16 = vld [vmem:[%s305_s6 + $0x8] sm:$0xff]  ;;  %v954_v18 = vld [vmem:[%s287_s29 + $0x10] sm:$0xff]  ;;  %s317_s10 = sadd.s32 %s862_s9, %s1360_s26 }
  0x19   : > { %v957_v17 = vld [vmem:[%s287_s29 + $0x28] sm:$0xff]  ;;  %s863_s13 = sshll.u32 %s317_s10, 2 }
  0x1a   : > { %966 = vmatpush.bf16.msra.mxu2 %v949_v5  ;;  %967 = vmatpush.bf16.msra.mxu3 %v949_v5  ;;  %s1251_s22 = scalar_lea.vmem %s1342_s4, %s863_s13 }
  0x1b   : > { %527 = vmatpush.bf16.msra.mxu1 %v949_v5  ;;  %458 = vmatpush.bf16.msra.mxu0 %v949_v5 }
  0x1e   : > { %968 = vmatpush.bf16.msra.mxu2 %v948_v6  ;;  %969 = vmatpush.bf16.msra.mxu3 %v948_v6 }
  0x1f   : > { %528 = vmatpush.bf16.msra.mxu1 %v948_v6  ;;  %459 = vmatpush.bf16.msra.mxu0 %v948_v6 }
  0x22   : > { %970 = vmatpush.bf16.msra.mxu2 %v947_v7  ;;  %971 = vmatpush.bf16.msra.mxu3 %v947_v7 }
  0x23   : > { %529 = vmatpush.bf16.msra.mxu1 %v947_v7  ;;  %460 = vmatpush.bf16.msra.mxu0 %v947_v7 }
  0x26   : > { %972 = vmatpush.bf16.msra.mxu2 %v946_v8  ;;  %973 = vmatpush.bf16.msra.mxu3 %v946_v8 }
  0x27   : > { %530 = vmatpush.bf16.msra.mxu1 %v946_v8  ;;  %461 = vmatpush.bf16.msra.mxu0 %v946_v8 }
  0x29   : > { %923 = vmatmul.msk.bf16.vlgmr.msra.gmra.mxu2 %vm425_vm1, %v955_v9  ;;  %926 = vmatmul.msk.bf16.vlgmr.msra.gmra.mxu3 %vm425_vm1, %v958_v10 }
  0x2a   : > { %936 = vmatmul.msk.bf16.vlgmr.msra.gmra.mxu1 %vm425_vm1, %v960_v11  ;;  %920 = vmatmul.msk.bf16.vlgmr.msra.gmra.mxu0 %vm425_vm1, %v952_v12 }
  0x39   : > { %924 = vmatmul.msk.bf16.gmra.mxu2 %vm425_vm1, %v956_v13  ;;  %927 = vmatmul.msk.bf16.gmra.mxu3 %vm425_vm1, %v959_v14 }
  0x3a   : > { %921 = vmatmul.msk.bf16.gmra.mxu0 %vm425_vm1, %v953_v15  ;;  %937 = vmatmul.msk.bf16.gmra.mxu1 %vm425_vm1, %v961_v16 }
  0x49   : > { %925 = vmatmul.msk.bf16.gmra.mxu2 %vm425_vm1, %v957_v17 }
  0x4a   : > { %922 = vmatmul.msk.bf16.gmra.mxu0 %vm425_vm1, %v954_v18 }
  0xa7   : > { %v532_v19 = vpop.f32.mrf.mxu1  ;;  %v1169_v21 = vpop.f32.mrf.mxu0 }
  0xa8   : > { %648 = vrot.lane.b32.xlu1 %v532_v19, %s1058_s7  ;;  %586 = vrot.lane.b32.xlu2 %v532_v19, %s1059_s8 }
  0xac   : > { %v1165_v20 = vpop.f32.mrf.mxu2  ;;  %v1171_v22 = vpop.f32.mrf.mxu3 }
  0xad   : > { %628 = vrot.lane.b32.xlu0 %v1165_v20, %s1058_s7 }
  0xaf   : > { %v1185_v24 = vpop.f32.mrf.mxu0  ;;  %v534_v25 = vpop.f32.mrf.mxu1 }
  0xb0   : > { %578 = vrot.lane.b32.xlu1 %v1171_v22, %s1059_s8  ;;  %566 = vrot.lane.b32.xlu2 %v1165_v20, %s1059_s8 }
  0xb4   : > { %v1177_v23 = vpop.f32.mrf.mxu2  ;;  %v1187_v26 = vpop.f32.mrf.mxu3 }
  0xb5   : > { %640 = vrot.lane.b32.xlu0 %v1171_v22, %s1058_s7 }
  0xb7   : > { %v1196_v28 = vpop.f32.mrf.mxu0  ;;  %v537_v37 = vpop.f32.mrf.mxu1 }
  0xb8   : > { %630 = vrot.lane.b32.xlu1 %v1177_v23, %s1058_s7  ;;  %568 = vrot.lane.b32.xlu2 %v1177_v23, %s1059_s8 }
  0xbc   : > { %v1189_v27 = vpop.f32.mrf.mxu2  ;;  %v498_v29 = vpop.f32.mrf.mxu3 }
  0xbd   : > { %588 = vrot.lane.b32.xlu0 %v534_v25, %s1059_s8 }
  0xbf   : > { %v1206_v31 = vpop.f32.mrf.mxu0  ;;  %v539_v38 = vpop.f32.mrf.mxu1 }
  0xc0   : > { %642 = vrot.lane.b32.xlu1 %v1187_v26, %s1058_s7  ;;  %580 = vrot.lane.b32.xlu2 %v1187_v26, %s1059_s8 }
  0xc4   : > { %v1200_v30 = vpop.f32.mrf.mxu2  ;;  %v1210_v32 = vpop.f32.mrf.mxu3 }
  0xc5   : > { %558 = vrot.lane.b32.xlu0 %v1196_v28, %s1059_s8 }
  0xc7   : > { %v473_v33 = vpop.f32.mrf.mxu0 }
  0xc8   : > { %632 = vrot.lane.b32.xlu2 %v1189_v27, %s1058_s7  ;;  %572 = vrot.lane.b32.xlu1 %v1200_v30, %s1059_s8 }
  0xcc   : > { %v488_v34 = vpop.f32.mrf.mxu2 }
  0xcd   : > { %570 = vrot.lane.b32.xlu0 %v1189_v27, %s1059_s8 }
  0xcf   : > { %v475_v35 = vpop.f32.mrf.mxu0 }
  0xd0   : > { %644 = vrot.lane.b32.xlu2 %v498_v29, %s1058_s7  ;;  %584 = vrot.lane.b32.xlu1 %v1210_v32, %s1059_s8 }
  0xd4   : > { %v490_v36 = vpop.f32.mrf.mxu2 }
  0xd5   : > { %582 = vrot.lane.b32.xlu0 %v498_v29, %s1059_s8 }
  0xd8   : > { %574 = vrot.lane.b32.xlu2 %v488_v34, %s1059_s8  ;;  %562 = vrot.lane.b32.xlu1 %v473_v33, %s1059_s8 }
  0xdd   : > { %560 = vrot.lane.b32.xlu0 %v1206_v31, %s1059_s8 }
  0xe0   : > { %624 = vrot.lane.b32.xlu1 %v473_v33, %s1058_s7  ;;  %626 = vrot.lane.b32.xlu2 %v475_v35, %s1058_s7 }
  0xe5   : > { %634 = vrot.lane.b32.xlu0 %v1200_v30, %s1058_s7 }
  0xe8   : > { %636 = vrot.lane.b32.xlu1 %v488_v34, %s1058_s7  ;;  %638 = vrot.lane.b32.xlu2 %v490_v36, %s1058_s7 }
  0xed   : > { %646 = vrot.lane.b32.xlu0 %v1210_v32, %s1058_s7 }
  0xf0   : > { %650 = vrot.lane.b32.xlu2 %v534_v25, %s1058_s7  ;;  %564 = vrot.lane.b32.xlu1 %v475_v35, %s1059_s8 }
  0xf5   : > { %576 = vrot.lane.b32.xlu0 %v490_v36, %s1059_s8 }
  0xf8   : > { %654 = vrot.lane.b32.xlu1 %v539_v38, %s1058_s7 }
  0xfd   : > { %652 = vrot.lane.b32.xlu0 %v537_v37, %s1058_s7 }
 0x102   : > { %v587_v39 = vpop.permute.xlu2 %586 }
 0x103   : > { %v1233_v40 = vadd.f32 %v587_v39, %v498_v29 }
 0x10a   : > { %v567_v41 = vpop.permute.xlu2 %566 }
 0x10b   : > { %v610_v48 = vadd.f32 %v567_v41, %v473_v33 }
 0x112   : > { %v569_v42 = vpop.permute.xlu2 %568 }
 0x113   : > { %v1235_v43 = vadd.f32 %v569_v42, %v475_v35 }
 0x11a   : > { %v649_v44 = vpop.permute.xlu1 %648  ;;  %v581_v45 = vpop.permute.xlu2 %580 }
 0x11b   : > { %v1238_v46 = vadd.f32 %v581_v45, %v490_v36 }
 0x11f   : > { %v629_v47 = vpop.permute.xlu0 %628 }
 0x122   : > { %v579_v50 = vpop.permute.xlu1 %578  ;;  %v633_v51 = vpop.permute.xlu2 %632 }
 0x123   : > { %v676_v52 = vadd.f32 %v633_v51, %v610_v48  ;;  %v616_v56 = vadd.f32 %v579_v50, %v488_v34 }
 0x125   : > { %v696_v53 = vadd.f32 %v1245_v49, %v676_v52 }
 0x127   : > { %v712_v54 = vpack.c.bf16 %v696_v53, %v696_v53  ;;  %v641_v55 = vpop.permute.xlu0 %640 }
 0x129   : > { %729 = vst.msk [vmem:[%s1251_s22 + $0x10] sm:$0xf] %vm724_vm2, %v712_v54 }
 0x12a   : > { %v1255_v57 = vpop.permute.xlu1 %630  ;;  %v645_v58 = vpop.permute.xlu2 %644 }
 0x12b   : > { %v682_v59 = vadd.f32 %v645_v58, %v616_v56 }
 0x12d   : > { %v702_v60 = vadd.f32 %v1245_v49, %v682_v59 }
 0x12f   : > { %v718_v61 = vpack.c.bf16 %v702_v60, %v702_v60  ;;  %v1258_v62 = vpop.permute.xlu0 %588 }
 0x131   : > { %735 = vst.msk [vmem:[%s1251_s22 + $0x28] sm:$0xf] %vm724_vm2, %v718_v61 }
 0x132   : > { %v1262_v63 = vpop.permute.xlu1 %642  ;;  %v575_v0 = vpop.permute.xlu2 %574 }
 0x133   : > { %v614_v1 = vadd.f32 %v575_v0, %v1189_v27 }
 0x135   : > { %v680_v2 = vadd.f32 %v641_v55, %v614_v1 }
 0x137   : > { %v700_v3 = vadd.f32 %v1245_v49, %v680_v2  ;;  %v559_v4 = vpop.permute.xlu0 %558 }
 0x139   : > { %v716_v5 = vpack.c.bf16 %v700_v3, %v700_v3 }
 0x13a   : > { %v573_v6 = vpop.permute.xlu1 %572  ;;  %v627_v7 = vpop.permute.xlu2 %626 }
 0x13b   : > { %733 = vst.msk [vmem:[%s1251_s22 + $0x20] sm:$0xf] %vm724_vm2, %v716_v5  ;;  %v613_v9 = vadd.f32 %v573_v6, %v1177_v23 }
 0x13f   : > { %v571_v8 = vpop.permute.xlu0 %570 }
 0x140   : > { %v612_v50 = vadd.f32 %v571_v8, %v1165_v20 }
 0x142   : > { %v585_v10 = vpop.permute.xlu1 %584  ;;  %v639_v11 = vpop.permute.xlu2 %638 }
 0x143   : > { %v679_v12 = vadd.f32 %v639_v11, %v613_v9  ;;  %v619_v17 = vadd.f32 %v585_v10, %v1187_v26 }
 0x145   : > { %v699_v13 = vadd.f32 %v1245_v49, %v679_v12 }
 0x147   : > { %v715_v14 = vpack.c.bf16 %v699_v13, %v699_v13  ;;  %v583_v15 = vpop.permute.xlu0 %582 }
 0x148   : > { %v618_v16 = vadd.f32 %v583_v15, %v1171_v22 }
 0x149   : > { %732 = vst.msk [vmem:[%s1251_s22 + $0x1c] sm:$0xf] %vm724_vm2, %v715_v14 }
 0x14a   : > { %v684_v18 = vadd.f32 %v649_v44, %v618_v16  ;;  %v563_v19 = vpop.permute.xlu1 %562  ;;  %v651_v25 = vpop.permute.xlu2 %650 }
 0x14b   : > { %v608_v23 = vadd.f32 %v563_v19, %v1196_v28  ;;  %v685_v27 = vadd.f32 %v651_v25, %v619_v17  ;;  %v606_v28 = vadd.f32 %v559_v4, %v1169_v21 }
 0x14c   : > { %v704_v29 = vadd.f32 %v1245_v49, %v684_v18 }
 0x14d   : > { %v674_v33 = vadd.f32 %v629_v47, %v608_v23  ;;  %v705_v34 = vadd.f32 %v1245_v49, %v685_v27 }
 0x14e   : > { %v720_v35 = vpack.c.bf16 %v704_v29, %v704_v29 }
 0x14f   : > { %v694_v22 = vadd.f32 %v1245_v49, %v674_v33  ;;  %v721_v36 = vpack.c.bf16 %v705_v34, %v705_v34  ;;  %v561_v26 = vpop.permute.xlu0 %560 }
 0x150   : > { %737 = vst.msk [vmem:[%s1251_s22 + $0x30] sm:$0xf] %vm724_vm2, %v720_v35  ;;  %v607_v37 = vadd.f32 %v561_v26, %v1185_v24 }
 0x151   : > { %v710_v38 = vpack.c.bf16 %v694_v22, %v694_v22  ;;  %738 = vst.msk [vmem:[%s1251_s22 + $0x34] sm:$0xf] %vm724_vm2, %v721_v36 }
 0x152   : > { %v673_v39 = vadd.f32 %v627_v7, %v607_v37  ;;  %v625_v41 = vpop.permute.xlu1 %624 }
 0x153   : > { %727 = vst.msk [vmem:[%s1251_s22 + $0x8] sm:$0xf] %vm724_vm2, %v710_v38  ;;  %v672_v42 = vadd.f32 %v625_v41, %v606_v28 }
 0x154   : > { %v693_v44 = vadd.f32 %v1245_v49, %v673_v39 }
 0x155   : > { %v692_v45 = vadd.f32 %v1245_v49, %v672_v42 }
 0x156   : > { %v709_v47 = vpack.c.bf16 %v693_v44, %v693_v44 }
 0x157   : > { %v708_v48 = vpack.c.bf16 %v692_v45, %v692_v45  ;;  %v635_v24 = vpop.permute.xlu0 %634 }
 0x158   : > { %726 = vst.msk [vmem:[%s1251_s22 + $0x4] sm:$0xf] %vm724_vm2, %v709_v47  ;;  %v677_v21 = vadd.f32 %v635_v24, %v1235_v43 }
 0x159   : > { %725 = vst.msk [vmem:[%s1251_s22] sm:$0xf] %vm724_vm2, %v708_v48 }
 0x15a   : > { %v697_v51 = vadd.f32 %v1245_v49, %v677_v21  ;;  %v637_v52 = vpop.permute.xlu1 %636 }
 0x15b   : > { %v678_v53 = vadd.f32 %v637_v52, %v612_v50 }
 0x15c   : > { %v713_v54 = vpack.c.bf16 %v697_v51, %v697_v51 }
 0x15d   : > { %v698_v55 = vadd.f32 %v1245_v49, %v678_v53 }
 0x15e   : > { %730 = vst.msk [vmem:[%s1251_s22 + $0x14] sm:$0xf] %vm724_vm2, %v713_v54 }
 0x15f   : > { %v714_v56 = vpack.c.bf16 %v698_v55, %v698_v55  ;;  %v647_v58 = vpop.permute.xlu0 %646 }
 0x160   : > { %v683_v59 = vadd.f32 %v647_v58, %v1238_v46  ;;  %v621_v46 = vadd.f32 %v1258_v62, %v1210_v32 }
 0x161   : > { %731 = vst.msk [vmem:[%s1251_s22 + $0x18] sm:$0xf] %vm724_vm2, %v714_v56 }
 0x162   : > { %v703_v20 = vadd.f32 %v1245_v49, %v683_v59  ;;  %v565_v43 = vpop.permute.xlu1 %564 }
 0x163   : > { %v609_v60 = vadd.f32 %v565_v43, %v1206_v31 }
 0x164   : > { %v719_v61 = vpack.c.bf16 %v703_v20, %v703_v20 }
 0x165   : > { %v675_v0 = vadd.f32 %v1255_v57, %v609_v60 }
 0x166   : > { %736 = vst.msk [vmem:[%s1251_s22 + $0x2c] sm:$0xf] %vm724_vm2, %v719_v61 }
 0x167   : > { %v695_v1 = vadd.f32 %v1245_v49, %v675_v0  ;;  %v577_v2 = vpop.permute.xlu0 %576 }
 0x168   : > { %v615_v3 = vadd.f32 %v577_v2, %v1200_v30 }
 0x169   : > { %v711_v4 = vpack.c.bf16 %v695_v1, %v695_v1 }
 0x16a   : > { %v681_v5 = vadd.f32 %v1262_v63, %v615_v3  ;;  %v655_v31 = vpop.permute.xlu1 %654 }
 0x16b   : > { %728 = vst.msk [vmem:[%s1251_s22 + $0xc] sm:$0xf] %vm724_vm2, %v711_v4  ;;  %v687_v57 = vadd.f32 %v655_v31, %v621_v46 }
 0x16c   : > { %v701_v6 = vadd.f32 %v1245_v49, %v681_v5 }
 0x16d   : > { %v707_v7 = vadd.f32 %v1245_v49, %v687_v57 }
 0x16e   : > { %v717_v8 = vpack.c.bf16 %v701_v6, %v701_v6 }
 0x16f   : > { %v723_v9 = vpack.c.bf16 %v707_v7, %v707_v7  ;;  %v653_v10 = vpop.permute.xlu0 %652 }
 0x170   : > { %734 = vst.msk [vmem:[%s1251_s22 + $0x24] sm:$0xf] %vm724_vm2, %v717_v8  ;;  %v686_v30 = vadd.f32 %v653_v10, %v1233_v40 }
 0x171   : > { %740 = vst.msk [vmem:[%s1251_s22 + $0x3c] sm:$0xf] %vm724_vm2, %v723_v9 }
 0x172   : > { %v706_v32 = vadd.f32 %v1245_v49, %v686_v30 }
 0x174   : > { %v722_v62 = vpack.c.bf16 %v706_v32, %v706_v32 }
 0x176   : > { %739 = vst.msk [vmem:[%s1251_s22 + $0x38] sm:$0xf] %vm724_vm2, %v722_v62 }
 0x177 PF: > { %s14_s19 = sadd.s32 1, %s1056_s19   ;;  %s1343_s15 = smov %s1048_s17 }
 0x178   : > { %p11_p10 = scmp.ge.s32.totalorder %s14_s19, 6   ;;  %s1344_s16 = smov %s1052_s18 }
 0x179   : > { %s1345_s17 = smov %s1348_s20  ;;  %s1346_s18 = smov %s1352_s21 }
 0x17a   :  { %13 = sbr.rel (!%p11_p10) target bundleno = 3 (0x3), region = 69 }

</bundles_post_ra>
